<compile_context>
chip_gen: v6e
topology: v6e:2x2x1
jax: 0.10.0
libtpu: 0.0.40
codegen_flags: <defaults>
</compile_context>

<pallas_src>
from math import sqrt

import jax
import jax.numpy as jnp
from jax.experimental import pallas as pl
from jax.experimental.pallas import tpu as pltpu

_VMEM_LIMIT = 24 * 1024 * 1024


def _round_up(x, m):
    return (x + m - 1) // m * m


def _choose_m_tiling(m):
    """Pad M only to the f32 sublane (8); split large M into <=256-row tiles
    (>=2 tiles when possible so both v7x TensorCores get work)."""
    mp8 = _round_up(m, 8)
    if mp8 <= 128:
        return mp8, mp8                       # single tile, minimal padding
    nt = max(2, pl.cdiv(mp8, 256))
    tm = _round_up(pl.cdiv(mp8, nt), 8)
    return tm, tm * nt


# ---------------------------------------------------------------------------
# Kernels
# ---------------------------------------------------------------------------

def _mm_bias_relu_kernel(x_ref, w_ref, b_ref, o_ref):
    # bf16 MXU inputs, f32 accumulate, f32 epilogue.
    x = x_ref[...].astype(jnp.bfloat16)
    acc = jnp.dot(x, w_ref[...], preferred_element_type=jnp.float32)
    o_ref[...] = jnp.maximum(acc + b_ref[...], 0.0)


def _fused_mm2_bias_relu_kernel(x_ref, w1_ref, b1_ref, w2_ref, b2_ref,
                                o1_ref, o2_ref):
    # Stage 1: 3x3 conv (as matmul on im2col rows) + bias + ReLU.
    x = x_ref[...].astype(jnp.bfloat16)
    h = jnp.dot(x, w1_ref[...], preferred_element_type=jnp.float32)
    o1_ref[...] = jnp.maximum(h + b1_ref[...], 0.0)
    # Stage 2: following 1x1 conv on the stage-1 output, still in VMEM.
    h2 = jnp.dot(o1_ref[...].astype(jnp.bfloat16), w2_ref[...],
                 preferred_element_type=jnp.float32)
    o2_ref[...] = jnp.maximum(h2 + b2_ref[...], 0.0)


# ---------------------------------------------------------------------------
# pallas_call wrappers
# ---------------------------------------------------------------------------

def matmul_bias_relu(x, w, b):
    """relu(x @ w + b); x: (M, K) f32, w: (K, N) bf16, b: (1, N) f32."""
    m, k = x.shape
    _, n = w.shape
    tm, mp = _choose_m_tiling(m)
    xp = jnp.pad(x, ((0, mp - m), (0, 0))) if mp != m else x

    out = pl.pallas_call(
        _mm_bias_relu_kernel,
        out_shape=jax.ShapeDtypeStruct((mp, n), jnp.float32),
        grid=(mp // tm,),
        in_specs=[
            pl.BlockSpec((tm, k), lambda i: (i, 0)),
            pl.BlockSpec((k, n), lambda i: (0, 0)),
            pl.BlockSpec((1, n), lambda i: (0, 0)),
        ],
        out_specs=pl.BlockSpec((tm, n), lambda i: (i, 0)),
        compiler_params=pltpu.CompilerParams(
            dimension_semantics=("parallel",),
            vmem_limit_bytes=_VMEM_LIMIT,
        ),
    )(xp, w, b)
    return out[:m] if mp != m else out


def fused_mm2_bias_relu(x, w1, b1, w2, b2):
    """o1 = relu(x @ w1 + b1); o2 = relu(o1 @ w2 + b2) in one kernel."""
    m, k = x.shape
    _, n1 = w1.shape
    _, n2 = w2.shape
    tm, mp = _choose_m_tiling(m)
    xp = jnp.pad(x, ((0, mp - m), (0, 0))) if mp != m else x

    o1, o2 = pl.pallas_call(
        _fused_mm2_bias_relu_kernel,
        out_shape=(jax.ShapeDtypeStruct((mp, n1), jnp.float32),
                   jax.ShapeDtypeStruct((mp, n2), jnp.float32)),
        grid=(mp // tm,),
        in_specs=[
            pl.BlockSpec((tm, k), lambda i: (i, 0)),
            pl.BlockSpec((k, n1), lambda i: (0, 0)),
            pl.BlockSpec((1, n1), lambda i: (0, 0)),
            pl.BlockSpec((n1, n2), lambda i: (0, 0)),
            pl.BlockSpec((1, n2), lambda i: (0, 0)),
        ],
        out_specs=(pl.BlockSpec((tm, n1), lambda i: (i, 0)),
                   pl.BlockSpec((tm, n2), lambda i: (i, 0))),
        compiler_params=pltpu.CompilerParams(
            dimension_semantics=("parallel",),
            vmem_limit_bytes=_VMEM_LIMIT,
        ),
    )(xp, w1, b1, w2, b2)
    if mp != m:
        o1, o2 = o1[:m], o2[:m]
    return o1, o2


# ---------------------------------------------------------------------------
# im2col (wrapper glue, 3x3 convs only)
# ---------------------------------------------------------------------------

def _im2col_nhwc(x, kh, kw, stride, pad):
    """x: (N,H,W,C) -> (N,Ho,Wo,C*kh*kw); feature order (C, kh, kw) matches the
    flattening of the PyTorch weight (C_out, C_in, kh, kw).reshape(C_out, -1)."""
    if pad:
        x = jnp.pad(x, ((0, 0), (pad, pad), (pad, pad), (0, 0)))
    n, h, w, c = x.shape
    ho = (h - kh) // stride + 1
    wo = (w - kw) // stride + 1
    cols = []
    for dy in range(kh):
        for dx in range(kw):
            cols.append(
                x[:, dy:dy + (ho - 1) * stride + 1:stride,
                  dx:dx + (wo - 1) * stride + 1:stride, :])
    patches = jnp.stack(cols, axis=-1)                  # (N,Ho,Wo,C,kh*kw)
    return patches.reshape(n, ho, wo, c * kh * kw), ho, wo


# ---------------------------------------------------------------------------
# AuxLayers: parameters + forward pass
# ---------------------------------------------------------------------------

_CONV_DEFS = [
    # name,       (C_out, C_in, kh, kw), stride, pad
    ("conv8_1",  (256, 1024, 1, 1), 1, 0),
    ("conv8_2",  (512,  256, 3, 3), 2, 1),
    ("conv9_1",  (128,  512, 1, 1), 1, 0),
    ("conv9_2",  (256,  128, 3, 3), 2, 1),
    ("conv10_1", (128,  256, 1, 1), 1, 0),
    ("conv10_2", (256,  128, 3, 3), 1, 0),
    ("conv11_1", (128,  256, 1, 1), 1, 0),
    ("conv11_2", (256,  128, 3, 3), 1, 0),
]
_LAYER_CFG = {name: (shape, stride, pad) for name, shape, stride, pad in _CONV_DEFS}


def _xavier_uniform(key, shape):
    c_out, c_in, kh, kw = shape
    fan_in = c_in * kh * kw
    fan_out = c_out * kh * kw
    bound = sqrt(6.0 / (fan_in + fan_out))
    return jax.random.uniform(key, shape, jnp.float32, -bound, bound)


def init_aux_params(key):
    """Weights pre-laid-out ONCE as (K, C_out) bf16; biases as (1, C_out) f32."""
    params = {}
    keys = jax.random.split(key, len(_CONV_DEFS))
    for k, (name, shape, _, _) in zip(keys, _CONV_DEFS):
        c_out, c_in, kh, kw = shape
        w = _xavier_uniform(k, shape)
        params[name] = {
            "w": w.reshape(c_out, c_in * kh * kw).T.astype(jnp.bfloat16),
            "b": jnp.zeros((1, c_out), jnp.float32),   # nn.init.constant_(bias, 0.)
        }
    return params


def aux_layers_forward(conv7_features_nchw, params):
    """Matches AuxLayers.forward. Input/outputs are NCHW like PyTorch."""
    out = jnp.transpose(conv7_features_nchw, (0, 2, 3, 1))      # NCHW -> NHWC
    n, h, w, _ = out.shape

    # conv8_1 (1x1): no im2col, just a reshape -> matmul kernel.
    p = params["conv8_1"]
    out = matmul_bias_relu(out.reshape(n * h * w, -1), p["w"], p["b"])
    out = out.reshape(n, h, w, -1)

    feats = []
    # Each 3x3 conv fused with the following 1x1 conv in one pallas_call.
    for name3, name1 in (("conv8_2", "conv9_1"),
                         ("conv9_2", "conv10_1"),
                         ("conv10_2", "conv11_1")):
        shape3, s, pd = _LAYER_CFG[name3]
        _, _, kh, kw = shape3
        patches, ho, wo = _im2col_nhwc(out, kh, kw, s, pd)
        x2 = patches.reshape(n * ho * wo, -1)
        p3, p1 = params[name3], params[name1]
        ft, nxt = fused_mm2_bias_relu(x2, p3["w"], p3["b"], p1["w"], p1["b"])
        feats.append(jnp.transpose(ft.reshape(n, ho, wo, -1), (0, 3, 1, 2)))
        out = nxt.reshape(n, ho, wo, -1)

    # conv11_2 (3x3, stride 1, pad 0): final single matmul kernel.
    shape3, s, pd = _LAYER_CFG["conv11_2"]
    _, _, kh, kw = shape3
    patches, ho, wo = _im2col_nhwc(out, kh, kw, s, pd)
    p = params["conv11_2"]
    ft = matmul_bias_relu(patches.reshape(n * ho * wo, -1), p["w"], p["b"])
    feats.append(jnp.transpose(ft.reshape(n, ho, wo, -1), (0, 3, 1, 2)))

    return tuple(feats)


if __name__ == "__main__":
    key = jax.random.PRNGKey(0)
    pkey, xkey = jax.random.split(key)
    params = init_aux_params(pkey)

    # conv7 features in SSD: (N, 1024, 19, 19) — small batch of 2.
    x = jax.random.normal(xkey, (2, 1024, 19, 19), jnp.float32)

    outs = jax.jit(aux_layers_forward)(x, params)
    outs = jax.block_until_ready(outs)

    expected = [
        (2, 512, 10, 10),   # conv8_2
        (2, 256, 5, 5),     # conv9_2
        (2, 256, 3, 3),     # conv10_2
        (2, 256, 1, 1),     # conv11_2
    ]
    for o, e in zip(outs, expected):
        assert o.shape == e, (o.shape, e)
        assert bool(jnp.all(o >= 0.0)), "ReLU output must be non-negative"

    print("KERNEL_OK")
</pallas_src>

<mosaic_0001>
module attributes {stable_mosaic.version = 11 : i64} {
  func.func @_mm_bias_relu_kernel(%arg0: i32, %arg1: memref<248x1024xf32, #tpu.memory_space<vmem>>, %arg2: memref<1024x256xbf16, #tpu.memory_space<vmem>>, %arg3: memref<1x256xf32, #tpu.memory_space<vmem>>, %arg4: memref<248x256xf32, #tpu.memory_space<vmem>>) attributes {dimension_semantics = [#tpu.dimension_semantics<parallel>], iteration_bounds = array<i64: 3>, scalar_prefetch = 0 : i64, scratch_operands = 0 : i64, tpu.core_type = #tpu.core_type<tc>, window_params = [{transform_indices = @transform_0, window_bounds = array<i64: 248, 1024>}, {pipeline_mode = #tpu.pipeline_mode<synchronous>, transform_indices = @transform_1, window_bounds = array<i64: 1024, 256>}, {pipeline_mode = #tpu.pipeline_mode<synchronous>, transform_indices = @transform_2, window_bounds = array<i64: 1, 256>}, {transform_indices = @transform_3, window_bounds = array<i64: 248, 256>}]} {
    %c0 = arith.constant 0 : index
    %c0_0 = arith.constant 0 : index
    %0 = vector.load %arg1[%c0, %c0_0] : memref<248x1024xf32, #tpu.memory_space<vmem>>, vector<248x1024xf32>
    %1 = arith.truncf %0 : vector<248x1024xf32> to vector<248x1024xbf16>
    %c0_1 = arith.constant 0 : index
    %c0_2 = arith.constant 0 : index
    %2 = vector.load %arg2[%c0_1, %c0_2] : memref<1024x256xbf16, #tpu.memory_space<vmem>>, vector<1024x256xbf16>
    %cst = arith.constant dense<0.000000e+00> : vector<248x256xf32>
    %3 = tpu.matmul %1, %2, %cst {dimension_numbers = #tpu.dot_dimension_numbers<[1], [0], [0], [1], [0, 0, 1, 1], [], []>} : vector<248x1024xbf16>, vector<1024x256xbf16>, vector<248x256xf32> -> vector<248x256xf32>
    %c0_3 = arith.constant 0 : index
    %c0_4 = arith.constant 0 : index
    %4 = vector.load %arg3[%c0_3, %c0_4] : memref<1x256xf32, #tpu.memory_space<vmem>>, vector<1x256xf32>
    %5 = vector.broadcast %4 : vector<1x256xf32> to vector<248x256xf32>
    %6 = arith.addf %3, %5 : vector<248x256xf32>
    %cst_5 = arith.constant 0.000000e+00 : f32
    %7 = vector.broadcast %cst_5 : f32 to vector<248x256xf32>
    %8 = arith.maximumf %6, %7 : vector<248x256xf32>
    %c0_6 = arith.constant 0 : index
    %c0_7 = arith.constant 0 : index
    %9 = vector.load %arg4[%c0_6, %c0_7] : memref<248x256xf32, #tpu.memory_space<vmem>>, vector<248x256xf32>
    tpu.vector_store %arg4[%c0_6, %c0_7], %8 {strides = array<i32>} : memref<248x256xf32, #tpu.memory_space<vmem>>, vector<248x256xf32>,
    return
  }
  func.func @transform_0(%arg0: i32) -> (i32, i32) {
    %c0_i32 = arith.constant 0 : i32
    %c0_i32_0 = arith.constant 0 : i32
    return %arg0, %c0_i32 : i32, i32
  }
  func.func @transform_1(%arg0: i32) -> (i32, i32) {
    %c0_i32 = arith.constant 0 : i32
    %c0_i32_0 = arith.constant 0 : i32
    %c0_i32_1 = arith.constant 0 : i32
    return %c0_i32, %c0_i32_0 : i32, i32
  }
  func.func @transform_2(%arg0: i32) -> (i32, i32) {
    %c0_i32 = arith.constant 0 : i32
    %c0_i32_0 = arith.constant 0 : i32
    %c0_i32_1 = arith.constant 0 : i32
    return %c0_i32, %c0_i32_0 : i32, i32
  }
  func.func @transform_3(%arg0: i32) -> (i32, i32) {
    %c0_i32 = arith.constant 0 : i32
    %c0_i32_0 = arith.constant 0 : i32
    return %arg0, %c0_i32 : i32, i32
  }
}

module attributes {stable_mosaic.version = 11 : i64} {
  func.func @_fused_mm2_bias_relu_kernel(%arg0: i32, %arg1: memref<104x2304xf32, #tpu.memory_space<vmem>>, %arg2: memref<2304x512xbf16, #tpu.memory_space<vmem>>, %arg3: memref<1x512xf32, #tpu.memory_space<vmem>>, %arg4: memref<512x128xbf16, #tpu.memory_space<vmem>>, %arg5: memref<1x128xf32, #tpu.memory_space<vmem>>, %arg6: memref<104x512xf32, #tpu.memory_space<vmem>>, %arg7: memref<104x128xf32, #tpu.memory_space<vmem>>) attributes {dimension_semantics = [#tpu.dimension_semantics<parallel>], iteration_bounds = array<i64: 2>, scalar_prefetch = 0 : i64, scratch_operands = 0 : i64, tpu.core_type = #tpu.core_type<tc>, window_params = [{transform_indices = @transform_0, window_bounds = array<i64: 104, 2304>}, {pipeline_mode = #tpu.pipeline_mode<synchronous>, transform_indices = @transform_1, window_bounds = array<i64: 2304, 512>}, {pipeline_mode = #tpu.pipeline_mode<synchronous>, transform_indices = @transform_2, window_bounds = array<i64: 1, 512>}, {pipeline_mode = #tpu.pipeline_mode<synchronous>, transform_indices = @transform_3, window_bounds = array<i64: 512, 128>}, {pipeline_mode = #tpu.pipeline_mode<synchronous>, transform_indices = @transform_4, window_bounds = array<i64: 1, 128>}, {transform_indices = @transform_5, window_bounds = array<i64: 104, 512>}, {transform_indices = @transform_6, window_bounds = array<i64: 104, 128>}]} {
    %c0 = arith.constant 0 : index
    %c0_0 = arith.constant 0 : index
    %0 = vector.load %arg1[%c0, %c0_0] : memref<104x2304xf32, #tpu.memory_space<vmem>>, vector<104x2304xf32>
    %1 = arith.truncf %0 : vector<104x2304xf32> to vector<104x2304xbf16>
    %c0_1 = arith.constant 0 : index
    %c0_2 = arith.constant 0 : index
    %2 = vector.load %arg2[%c0_1, %c0_2] : memref<2304x512xbf16, #tpu.memory_space<vmem>>, vector<2304x512xbf16>
    %cst = arith.constant dense<0.000000e+00> : vector<104x512xf32>
    %3 = tpu.matmul %1, %2, %cst {dimension_numbers = #tpu.dot_dimension_numbers<[1], [0], [0], [1], [0, 0, 1, 1], [], []>} : vector<104x2304xbf16>, vector<2304x512xbf16>, vector<104x512xf32> -> vector<104x512xf32>
    %c0_3 = arith.constant 0 : index
    %c0_4 = arith.constant 0 : index
    %4 = vector.load %arg3[%c0_3, %c0_4] : memref<1x512xf32, #tpu.memory_space<vmem>>, vector<1x512xf32>
    %5 = vector.broadcast %4 : vector<1x512xf32> to vector<104x512xf32>
    %6 = arith.addf %3, %5 : vector<104x512xf32>
    %cst_5 = arith.constant 0.000000e+00 : f32
    %7 = vector.broadcast %cst_5 : f32 to vector<104x512xf32>
    %8 = arith.maximumf %6, %7 : vector<104x512xf32>
    %c0_6 = arith.constant 0 : index
    %c0_7 = arith.constant 0 : index
    %9 = vector.load %arg6[%c0_6, %c0_7] : memref<104x512xf32, #tpu.memory_space<vmem>>, vector<104x512xf32>
    tpu.vector_store %arg6[%c0_6, %c0_7], %8 {strides = array<i32>} : memref<104x512xf32, #tpu.memory_space<vmem>>, vector<104x512xf32>,
    %c0_8 = arith.constant 0 : index
    %c0_9 = arith.constant 0 : index
    %10 = vector.load %arg6[%c0_8, %c0_9] : memref<104x512xf32, #tpu.memory_space<vmem>>, vector<104x512xf32>
    %11 = arith.truncf %10 : vector<104x512xf32> to vector<104x512xbf16>
    %c0_10 = arith.constant 0 : index
    %c0_11 = arith.constant 0 : index
    %12 = vector.load %arg4[%c0_10, %c0_11] : memref<512x128xbf16, #tpu.memory_space<vmem>>, vector<512x128xbf16>
    %cst_12 = arith.constant dense<0.000000e+00> : vector<104x128xf32>
    %13 = tpu.matmul %11, %12, %cst_12 {dimension_numbers = #tpu.dot_dimension_numbers<[1], [0], [0], [1], [0, 0, 1, 1], [], []>} : vector<104x512xbf16>, vector<512x128xbf16>, vector<104x128xf32> -> vector<104x128xf32>
    %c0_13 = arith.constant 0 : index
    %c0_14 = arith.constant 0 : index
    %14 = vector.load %arg5[%c0_13, %c0_14] : memref<1x128xf32, #tpu.memory_space<vmem>>, vector<1x128xf32>
    %15 = vector.broadcast %14 : vector<1x128xf32> to vector<104x128xf32>
    %16 = arith.addf %13, %15 : vector<104x128xf32>
    %cst_15 = arith.constant 0.000000e+00 : f32
    %17 = vector.broadcast %cst_15 : f32 to vector<104x128xf32>
    %18 = arith.maximumf %16, %17 : vector<104x128xf32>
    %c0_16 = arith.constant 0 : index
    %c0_17 = arith.constant 0 : index
    %19 = vector.load %arg7[%c0_16, %c0_17] : memref<104x128xf32, #tpu.memory_space<vmem>>, vector<104x128xf32>
    tpu.vector_store %arg7[%c0_16, %c0_17], %18 {strides = array<i32>} : memref<104x128xf32, #tpu.memory_space<vmem>>, vector<104x128xf32>,
    return
  }
  func.func @transform_0(%arg0: i32) -> (i32, i32) {
    %c0_i32 = arith.constant 0 : i32
    %c0_i32_0 = arith.constant 0 : i32
    return %arg0, %c0_i32 : i32, i32
  }
  func.func @transform_1(%arg0: i32) -> (i32, i32) {
    %c0_i32 = arith.constant 0 : i32
    %c0_i32_0 = arith.constant 0 : i32
    %c0_i32_1 = arith.constant 0 : i32
    return %c0_i32, %c0_i32_0 : i32, i32
  }
  func.func @transform_2(%arg0: i32) -> (i32, i32) {
    %c0_i32 = arith.constant 0 : i32
    %c0_i32_0 = arith.constant 0 : i32
    %c0_i32_1 = arith.constant 0 : i32
    return %c0_i32, %c0_i32_0 : i32, i32
  }
  func.func @transform_3(%arg0: i32) -> (i32, i32) {
    %c0_i32 = arith.constant 0 : i32
    %c0_i32_0 = arith.constant 0 : i32
    %c0_i32_1 = arith.constant 0 : i32
    return %c0_i32, %c0_i32_0 : i32, i32
  }
  func.func @transform_4(%arg0: i32) -> (i32, i32) {
    %c0_i32 = arith.constant 0 : i32
    %c0_i32_0 = arith.constant 0 : i32
    %c0_i32_1 = arith.constant 0 : i32
    return %c0_i32, %c0_i32_0 : i32, i32
  }
  func.func @transform_5(%arg0: i32) -> (i32, i32) {
    %c0_i32 = arith.constant 0 : i32
    %c0_i32_0 = arith.constant 0 : i32
    return %arg0, %c0_i32 : i32, i32
  }
  func.func @transform_6(%arg0: i32) -> (i32, i32) {
    %c0_i32 = arith.constant 0 : i32
    %c0_i32_0 = arith.constant 0 : i32
    return %arg0, %c0_i32 : i32, i32
  }
}

module attributes {stable_mosaic.version = 11 : i64} {
  func.func @_fused_mm2_bias_relu_kernel(%arg0: i32, %arg1: memref<56x1152xf32, #tpu.memory_space<vmem>>, %arg2: memref<1152x256xbf16, #tpu.memory_space<vmem>>, %arg3: memref<1x256xf32, #tpu.memory_space<vmem>>, %arg4: memref<256x128xbf16, #tpu.memory_space<vmem>>, %arg5: memref<1x128xf32, #tpu.memory_space<vmem>>, %arg6: memref<56x256xf32, #tpu.memory_space<vmem>>, %arg7: memref<56x128xf32, #tpu.memory_space<vmem>>) attributes {dimension_semantics = [#tpu.dimension_semantics<parallel>], iteration_bounds = array<i64: 1>, scalar_prefetch = 0 : i64, scratch_operands = 0 : i64, tpu.core_type = #tpu.core_type<tc>, window_params = [{transform_indices = @transform_0, window_bounds = array<i64: 56, 1152>}, {pipeline_mode = #tpu.pipeline_mode<synchronous>, transform_indices = @transform_1, window_bounds = array<i64: 1152, 256>}, {pipeline_mode = #tpu.pipeline_mode<synchronous>, transform_indices = @transform_2, window_bounds = array<i64: 1, 256>}, {pipeline_mode = #tpu.pipeline_mode<synchronous>, transform_indices = @transform_3, window_bounds = array<i64: 256, 128>}, {pipeline_mode = #tpu.pipeline_mode<synchronous>, transform_indices = @transform_4, window_bounds = array<i64: 1, 128>}, {transform_indices = @transform_5, window_bounds = array<i64: 56, 256>}, {transform_indices = @transform_6, window_bounds = array<i64: 56, 128>}]} {
    %c0 = arith.constant 0 : index
    %c0_0 = arith.constant 0 : index
    %0 = vector.load %arg1[%c0, %c0_0] : memref<56x1152xf32, #tpu.memory_space<vmem>>, vector<56x1152xf32>
    %1 = arith.truncf %0 : vector<56x1152xf32> to vector<56x1152xbf16>
    %c0_1 = arith.constant 0 : index
    %c0_2 = arith.constant 0 : index
    %2 = vector.load %arg2[%c0_1, %c0_2] : memref<1152x256xbf16, #tpu.memory_space<vmem>>, vector<1152x256xbf16>
    %cst = arith.constant dense<0.000000e+00> : vector<56x256xf32>
    %3 = tpu.matmul %1, %2, %cst {dimension_numbers = #tpu.dot_dimension_numbers<[1], [0], [0], [1], [0, 0, 1, 1], [], []>} : vector<56x1152xbf16>, vector<1152x256xbf16>, vector<56x256xf32> -> vector<56x256xf32>
    %c0_3 = arith.constant 0 : index
    %c0_4 = arith.constant 0 : index
    %4 = vector.load %arg3[%c0_3, %c0_4] : memref<1x256xf32, #tpu.memory_space<vmem>>, vector<1x256xf32>
    %5 = vector.broadcast %4 : vector<1x256xf32> to vector<56x256xf32>
    %6 = arith.addf %3, %5 : vector<56x256xf32>
    %cst_5 = arith.constant 0.000000e+00 : f32
    %7 = vector.broadcast %cst_5 : f32 to vector<56x256xf32>
    %8 = arith.maximumf %6, %7 : vector<56x256xf32>
    %c0_6 = arith.constant 0 : index
    %c0_7 = arith.constant 0 : index
    %9 = vector.load %arg6[%c0_6, %c0_7] : memref<56x256xf32, #tpu.memory_space<vmem>>, vector<56x256xf32>
    tpu.vector_store %arg6[%c0_6, %c0_7], %8 {strides = array<i32>} : memref<56x256xf32, #tpu.memory_space<vmem>>, vector<56x256xf32>,
    %c0_8 = arith.constant 0 : index
    %c0_9 = arith.constant 0 : index
    %10 = vector.load %arg6[%c0_8, %c0_9] : memref<56x256xf32, #tpu.memory_space<vmem>>, vector<56x256xf32>
    %11 = arith.truncf %10 : vector<56x256xf32> to vector<56x256xbf16>
    %c0_10 = arith.constant 0 : index
    %c0_11 = arith.constant 0 : index
    %12 = vector.load %arg4[%c0_10, %c0_11] : memref<256x128xbf16, #tpu.memory_space<vmem>>, vector<256x128xbf16>
    %cst_12 = arith.constant dense<0.000000e+00> : vector<56x128xf32>
    %13 = tpu.matmul %11, %12, %cst_12 {dimension_numbers = #tpu.dot_dimension_numbers<[1], [0], [0], [1], [0, 0, 1, 1], [], []>} : vector<56x256xbf16>, vector<256x128xbf16>, vector<56x128xf32> -> vector<56x128xf32>
    %c0_13 = arith.constant 0 : index
    %c0_14 = arith.constant 0 : index
    %14 = vector.load %arg5[%c0_13, %c0_14] : memref<1x128xf32, #tpu.memory_space<vmem>>, vector<1x128xf32>
    %15 = vector.broadcast %14 : vector<1x128xf32> to vector<56x128xf32>
    %16 = arith.addf %13, %15 : vector<56x128xf32>
    %cst_15 = arith.constant 0.000000e+00 : f32
    %17 = vector.broadcast %cst_15 : f32 to vector<56x128xf32>
    %18 = arith.maximumf %16, %17 : vector<56x128xf32>
    %c0_16 = arith.constant 0 : index
    %c0_17 = arith.constant 0 : index
    %19 = vector.load %arg7[%c0_16, %c0_17] : memref<56x128xf32, #tpu.memory_space<vmem>>, vector<56x128xf32>
    tpu.vector_store %arg7[%c0_16, %c0_17], %18 {strides = array<i32>} : memref<56x128xf32, #tpu.memory_space<vmem>>, vector<56x128xf32>,
    return
  }
  func.func @transform_0(%arg0: i32) -> (i32, i32) {
    %c0_i32 = arith.constant 0 : i32
    %c0_i32_0 = arith.constant 0 : i32
    return %arg0, %c0_i32 : i32, i32
  }
  func.func @transform_1(%arg0: i32) -> (i32, i32) {
    %c0_i32 = arith.constant 0 : i32
    %c0_i32_0 = arith.constant 0 : i32
    %c0_i32_1 = arith.constant 0 : i32
    return %c0_i32, %c0_i32_0 : i32, i32
  }
  func.func @transform_2(%arg0: i32) -> (i32, i32) {
    %c0_i32 = arith.constant 0 : i32
    %c0_i32_0 = arith.constant 0 : i32
    %c0_i32_1 = arith.constant 0 : i32
    return %c0_i32, %c0_i32_0 : i32, i32
  }
  func.func @transform_3(%arg0: i32) -> (i32, i32) {
    %c0_i32 = arith.constant 0 : i32
    %c0_i32_0 = arith.constant 0 : i32
    %c0_i32_1 = arith.constant 0 : i32
    return %c0_i32, %c0_i32_0 : i32, i32
  }
  func.func @transform_4(%arg0: i32) -> (i32, i32) {
    %c0_i32 = arith.constant 0 : i32
    %c0_i32_0 = arith.constant 0 : i32
    %c0_i32_1 = arith.constant 0 : i32
    return %c0_i32, %c0_i32_0 : i32, i32
  }
  func.func @transform_5(%arg0: i32) -> (i32, i32) {
    %c0_i32 = arith.constant 0 : i32
    %c0_i32_0 = arith.constant 0 : i32
    return %arg0, %c0_i32 : i32, i32
  }
  func.func @transform_6(%arg0: i32) -> (i32, i32) {
    %c0_i32 = arith.constant 0 : i32
    %c0_i32_0 = arith.constant 0 : i32
    return %arg0, %c0_i32 : i32, i32
  }
}

module attributes {stable_mosaic.version = 11 : i64} {
  func.func @_fused_mm2_bias_relu_kernel(%arg0: i32, %arg1: memref<24x1152xf32, #tpu.memory_space<vmem>>, %arg2: memref<1152x256xbf16, #tpu.memory_space<vmem>>, %arg3: memref<1x256xf32, #tpu.memory_space<vmem>>, %arg4: memref<256x128xbf16, #tpu.memory_space<vmem>>, %arg5: memref<1x128xf32, #tpu.memory_space<vmem>>, %arg6: memref<24x256xf32, #tpu.memory_space<vmem>>, %arg7: memref<24x128xf32, #tpu.memory_space<vmem>>) attributes {dimension_semantics = [#tpu.dimension_semantics<parallel>], iteration_bounds = array<i64: 1>, scalar_prefetch = 0 : i64, scratch_operands = 0 : i64, tpu.core_type = #tpu.core_type<tc>, window_params = [{transform_indices = @transform_0, window_bounds = array<i64: 24, 1152>}, {pipeline_mode = #tpu.pipeline_mode<synchronous>, transform_indices = @transform_1, window_bounds = array<i64: 1152, 256>}, {pipeline_mode = #tpu.pipeline_mode<synchronous>, transform_indices = @transform_2, window_bounds = array<i64: 1, 256>}, {pipeline_mode = #tpu.pipeline_mode<synchronous>, transform_indices = @transform_3, window_bounds = array<i64: 256, 128>}, {pipeline_mode = #tpu.pipeline_mode<synchronous>, transform_indices = @transform_4, window_bounds = array<i64: 1, 128>}, {transform_indices = @transform_5, window_bounds = array<i64: 24, 256>}, {transform_indices = @transform_6, window_bounds = array<i64: 24, 128>}]} {
    %c0 = arith.constant 0 : index
    %c0_0 = arith.constant 0 : index
    %0 = vector.load %arg1[%c0, %c0_0] : memref<24x1152xf32, #tpu.memory_space<vmem>>, vector<24x1152xf32>
    %1 = arith.truncf %0 : vector<24x1152xf32> to vector<24x1152xbf16>
    %c0_1 = arith.constant 0 : index
    %c0_2 = arith.constant 0 : index
    %2 = vector.load %arg2[%c0_1, %c0_2] : memref<1152x256xbf16, #tpu.memory_space<vmem>>, vector<1152x256xbf16>
    %cst = arith.constant dense<0.000000e+00> : vector<24x256xf32>
    %3 = tpu.matmul %1, %2, %cst {dimension_numbers = #tpu.dot_dimension_numbers<[1], [0], [0], [1], [0, 0, 1, 1], [], []>} : vector<24x1152xbf16>, vector<1152x256xbf16>, vector<24x256xf32> -> vector<24x256xf32>
    %c0_3 = arith.constant 0 : index
    %c0_4 = arith.constant 0 : index
    %4 = vector.load %arg3[%c0_3, %c0_4] : memref<1x256xf32, #tpu.memory_space<vmem>>, vector<1x256xf32>
    %5 = vector.broadcast %4 : vector<1x256xf32> to vector<24x256xf32>
    %6 = arith.addf %3, %5 : vector<24x256xf32>
    %cst_5 = arith.constant 0.000000e+00 : f32
    %7 = vector.broadcast %cst_5 : f32 to vector<24x256xf32>
    %8 = arith.maximumf %6, %7 : vector<24x256xf32>
    %c0_6 = arith.constant 0 : index
    %c0_7 = arith.constant 0 : index
    %9 = vector.load %arg6[%c0_6, %c0_7] : memref<24x256xf32, #tpu.memory_space<vmem>>, vector<24x256xf32>
    tpu.vector_store %arg6[%c0_6, %c0_7], %8 {strides = array<i32>} : memref<24x256xf32, #tpu.memory_space<vmem>>, vector<24x256xf32>,
    %c0_8 = arith.constant 0 : index
    %c0_9 = arith.constant 0 : index
    %10 = vector.load %arg6[%c0_8, %c0_9] : memref<24x256xf32, #tpu.memory_space<vmem>>, vector<24x256xf32>
    %11 = arith.truncf %10 : vector<24x256xf32> to vector<24x256xbf16>
    %c0_10 = arith.constant 0 : index
    %c0_11 = arith.constant 0 : index
    %12 = vector.load %arg4[%c0_10, %c0_11] : memref<256x128xbf16, #tpu.memory_space<vmem>>, vector<256x128xbf16>
    %cst_12 = arith.constant dense<0.000000e+00> : vector<24x128xf32>
    %13 = tpu.matmul %11, %12, %cst_12 {dimension_numbers = #tpu.dot_dimension_numbers<[1], [0], [0], [1], [0, 0, 1, 1], [], []>} : vector<24x256xbf16>, vector<256x128xbf16>, vector<24x128xf32> -> vector<24x128xf32>
    %c0_13 = arith.constant 0 : index
    %c0_14 = arith.constant 0 : index
    %14 = vector.load %arg5[%c0_13, %c0_14] : memref<1x128xf32, #tpu.memory_space<vmem>>, vector<1x128xf32>
    %15 = vector.broadcast %14 : vector<1x128xf32> to vector<24x128xf32>
    %16 = arith.addf %13, %15 : vector<24x128xf32>
    %cst_15 = arith.constant 0.000000e+00 : f32
    %17 = vector.broadcast %cst_15 : f32 to vector<24x128xf32>
    %18 = arith.maximumf %16, %17 : vector<24x128xf32>
    %c0_16 = arith.constant 0 : index
    %c0_17 = arith.constant 0 : index
    %19 = vector.load %arg7[%c0_16, %c0_17] : memref<24x128xf32, #tpu.memory_space<vmem>>, vector<24x128xf32>
    tpu.vector_store %arg7[%c0_16, %c0_17], %18 {strides = array<i32>} : memref<24x128xf32, #tpu.memory_space<vmem>>, vector<24x128xf32>,
    return
  }
  func.func @transform_0(%arg0: i32) -> (i32, i32) {
    %c0_i32 = arith.constant 0 : i32
    %c0_i32_0 = arith.constant 0 : i32
    return %arg0, %c0_i32 : i32, i32
  }
  func.func @transform_1(%arg0: i32) -> (i32, i32) {
    %c0_i32 = arith.constant 0 : i32
    %c0_i32_0 = arith.constant 0 : i32
    %c0_i32_1 = arith.constant 0 : i32
    return %c0_i32, %c0_i32_0 : i32, i32
  }
  func.func @transform_2(%arg0: i32) -> (i32, i32) {
    %c0_i32 = arith.constant 0 : i32
    %c0_i32_0 = arith.constant 0 : i32
    %c0_i32_1 = arith.constant 0 : i32
    return %c0_i32, %c0_i32_0 : i32, i32
  }
  func.func @transform_3(%arg0: i32) -> (i32, i32) {
    %c0_i32 = arith.constant 0 : i32
    %c0_i32_0 = arith.constant 0 : i32
    %c0_i32_1 = arith.constant 0 : i32
    return %c0_i32, %c0_i32_0 : i32, i32
  }
  func.func @transform_4(%arg0: i32) -> (i32, i32) {
    %c0_i32 = arith.constant 0 : i32
    %c0_i32_0 = arith.constant 0 : i32
    %c0_i32_1 = arith.constant 0 : i32
    return %c0_i32, %c0_i32_0 : i32, i32
  }
  func.func @transform_5(%arg0: i32) -> (i32, i32) {
    %c0_i32 = arith.constant 0 : i32
    %c0_i32_0 = arith.constant 0 : i32
    return %arg0, %c0_i32 : i32, i32
  }
  func.func @transform_6(%arg0: i32) -> (i32, i32) {
    %c0_i32 = arith.constant 0 : i32
    %c0_i32_0 = arith.constant 0 : i32
    return %arg0, %c0_i32 : i32, i32
  }
}

module attributes {stable_mosaic.version = 11 : i64} {
  func.func @_mm_bias_relu_kernel(%arg0: i32, %arg1: memref<8x1152xf32, #tpu.memory_space<vmem>>, %arg2: memref<1152x256xbf16, #tpu.memory_space<vmem>>, %arg3: memref<1x256xf32, #tpu.memory_space<vmem>>, %arg4: memref<8x256xf32, #tpu.memory_space<vmem>>) attributes {dimension_semantics = [#tpu.dimension_semantics<parallel>], iteration_bounds = array<i64: 1>, scalar_prefetch = 0 : i64, scratch_operands = 0 : i64, tpu.core_type = #tpu.core_type<tc>, window_params = [{transform_indices = @transform_0, window_bounds = array<i64: 8, 1152>}, {pipeline_mode = #tpu.pipeline_mode<synchronous>, transform_indices = @transform_1, window_bounds = array<i64: 1152, 256>}, {pipeline_mode = #tpu.pipeline_mode<synchronous>, transform_indices = @transform_2, window_bounds = array<i64: 1, 256>}, {transform_indices = @transform_3, window_bounds = array<i64: 8, 256>}]} {
    %c0 = arith.constant 0 : index
    %c0_0 = arith.constant 0 : index
    %0 = vector.load %arg1[%c0, %c0_0] : memref<8x1152xf32, #tpu.memory_space<vmem>>, vector<8x1152xf32>
    %1 = arith.truncf %0 : vector<8x1152xf32> to vector<8x1152xbf16>
    %c0_1 = arith.constant 0 : index
    %c0_2 = arith.constant 0 : index
    %2 = vector.load %arg2[%c0_1, %c0_2] : memref<1152x256xbf16, #tpu.memory_space<vmem>>, vector<1152x256xbf16>
    %cst = arith.constant dense<0.000000e+00> : vector<8x256xf32>
    %3 = tpu.matmul %1, %2, %cst {dimension_numbers = #tpu.dot_dimension_numbers<[1], [0], [0], [1], [0, 0, 1, 1], [], []>} : vector<8x1152xbf16>, vector<1152x256xbf16>, vector<8x256xf32> -> vector<8x256xf32>
    %c0_3 = arith.constant 0 : index
    %c0_4 = arith.constant 0 : index
    %4 = vector.load %arg3[%c0_3, %c0_4] : memref<1x256xf32, #tpu.memory_space<vmem>>, vector<1x256xf32>
    %5 = vector.broadcast %4 : vector<1x256xf32> to vector<8x256xf32>
    %6 = arith.addf %3, %5 : vector<8x256xf32>
    %cst_5 = arith.constant 0.000000e+00 : f32
    %7 = vector.broadcast %cst_5 : f32 to vector<8x256xf32>
    %8 = arith.maximumf %6, %7 : vector<8x256xf32>
    %c0_6 = arith.constant 0 : index
    %c0_7 = arith.constant 0 : index
    %9 = vector.load %arg4[%c0_6, %c0_7] : memref<8x256xf32, #tpu.memory_space<vmem>>, vector<8x256xf32>
    tpu.vector_store %arg4[%c0_6, %c0_7], %8 {strides = array<i32>} : memref<8x256xf32, #tpu.memory_space<vmem>>, vector<8x256xf32>,
    return
  }
  func.func @transform_0(%arg0: i32) -> (i32, i32) {
    %c0_i32 = arith.constant 0 : i32
    %c0_i32_0 = arith.constant 0 : i32
    return %arg0, %c0_i32 : i32, i32
  }
  func.func @transform_1(%arg0: i32) -> (i32, i32) {
    %c0_i32 = arith.constant 0 : i32
    %c0_i32_0 = arith.constant 0 : i32
    %c0_i32_1 = arith.constant 0 : i32
    return %c0_i32, %c0_i32_0 : i32, i32
  }
  func.func @transform_2(%arg0: i32) -> (i32, i32) {
    %c0_i32 = arith.constant 0 : i32
    %c0_i32_0 = arith.constant 0 : i32
    %c0_i32_1 = arith.constant 0 : i32
    return %c0_i32, %c0_i32_0 : i32, i32
  }
  func.func @transform_3(%arg0: i32) -> (i32, i32) {
    %c0_i32 = arith.constant 0 : i32
    %c0_i32_0 = arith.constant 0 : i32
    return %arg0, %c0_i32 : i32, i32
  }
}

</mosaic_0001>

<bundles_post_ra>
// kernel: aux_layers_forward.5
= control target key start
LH: loop header
LB: loop body
LE: loop exit
PB: predicated region body
PF: predicated region fallthrough
CT: control target
= control target key end

     0   :  { %s2650_s12 = smov 0   ;;  %s3626_s0 = inlined_call_operand.vmem [shape: f32[744,1024], index: 0, kind: input, shape index: {}]   ;;  %s3627_s1 = inlined_call_operand.vmem [shape: bf16[1024,256], index: 1, kind: input, shape index: {}]   ;;  %s3628_s2 = inlined_call_operand.vmem [shape: f32[1,256], index: 2, kind: input, shape index: {}]   ;;  %s3629_s3 = inlined_call_operand.vmem [shape: f32[744,256], index: 3, kind: output, shape index: {}]  }
   0x1 LB: > { %s2281_s13 = sadd.s32 4294967295, %s2628_s12   ;;  %p2285_p0 = scmp.ge.s32.totalorder %s2628_s12, 1  ;;  %s2628_s12 = sphi %s2650_s12, %s13_s12  }
   0x2   : > { %p139_p1 = scmp.lt.s32.totalorder %s2628_s12, 4 }
   0x4   : > { %p140_p2 = pnand %p2285_p0, %p139_p1 }
   0x6   : > { %143 = sbr.rel (%p140_p2) target bundleno = 526 (0x20e), region = 32 }
   0xb   : > { %v2430_v0 = vld [vmem:[%s3627_s1 + $0x74] ss:$8 sps:$4 sm:$0xff]   ;;  %v2434_v2 = vld [vmem:[%s3627_s1 + $0x70] ss:$8 sps:$4 sm:$0xff]   ;;  %v2436_v4 = vld [vmem:[%s3627_s1 + $0x64] ss:$8 sps:$4 sm:$0xff]  }
   0xc   : > { %v2432_v1 = vld [vmem:[%s3627_s1 + $0x174] ss:$8 sps:$4 sm:$0xff]   ;;  %1335 = vmatprep.subr.bf16.mxu0 %v2430_v0  ;;  %v2435_v3 = vld [vmem:[%s3627_s1 + $0x170] ss:$8 sps:$4 sm:$0xff]   ;;  %v2438_v5 = vld [vmem:[%s3627_s1 + $0x164] ss:$8 sps:$4 sm:$0xff]  }
   0xd   : > { %1526 = vmatprep.subr.bf16.mxu1 %v2432_v1  ;;  %1336 = vmatpush1.bf16.msra.mxu0 %v2434_v2  ;;  %v2440_v6 = vld [vmem:[%s3627_s1 + $0x60] ss:$8 sps:$4 sm:$0xff]   ;;  %v2442_v8 = vld [vmem:[%s3627_s1 + $0x54] ss:$8 sps:$4 sm:$0xff]   ;;  %v2446_v10 = vld [vmem:[%s3627_s1 + $0x50] ss:$8 sps:$4 sm:$0xff]  }
   0xe   : > { %1527 = vmatpush1.bf16.msra.mxu1 %v2435_v3  ;;  %1337 = vmatprep.subr.bf16.mxu0 %v2436_v4  ;;  %v2441_v7 = vld [vmem:[%s3627_s1 + $0x160] ss:$8 sps:$4 sm:$0xff]   ;;  %v2444_v9 = vld [vmem:[%s3627_s1 + $0x154] ss:$8 sps:$4 sm:$0xff]   ;;  %v2447_v11 = vld [vmem:[%s3627_s1 + $0x150] ss:$8 sps:$4 sm:$0xff]  }
   0xf   : > { %1528 = vmatprep.subr.bf16.mxu1 %v2438_v5  ;;  %v2448_v12 = vld [vmem:[%s3627_s1 + $0x44] ss:$8 sps:$4 sm:$0xff]   ;;  %v2452_v14 = vld [vmem:[%s3627_s1 + $0x40] ss:$8 sps:$4 sm:$0xff]   ;;  %v2454_v16 = vld [vmem:[%s3627_s1 + $0x34] ss:$8 sps:$4 sm:$0xff]  }
  0x10   : > { %v2450_v13 = vld [vmem:[%s3627_s1 + $0x144] ss:$8 sps:$4 sm:$0xff]   ;;  %v2453_v15 = vld [vmem:[%s3627_s1 + $0x140] ss:$8 sps:$4 sm:$0xff]   ;;  %v2456_v17 = vld [vmem:[%s3627_s1 + $0x134] ss:$8 sps:$4 sm:$0xff]  }
  0x11   : > { %1338 = vmatpush1.bf16.msra.mxu0 %v2440_v6  ;;  %v2458_v18 = vld [vmem:[%s3627_s1 + $0x30] ss:$8 sps:$4 sm:$0xff]   ;;  %v2460_v20 = vld [vmem:[%s3627_s1 + $0x24] ss:$8 sps:$4 sm:$0xff]   ;;  %v2464_v22 = vld [vmem:[%s3627_s1 + $0x20] ss:$8 sps:$4 sm:$0xff]  }
  0x12   : > { %1529 = vmatpush1.bf16.msra.mxu1 %v2441_v7  ;;  %1339 = vmatprep.subr.bf16.mxu0 %v2442_v8  ;;  %v2459_v19 = vld [vmem:[%s3627_s1 + $0x130] ss:$8 sps:$4 sm:$0xff]   ;;  %v2462_v21 = vld [vmem:[%s3627_s1 + $0x124] ss:$8 sps:$4 sm:$0xff]   ;;  %v2465_v23 = vld [vmem:[%s3627_s1 + $0x120] ss:$8 sps:$4 sm:$0xff]  }
  0x13   : > { %1530 = vmatprep.subr.bf16.mxu1 %v2444_v9  ;;  %v2466_v24 = vld [vmem:[%s3627_s1 + $0x14] ss:$8 sps:$4 sm:$0xff]   ;;  %v2470_v26 = vld [vmem:[%s3627_s1 + $0x10] ss:$8 sps:$4 sm:$0xff]   ;;  %v2472_v28 = vld [vmem:[%s3627_s1 + $0x4] ss:$8 sps:$4 sm:$0xff]  }
  0x14   : > { %v2468_v25 = vld [vmem:[%s3627_s1 + $0x114] ss:$8 sps:$4 sm:$0xff]   ;;  %v2471_v27 = vld [vmem:[%s3627_s1 + $0x110] ss:$8 sps:$4 sm:$0xff]   ;;  %s165_s22 = smul.u32 31, %s2281_s13 }
  0x15   : > { %1340 = vmatpush1.bf16.msra.mxu0 %v2446_v10  ;;  %v2474_v29 = vld [vmem:[%s3627_s1 + $0x104] ss:$8 sps:$4 sm:$0xff]   ;;  %v2476_v30 = vld [vmem:[%s3627_s1] ss:$8 sps:$4 sm:$0xff]   ;;  %v2478_v32 = vld [vmem:[%s3627_s1 + $0xf4] ss:$8 sps:$4 sm:$0xff]  }
  0x16   : > { %1531 = vmatpush1.bf16.msra.mxu1 %v2447_v11  ;;  %1341 = vmatprep.subr.bf16.mxu0 %v2448_v12  ;;  %v2477_v31 = vld [vmem:[%s3627_s1 + $0x100] ss:$8 sps:$4 sm:$0xff]   ;;  %p166_p3 = scmp.lt.s32.totalorder %s165_s22, 92  ;;  %v2480_v33 = vld [vmem:[%s3627_s1 + $0x1f4] ss:$8 sps:$4 sm:$0xff]  }
  0x17   : > { %1532 = vmatprep.subr.bf16.mxu1 %v2450_v13  ;;  %v2482_v34 = vld [vmem:[%s3627_s1 + $0xf0] ss:$8 sps:$4 sm:$0xff]   ;;  %v2484_v36 = vld [vmem:[%s3627_s1 + $0xe4] ss:$8 sps:$4 sm:$0xff]   ;;  %v2488_v38 = vld [vmem:[%s3627_s1 + $0xe0] ss:$8 sps:$4 sm:$0xff]  }
  0x18   : > { %v2483_v35 = vld [vmem:[%s3627_s1 + $0x1f0] ss:$8 sps:$4 sm:$0xff]   ;;  %s3661_s22 = smov (!%p166_p3, %s165_s22), 92  ;;  %v2486_v37 = vld [vmem:[%s3627_s1 + $0x1e4] ss:$8 sps:$4 sm:$0xff]  }
  0x19   : > { %1342 = vmatpush1.bf16.msra.mxu0 %v2452_v14  ;;  %v2489_v39 = vld [vmem:[%s3627_s1 + $0x1e0] ss:$8 sps:$4 sm:$0xff]   ;;  %v2490_v40 = vld [vmem:[%s3627_s1 + $0xd4] ss:$8 sps:$4 sm:$0xff]   ;;  %s2420_s21 = sshll.u32 %s3661_s22, 6 }
  0x1a   : > { %1533 = vmatpush1.bf16.msra.mxu1 %v2453_v15  ;;  %1343 = vmatprep.subr.bf16.mxu0 %v2454_v16  ;;  %v2492_v41 = vld [vmem:[%s3627_s1 + $0x1d4] ss:$8 sps:$4 sm:$0xff]   ;;  %v2494_v42 = vld [vmem:[%s3627_s1 + $0xd0] ss:$8 sps:$4 sm:$0xff]   ;;  %s2798_s13 = scalar_lea.vmem %s3626_s0, %s2420_s21  ;;  %v2496_v44 = vld [vmem:[%s3627_s1 + $0xc4] ss:$8 sps:$4 sm:$0xff]  }
  0x1b   : > { %1534 = vmatprep.subr.bf16.mxu1 %v2456_v17  ;;  %v2495_v43 = vld [vmem:[%s3627_s1 + $0x1d0] ss:$8 sps:$4 sm:$0xff]   ;;  %v2498_v45 = vld [vmem:[%s3627_s1 + $0x1c4] ss:$8 sps:$4 sm:$0xff]   ;;  %v2500_v50 = vld [vmem:[%s3627_s1 + $0xc0] ss:$8 sps:$4 sm:$0xff]  }
  0x1c   : > { %v180_v46 = vld [vmem:[%s2798_s13 + $0x8] sm:$0xff]  ;;  %v182_v48 = vld [vmem:[%s2798_s13 + $0x18] sm:$0xff]  ;;  %v179_v6 = vld [vmem:[%s2798_s13] sm:$0xff] }
  0x1d   : > { %1344 = vmatpush1.bf16.msra.mxu0 %v2458_v18  ;;  %v188_v47 = vld [vmem:[%s2798_s13 + $0x48] sm:$0xff]  ;;  %v190_v49 = vld [vmem:[%s2798_s13 + $0x58] sm:$0xff]  ;;  %v187_v7 = vld [vmem:[%s2798_s13 + $0x40] sm:$0xff] }
  0x1e   : > { %1535 = vmatpush1.bf16.msra.mxu1 %v2459_v19  ;;  %1345 = vmatprep.subr.bf16.mxu0 %v2460_v20  ;;  %v2501_v51 = vld [vmem:[%s3627_s1 + $0x1c0] ss:$8 sps:$4 sm:$0xff]   ;;  %v2502_v52 = vld [vmem:[%s3627_s1 + $0xb4] ss:$8 sps:$4 sm:$0xff]   ;;  %v428_v53 = vpack.c.bf16 %v188_v47, %v180_v46  ;;  %v430_v54 = vpack.c.bf16 %v190_v49, %v182_v48  ;;  %v2506_v56 = vld [vmem:[%s3627_s1 + $0xb0] ss:$8 sps:$4 sm:$0xff]   ;;  %v427_v16 = vpack.c.bf16 %v187_v7, %v179_v6 }
  0x1f   : > { %1536 = vmatprep.subr.bf16.mxu1 %v2462_v21  ;;  %v2504_v55 = vld [vmem:[%s3627_s1 + $0x1b4] ss:$8 sps:$4 sm:$0xff]   ;;  %v2507_v57 = vld [vmem:[%s3627_s1 + $0x1b0] ss:$8 sps:$4 sm:$0xff]   ;;  %v2508_v58 = vld [vmem:[%s3627_s1 + $0xa4] ss:$8 sps:$4 sm:$0xff]  }
  0x20   : > { %1367 = vmatprep.mubr.bf16.mxu0 %v428_v53  ;;  %1558 = vmatprep.mubr.bf16.mxu1 %v430_v54  ;;  %v2510_v59 = vld [vmem:[%s3627_s1 + $0x1a4] ss:$8 sps:$4 sm:$0xff]   ;;  %v2512_v60 = vld [vmem:[%s3627_s1 + $0xa0] ss:$8 sps:$4 sm:$0xff]   ;;  %v2514_v62 = vld [vmem:[%s3627_s1 + $0x94] ss:$8 sps:$4 sm:$0xff]  }
  0x21   : > { %1346 = vmatpush1.bf16.msra.mxu0 %v2464_v22  ;;  %v2513_v61 = vld [vmem:[%s3627_s1 + $0x1a0] ss:$8 sps:$4 sm:$0xff]   ;;  %v2516_v63 = vld [vmem:[%s3627_s1 + $0x194] ss:$8 sps:$4 sm:$0xff]   ;;  %v2518_v0 = vld [vmem:[%s3627_s1 + $0x90] ss:$8 sps:$4 sm:$0xff]  }
  0x22   : > { %1537 = vmatpush1.bf16.msra.mxu1 %v2465_v23  ;;  %1347 = vmatprep.subr.bf16.mxu0 %v2466_v24  ;;  %v2519_v1 = vld [vmem:[%s3627_s1 + $0x190] ss:$8 sps:$4 sm:$0xff]   ;;  %v2520_v2 = vld [vmem:[%s3627_s1 + $0x84] ss:$8 sps:$4 sm:$0xff]   ;;  %v2524_v4 = vld [vmem:[%s3627_s1 + $0x80] ss:$8 sps:$4 sm:$0xff]  }
  0x23   : > { %1538 = vmatprep.subr.bf16.mxu1 %v2468_v25  ;;  %v2522_v3 = vld [vmem:[%s3627_s1 + $0x184] ss:$8 sps:$4 sm:$0xff]   ;;  %v2525_v5 = vld [vmem:[%s3627_s1 + $0x180] ss:$8 sps:$4 sm:$0xff]   ;;  %v181_v8 = vld [vmem:[%s2798_s13 + $0x10] sm:$0xff] }
  0x24   : > { %v189_v9 = vld [vmem:[%s2798_s13 + $0x50] sm:$0xff]  ;;  %v196_v12 = vld [vmem:[%s2798_s13 + $0x88] sm:$0xff]  ;;  %v198_v14 = vld [vmem:[%s2798_s13 + $0x98] sm:$0xff] }
  0x25   : > { %1348 = vmatpush1.bf16.msra.mxu0 %v2470_v26  ;;  %v2528_v10 = vld [vmem:[%s3627_s1 + $0x274] ss:$8 sps:$4 sm:$0xff]   ;;  %v204_v13 = vld [vmem:[%s2798_s13 + $0xc8] sm:$0xff]  ;;  %v429_v17 = vpack.c.bf16 %v189_v9, %v181_v8  ;;  %v2526_v18 = vld [vmem:[%s3627_s1 + $0x270] ss:$8 sps:$4 sm:$0xff]  }
  0x26   : > { %1539 = vmatpush1.bf16.msra.mxu1 %v2471_v27  ;;  %1349 = vmatprep.subr.bf16.mxu0 %v2472_v28  ;;  %v2531_v11 = vld [vmem:[%s3627_s1 + $0x374] ss:$8 sps:$4 sm:$0xff]   ;;  %v2529_v19 = vld [vmem:[%s3627_s1 + $0x370] ss:$8 sps:$4 sm:$0xff]   ;;  %v436_v20 = vpack.c.bf16 %v204_v13, %v196_v12  ;;  %v2534_v22 = vld [vmem:[%s3627_s1 + $0x264] ss:$8 sps:$4 sm:$0xff]  }
  0x27   : > { %1540 = vmatprep.subr.bf16.mxu1 %v2474_v29  ;;  %v206_v15 = vld [vmem:[%s2798_s13 + $0xd8] sm:$0xff]  ;;  %v195_v23 = vld [vmem:[%s2798_s13 + $0x80] sm:$0xff]  ;;  %v197_v25 = vld [vmem:[%s2798_s13 + $0x90] sm:$0xff] }
  0x28   : > { %v438_v21 = vpack.c.bf16 %v206_v15, %v198_v14  ;;  %v203_v24 = vld [vmem:[%s2798_s13 + $0xc0] sm:$0xff]  ;;  %v205_v26 = vld [vmem:[%s2798_s13 + $0xd0] sm:$0xff]  ;;  %v228_v48 = vld [vmem:[%s2798_s13 + $0x188] sm:$0xff] }
  0x29   : > { %1350 = vmatpush1.bf16.msra.mxu0 %v2476_v30  ;;  %v2532_v27 = vld [vmem:[%s3627_s1 + $0x260] ss:$8 sps:$4 sm:$0xff]   ;;  %v2537_v29 = vld [vmem:[%s3627_s1 + $0x364] ss:$8 sps:$4 sm:$0xff]   ;;  %v221_v47 = vld [vmem:[%s2798_s13 + $0x150] sm:$0xff] }
  0x2a   : > { %1541 = vmatpush1.bf16.msra.mxu1 %v2477_v31  ;;  %1351 = vmatprep.subr.bf16.mxu0 %v2478_v32  ;;  %v2535_v28 = vld [vmem:[%s3627_s1 + $0x360] ss:$8 sps:$4 sm:$0xff]   ;;  %v214_v32 = vld [vmem:[%s2798_s13 + $0x118] sm:$0xff]  ;;  %v2549_v46 = vld [vmem:[%s3627_s1 + $0x344] ss:$8 sps:$4 sm:$0xff]  }
  0x2b   : > { %1542 = vmatprep.subr.bf16.mxu1 %v2480_v33  ;;  %v212_v30 = vld [vmem:[%s2798_s13 + $0x108] sm:$0xff]  ;;  %v222_v33 = vld [vmem:[%s2798_s13 + $0x158] sm:$0xff] }
  0x2c   : > { %v220_v31 = vld [vmem:[%s2798_s13 + $0x148] sm:$0xff]  ;;  %v2552_v54 = vld [vmem:[%s3627_s1 + $0x234] ss:$8 sps:$4 sm:$0xff]  }
  0x2d   : > { %1352 = vmatpush2.bf16.msra.mxu0 %v2482_v34  ;;  %v2540_v34 = vld [vmem:[%s3627_s1 + $0x254] ss:$8 sps:$4 sm:$0xff]   ;;  %v236_v49 = vld [vmem:[%s2798_s13 + $0x1c8] sm:$0xff] }
  0x2e   : > { %1543 = vmatpush2.bf16.msra.mxu1 %v2483_v35  ;;  %1353 = vmatprep.subr.bf16.mxu0 %v2484_v36  ;;  %v2543_v35 = vld [vmem:[%s3627_s1 + $0x354] ss:$8 sps:$4 sm:$0xff]   ;;  %v435_v36 = vpack.c.bf16 %v203_v24, %v195_v23  ;;  %v2547_v53 = vld [vmem:[%s3627_s1 + $0x340] ss:$8 sps:$4 sm:$0xff]  }
  0x2f   : > { %1544 = vmatprep.subr.bf16.mxu1 %v2486_v37  ;;  %v437_v37 = vpack.c.bf16 %v205_v26, %v197_v25  ;;  %v246_v6 = vld [vmem:[%s2798_s13 + $0x218] sm:$0xff]  ;;  %v2556_v8 = vld [vmem:[%s3627_s1 + $0x220] ss:$8 sps:$4 sm:$0xff]   ;;  %v253_v23 = vld [vmem:[%s2798_s13 + $0x250] sm:$0xff] }
  0x30   : > { %v254_v7 = vld [vmem:[%s2798_s13 + $0x258] sm:$0xff]  ;;  %v2559_v9 = vld [vmem:[%s3627_s1 + $0x320] ss:$8 sps:$4 sm:$0xff]  }
  0x31   : > { %1354 = vmatpush2.bf16.msra.mxu0 %v2488_v38  ;;  %v444_v38 = vpack.c.bf16 %v220_v31, %v212_v30  ;;  %v462_v15 = vpack.c.bf16 %v254_v7, %v246_v6  ;;  %v260_v24 = vld [vmem:[%s2798_s13 + $0x288] sm:$0xff]  ;;  %v262_v26 = vld [vmem:[%s2798_s13 + $0x298] sm:$0xff] }
  0x32   : > { %1545 = vmatpush2.bf16.msra.mxu1 %v2489_v39  ;;  %1355 = vmatprep.subr.bf16.mxu0 %v2490_v40  ;;  %v446_v39 = vpack.c.bf16 %v222_v33, %v214_v32  ;;  %v2538_v40 = vld [vmem:[%s3627_s1 + $0x250] ss:$8 sps:$4 sm:$0xff]   ;;  %v268_v25 = vld [vmem:[%s2798_s13 + $0x2c8] sm:$0xff]  ;;  %v2576_v30 = vld [vmem:[%s3627_s1 + $0x2f4] ss:$8 sps:$4 sm:$0xff]  }
  0x33   : > { %1546 = vmatprep.subr.bf16.mxu1 %v2492_v41  ;;  %v2541_v41 = vld [vmem:[%s3627_s1 + $0x350] ss:$8 sps:$4 sm:$0xff]   ;;  %v2579_v31 = vld [vmem:[%s3627_s1 + $0x3f4] ss:$8 sps:$4 sm:$0xff]  }
  0x34   : > { %v2600_v6 = vld [vmem:[%s3627_s1 + $0x2b4] ss:$8 sps:$4 sm:$0xff]  }
  0x35   : > { %1356 = vmatpush2.bf16.msra.mxu0 %v2494_v42  ;;  %v211_v42 = vld [vmem:[%s2798_s13 + $0x100] sm:$0xff] }
  0x36   : > { %1547 = vmatpush2.bf16.msra.mxu1 %v2495_v43  ;;  %1357 = vmatprep.subr.bf16.mxu0 %v2496_v44  ;;  %v219_v43 = vld [vmem:[%s2798_s13 + $0x140] sm:$0xff]  ;;  %v213_v44 = vld [vmem:[%s2798_s13 + $0x110] sm:$0xff] }
  0x37   : > { %1548 = vmatprep.subr.bf16.mxu1 %v2498_v45  ;;  %v2546_v45 = vld [vmem:[%s3627_s1 + $0x244] ss:$8 sps:$4 sm:$0xff]  }
  0x39   : > { %1358 = vmatpush2.bf16.msra.mxu0 %v2500_v50  ;;  %v230_v50 = vld [vmem:[%s2798_s13 + $0x198] sm:$0xff] }
  0x3a   : > { %1549 = vmatpush2.bf16.msra.mxu1 %v2501_v51  ;;  %1359 = vmatprep.subr.bf16.mxu0 %v2502_v52  ;;  %v238_v51 = vld [vmem:[%s2798_s13 + $0x1d8] sm:$0xff]  ;;  %v2544_v52 = vld [vmem:[%s3627_s1 + $0x240] ss:$8 sps:$4 sm:$0xff]  }
  0x3b   : > { %1550 = vmatprep.subr.bf16.mxu1 %v2504_v55  ;;  %v2555_v55 = vld [vmem:[%s3627_s1 + $0x334] ss:$8 sps:$4 sm:$0xff]  }
  0x3d   : > { %1360 = vmatpush2.bf16.msra.mxu0 %v2506_v56  ;;  %v443_v56 = vpack.c.bf16 %v219_v43, %v211_v42  ;;  %v2582_v42 = vld [vmem:[%s3627_s1 + $0x2e4] ss:$8 sps:$4 sm:$0xff]  }
  0x3e   : > { %1551 = vmatpush2.bf16.msra.mxu1 %v2507_v57  ;;  %1361 = vmatprep.subr.bf16.mxu0 %v2508_v58  ;;  %v445_v57 = vpack.c.bf16 %v221_v47, %v213_v44  ;;  %v452_v58 = vpack.c.bf16 %v236_v49, %v228_v48  ;;  %v2585_v43 = vld [vmem:[%s3627_s1 + $0x3e4] ss:$8 sps:$4 sm:$0xff]   ;;  %v286_v47 = vld [vmem:[%s2798_s13 + $0x358] sm:$0xff]  ;;  %v2580_v48 = vld [vmem:[%s3627_s1 + $0x2e0] ss:$8 sps:$4 sm:$0xff]  }
  0x3f   : > { %1552 = vmatprep.subr.bf16.mxu1 %v2510_v59  ;;  %v454_v59 = vpack.c.bf16 %v238_v51, %v230_v50  ;;  %v276_v44 = vld [vmem:[%s2798_s13 + $0x308] sm:$0xff]  ;;  %v2588_v50 = vld [vmem:[%s3627_s1 + $0x2d4] ss:$8 sps:$4 sm:$0xff]  }
  0x40   : > { %v2583_v49 = vld [vmem:[%s3627_s1 + $0x3e0] ss:$8 sps:$4 sm:$0xff]   ;;  %v2591_v51 = vld [vmem:[%s3627_s1 + $0x3d4] ss:$8 sps:$4 sm:$0xff]  }
  0x41   : > { %1362 = vmatpush2.bf16.msra.mxu0 %v2512_v60  ;;  %v2550_v60 = vld [vmem:[%s3627_s1 + $0x230] ss:$8 sps:$4 sm:$0xff]  }
  0x42   : > { %1553 = vmatpush2.bf16.msra.mxu1 %v2513_v61  ;;  %1363 = vmatprep.subr.bf16.mxu0 %v2514_v62  ;;  %v2553_v61 = vld [vmem:[%s3627_s1 + $0x330] ss:$8 sps:$4 sm:$0xff]   ;;  %v227_v62 = vld [vmem:[%s2798_s13 + $0x180] sm:$0xff] }
  0x43   : > { %1554 = vmatprep.subr.bf16.mxu1 %v2516_v63  ;;  %v235_v63 = vld [vmem:[%s2798_s13 + $0x1c0] sm:$0xff] }
  0x44   : > { %v451_v12 = vpack.c.bf16 %v235_v63, %v227_v62  ;;  %v2597_v62 = vld [vmem:[%s3627_s1 + $0x3c4] ss:$8 sps:$4 sm:$0xff]   ;;  %v285_v63 = vld [vmem:[%s2798_s13 + $0x350] sm:$0xff] }
  0x45   : > { %1364 = vmatpush2.bf16.msra.mxu0 %v2518_v0  ;;  %v229_v0 = vld [vmem:[%s2798_s13 + $0x190] sm:$0xff] }
  0x46   : > { %1555 = vmatpush2.bf16.msra.mxu1 %v2519_v1  ;;  %1365 = vmatprep.subr.bf16.mxu0 %v2520_v2  ;;  %v237_v1 = vld [vmem:[%s2798_s13 + $0x1d0] sm:$0xff]  ;;  %v2558_v2 = vld [vmem:[%s3627_s1 + $0x224] ss:$8 sps:$4 sm:$0xff]  }
  0x47   : > { %1556 = vmatprep.subr.bf16.mxu1 %v2522_v3  ;;  %v2561_v3 = vld [vmem:[%s3627_s1 + $0x324] ss:$8 sps:$4 sm:$0xff]   ;;  %v453_v13 = vpack.c.bf16 %v237_v1, %v229_v0 }
  0x48   : > { %v292_v0 = vld [vmem:[%s2798_s13 + $0x388] sm:$0xff] }
  0x49   : > { %1366 = vmatpush2.bf16.msra.mxu0 %v2524_v4  ;;  %v244_v4 = vld [vmem:[%s2798_s13 + $0x208] sm:$0xff] }
  0x4a   : > { %1557 = vmatpush2.bf16.msra.mxu1 %v2525_v5  ;;  %1717 = vmatprep.subr.bf16.mxu0 %v2528_v10  ;;  %v252_v5 = vld [vmem:[%s2798_s13 + $0x248] sm:$0xff]  ;;  %v2564_v10 = vld [vmem:[%s3627_s1 + $0x214] ss:$8 sps:$4 sm:$0xff]  }
  0x4b   : > { %1908 = vmatprep.subr.bf16.mxu1 %v2531_v11  ;;  %v2567_v11 = vld [vmem:[%s3627_s1 + $0x314] ss:$8 sps:$4 sm:$0xff]   ;;  %v460_v14 = vpack.c.bf16 %v252_v5, %v244_v4  ;;  %v300_v1 = vld [vmem:[%s2798_s13 + $0x3c8] sm:$0xff] }
  0x4c   : > { %1368 = vmatmul.mubr.bf16.vlgmr.msra.gmra.mxu0 %v427_v16  ;;  %v2562_v16 = vld [vmem:[%s3627_s1 + $0x210] ss:$8 sps:$4 sm:$0xff]   ;;  %v2592_v4 = vld [vmem:[%s3627_s1 + $0x2c0] ss:$8 sps:$4 sm:$0xff]  }
  0x4d   : > { %1559 = vmatmul.mubr.bf16.vlgmr.msra.gmra.mxu1 %v429_v17  ;;  %1718 = vmatpush1.bf16.msra.mxu0 %v2526_v18  ;;  %v2565_v17 = vld [vmem:[%s3627_s1 + $0x310] ss:$8 sps:$4 sm:$0xff]   ;;  %v243_v18 = vld [vmem:[%s2798_s13 + $0x200] sm:$0xff] }
  0x4e   : > { %1909 = vmatpush1.bf16.msra.mxu1 %v2529_v19  ;;  %1377 = vmatprep.mubr.bf16.mxu0 %v436_v20  ;;  %v251_v19 = vld [vmem:[%s2798_s13 + $0x240] sm:$0xff]  ;;  %v245_v20 = vld [vmem:[%s2798_s13 + $0x210] sm:$0xff] }
  0x4f   : > { %1568 = vmatprep.mubr.bf16.mxu1 %v438_v21  ;;  %1719 = vmatprep.subr.bf16.mxu0 %v2534_v22  ;;  %v2570_v21 = vld [vmem:[%s3627_s1 + $0x204] ss:$8 sps:$4 sm:$0xff]   ;;  %v459_v32 = vpack.c.bf16 %v251_v19, %v243_v18  ;;  %v461_v33 = vpack.c.bf16 %v253_v23, %v245_v20  ;;  %v2595_v5 = vld [vmem:[%s3627_s1 + $0x3c0] ss:$8 sps:$4 sm:$0xff]   ;;  %v310_v20 = vld [vmem:[%s2798_s13 + $0x418] sm:$0xff] }
  0x50   : > { %1910 = vmatprep.subr.bf16.mxu1 %v2537_v29  ;;  %v2573_v22 = vld [vmem:[%s3627_s1 + $0x304] ss:$8 sps:$4 sm:$0xff]   ;;  %v2571_v29 = vld [vmem:[%s3627_s1 + $0x300] ss:$8 sps:$4 sm:$0xff]  }
  0x51   : > { %1720 = vmatpush1.bf16.msra.mxu0 %v2532_v27  ;;  %v270_v27 = vld [vmem:[%s2798_s13 + $0x2d8] sm:$0xff]  ;;  %v308_v18 = vld [vmem:[%s2798_s13 + $0x408] sm:$0xff] }
  0x52   : > { %1911 = vmatpush1.bf16.msra.mxu1 %v2535_v28  ;;  %1721 = vmatprep.subr.bf16.mxu0 %v2540_v34  ;;  %v2568_v28 = vld [vmem:[%s3627_s1 + $0x200] ss:$8 sps:$4 sm:$0xff]   ;;  %v468_v34 = vpack.c.bf16 %v268_v25, %v260_v24  ;;  %v2609_v25 = vld [vmem:[%s3627_s1 + $0x3a4] ss:$8 sps:$4 sm:$0xff]  }
  0x53   : > { %1912 = vmatprep.subr.bf16.mxu1 %v2543_v35  ;;  %v470_v35 = vpack.c.bf16 %v270_v27, %v262_v26  ;;  %v316_v19 = vld [vmem:[%s2798_s13 + $0x448] sm:$0xff] }
  0x54   : > { %1378 = vmatmul.mubr.bf16.gmra.mxu0 %v435_v36  ;;  %v2574_v36 = vld [vmem:[%s3627_s1 + $0x2f0] ss:$8 sps:$4 sm:$0xff]   ;;  %v2604_v23 = vld [vmem:[%s3627_s1 + $0x2a0] ss:$8 sps:$4 sm:$0xff]  }
  0x55   : > { %1569 = vmatmul.mubr.bf16.gmra.mxu1 %v437_v37  ;;  %1387 = vmatprep.mubr.bf16.mxu0 %v444_v38  ;;  %v2577_v37 = vld [vmem:[%s3627_s1 + $0x3f0] ss:$8 sps:$4 sm:$0xff]   ;;  %v259_v38 = vld [vmem:[%s2798_s13 + $0x280] sm:$0xff] }
  0x56   : > { %1578 = vmatprep.mubr.bf16.mxu1 %v446_v39  ;;  %1722 = vmatpush1.bf16.msra.mxu0 %v2538_v40  ;;  %v267_v39 = vld [vmem:[%s2798_s13 + $0x2c0] sm:$0xff]  ;;  %v261_v40 = vld [vmem:[%s2798_s13 + $0x290] sm:$0xff] }
  0x57   : > { %1913 = vmatpush1.bf16.msra.mxu1 %v2541_v41  ;;  %1723 = vmatprep.subr.bf16.mxu0 %v2546_v45  ;;  %v269_v41 = vld [vmem:[%s2798_s13 + $0x2d0] sm:$0xff]  ;;  %v284_v45 = vld [vmem:[%s2798_s13 + $0x348] sm:$0xff] }
  0x58   : > { %1914 = vmatprep.subr.bf16.mxu1 %v2549_v46  ;;  %v278_v46 = vld [vmem:[%s2798_s13 + $0x318] sm:$0xff]  ;;  %v2607_v24 = vld [vmem:[%s3627_s1 + $0x3a0] ss:$8 sps:$4 sm:$0xff]  }
  0x5a   : > { %1724 = vmatpush1.bf16.msra.mxu0 %v2544_v52  ;;  %v467_v52 = vpack.c.bf16 %v267_v39, %v259_v38  ;;  %v324_v38 = vld [vmem:[%s2798_s13 + $0x488] sm:$0xff] }
  0x5b   : > { %1915 = vmatpush1.bf16.msra.mxu1 %v2547_v53  ;;  %1725 = vmatprep.subr.bf16.mxu0 %v2552_v54  ;;  %v469_v53 = vpack.c.bf16 %v269_v41, %v261_v40  ;;  %v476_v54 = vpack.c.bf16 %v284_v45, %v276_v44  ;;  %v332_v39 = vld [vmem:[%s2798_s13 + $0x4c8] sm:$0xff]  ;;  %v326_v40 = vld [vmem:[%s2798_s13 + $0x498] sm:$0xff] }
  0x5c   : > { %1916 = vmatprep.subr.bf16.mxu1 %v2555_v55  ;;  %1388 = vmatmul.mubr.bf16.gmra.mxu0 %v443_v56  ;;  %v478_v55 = vpack.c.bf16 %v286_v47, %v278_v46  ;;  %v2586_v56 = vld [vmem:[%s3627_s1 + $0x2d0] ss:$8 sps:$4 sm:$0xff]   ;;  %v2619_v44 = vld [vmem:[%s3627_s1 + $0x380] ss:$8 sps:$4 sm:$0xff]   ;;  %v2621_v45 = vld [vmem:[%s3627_s1 + $0x384] ss:$8 sps:$4 sm:$0xff]  }
  0x5d   : > { %1579 = vmatmul.mubr.bf16.gmra.mxu1 %v445_v57  ;;  %1397 = vmatprep.mubr.bf16.mxu0 %v452_v58  ;;  %v2589_v57 = vld [vmem:[%s3627_s1 + $0x3d0] ss:$8 sps:$4 sm:$0xff]   ;;  %v275_v58 = vld [vmem:[%s2798_s13 + $0x300] sm:$0xff] }
  0x5e   : > { %1588 = vmatprep.mubr.bf16.mxu1 %v454_v59  ;;  %1726 = vmatpush1.bf16.msra.mxu0 %v2550_v60  ;;  %v283_v59 = vld [vmem:[%s2798_s13 + $0x340] sm:$0xff]  ;;  %v277_v60 = vld [vmem:[%s2798_s13 + $0x310] sm:$0xff]  ;;  %v334_v41 = vld [vmem:[%s2798_s13 + $0x4d8] sm:$0xff] }
  0x5f   : > { %1917 = vmatpush1.bf16.msra.mxu1 %v2553_v61  ;;  %1727 = vmatprep.subr.bf16.mxu0 %v2558_v2  ;;  %v2594_v61 = vld [vmem:[%s3627_s1 + $0x2c4] ss:$8 sps:$4 sm:$0xff]   ;;  %v294_v2 = vld [vmem:[%s2798_s13 + $0x398] sm:$0xff]  ;;  %v475_v7 = vpack.c.bf16 %v283_v59, %v275_v58 }
  0x60   : > { %1918 = vmatprep.subr.bf16.mxu1 %v2561_v3  ;;  %v302_v3 = vld [vmem:[%s2798_s13 + $0x3d8] sm:$0xff] }
  0x62   : > { %1728 = vmatpush1.bf16.msra.mxu0 %v2556_v8  ;;  %v477_v8 = vpack.c.bf16 %v285_v63, %v277_v60  ;;  %v347_v63 = vld [vmem:[%s2798_s13 + $0x540] sm:$0xff] }
  0x63   : > { %1919 = vmatpush1.bf16.msra.mxu1 %v2559_v9  ;;  %1729 = vmatprep.subr.bf16.mxu0 %v2564_v10  ;;  %v2603_v9 = vld [vmem:[%s3627_s1 + $0x3b4] ss:$8 sps:$4 sm:$0xff]   ;;  %v484_v10 = vpack.c.bf16 %v300_v1, %v292_v0 }
  0x64   : > { %1920 = vmatprep.subr.bf16.mxu1 %v2567_v11  ;;  %1398 = vmatmul.mubr.bf16.gmra.mxu0 %v451_v12  ;;  %v486_v11 = vpack.c.bf16 %v302_v3, %v294_v2  ;;  %v2598_v12 = vld [vmem:[%s3627_s1 + $0x2b0] ss:$8 sps:$4 sm:$0xff]   ;;  %v356_v2 = vld [vmem:[%s2798_s13 + $0x588] sm:$0xff] }
  0x65   : > { %1589 = vmatmul.mubr.bf16.gmra.mxu1 %v453_v13  ;;  %1407 = vmatprep.mubr.bf16.mxu0 %v460_v14  ;;  %v2601_v13 = vld [vmem:[%s3627_s1 + $0x3b0] ss:$8 sps:$4 sm:$0xff]   ;;  %v291_v14 = vld [vmem:[%s2798_s13 + $0x380] sm:$0xff]  ;;  %v364_v3 = vld [vmem:[%s2798_s13 + $0x5c8] sm:$0xff] }
  0x66   : > { %1598 = vmatprep.mubr.bf16.mxu1 %v462_v15  ;;  %1730 = vmatpush1.bf16.msra.mxu0 %v2562_v16  ;;  %v299_v15 = vld [vmem:[%s2798_s13 + $0x3c0] sm:$0xff]  ;;  %v293_v16 = vld [vmem:[%s2798_s13 + $0x390] sm:$0xff] }
  0x67   : > { %1921 = vmatpush1.bf16.msra.mxu1 %v2565_v17  ;;  %1731 = vmatprep.subr.bf16.mxu0 %v2570_v21  ;;  %v301_v17 = vld [vmem:[%s2798_s13 + $0x3d0] sm:$0xff]  ;;  %v2606_v21 = vld [vmem:[%s3627_s1 + $0x2a4] ss:$8 sps:$4 sm:$0xff]   ;;  %v483_v26 = vpack.c.bf16 %v299_v15, %v291_v14 }
  0x68   : > { %1922 = vmatprep.subr.bf16.mxu1 %v2573_v22  ;;  %v318_v22 = vld [vmem:[%s2798_s13 + $0x458] sm:$0xff]  ;;  %v485_v27 = vpack.c.bf16 %v301_v17, %v293_v16  ;;  %v341_v0 = vld [vmem:[%s2798_s13 + $0x510] sm:$0xff]  ;;  %v372_v14 = vld [vmem:[%s2798_s13 + $0x608] sm:$0xff] }
  0x69   : > { %v349_v1 = vld [vmem:[%s2798_s13 + $0x550] sm:$0xff]  ;;  %v380_v15 = vld [vmem:[%s2798_s13 + $0x648] sm:$0xff]  ;;  %v374_v16 = vld [vmem:[%s2798_s13 + $0x618] sm:$0xff] }
  0x6a   : > { %1732 = vmatpush1.bf16.msra.mxu0 %v2568_v28  ;;  %v492_v28 = vpack.c.bf16 %v316_v19, %v308_v18  ;;  %v382_v17 = vld [vmem:[%s2798_s13 + $0x658] sm:$0xff] }
  0x6b   : > { %1923 = vmatpush1.bf16.msra.mxu1 %v2571_v29  ;;  %1733 = vmatprep.subr.bf16.mxu0 %v2576_v30  ;;  %v494_v29 = vpack.c.bf16 %v318_v22, %v310_v20  ;;  %v2612_v30 = vld [vmem:[%s3627_s1 + $0x294] ss:$8 sps:$4 sm:$0xff]   ;;  %v524_v20 = vpack.c.bf16 %v380_v15, %v372_v14  ;;  %v371_v22 = vld [vmem:[%s2798_s13 + $0x600] sm:$0xff] }
  0x6c   : > { %1924 = vmatprep.subr.bf16.mxu1 %v2579_v31  ;;  %1408 = vmatmul.mubr.bf16.gmra.mxu0 %v459_v32  ;;  %v307_v31 = vld [vmem:[%s2798_s13 + $0x400] sm:$0xff] }
  0x6d   : > { %1599 = vmatmul.mubr.bf16.gmra.mxu1 %v461_v33  ;;  %1417 = vmatprep.mubr.bf16.mxu0 %v468_v34  ;;  %v315_v32 = vld [vmem:[%s2798_s13 + $0x440] sm:$0xff]  ;;  %v309_v33 = vld [vmem:[%s2798_s13 + $0x410] sm:$0xff] }
  0x6e   : > { %1608 = vmatprep.mubr.bf16.mxu1 %v470_v35  ;;  %1734 = vmatpush2.bf16.msra.mxu0 %v2574_v36  ;;  %v317_v34 = vld [vmem:[%s2798_s13 + $0x450] sm:$0xff]  ;;  %v491_v46 = vpack.c.bf16 %v315_v32, %v307_v31  ;;  %v199_v14 = vld [vmem:[%s2798_s13 + $0xa0] sm:$0xff] }
  0x6f   : > { %1925 = vmatpush2.bf16.msra.mxu1 %v2577_v37  ;;  %1735 = vmatprep.subr.bf16.mxu0 %v2582_v42  ;;  %v2610_v35 = vld [vmem:[%s3627_s1 + $0x290] ss:$8 sps:$4 sm:$0xff]   ;;  %v2615_v37 = vld [vmem:[%s3627_s1 + $0x394] ss:$8 sps:$4 sm:$0xff]   ;;  %v2618_v42 = vld [vmem:[%s3627_s1 + $0x284] ss:$8 sps:$4 sm:$0xff]   ;;  %v493_v47 = vpack.c.bf16 %v317_v34, %v309_v33 }
  0x70   : > { %1926 = vmatprep.subr.bf16.mxu1 %v2585_v43  ;;  %v2613_v36 = vld [vmem:[%s3627_s1 + $0x390] ss:$8 sps:$4 sm:$0xff]   ;;  %v2616_v43 = vld [vmem:[%s3627_s1 + $0x280] ss:$8 sps:$4 sm:$0xff]  }
  0x71   : > { %v387_v34 = vld [vmem:[%s2798_s13 + $0x680] sm:$0xff] }
  0x72   : > { %1736 = vmatpush2.bf16.msra.mxu0 %v2580_v48  ;;  %v500_v48 = vpack.c.bf16 %v332_v39, %v324_v38  ;;  %v404_v38 = vld [vmem:[%s2798_s13 + $0x708] sm:$0xff]  ;;  %v207_v15 = vld [vmem:[%s2798_s13 + $0xe0] sm:$0xff] }
  0x73   : > { %1927 = vmatpush2.bf16.msra.mxu1 %v2583_v49  ;;  %1737 = vmatprep.subr.bf16.mxu0 %v2588_v50  ;;  %v502_v49 = vpack.c.bf16 %v334_v41, %v326_v40  ;;  %v323_v50 = vld [vmem:[%s2798_s13 + $0x480] sm:$0xff]  ;;  %v412_v39 = vld [vmem:[%s2798_s13 + $0x748] sm:$0xff]  ;;  %v406_v40 = vld [vmem:[%s2798_s13 + $0x718] sm:$0xff] }
  0x74   : > { %1928 = vmatprep.subr.bf16.mxu1 %v2591_v51  ;;  %1418 = vmatmul.mubr.bf16.gmra.mxu0 %v467_v52  ;;  %v331_v51 = vld [vmem:[%s2798_s13 + $0x4c0] sm:$0xff]  ;;  %v325_v52 = vld [vmem:[%s2798_s13 + $0x490] sm:$0xff]  ;;  %v414_v41 = vld [vmem:[%s2798_s13 + $0x758] sm:$0xff] }
  0x75   : > { %1609 = vmatmul.mubr.bf16.gmra.mxu1 %v469_v53  ;;  %1427 = vmatprep.mubr.bf16.mxu0 %v476_v54  ;;  %v333_v53 = vld [vmem:[%s2798_s13 + $0x4d0] sm:$0xff]  ;;  %v340_v54 = vld [vmem:[%s2798_s13 + $0x508] sm:$0xff]  ;;  %v499_v58 = vpack.c.bf16 %v331_v51, %v323_v50  ;;  %v422_v51 = vld [vmem:[%s2798_s13 + $0x798] sm:$0xff] }
  0x76   : > { %1618 = vmatprep.mubr.bf16.mxu1 %v478_v55  ;;  %1738 = vmatpush2.bf16.msra.mxu0 %v2586_v56  ;;  %v348_v55 = vld [vmem:[%s2798_s13 + $0x548] sm:$0xff]  ;;  %v342_v56 = vld [vmem:[%s2798_s13 + $0x518] sm:$0xff]  ;;  %v501_v59 = vpack.c.bf16 %v333_v53, %v325_v52 }
  0x77   : > { %1929 = vmatpush2.bf16.msra.mxu1 %v2589_v57  ;;  %1739 = vmatprep.subr.bf16.mxu0 %v2594_v61  ;;  %v350_v57 = vld [vmem:[%s2798_s13 + $0x558] sm:$0xff]  ;;  %v508_v60 = vpack.c.bf16 %v348_v55, %v340_v54  ;;  %v420_v50 = vld [vmem:[%s2798_s13 + $0x788] sm:$0xff]  ;;  %v550_v55 = vpack.c.bf16 %v422_v51, %v422_v51  ;;  %v255_v51 = vld [vmem:[%s2798_s13 + $0x260] sm:$0xff] }
  0x78   : > { %1930 = vmatprep.subr.bf16.mxu1 %v2597_v62  ;;  %v510_v61 = vpack.c.bf16 %v350_v57, %v342_v56  ;;  %v339_v62 = vld [vmem:[%s2798_s13 + $0x500] sm:$0xff]  ;;  %v548_v54 = vpack.c.bf16 %v420_v50, %v420_v50  ;;  %v421_v57 = vld [vmem:[%s2798_s13 + $0x790] sm:$0xff] }
  0x79   : > { %v419_v56 = vld [vmem:[%s2798_s13 + $0x780] sm:$0xff] }
  0x7a   : > { %1740 = vmatpush2.bf16.msra.mxu0 %v2592_v4  ;;  %v358_v4 = vld [vmem:[%s2798_s13 + $0x598] sm:$0xff]  ;;  %v247_v50 = vld [vmem:[%s2798_s13 + $0x220] sm:$0xff] }
  0x7b   : > { %1931 = vmatpush2.bf16.msra.mxu1 %v2595_v5  ;;  %1741 = vmatprep.subr.bf16.mxu0 %v2600_v6  ;;  %v366_v5 = vld [vmem:[%s2798_s13 + $0x5d8] sm:$0xff]  ;;  %v507_v6 = vpack.c.bf16 %v347_v63, %v339_v62  ;;  %v547_v62 = vpack.c.bf16 %v419_v56, %v419_v56  ;;  %v549_v63 = vpack.c.bf16 %v421_v57, %v421_v57 }
  0x7c   : > { %1932 = vmatprep.subr.bf16.mxu1 %v2603_v9  ;;  %1428 = vmatmul.mubr.bf16.gmra.mxu0 %v475_v7  ;;  %v509_v7 = vpack.c.bf16 %v349_v1, %v341_v0  ;;  %v518_v9 = vpack.c.bf16 %v366_v5, %v358_v4  ;;  %v185_v4 = vld [vmem:[%s2798_s13 + $0x30] sm:$0xff]  ;;  %v266_v56 = vld [vmem:[%s2798_s13 + $0x2b8] sm:$0xff] }
  0x7d   : > { %1619 = vmatmul.mubr.bf16.gmra.mxu1 %v477_v8  ;;  %1437 = vmatprep.mubr.bf16.mxu0 %v484_v10  ;;  %v516_v8 = vpack.c.bf16 %v364_v3, %v356_v2  ;;  %v355_v10 = vld [vmem:[%s2798_s13 + $0x580] sm:$0xff]  ;;  %v193_v5 = vld [vmem:[%s2798_s13 + $0x70] sm:$0xff]  ;;  %v274_v57 = vld [vmem:[%s2798_s13 + $0x2f8] sm:$0xff] }
  0x7e   : > { %1628 = vmatprep.mubr.bf16.mxu1 %v486_v11  ;;  %1742 = vmatpush2.bf16.msra.mxu0 %v2598_v12  ;;  %v363_v11 = vld [vmem:[%s2798_s13 + $0x5c0] sm:$0xff]  ;;  %v357_v12 = vld [vmem:[%s2798_s13 + $0x590] sm:$0xff] }
  0x7f   : > { %1933 = vmatpush2.bf16.msra.mxu1 %v2601_v13  ;;  %1743 = vmatprep.subr.bf16.mxu0 %v2606_v21  ;;  %v365_v13 = vld [vmem:[%s2798_s13 + $0x5d0] sm:$0xff]  ;;  %v515_v18 = vpack.c.bf16 %v363_v11, %v355_v10  ;;  %v526_v21 = vpack.c.bf16 %v382_v17, %v374_v16  ;;  %v183_v2 = vld [vmem:[%s2798_s13 + $0x20] sm:$0xff]  ;;  %v433_v11 = vpack.c.bf16 %v193_v5, %v185_v4  ;;  %v282_v4 = vld [vmem:[%s2798_s13 + $0x338] sm:$0xff] }
  0x80   : > { %1934 = vmatprep.subr.bf16.mxu1 %v2609_v25  ;;  %v517_v19 = vpack.c.bf16 %v365_v13, %v357_v12  ;;  %v381_v25 = vld [vmem:[%s2798_s13 + $0x650] sm:$0xff]  ;;  %v191_v3 = vld [vmem:[%s2798_s13 + $0x60] sm:$0xff]  ;;  %v290_v5 = vld [vmem:[%s2798_s13 + $0x378] sm:$0xff] }
  0x81   : > { %v431_v10 = vpack.c.bf16 %v191_v3, %v183_v2  ;;  %v201_v16 = vld [vmem:[%s2798_s13 + $0xb0] sm:$0xff]  ;;  %v280_v2 = vld [vmem:[%s2798_s13 + $0x328] sm:$0xff] }
  0x82   : > { %1744 = vmatpush2.bf16.msra.mxu0 %v2604_v23  ;;  %v379_v23 = vld [vmem:[%s2798_s13 + $0x640] sm:$0xff]  ;;  %v209_v17 = vld [vmem:[%s2798_s13 + $0xf0] sm:$0xff]  ;;  %v288_v3 = vld [vmem:[%s2798_s13 + $0x368] sm:$0xff] }
  0x83   : > { %1935 = vmatpush2.bf16.msra.mxu1 %v2607_v24  ;;  %1745 = vmatprep.subr.bf16.mxu0 %v2612_v30  ;;  %v373_v24 = vld [vmem:[%s2798_s13 + $0x610] sm:$0xff]  ;;  %v523_v30 = vpack.c.bf16 %v379_v23, %v371_v22  ;;  %v439_v22 = vpack.c.bf16 %v207_v15, %v199_v14  ;;  %v441_v23 = vpack.c.bf16 %v209_v17, %v201_v16  ;;  %v296_v14 = vld [vmem:[%s2798_s13 + $0x3a8] sm:$0xff]  ;;  %v298_v16 = vld [vmem:[%s2798_s13 + $0x3b8] sm:$0xff] }
  0x84   : > { %1438 = vmatmul.mubr.bf16.gmra.mxu0 %v483_v26  ;;  %1936 = vmatprep.subr.bf16.mxu1 %v2615_v37  ;;  %v388_v26 = vld [vmem:[%s2798_s13 + $0x688] sm:$0xff]  ;;  %v525_v31 = vpack.c.bf16 %v381_v25, %v373_v24  ;;  %v397_v37 = vld [vmem:[%s2798_s13 + $0x6d0] sm:$0xff]  ;;  %v306_v17 = vld [vmem:[%s2798_s13 + $0x3f8] sm:$0xff] }
  0x85   : > { %1629 = vmatmul.mubr.bf16.gmra.mxu1 %v485_v27  ;;  %1447 = vmatprep.mubr.bf16.mxu0 %v492_v28  ;;  %v396_v27 = vld [vmem:[%s2798_s13 + $0x6c8] sm:$0xff]  ;;  %v390_v28 = vld [vmem:[%s2798_s13 + $0x698] sm:$0xff] }
  0x86   : > { %1638 = vmatprep.mubr.bf16.mxu1 %v494_v29  ;;  %1746 = vmatpush2.bf16.msra.mxu0 %v2610_v35  ;;  %v398_v29 = vld [vmem:[%s2798_s13 + $0x6d8] sm:$0xff]  ;;  %v532_v32 = vpack.c.bf16 %v396_v27, %v388_v26  ;;  %v395_v35 = vld [vmem:[%s2798_s13 + $0x6c0] sm:$0xff]  ;;  %v304_v15 = vld [vmem:[%s2798_s13 + $0x3e8] sm:$0xff] }
  0x87   : > { %1937 = vmatpush2.bf16.msra.mxu1 %v2613_v36  ;;  %1747 = vmatprep.subr.bf16.mxu0 %v2618_v42  ;;  %v534_v33 = vpack.c.bf16 %v398_v29, %v390_v28  ;;  %v389_v36 = vld [vmem:[%s2798_s13 + $0x690] sm:$0xff]  ;;  %v531_v42 = vpack.c.bf16 %v395_v35, %v387_v34  ;;  %v215_v26 = vld [vmem:[%s2798_s13 + $0x120] sm:$0xff] }
  0x88   : > { %1938 = vmatprep.subr.bf16.mxu1 %v2621_v45  ;;  %v542_v45 = vpack.c.bf16 %v414_v41, %v406_v40  ;;  %v223_v27 = vld [vmem:[%s2798_s13 + $0x160] sm:$0xff]  ;;  %v217_v28 = vld [vmem:[%s2798_s13 + $0x130] sm:$0xff] }
  0x89   : > { %v225_v29 = vld [vmem:[%s2798_s13 + $0x170] sm:$0xff]  ;;  %v447_v34 = vpack.c.bf16 %v223_v27, %v215_v26  ;;  %v312_v26 = vld [vmem:[%s2798_s13 + $0x428] sm:$0xff]  ;;  %v685_v27 = vlaneseq }
  0x8a   : > { %1748 = vmatpush2.bf16.msra.mxu0 %v2616_v43  ;;  %v533_v43 = vpack.c.bf16 %v397_v37, %v389_v36  ;;  %v449_v35 = vpack.c.bf16 %v225_v29, %v217_v28  ;;  %v233_v40 = vld [vmem:[%s2798_s13 + $0x1b0] sm:$0xff]  ;;  %v320_v28 = vld [vmem:[%s2798_s13 + $0x468] sm:$0xff]  ;;  %v314_v29 = vld [vmem:[%s2798_s13 + $0x438] sm:$0xff] }
  0x8b   : > { %1939 = vmatpush2.bf16.msra.mxu1 %v2619_v44  ;;  %v540_v44 = vpack.c.bf16 %v412_v39, %v404_v38  ;;  %v231_v38 = vld [vmem:[%s2798_s13 + $0x1a0] sm:$0xff]  ;;  %v241_v41 = vld [vmem:[%s2798_s13 + $0x1f0] sm:$0xff] }
  0x8c   : > { %1448 = vmatmul.mubr.bf16.gmra.mxu0 %v491_v46  ;;  %v403_v46 = vld [vmem:[%s2798_s13 + $0x700] sm:$0xff] }
  0x8d   : > { %1639 = vmatmul.mubr.bf16.gmra.mxu1 %v493_v47  ;;  %1457 = vmatprep.mubr.bf16.mxu0 %v500_v48  ;;  %v411_v47 = vld [vmem:[%s2798_s13 + $0x740] sm:$0xff]  ;;  %v405_v48 = vld [vmem:[%s2798_s13 + $0x710] sm:$0xff] }
  0x8e   : > { %1648 = vmatprep.mubr.bf16.mxu1 %v502_v49  ;;  %v413_v49 = vld [vmem:[%s2798_s13 + $0x750] sm:$0xff]  ;;  %v539_v52 = vpack.c.bf16 %v411_v47, %v403_v46  ;;  %v239_v39 = vld [vmem:[%s2798_s13 + $0x1e0] sm:$0xff]  ;;  %v457_v47 = vpack.c.bf16 %v241_v41, %v233_v40 }
  0x8f   : > { %v541_v53 = vpack.c.bf16 %v413_v49, %v405_v48  ;;  %v455_v46 = vpack.c.bf16 %v239_v39, %v231_v38  ;;  %v319_v38 = vld [vmem:[%s2798_s13 + $0x460] sm:$0xff]  ;;  %v313_v40 = vld [vmem:[%s2798_s13 + $0x430] sm:$0xff] }
  0x90   : > { %v321_v41 = vld [vmem:[%s2798_s13 + $0x470] sm:$0xff] }
  0x94   : > { %1458 = vmatmul.mubr.bf16.gmra.mxu0 %v499_v58  ;;  %v184_v58 = vld [vmem:[%s2798_s13 + $0x28] sm:$0xff] }
  0x95   : > { %1649 = vmatmul.mubr.bf16.gmra.mxu1 %v501_v59  ;;  %1467 = vmatprep.mubr.bf16.mxu0 %v508_v60  ;;  %v192_v59 = vld [vmem:[%s2798_s13 + $0x68] sm:$0xff]  ;;  %v186_v60 = vld [vmem:[%s2798_s13 + $0x38] sm:$0xff] }
  0x96   : > { %1658 = vmatprep.mubr.bf16.mxu1 %v510_v61  ;;  %v194_v61 = vld [vmem:[%s2798_s13 + $0x78] sm:$0xff]  ;;  %v432_v0 = vpack.c.bf16 %v192_v59, %v184_v58  ;;  %v463_v58 = vpack.c.bf16 %v255_v51, %v247_v50 }
  0x97   : > { %v434_v1 = vpack.c.bf16 %v194_v61, %v186_v60  ;;  %v474_v61 = vpack.c.bf16 %v274_v57, %v266_v56  ;;  %v335_v56 = vld [vmem:[%s2798_s13 + $0x4e0] sm:$0xff] }
  0x9c   : > { %1468 = vmatmul.mubr.bf16.gmra.mxu0 %v507_v6  ;;  %v200_v6 = vld [vmem:[%s2798_s13 + $0xa8] sm:$0xff] }
  0x9d   : > { %1659 = vmatmul.mubr.bf16.gmra.mxu1 %v509_v7  ;;  %1477 = vmatprep.mubr.bf16.mxu0 %v516_v8  ;;  %v208_v7 = vld [vmem:[%s2798_s13 + $0xe8] sm:$0xff]  ;;  %v202_v8 = vld [vmem:[%s2798_s13 + $0xb8] sm:$0xff] }
  0x9e   : > { %1668 = vmatprep.mubr.bf16.mxu1 %v518_v9  ;;  %v210_v9 = vld [vmem:[%s2798_s13 + $0xf8] sm:$0xff]  ;;  %v440_v12 = vpack.c.bf16 %v208_v7, %v200_v6 }
  0x9f   : > { %v442_v13 = vpack.c.bf16 %v210_v9, %v202_v8  ;;  %v480_v8 = vpack.c.bf16 %v288_v3, %v280_v2  ;;  %v482_v9 = vpack.c.bf16 %v290_v5, %v282_v4 }
  0xa4   : > { %1478 = vmatmul.mubr.bf16.gmra.mxu0 %v515_v18  ;;  %v216_v18 = vld [vmem:[%s2798_s13 + $0x128] sm:$0xff] }
  0xa5   : > { %1669 = vmatmul.mubr.bf16.gmra.mxu1 %v517_v19  ;;  %1487 = vmatprep.mubr.bf16.mxu0 %v524_v20  ;;  %v224_v19 = vld [vmem:[%s2798_s13 + $0x168] sm:$0xff]  ;;  %v218_v20 = vld [vmem:[%s2798_s13 + $0x138] sm:$0xff] }
  0xa6   : > { %1678 = vmatprep.mubr.bf16.mxu1 %v526_v21  ;;  %v226_v21 = vld [vmem:[%s2798_s13 + $0x178] sm:$0xff]  ;;  %v448_v24 = vpack.c.bf16 %v224_v19, %v216_v18 }
  0xa7   : > { %v450_v25 = vpack.c.bf16 %v226_v21, %v218_v20  ;;  %v488_v20 = vpack.c.bf16 %v304_v15, %v296_v14  ;;  %v490_v21 = vpack.c.bf16 %v306_v17, %v298_v16 }
  0xac   : > { %1488 = vmatmul.mubr.bf16.gmra.mxu0 %v523_v30  ;;  %v232_v30 = vld [vmem:[%s2798_s13 + $0x1a8] sm:$0xff] }
  0xad   : > { %1679 = vmatmul.mubr.bf16.gmra.mxu1 %v525_v31  ;;  %1497 = vmatprep.mubr.bf16.mxu0 %v532_v32  ;;  %v240_v31 = vld [vmem:[%s2798_s13 + $0x1e8] sm:$0xff]  ;;  %v234_v32 = vld [vmem:[%s2798_s13 + $0x1b8] sm:$0xff] }
  0xae   : > { %1688 = vmatprep.mubr.bf16.mxu1 %v534_v33  ;;  %v242_v33 = vld [vmem:[%s2798_s13 + $0x1f8] sm:$0xff]  ;;  %v456_v36 = vpack.c.bf16 %v240_v31, %v232_v30 }
  0xaf   : > { %v458_v37 = vpack.c.bf16 %v242_v33, %v234_v32  ;;  %v322_v30 = vld [vmem:[%s2798_s13 + $0x478] sm:$0xff]  ;;  %v496_v33 = vpack.c.bf16 %v320_v28, %v312_v26 }
  0xb0   : > { %v362_v28 = vld [vmem:[%s2798_s13 + $0x5b8] sm:$0xff] }
  0xb4   : > { %1498 = vmatmul.mubr.bf16.gmra.mxu0 %v531_v42  ;;  %v248_v42 = vld [vmem:[%s2798_s13 + $0x228] sm:$0xff] }
  0xb5   : > { %1689 = vmatmul.mubr.bf16.gmra.mxu1 %v533_v43  ;;  %1507 = vmatprep.mubr.bf16.mxu0 %v540_v44  ;;  %v256_v43 = vld [vmem:[%s2798_s13 + $0x268] sm:$0xff]  ;;  %v250_v44 = vld [vmem:[%s2798_s13 + $0x238] sm:$0xff] }
  0xb6   : > { %1698 = vmatprep.mubr.bf16.mxu1 %v542_v45  ;;  %v258_v45 = vld [vmem:[%s2798_s13 + $0x278] sm:$0xff]  ;;  %v464_v48 = vpack.c.bf16 %v256_v43, %v248_v42  ;;  %v328_v42 = vld [vmem:[%s2798_s13 + $0x4a8] sm:$0xff] }
  0xb7   : > { %v466_v49 = vpack.c.bf16 %v258_v45, %v250_v44  ;;  %v336_v43 = vld [vmem:[%s2798_s13 + $0x4e8] sm:$0xff]  ;;  %v330_v44 = vld [vmem:[%s2798_s13 + $0x4b8] sm:$0xff] }
  0xb8   : > { %v338_v45 = vld [vmem:[%s2798_s13 + $0x4f8] sm:$0xff]  ;;  %v504_v50 = vpack.c.bf16 %v336_v43, %v328_v42 }
  0xb9   : > { %v506_v51 = vpack.c.bf16 %v338_v45, %v330_v44 }
  0xbc   : > { %1508 = vmatmul.mubr.bf16.gmra.mxu0 %v539_v52  ;;  %v249_v52 = vld [vmem:[%s2798_s13 + $0x230] sm:$0xff] }
  0xbd   : > { %1699 = vmatmul.mubr.bf16.gmra.mxu1 %v541_v53  ;;  %1517 = vmatprep.mubr.bf16.mxu0 %v548_v54  ;;  %v257_v53 = vld [vmem:[%s2798_s13 + $0x270] sm:$0xff]  ;;  %v264_v54 = vld [vmem:[%s2798_s13 + $0x2a8] sm:$0xff] }
  0xbe   : > { %1708 = vmatprep.mubr.bf16.mxu1 %v550_v55  ;;  %v272_v55 = vld [vmem:[%s2798_s13 + $0x2e8] sm:$0xff]  ;;  %v465_v59 = vpack.c.bf16 %v257_v53, %v249_v52 }
  0xbf   : > { %v472_v60 = vpack.c.bf16 %v272_v55, %v264_v54  ;;  %v327_v55 = vld [vmem:[%s2798_s13 + $0x4a0] sm:$0xff] }
  0xc4   : > { %1518 = vmatmul.mubr.bf16.gmra.mxu0 %v547_v62  ;;  %v263_v62 = vld [vmem:[%s2798_s13 + $0x2a0] sm:$0xff] }
  0xc5   : > { %1709 = vmatmul.mubr.bf16.gmra.mxu1 %v549_v63  ;;  %1749 = vmatprep.mubr.bf16.mxu0 %v432_v0  ;;  %v271_v63 = vld [vmem:[%s2798_s13 + $0x2e0] sm:$0xff]  ;;  %v265_v0 = vld [vmem:[%s2798_s13 + $0x2b0] sm:$0xff] }
  0xc6   : > { %1940 = vmatprep.mubr.bf16.mxu1 %v434_v1  ;;  %v273_v1 = vld [vmem:[%s2798_s13 + $0x2f0] sm:$0xff]  ;;  %v471_v6 = vpack.c.bf16 %v271_v63, %v263_v62  ;;  %v352_v63 = vld [vmem:[%s2798_s13 + $0x568] sm:$0xff] }
  0xc7   : > { %v473_v7 = vpack.c.bf16 %v273_v1, %v265_v0  ;;  %v346_v0 = vld [vmem:[%s2798_s13 + $0x538] sm:$0xff] }
  0xc8   : > { %v354_v1 = vld [vmem:[%s2798_s13 + $0x578] sm:$0xff] }
  0xcc   : > { %1750 = vmatmul.mubr.bf16.vlgmr.msra.gmra.mxu0 %v431_v10  ;;  %v279_v10 = vld [vmem:[%s2798_s13 + $0x320] sm:$0xff] }
  0xcd   : > { %1941 = vmatmul.mubr.bf16.vlgmr.msra.gmra.mxu1 %v433_v11  ;;  %1759 = vmatprep.mubr.bf16.mxu0 %v440_v12  ;;  %v287_v11 = vld [vmem:[%s2798_s13 + $0x360] sm:$0xff]  ;;  %v281_v12 = vld [vmem:[%s2798_s13 + $0x330] sm:$0xff] }
  0xce   : > { %1950 = vmatprep.mubr.bf16.mxu1 %v442_v13  ;;  %v289_v13 = vld [vmem:[%s2798_s13 + $0x370] sm:$0xff]  ;;  %v479_v18 = vpack.c.bf16 %v287_v11, %v279_v10  ;;  %v514_v11 = vpack.c.bf16 %v354_v1, %v346_v0 }
  0xcf   : > { %v481_v19 = vpack.c.bf16 %v289_v13, %v281_v12 }
  0xd4   : > { %1760 = vmatmul.mubr.bf16.gmra.mxu0 %v439_v22  ;;  %v295_v22 = vld [vmem:[%s2798_s13 + $0x3a0] sm:$0xff] }
  0xd5   : > { %1951 = vmatmul.mubr.bf16.gmra.mxu1 %v441_v23  ;;  %1769 = vmatprep.mubr.bf16.mxu0 %v448_v24  ;;  %v303_v23 = vld [vmem:[%s2798_s13 + $0x3e0] sm:$0xff]  ;;  %v297_v24 = vld [vmem:[%s2798_s13 + $0x3b0] sm:$0xff] }
  0xd6   : > { %1960 = vmatprep.mubr.bf16.mxu1 %v450_v25  ;;  %v305_v25 = vld [vmem:[%s2798_s13 + $0x3f0] sm:$0xff]  ;;  %v487_v31 = vpack.c.bf16 %v303_v23, %v295_v22 }
  0xd7   : > { %v489_v32 = vpack.c.bf16 %v305_v25, %v297_v24  ;;  %v345_v22 = vld [vmem:[%s2798_s13 + $0x530] sm:$0xff]  ;;  %v360_v24 = vld [vmem:[%s2798_s13 + $0x5a8] sm:$0xff] }
  0xd8   : > { %v353_v23 = vld [vmem:[%s2798_s13 + $0x570] sm:$0xff] }
  0xdc   : > { %1770 = vmatmul.mubr.bf16.gmra.mxu0 %v447_v34  ;;  %v498_v34 = vpack.c.bf16 %v322_v30, %v314_v29  ;;  %v370_v29 = vld [vmem:[%s2798_s13 + $0x5f8] sm:$0xff] }
  0xdd   : > { %1961 = vmatmul.mubr.bf16.gmra.mxu1 %v449_v35  ;;  %1779 = vmatprep.mubr.bf16.mxu0 %v456_v36  ;;  %v686_v35 = vshrl.u32 %v685_v27, 7  ;;  %v683_v36 = vld [vmem:[%s3628_s2] sm:$0x3]  ;;  %v368_v27 = vld [vmem:[%s2798_s13 + $0x5e8] sm:$0xff] }
  0xde   : > { %1970 = vmatprep.mubr.bf16.mxu1 %v458_v37  ;;  %v311_v37 = vld [vmem:[%s2798_s13 + $0x420] sm:$0xff] }
  0xdf   : > { %v687_v39 = vsub.s32 0, %v686_v35 }
  0xe4   : > { %1780 = vmatmul.mubr.bf16.gmra.mxu0 %v455_v46  ;;  %v691_v46 = vsub.s32 1, %v686_v35  ;;  %v513_v35 = vpack.c.bf16 %v353_v23, %v345_v22  ;;  %v392_v22 = vld [vmem:[%s2798_s13 + $0x6a8] sm:$0xff] }
  0xe5   : > { %1971 = vmatmul.mubr.bf16.gmra.mxu1 %v457_v47  ;;  %1789 = vmatprep.mubr.bf16.mxu0 %v464_v48  ;;  %v495_v47 = vpack.c.bf16 %v319_v38, %v311_v37  ;;  %v497_v48 = vpack.c.bf16 %v321_v41, %v313_v40  ;;  %v520_v38 = vpack.c.bf16 %v368_v27, %v360_v24  ;;  %v402_v27 = vld [vmem:[%s2798_s13 + $0x6f8] sm:$0xff] }
  0xe6   : > { %1980 = vmatprep.mubr.bf16.mxu1 %v466_v49  ;;  %v3255_v49 = vrot.slane %v683_v36, %v687_v39  ;;  %v3257_v52 = vrot.slane %v683_v36, %v691_v46  ;;  %v522_v39 = vpack.c.bf16 %v370_v29, %v362_v28  ;;  %v359_v46 = vld [vmem:[%s2798_s13 + $0x5a0] sm:$0xff] }
  0xec   : > { %1790 = vmatmul.mubr.bf16.gmra.mxu0 %v463_v58  ;;  %v329_v58 = vld [vmem:[%s2798_s13 + $0x4b0] sm:$0xff] }
  0xed   : > { %1981 = vmatmul.mubr.bf16.gmra.mxu1 %v465_v59  ;;  %1799 = vmatprep.mubr.bf16.mxu0 %v472_v60  ;;  %v337_v59 = vld [vmem:[%s2798_s13 + $0x4f0] sm:$0xff]  ;;  %v344_v60 = vld [vmem:[%s2798_s13 + $0x528] sm:$0xff] }
  0xee   : > { %1990 = vmatprep.mubr.bf16.mxu1 %v474_v61  ;;  %v512_v10 = vpack.c.bf16 %v352_v63, %v344_v60 }
  0xf4   : > { %1800 = vmatmul.mubr.bf16.gmra.mxu0 %v471_v6  ;;  %v503_v6 = vpack.c.bf16 %v335_v56, %v327_v55 }
  0xf5   : > { %1991 = vmatmul.mubr.bf16.gmra.mxu1 %v473_v7  ;;  %1809 = vmatprep.mubr.bf16.mxu0 %v480_v8  ;;  %v505_v7 = vpack.c.bf16 %v337_v59, %v329_v58  ;;  %v378_v58 = vld [vmem:[%s2798_s13 + $0x638] sm:$0xff] }
  0xf6   : > { %2000 = vmatprep.mubr.bf16.mxu1 %v482_v9  ;;  %v386_v59 = vld [vmem:[%s2798_s13 + $0x678] sm:$0xff] }
  0xfc   : > { %1810 = vmatmul.mubr.bf16.gmra.mxu0 %v479_v18  ;;  %v343_v18 = vld [vmem:[%s2798_s13 + $0x520] sm:$0xff] }
  0xfd   : > { %2001 = vmatmul.mubr.bf16.gmra.mxu1 %v481_v19  ;;  %1819 = vmatprep.mubr.bf16.mxu0 %v488_v20  ;;  %v351_v19 = vld [vmem:[%s2798_s13 + $0x560] sm:$0xff] }
  0xfe   : > { %2010 = vmatprep.mubr.bf16.mxu1 %v490_v21 }
 0x104   : > { %1820 = vmatmul.mubr.bf16.gmra.mxu0 %v487_v31 }
 0x105   : > { %2011 = vmatmul.mubr.bf16.gmra.mxu1 %v489_v32  ;;  %1829 = vmatprep.mubr.bf16.mxu0 %v496_v33 }
 0x106   : > { %2020 = vmatprep.mubr.bf16.mxu1 %v498_v34  ;;  %v511_v34 = vpack.c.bf16 %v351_v19, %v343_v18  ;;  %v377_v19 = vld [vmem:[%s2798_s13 + $0x630] sm:$0xff] }
 0x10c   : > { %v1369_v53 = vpop.f32.mrf.mxu0  ;;  %1830 = vmatmul.mubr.bf16.gmra.mxu0 %v495_v47  ;;  %v367_v47 = vld [vmem:[%s2798_s13 + $0x5e0] sm:$0xff] }
 0x10d   : > { %v1560_v54 = vpop.f32.mrf.mxu1  ;;  %2021 = vmatmul.mubr.bf16.gmra.mxu1 %v497_v48  ;;  %v1370_v57 = vadd.f32 %v1369_v53, %v3255_v49  ;;  %1839 = vmatprep.mubr.bf16.mxu0 %v504_v50  ;;  %v369_v53 = vld [vmem:[%s2798_s13 + $0x5f0] sm:$0xff]  ;;  %v519_v0 = vpack.c.bf16 %v367_v47, %v359_v46  ;;  %v391_v47 = vld [vmem:[%s2798_s13 + $0x6a0] sm:$0xff] }
 0x10e   : > { %2030 = vmatprep.mubr.bf16.mxu1 %v506_v51  ;;  %v1371_v61 = vpop.f32.mrf.mxu0  ;;  %v361_v51 = vld [vmem:[%s2798_s13 + $0x5b0] sm:$0xff] }
 0x10f   : > { %v1562_v62 = vpop.f32.mrf.mxu1  ;;  %v3268_v2 = vadd.f32 %v1560_v54, %v1370_v57  ;;  %v1372_v3 = vadd.f32 %v1371_v61, %v3257_v52  ;;  %v376_v54 = vld [vmem:[%s2798_s13 + $0x628] sm:$0xff]  ;;  %v521_v1 = vpack.c.bf16 %v369_v53, %v361_v51 }
 0x110   : > { %v1373_v4 = vpop.f32.mrf.mxu0  ;;  %v384_v57 = vld [vmem:[%s2798_s13 + $0x668] sm:$0xff] }
 0x111   : > { %v1564_v5 = vpop.f32.mrf.mxu1  ;;  %v3271_v8 = vadd.f32 %v1562_v62, %v1372_v3  ;;  %v1374_v9 = vadd.f32 %v1373_v4, %v3255_v49 }
 0x112   : > { %v1375_v12 = vpop.f32.mrf.mxu0 }
 0x113   : > { %v1566_v13 = vpop.f32.mrf.mxu1  ;;  %v3274_v14 = vadd.f32 %v1564_v5, %v1374_v9  ;;  %v1376_v15 = vadd.f32 %v1375_v12, %v3257_v52  ;;  %v528_v5 = vpack.c.bf16 %v384_v57, %v376_v54  ;;  %v393_v54 = vld [vmem:[%s2798_s13 + $0x6b0] sm:$0xff] }
 0x114   : > { %v1379_v16 = vpop.f32.mrf.mxu0  ;;  %1840 = vmatmul.mubr.bf16.gmra.mxu0 %v503_v6  ;;  %v530_v6 = vpack.c.bf16 %v386_v59, %v378_v58  ;;  %v416_v59 = vld [vmem:[%s2798_s13 + $0x768] sm:$0xff] }
 0x115   : > { %v1570_v17 = vpop.f32.mrf.mxu1  ;;  %2031 = vmatmul.mubr.bf16.gmra.mxu1 %v505_v7  ;;  %v3279_v20 = vadd.f32 %v1566_v13, %v1376_v15  ;;  %v1380_v21 = vadd.f32 %v1379_v16, %v3255_v49  ;;  %1849 = vmatprep.mubr.bf16.mxu0 %v512_v10  ;;  %v375_v15 = vld [vmem:[%s2798_s13 + $0x620] sm:$0xff] }
 0x116   : > { %2040 = vmatprep.mubr.bf16.mxu1 %v514_v11  ;;  %v1381_v25 = vpop.f32.mrf.mxu0  ;;  %v383_v16 = vld [vmem:[%s2798_s13 + $0x660] sm:$0xff] }
 0x117   : > { %v1572_v26 = vpop.f32.mrf.mxu1  ;;  %v3288_v30 = vadd.f32 %v1570_v17, %v1380_v21  ;;  %v1382_v31 = vadd.f32 %v1381_v25, %v3257_v52  ;;  %v385_v21 = vld [vmem:[%s2798_s13 + $0x670] sm:$0xff]  ;;  %v400_v25 = vld [vmem:[%s2798_s13 + $0x6e8] sm:$0xff] }
 0x118   : > { %v1383_v32 = vpop.f32.mrf.mxu0 }
 0x119   : > { %v1574_v33 = vpop.f32.mrf.mxu1  ;;  %v3291_v36 = vadd.f32 %v1572_v26, %v1382_v31  ;;  %v1384_v37 = vadd.f32 %v1383_v32, %v3255_v49  ;;  %v394_v26 = vld [vmem:[%s2798_s13 + $0x6b8] sm:$0xff] }
 0x11a   : > { %v1385_v40 = vpop.f32.mrf.mxu0 }
 0x11b   : > { %v1576_v41 = vpop.f32.mrf.mxu1  ;;  %v3294_v42 = vadd.f32 %v1574_v33, %v1384_v37  ;;  %v1386_v43 = vadd.f32 %v1385_v40, %v3257_v52  ;;  %v527_v33 = vpack.c.bf16 %v383_v16, %v375_v15 }
 0x11c   : > { %v1389_v44 = vpop.f32.mrf.mxu0  ;;  %1850 = vmatmul.mubr.bf16.gmra.mxu0 %v511_v34  ;;  %v529_v34 = vpack.c.bf16 %v385_v21, %v377_v19 }
 0x11d   : > { %v1580_v45 = vpop.f32.mrf.mxu1  ;;  %2041 = vmatmul.mubr.bf16.gmra.mxu1 %v513_v35  ;;  %v3299_v48 = vadd.f32 %v1576_v41, %v1386_v43  ;;  %v1390_v50 = vadd.f32 %v1389_v44, %v3255_v49  ;;  %1859 = vmatprep.mubr.bf16.mxu0 %v520_v38  ;;  %v536_v38 = vpack.c.bf16 %v400_v25, %v392_v22  ;;  %v407_v22 = vld [vmem:[%s2798_s13 + $0x720] sm:$0xff] }
 0x11e   : > { %2050 = vmatprep.mubr.bf16.mxu1 %v522_v39  ;;  %v1391_v55 = vpop.f32.mrf.mxu0  ;;  %v538_v39 = vpack.c.bf16 %v402_v27, %v394_v26  ;;  %v415_v25 = vld [vmem:[%s2798_s13 + $0x760] sm:$0xff]  ;;  %v409_v26 = vld [vmem:[%s2798_s13 + $0x730] sm:$0xff] }
 0x11f   : > { %v1582_v56 = vpop.f32.mrf.mxu1  ;;  %v3308_v60 = vadd.f32 %v1580_v45, %v1390_v50  ;;  %v1392_v61 = vadd.f32 %v1391_v55, %v3257_v52  ;;  %v399_v50 = vld [vmem:[%s2798_s13 + $0x6e0] sm:$0xff]  ;;  %v401_v55 = vld [vmem:[%s2798_s13 + $0x6f0] sm:$0xff] }
 0x120   : > { %v1393_v62 = vpop.f32.mrf.mxu0  ;;  %v417_v27 = vld [vmem:[%s2798_s13 + $0x770] sm:$0xff] }
 0x121   : > { %v1584_v63 = vpop.f32.mrf.mxu1  ;;  %v3311_v3 = vadd.f32 %v1582_v56, %v1392_v61  ;;  %v1394_v4 = vadd.f32 %v1393_v62, %v3255_v49  ;;  %v408_v56 = vld [vmem:[%s2798_s13 + $0x728] sm:$0xff]  ;;  %v410_v61 = vld [vmem:[%s2798_s13 + $0x738] sm:$0xff] }
 0x122   : > { %v1395_v7 = vpop.f32.mrf.mxu0  ;;  %v418_v62 = vld [vmem:[%s2798_s13 + $0x778] sm:$0xff] }
 0x123   : > { %v1586_v9 = vpop.f32.mrf.mxu1  ;;  %v3314_v10 = vadd.f32 %v1584_v63, %v1394_v4  ;;  %v1396_v11 = vadd.f32 %v1395_v7, %v3257_v52 }
 0x124   : > { %v1399_v12 = vpop.f32.mrf.mxu0  ;;  %1860 = vmatmul.mubr.bf16.gmra.mxu0 %v519_v0 }
 0x125   : > { %v1590_v13 = vpop.f32.mrf.mxu1  ;;  %2051 = vmatmul.mubr.bf16.gmra.mxu1 %v521_v1  ;;  %v3319_v17 = vadd.f32 %v1586_v9, %v1396_v11  ;;  %v1400_v18 = vadd.f32 %v1399_v12, %v3255_v49  ;;  %1869 = vmatprep.mubr.bf16.mxu0 %v528_v5  ;;  %v535_v5 = vpack.c.bf16 %v399_v50, %v391_v47 }
 0x126   : > { %2060 = vmatprep.mubr.bf16.mxu1 %v530_v6  ;;  %v1401_v23 = vpop.f32.mrf.mxu0  ;;  %v537_v6 = vpack.c.bf16 %v401_v55, %v393_v54  ;;  %v544_v11 = vpack.c.bf16 %v416_v59, %v408_v56  ;;  %v546_v12 = vpack.c.bf16 %v418_v62, %v410_v61  ;;  %v423_v61 = vld [vmem:[%s2798_s13 + $0x7a0] sm:$0xff]  ;;  %v425_v62 = vld [vmem:[%s2798_s13 + $0x7b0] sm:$0xff] }
 0x127   : > { %v1592_v24 = vpop.f32.mrf.mxu1  ;;  %v3328_v28 = vadd.f32 %v1590_v13, %v1400_v18  ;;  %v1402_v29 = vadd.f32 %v1401_v23, %v3257_v52 }
 0x128   : > { %v1403_v31 = vpop.f32.mrf.mxu0 }
 0x129   : > { %v1594_v32 = vpop.f32.mrf.mxu1  ;;  %v3331_v35 = vadd.f32 %v1592_v24, %v1402_v29  ;;  %v1404_v37 = vadd.f32 %v1403_v31, %v3255_v49 }
 0x12a   : > { %v1405_v40 = vpop.f32.mrf.mxu0 }
 0x12b   : > { %v1596_v41 = vpop.f32.mrf.mxu1  ;;  %v3334_v43 = vadd.f32 %v1594_v32, %v1404_v37  ;;  %v1406_v44 = vadd.f32 %v1405_v40, %v3257_v52  ;;  %v424_v32 = vld [vmem:[%s2798_s13 + $0x7a8] sm:$0xff]  ;;  %v543_v40 = vpack.c.bf16 %v415_v25, %v407_v22 }
 0x12c   : > { %v1409_v45 = vpop.f32.mrf.mxu0  ;;  %1870 = vmatmul.mubr.bf16.gmra.mxu0 %v527_v33  ;;  %v426_v33 = vld [vmem:[%s2798_s13 + $0x7b8] sm:$0xff]  ;;  %s2421_s13 = sshll.u32 %s3661_s22, 4 }
 0x12d   : > { %v1600_v46 = vpop.f32.mrf.mxu1  ;;  %2061 = vmatmul.mubr.bf16.gmra.mxu1 %v529_v34  ;;  %v3339_v51 = vadd.f32 %v1596_v41, %v1406_v44  ;;  %v1410_v53 = vadd.f32 %v1409_v45, %v3255_v49  ;;  %1879 = vmatprep.mubr.bf16.mxu0 %v536_v38  ;;  %v545_v41 = vpack.c.bf16 %v417_v27, %v409_v26  ;;  %s3499_s8 = scalar_lea.vmem %s3629_s3, %s2421_s13 }
 0x12e   : > { %2070 = vmatprep.mubr.bf16.mxu1 %v538_v39  ;;  %v1411_v57 = vpop.f32.mrf.mxu0  ;;  %v554_v47 = vpack.c.bf16 %v426_v33, %v426_v33 }
 0x12f   : > { %v1602_v58 = vpop.f32.mrf.mxu1  ;;  %v3348_v63 = vadd.f32 %v1600_v46, %v1410_v53  ;;  %v1412_v0 = vadd.f32 %v1411_v57, %v3257_v52  ;;  %v552_v46 = vpack.c.bf16 %v424_v32, %v424_v32 }
 0x130   : > { %v1413_v1 = vpop.f32.mrf.mxu0 }
 0x131   : > { %v1604_v4 = vpop.f32.mrf.mxu1  ;;  %v3351_v7 = vadd.f32 %v1602_v58, %v1412_v0  ;;  %v1414_v9 = vadd.f32 %v1413_v1, %v3255_v49 }
 0x132   : > { %v1415_v13 = vpop.f32.mrf.mxu0 }
 0x133   : > { %v1606_v15 = vpop.f32.mrf.mxu1  ;;  %v3354_v16 = vadd.f32 %v1604_v4, %v1414_v9  ;;  %v1416_v18 = vadd.f32 %v1415_v13, %v3257_v52 }
 0x134   : > { %v1419_v19 = vpop.f32.mrf.mxu0  ;;  %1880 = vmatmul.mubr.bf16.gmra.mxu0 %v535_v5 }
 0x135   : > { %v1610_v21 = vpop.f32.mrf.mxu1  ;;  %2071 = vmatmul.mubr.bf16.gmra.mxu1 %v537_v6  ;;  %v3358_v23 = vadd.f32 %v1606_v15, %v1416_v18  ;;  %v1420_v24 = vadd.f32 %v1419_v19, %v3255_v49  ;;  %1889 = vmatprep.mubr.bf16.mxu0 %v544_v11  ;;  %v551_v11 = vpack.c.bf16 %v423_v61, %v423_v61 }
 0x136   : > { %2080 = vmatprep.mubr.bf16.mxu1 %v546_v12  ;;  %v1421_v29 = vpop.f32.mrf.mxu0  ;;  %v553_v12 = vpack.c.bf16 %v425_v62, %v425_v62 }
 0x137   : > { %v1612_v31 = vpop.f32.mrf.mxu1  ;;  %v3366_v34 = vadd.f32 %v1610_v21, %v1420_v24  ;;  %v1422_v37 = vadd.f32 %v1421_v29, %v3257_v52 }
 0x138   : > { %v1423_v38 = vpop.f32.mrf.mxu0 }
 0x139   : > { %v1614_v39 = vpop.f32.mrf.mxu1  ;;  %v3369_v44 = vadd.f32 %v1612_v31, %v1422_v37  ;;  %v1424_v45 = vadd.f32 %v1423_v38, %v3255_v49 }
 0x13a   : > { %v1425_v50 = vpop.f32.mrf.mxu0 }
 0x13b   : > { %v1616_v53 = vpop.f32.mrf.mxu1  ;;  %v3372_v54 = vadd.f32 %v1614_v39, %v1424_v45  ;;  %v1426_v55 = vadd.f32 %v1425_v50, %v3257_v52 }
 0x13c   : > { %v1429_v56 = vpop.f32.mrf.mxu0  ;;  %1890 = vmatmul.mubr.bf16.gmra.mxu0 %v543_v40 }
 0x13d   : > { %v1620_v57 = vpop.f32.mrf.mxu1  ;;  %2081 = vmatmul.mubr.bf16.gmra.mxu1 %v545_v41  ;;  %v3375_v58 = vadd.f32 %v1616_v53, %v1426_v55  ;;  %v1430_v59 = vadd.f32 %v1429_v56, %v3255_v49  ;;  %1899 = vmatprep.mubr.bf16.mxu0 %v552_v46 }
 0x13e   : > { %2090 = vmatprep.mubr.bf16.mxu1 %v554_v47  ;;  %v1431_v0 = vpop.f32.mrf.mxu0 }
 0x13f   : > { %v1622_v1 = vpop.f32.mrf.mxu1  ;;  %v3380_v4 = vadd.f32 %v1620_v57, %v1430_v59  ;;  %v1432_v5 = vadd.f32 %v1431_v0, %v3257_v52 }
 0x140   : > { %v1433_v6 = vpop.f32.mrf.mxu0 }
 0x141   : > { %v1624_v9 = vpop.f32.mrf.mxu1  ;;  %v3383_v13 = vadd.f32 %v1622_v1, %v1432_v5  ;;  %v1434_v15 = vadd.f32 %v1433_v6, %v3255_v49 }
 0x142   : > { %v1435_v18 = vpop.f32.mrf.mxu0 }
 0x143   : > { %v1626_v19 = vpop.f32.mrf.mxu1  ;;  %v3386_v21 = vadd.f32 %v1624_v9, %v1434_v15  ;;  %v1436_v22 = vadd.f32 %v1435_v18, %v3257_v52 }
 0x144   : > { %v1439_v24 = vpop.f32.mrf.mxu0  ;;  %1900 = vmatmul.mubr.bf16.gmra.mxu0 %v551_v11 }
 0x145   : > { %v1630_v25 = vpop.f32.mrf.mxu1  ;;  %2091 = vmatmul.mubr.bf16.gmra.mxu1 %v553_v12  ;;  %v3389_v26 = vadd.f32 %v1626_v19, %v1436_v22  ;;  %v1440_v27 = vadd.f32 %v1439_v24, %v3255_v49 }
 0x146   : > { %v1441_v29 = vpop.f32.mrf.mxu0 }
 0x147   : > { %v1632_v31 = vpop.f32.mrf.mxu1  ;;  %v3392_v32 = vadd.f32 %v1630_v25, %v1440_v27  ;;  %v1442_v33 = vadd.f32 %v1441_v29, %v3257_v52 }
 0x148   : > { %v1443_v37 = vpop.f32.mrf.mxu0 }
 0x149   : > { %v1634_v38 = vpop.f32.mrf.mxu1  ;;  %v3395_v39 = vadd.f32 %v1632_v31, %v1442_v33  ;;  %v1444_v40 = vadd.f32 %v1443_v37, %v3255_v49 }
 0x14a   : > { %v1445_v41 = vpop.f32.mrf.mxu0 }
 0x14b   : > { %v1636_v45 = vpop.f32.mrf.mxu1  ;;  %v3398_v46 = vadd.f32 %v1634_v38, %v1444_v40  ;;  %v1446_v47 = vadd.f32 %v1445_v41, %v3257_v52 }
 0x14c   : > { %v1449_v50 = vpop.f32.mrf.mxu0 }
 0x14d   : > { %v1640_v53 = vpop.f32.mrf.mxu1  ;;  %v3401_v55 = vadd.f32 %v1636_v45, %v1446_v47  ;;  %v1450_v56 = vadd.f32 %v1449_v50, %v3255_v49 }
 0x14e   : > { %v1451_v57 = vpop.f32.mrf.mxu0 }
 0x14f   : > { %v1642_v59 = vpop.f32.mrf.mxu1  ;;  %v3404_v61 = vadd.f32 %v1640_v53, %v1450_v56  ;;  %v1452_v62 = vadd.f32 %v1451_v57, %v3257_v52 }
 0x150   : > { %v1453_v0 = vpop.f32.mrf.mxu0 }
 0x151   : > { %v1644_v1 = vpop.f32.mrf.mxu1  ;;  %v3407_v5 = vadd.f32 %v1642_v59, %v1452_v62  ;;  %v1454_v6 = vadd.f32 %v1453_v0, %v3255_v49 }
 0x152   : > { %v1455_v9 = vpop.f32.mrf.mxu0 }
 0x153   : > { %v1646_v11 = vpop.f32.mrf.mxu1  ;;  %v3410_v12 = vadd.f32 %v1644_v1, %v1454_v6  ;;  %v1456_v15 = vadd.f32 %v1455_v9, %v3257_v52 }
 0x154   : > { %v1459_v18 = vpop.f32.mrf.mxu0 }
 0x155   : > { %v1650_v19 = vpop.f32.mrf.mxu1  ;;  %v3413_v22 = vadd.f32 %v1646_v11, %v1456_v15  ;;  %v1460_v24 = vadd.f32 %v1459_v18, %v3255_v49 }
 0x156   : > { %v1461_v25 = vpop.f32.mrf.mxu0 }
 0x157   : > { %v1652_v27 = vpop.f32.mrf.mxu1  ;;  %v3416_v29 = vadd.f32 %v1650_v19, %v1460_v24  ;;  %v1462_v31 = vadd.f32 %v1461_v25, %v3257_v52 }
 0x158   : > { %v1463_v33 = vpop.f32.mrf.mxu0 }
 0x159   : > { %v1654_v37 = vpop.f32.mrf.mxu1  ;;  %v3419_v38 = vadd.f32 %v1652_v27, %v1462_v31  ;;  %v1464_v40 = vadd.f32 %v1463_v33, %v3255_v49 }
 0x15a   : > { %v1465_v41 = vpop.f32.mrf.mxu0 }
 0x15b   : > { %v1656_v45 = vpop.f32.mrf.mxu1  ;;  %v3422_v47 = vadd.f32 %v1654_v37, %v1464_v40  ;;  %v1466_v50 = vadd.f32 %v1465_v41, %v3257_v52 }
 0x15c   : > { %v1469_v53 = vpop.f32.mrf.mxu0 }
 0x15d   : > { %v1660_v56 = vpop.f32.mrf.mxu1  ;;  %v3425_v57 = vadd.f32 %v1656_v45, %v1466_v50  ;;  %v1470_v59 = vadd.f32 %v1469_v53, %v3255_v49 }
 0x15e   : > { %v1471_v62 = vpop.f32.mrf.mxu0 }
 0x15f   : > { %v1662_v0 = vpop.f32.mrf.mxu1  ;;  %v3428_v1 = vadd.f32 %v1660_v56, %v1470_v59  ;;  %v1472_v6 = vadd.f32 %v1471_v62, %v3257_v52 }
 0x160   : > { %v1473_v9 = vpop.f32.mrf.mxu0 }
 0x161   : > { %v1664_v11 = vpop.f32.mrf.mxu1  ;;  %v3431_v15 = vadd.f32 %v1662_v0, %v1472_v6  ;;  %v1474_v18 = vadd.f32 %v1473_v9, %v3255_v49 }
 0x162   : > { %v1475_v19 = vpop.f32.mrf.mxu0 }
 0x163   : > { %v1666_v24 = vpop.f32.mrf.mxu1  ;;  %v3434_v25 = vadd.f32 %v1664_v11, %v1474_v18  ;;  %v1476_v27 = vadd.f32 %v1475_v19, %v3257_v52 }
 0x164   : > { %v1479_v31 = vpop.f32.mrf.mxu0 }
 0x165   : > { %v1670_v33 = vpop.f32.mrf.mxu1  ;;  %v3437_v37 = vadd.f32 %v1666_v24, %v1476_v27  ;;  %v1480_v40 = vadd.f32 %v1479_v31, %v3255_v49 }
 0x166   : > { %v1481_v41 = vpop.f32.mrf.mxu0 }
 0x167   : > { %v1672_v45 = vpop.f32.mrf.mxu1  ;;  %v3440_v50 = vadd.f32 %v1670_v33, %v1480_v40  ;;  %v1482_v53 = vadd.f32 %v1481_v41, %v3257_v52 }
 0x168   : > { %v1483_v56 = vpop.f32.mrf.mxu0 }
 0x169   : > { %3630 = vst [vmem:[#allocation2_spill] sm:$0xff] %v3440_v50  ;;  %v1674_v59 = vpop.f32.mrf.mxu1  ;;  %v3443_v62 = vadd.f32 %v1672_v45, %v1482_v53  ;;  %v1484_v0 = vadd.f32 %v1483_v56, %v3255_v49 }
 0x16a   : > { %v1485_v6 = vpop.f32.mrf.mxu0 }
 0x16b   : > { %3631 = vst [vmem:[#allocation3_spill] sm:$0xff] %v3443_v62  ;;  %v1676_v9 = vpop.f32.mrf.mxu1  ;;  %v3446_v11 = vadd.f32 %v1674_v59, %v1484_v0  ;;  %v1486_v18 = vadd.f32 %v1485_v6, %v3257_v52 }
 0x16c   : > { %v1489_v19 = vpop.f32.mrf.mxu0 }
 0x16d   : > { %3632 = vst [vmem:[#allocation4_spill] sm:$0xff] %v3446_v11  ;;  %v1680_v24 = vpop.f32.mrf.mxu1  ;;  %v3449_v27 = vadd.f32 %v1676_v9, %v1486_v18  ;;  %v1490_v31 = vadd.f32 %v1489_v19, %v3255_v49 }
 0x16e   : > { %v1491_v33 = vpop.f32.mrf.mxu0 }
 0x16f   : > { %3633 = vst [vmem:[#allocation5_spill] sm:$0xff] %v3449_v27  ;;  %v1682_v40 = vpop.f32.mrf.mxu1  ;;  %v3452_v41 = vadd.f32 %v1680_v24, %v1490_v31  ;;  %v1492_v45 = vadd.f32 %v1491_v33, %v3257_v52 }
 0x170   : > { %v1493_v53 = vpop.f32.mrf.mxu0 }
 0x171   : > { %3634 = vst [vmem:[#allocation6_spill] sm:$0xff] %v3452_v41  ;;  %v1684_v56 = vpop.f32.mrf.mxu1  ;;  %v3455_v62 = vadd.f32 %v1682_v40, %v1492_v45  ;;  %v1494_v59 = vadd.f32 %v1493_v53, %v3255_v49 }
 0x172   : > { %v1495_v0 = vpop.f32.mrf.mxu0 }
 0x173   : > { %3635 = vst [vmem:[#allocation7_spill] sm:$0xff] %v3455_v62  ;;  %v1686_v6 = vpop.f32.mrf.mxu1  ;;  %v3458_v11 = vadd.f32 %v1684_v56, %v1494_v59  ;;  %v1496_v9 = vadd.f32 %v1495_v0, %v3257_v52 }
 0x174   : > { %v1499_v18 = vpop.f32.mrf.mxu0 }
 0x175   : > { %3636 = vst [vmem:[#allocation8_spill] sm:$0xff] %v3458_v11  ;;  %v1690_v19 = vpop.f32.mrf.mxu1  ;;  %v3461_v27 = vadd.f32 %v1686_v6, %v1496_v9  ;;  %v1500_v24 = vadd.f32 %v1499_v18, %v3255_v49 }
 0x176   : > { %v1501_v31 = vpop.f32.mrf.mxu0 }
 0x177   : > { %3637 = vst [vmem:[#allocation9_spill] sm:$0xff] %v3461_v27  ;;  %v1692_v33 = vpop.f32.mrf.mxu1  ;;  %v3464_v41 = vadd.f32 %v1690_v19, %v1500_v24  ;;  %v1502_v40 = vadd.f32 %v1501_v31, %v3257_v52 }
 0x178   : > { %v1503_v45 = vpop.f32.mrf.mxu0 }
 0x179   : > { %3638 = vst [vmem:[#allocation10_spill] sm:$0xff] %v3464_v41  ;;  %v1694_v53 = vpop.f32.mrf.mxu1  ;;  %v3467_v62 = vadd.f32 %v1692_v33, %v1502_v40  ;;  %v1504_v56 = vadd.f32 %v1503_v45, %v3255_v49 }
 0x17a   : > { %v1505_v59 = vpop.f32.mrf.mxu0 }
 0x17b   : > { %3639 = vst [vmem:[#allocation11_spill] sm:$0xff] %v3467_v62  ;;  %v1696_v0 = vpop.f32.mrf.mxu1  ;;  %v3470_v11 = vadd.f32 %v1694_v53, %v1504_v56  ;;  %v1506_v6 = vadd.f32 %v1505_v59, %v3257_v52 }
 0x17c   : > { %v1509_v9 = vpop.f32.mrf.mxu0 }
 0x17d   : > { %3640 = vst [vmem:[#allocation12_spill] sm:$0xff] %v3470_v11  ;;  %v1700_v18 = vpop.f32.mrf.mxu1  ;;  %v3473_v27 = vadd.f32 %v1696_v0, %v1506_v6  ;;  %v1510_v19 = vadd.f32 %v1509_v9, %v3255_v49 }
 0x17e   : > { %v1511_v24 = vpop.f32.mrf.mxu0 }
 0x17f   : > { %3641 = vst [vmem:[#allocation13_spill] sm:$0xff] %v3473_v27  ;;  %v1702_v31 = vpop.f32.mrf.mxu1  ;;  %v3476_v41 = vadd.f32 %v1700_v18, %v1510_v19  ;;  %v1512_v33 = vadd.f32 %v1511_v24, %v3257_v52 }
 0x180   : > { %v1513_v40 = vpop.f32.mrf.mxu0 }
 0x181   : > { %3642 = vst [vmem:[#allocation14_spill] sm:$0xff] %v3476_v41  ;;  %v1704_v45 = vpop.f32.mrf.mxu1  ;;  %v3479_v62 = vadd.f32 %v1702_v31, %v1512_v33  ;;  %v1514_v53 = vadd.f32 %v1513_v40, %v3255_v49 }
 0x182   : > { %v1515_v56 = vpop.f32.mrf.mxu0 }
 0x183   : > { %3643 = vst [vmem:[#allocation15_spill] sm:$0xff] %v3479_v62  ;;  %v1706_v59 = vpop.f32.mrf.mxu1  ;;  %v3482_v11 = vadd.f32 %v1704_v45, %v1514_v53  ;;  %v1516_v0 = vadd.f32 %v1515_v56, %v3257_v52 }
 0x184   : > { %v1519_v6 = vpop.f32.mrf.mxu0 }
 0x185   : > { %3644 = vst [vmem:[#allocation16_spill] sm:$0xff] %v3482_v11  ;;  %v1710_v9 = vpop.f32.mrf.mxu1  ;;  %v3485_v27 = vadd.f32 %v1706_v59, %v1516_v0  ;;  %v1520_v18 = vadd.f32 %v1519_v6, %v3255_v49 }
 0x186   : > { %v1521_v19 = vpop.f32.mrf.mxu0 }
 0x187   : > { %v1712_v24 = vpop.f32.mrf.mxu1  ;;  %v3488_v41 = vadd.f32 %v1710_v9, %v1520_v18  ;;  %v1522_v31 = vadd.f32 %v1521_v19, %v3257_v52 }
 0x188   : > { %v1523_v33 = vpop.f32.mrf.mxu0 }
 0x189   : > { %v1714_v40 = vpop.f32.mrf.mxu1  ;;  %v3491_v62 = vadd.f32 %v1712_v24, %v1522_v31 }
 0x18a   : > { %v1524_v45 = vpop.f32.mrf.mxu0 }
 0x18b   : > { %v1715_v53 = vpop.f32.mrf.mxu1 }
 0x18c   : > { %v1751_v56 = vpop.f32.mrf.mxu0 }
 0x18d   : > { %v1942_v11 = vpop.f32.mrf.mxu1  ;;  %v1752_v50 = vadd.f32 %v1751_v56, %v3268_v2 }
 0x18e   : > { %v1753_v59 = vpop.f32.mrf.mxu0 }
 0x18f   : > { %v1944_v0 = vpop.f32.mrf.mxu1  ;;  %v1943_v49 = vadd.f32 %v1942_v11, %v1752_v50  ;;  %v1754_v6 = vadd.f32 %v1753_v59, %v3271_v8 }
 0x190   : > { %v1755_v52 = vpop.f32.mrf.mxu0 }
 0x191   : > { %v1946_v9 = vpop.f32.mrf.mxu1  ;;  %v2099_v18 = vmax.f32 %v1943_v49, 0.0  ;;  %v1945_v19 = vadd.f32 %v1944_v0, %v1754_v6  ;;  %v1756_v2 = vadd.f32 %v1755_v52, %v3274_v14 }
 0x192   : > { %v1757_v24 = vpop.f32.mrf.mxu0 }
 0x193   : > { %v1948_v31 = vpop.f32.mrf.mxu1  ;;  %2161 = vst [vmem:[%s3499_s8] sm:$0xff] %v2099_v18  ;;  %v2100_v50 = vmax.f32 %v1945_v19, 0.0  ;;  %v1947_v11 = vadd.f32 %v1946_v9, %v1756_v2  ;;  %v1758_v8 = vadd.f32 %v1757_v24, %v3279_v20 }
 0x194   : > { %v1761_v33 = vpop.f32.mrf.mxu0 }
 0x195   : > { %v1952_v40 = vpop.f32.mrf.mxu1  ;;  %2162 = vst [vmem:[%s3499_s8 + $0x8] sm:$0xff] %v2100_v50  ;;  %v2101_v45 = vmax.f32 %v1947_v11, 0.0  ;;  %v1949_v53 = vadd.f32 %v1948_v31, %v1758_v8  ;;  %v1762_v56 = vadd.f32 %v1761_v33, %v3288_v30 }
 0x196   : > { %v1763_v59 = vpop.f32.mrf.mxu0 }
 0x197   : > { %v1954_v0 = vpop.f32.mrf.mxu1  ;;  %2163 = vst [vmem:[%s3499_s8 + $0x10] sm:$0xff] %v2101_v45  ;;  %v2102_v14 = vmax.f32 %v1949_v53, 0.0  ;;  %v1953_v49 = vadd.f32 %v1952_v40, %v1762_v56  ;;  %v1764_v6 = vadd.f32 %v1763_v59, %v3291_v36 }
 0x198   : > { %v1765_v52 = vpop.f32.mrf.mxu0 }
 0x199   : > { %v1956_v9 = vpop.f32.mrf.mxu1  ;;  %2164 = vst [vmem:[%s3499_s8 + $0x18] sm:$0xff] %v2102_v14  ;;  %v2103_v20 = vmax.f32 %v1953_v49, 0.0  ;;  %v1955_v18 = vadd.f32 %v1954_v0, %v1764_v6  ;;  %v1766_v19 = vadd.f32 %v1765_v52, %v3294_v42 }
 0x19a   : > { %v1767_v2 = vpop.f32.mrf.mxu0 }
 0x19b   : > { %v1958_v24 = vpop.f32.mrf.mxu1  ;;  %2165 = vst [vmem:[%s3499_s8 + $0x20] sm:$0xff] %v2103_v20  ;;  %v2104_v30 = vmax.f32 %v1955_v18, 0.0  ;;  %v1957_v31 = vadd.f32 %v1956_v9, %v1766_v19  ;;  %v1768_v50 = vadd.f32 %v1767_v2, %v3299_v48 }
 0x19c   : > { %v1771_v11 = vpop.f32.mrf.mxu0 }
 0x19d   : > { %v1962_v8 = vpop.f32.mrf.mxu1  ;;  %2166 = vst [vmem:[%s3499_s8 + $0x28] sm:$0xff] %v2104_v30  ;;  %v2105_v36 = vmax.f32 %v1957_v31, 0.0  ;;  %v1959_v33 = vadd.f32 %v1958_v24, %v1768_v50  ;;  %v1772_v40 = vadd.f32 %v1771_v11, %v3308_v60 }
 0x19e   : > { %v1773_v45 = vpop.f32.mrf.mxu0 }
 0x19f   : > { %v1964_v53 = vpop.f32.mrf.mxu1  ;;  %2167 = vst [vmem:[%s3499_s8 + $0x30] sm:$0xff] %v2105_v36  ;;  %v2106_v42 = vmax.f32 %v1959_v33, 0.0  ;;  %v1963_v56 = vadd.f32 %v1962_v8, %v1772_v40  ;;  %v1774_v59 = vadd.f32 %v1773_v45, %v3311_v3 }
 0x1a0   : > { %v1775_v0 = vpop.f32.mrf.mxu0 }
 0x1a1   : > { %v1966_v14 = vpop.f32.mrf.mxu1  ;;  %2168 = vst [vmem:[%s3499_s8 + $0x38] sm:$0xff] %v2106_v42  ;;  %v2107_v48 = vmax.f32 %v1963_v56, 0.0  ;;  %v1965_v49 = vadd.f32 %v1964_v53, %v1774_v59  ;;  %v1776_v6 = vadd.f32 %v1775_v0, %v3314_v10 }
 0x1a2   : > { %v1777_v52 = vpop.f32.mrf.mxu0 }
 0x1a3   : > { %v1968_v9 = vpop.f32.mrf.mxu1  ;;  %2169 = vst [vmem:[%s3499_s8 + $0x40] sm:$0xff] %v2107_v48  ;;  %v2108_v60 = vmax.f32 %v1965_v49, 0.0  ;;  %v1967_v20 = vadd.f32 %v1966_v14, %v1776_v6  ;;  %v1778_v18 = vadd.f32 %v1777_v52, %v3319_v17 }
 0x1a4   : > { %v1781_v19 = vpop.f32.mrf.mxu0 }
 0x1a5   : > { %v1972_v2 = vpop.f32.mrf.mxu1  ;;  %2170 = vst [vmem:[%s3499_s8 + $0x48] sm:$0xff] %v2108_v60  ;;  %v2109_v3 = vmax.f32 %v1967_v20, 0.0  ;;  %v1969_v24 = vadd.f32 %v1968_v9, %v1778_v18  ;;  %v1782_v30 = vadd.f32 %v1781_v19, %v3328_v28 }
 0x1a6   : > { %v1783_v31 = vpop.f32.mrf.mxu0 }
 0x1a7   : > { %v1974_v50 = vpop.f32.mrf.mxu1  ;;  %2171 = vst [vmem:[%s3499_s8 + $0x50] sm:$0xff] %v2109_v3  ;;  %v2110_v10 = vmax.f32 %v1969_v24, 0.0  ;;  %v1973_v11 = vadd.f32 %v1972_v2, %v1782_v30  ;;  %v1784_v8 = vadd.f32 %v1783_v31, %v3331_v35 }
 0x1a8   : > { %v1785_v36 = vpop.f32.mrf.mxu0 }
 0x1a9   : > { %v1976_v33 = vpop.f32.mrf.mxu1  ;;  %2172 = vst [vmem:[%s3499_s8 + $0x58] sm:$0xff] %v2110_v10  ;;  %v2111_v17 = vmax.f32 %v1973_v11, 0.0  ;;  %v1975_v40 = vadd.f32 %v1974_v50, %v1784_v8  ;;  %v1786_v45 = vadd.f32 %v1785_v36, %v3334_v43 }
 0x1aa   : > { %v1787_v53 = vpop.f32.mrf.mxu0 }
 0x1ab   : > { %v1978_v42 = vpop.f32.mrf.mxu1  ;;  %2173 = vst [vmem:[%s3499_s8 + $0x60] sm:$0xff] %v2111_v17  ;;  %v2112_v28 = vmax.f32 %v1975_v40, 0.0  ;;  %v1977_v56 = vadd.f32 %v1976_v33, %v1786_v45  ;;  %v1788_v59 = vadd.f32 %v1787_v53, %v3339_v51 }
 0x1ac   : > { %v1791_v0 = vpop.f32.mrf.mxu0 }
 0x1ad   : > { %v1982_v14 = vpop.f32.mrf.mxu1  ;;  %2174 = vst [vmem:[%s3499_s8 + $0x68] sm:$0xff] %v2112_v28  ;;  %v2113_v35 = vmax.f32 %v1977_v56, 0.0  ;;  %v1979_v48 = vadd.f32 %v1978_v42, %v1788_v59  ;;  %v1792_v49 = vadd.f32 %v1791_v0, %v3348_v63 }
 0x1ae   : > { %v1793_v6 = vpop.f32.mrf.mxu0 }
 0x1af   : > { %v1984_v52 = vpop.f32.mrf.mxu1  ;;  %2175 = vst [vmem:[%s3499_s8 + $0x70] sm:$0xff] %v2113_v35  ;;  %v2114_v43 = vmax.f32 %v1979_v48, 0.0  ;;  %v1983_v9 = vadd.f32 %v1982_v14, %v1792_v49  ;;  %v1794_v60 = vadd.f32 %v1793_v6, %v3351_v7 }
 0x1b0   : > { %v1795_v20 = vpop.f32.mrf.mxu0 }
 0x1b1   : > { %v1986_v18 = vpop.f32.mrf.mxu1  ;;  %2176 = vst [vmem:[%s3499_s8 + $0x78] sm:$0xff] %v2114_v43  ;;  %v2115_v51 = vmax.f32 %v1983_v9, 0.0  ;;  %v1985_v19 = vadd.f32 %v1984_v52, %v1794_v60  ;;  %v1796_v2 = vadd.f32 %v1795_v20, %v3354_v16 }
 0x1b2   : > { %v1797_v3 = vpop.f32.mrf.mxu0 }
 0x1b3   : > { %v1988_v24 = vpop.f32.mrf.mxu1  ;;  %2177 = vst [vmem:[%s3499_s8 + $0x80] sm:$0xff] %v2115_v51  ;;  %v2116_v63 = vmax.f32 %v1985_v19, 0.0  ;;  %v1987_v30 = vadd.f32 %v1986_v18, %v1796_v2  ;;  %v1798_v31 = vadd.f32 %v1797_v3, %v3358_v23 }
 0x1b4   : > { %v1801_v50 = vpop.f32.mrf.mxu0 }
 0x1b5   : > { %v1992_v10 = vpop.f32.mrf.mxu1  ;;  %2178 = vst [vmem:[%s3499_s8 + $0x88] sm:$0xff] %v2116_v63  ;;  %v2117_v7 = vmax.f32 %v1987_v30, 0.0  ;;  %v1989_v11 = vadd.f32 %v1988_v24, %v1798_v31  ;;  %v1802_v8 = vadd.f32 %v1801_v50, %v3366_v34 }
 0x1b6   : > { %v1803_v36 = vpop.f32.mrf.mxu0 }
 0x1b7   : > { %v1994_v33 = vpop.f32.mrf.mxu1  ;;  %2179 = vst [vmem:[%s3499_s8 + $0x90] sm:$0xff] %v2117_v7  ;;  %v2118_v16 = vmax.f32 %v1989_v11, 0.0  ;;  %v1993_v17 = vadd.f32 %v1992_v10, %v1802_v8  ;;  %v1804_v40 = vadd.f32 %v1803_v36, %v3369_v44 }
 0x1b8   : > { %v1805_v45 = vpop.f32.mrf.mxu0 }
 0x1b9   : > { %v1996_v53 = vpop.f32.mrf.mxu1  ;;  %2180 = vst [vmem:[%s3499_s8 + $0x98] sm:$0xff] %v2118_v16  ;;  %v2119_v23 = vmax.f32 %v1993_v17, 0.0  ;;  %v1995_v42 = vadd.f32 %v1994_v33, %v1804_v40  ;;  %v1806_v28 = vadd.f32 %v1805_v45, %v3372_v54 }
 0x1ba   : > { %v1807_v56 = vpop.f32.mrf.mxu0 }
 0x1bb   : > { %v1998_v59 = vpop.f32.mrf.mxu1  ;;  %2181 = vst [vmem:[%s3499_s8 + $0xa0] sm:$0xff] %v2119_v23  ;;  %v2120_v34 = vmax.f32 %v1995_v42, 0.0  ;;  %v1997_v0 = vadd.f32 %v1996_v53, %v1806_v28  ;;  %v1808_v14 = vadd.f32 %v1807_v56, %v3375_v58 }
 0x1bc   : > { %v1811_v35 = vpop.f32.mrf.mxu0 }
 0x1bd   : > { %v2002_v48 = vpop.f32.mrf.mxu1  ;;  %2182 = vst [vmem:[%s3499_s8 + $0xa8] sm:$0xff] %v2120_v34  ;;  %v2121_v44 = vmax.f32 %v1997_v0, 0.0  ;;  %v1999_v49 = vadd.f32 %v1998_v59, %v1808_v14  ;;  %v1812_v6 = vadd.f32 %v1811_v35, %v3380_v4 }
 0x1be   : > { %v1813_v52 = vpop.f32.mrf.mxu0 }
 0x1bf   : > { %v2004_v43 = vpop.f32.mrf.mxu1  ;;  %2183 = vst [vmem:[%s3499_s8 + $0xb0] sm:$0xff] %v2121_v44  ;;  %v2122_v54 = vmax.f32 %v1999_v49, 0.0  ;;  %v2003_v9 = vadd.f32 %v2002_v48, %v1812_v6  ;;  %v1814_v60 = vadd.f32 %v1813_v52, %v3383_v13 }
 0x1c0   : > { %v1815_v20 = vpop.f32.mrf.mxu0 }
 0x1c1   : > { %v2006_v18 = vpop.f32.mrf.mxu1  ;;  %2184 = vst [vmem:[%s3499_s8 + $0xb8] sm:$0xff] %v2122_v54  ;;  %v2123_v58 = vmax.f32 %v2003_v9, 0.0  ;;  %v2005_v51 = vadd.f32 %v2004_v43, %v1814_v60  ;;  %v1816_v19 = vadd.f32 %v1815_v20, %v3386_v21 }
 0x1c2   : > { %v1817_v2 = vpop.f32.mrf.mxu0 }
 0x1c3   : > { %v2008_v3 = vpop.f32.mrf.mxu1  ;;  %2185 = vst [vmem:[%s3499_s8 + $0xc0] sm:$0xff] %v2123_v58  ;;  %v2124_v4 = vmax.f32 %v2005_v51, 0.0  ;;  %v2007_v24 = vadd.f32 %v2006_v18, %v1816_v19  ;;  %v1818_v63 = vadd.f32 %v1817_v2, %v3389_v26 }
 0x1c4   : > { %v1821_v30 = vpop.f32.mrf.mxu0 }
 0x1c5   : > { %v2012_v31 = vpop.f32.mrf.mxu1  ;;  %2186 = vst [vmem:[%s3499_s8 + $0xc8] sm:$0xff] %v2124_v4  ;;  %v2125_v13 = vmax.f32 %v2007_v24, 0.0  ;;  %v2009_v50 = vadd.f32 %v2008_v3, %v1818_v63  ;;  %v1822_v10 = vadd.f32 %v1821_v30, %v3392_v32 }
 0x1c6   : > { %v1823_v7 = vpop.f32.mrf.mxu0 }
 0x1c7   : > { %v2014_v11 = vpop.f32.mrf.mxu1  ;;  %2187 = vst [vmem:[%s3499_s8 + $0xd0] sm:$0xff] %v2125_v13  ;;  %v2126_v21 = vmax.f32 %v2009_v50, 0.0  ;;  %v2013_v8 = vadd.f32 %v2012_v31, %v1822_v10  ;;  %v1824_v36 = vadd.f32 %v1823_v7, %v3395_v39 }
 0x1c8   : > { %v1825_v33 = vpop.f32.mrf.mxu0 }
 0x1c9   : > { %v2016_v16 = vpop.f32.mrf.mxu1  ;;  %2188 = vst [vmem:[%s3499_s8 + $0xd8] sm:$0xff] %v2126_v21  ;;  %v2127_v26 = vmax.f32 %v2013_v8, 0.0  ;;  %v2015_v17 = vadd.f32 %v2014_v11, %v1824_v36  ;;  %v1826_v40 = vadd.f32 %v1825_v33, %v3398_v46 }
 0x1ca   : > { %v1827_v45 = vpop.f32.mrf.mxu0 }
 0x1cb   : > { %v2018_v53 = vpop.f32.mrf.mxu1  ;;  %2189 = vst [vmem:[%s3499_s8 + $0xe0] sm:$0xff] %v2127_v26  ;;  %v2128_v32 = vmax.f32 %v2015_v17, 0.0  ;;  %v2017_v23 = vadd.f32 %v2016_v16, %v1826_v40  ;;  %v1828_v42 = vadd.f32 %v1827_v45, %v3401_v55 }
 0x1cc   : > { %v1831_v28 = vpop.f32.mrf.mxu0 }
 0x1cd   : > { %v2022_v56 = vpop.f32.mrf.mxu1  ;;  %2190 = vst [vmem:[%s3499_s8 + $0xe8] sm:$0xff] %v2128_v32  ;;  %v2129_v39 = vmax.f32 %v2017_v23, 0.0  ;;  %v2019_v59 = vadd.f32 %v2018_v53, %v1828_v42  ;;  %v1832_v34 = vadd.f32 %v1831_v28, %v3404_v61 }
 0x1ce   : > { %v1833_v0 = vpop.f32.mrf.mxu0 }
 0x1cf   : > { %v2024_v14 = vpop.f32.mrf.mxu1  ;;  %2191 = vst [vmem:[%s3499_s8 + $0xf0] sm:$0xff] %v2129_v39  ;;  %v2130_v46 = vmax.f32 %v2019_v59, 0.0  ;;  %v2023_v35 = vadd.f32 %v2022_v56, %v1832_v34  ;;  %v1834_v48 = vadd.f32 %v1833_v0, %v3407_v5  ;;  %v3645_v0 = vld [vmem:[#allocation2_spill] sm:$0xff] }
 0x1d0   : > { %v1835_v44 = vpop.f32.mrf.mxu0 }
 0x1d1   : > { %v2026_v49 = vpop.f32.mrf.mxu1  ;;  %2192 = vst [vmem:[%s3499_s8 + $0xf8] sm:$0xff] %v2130_v46  ;;  %v2131_v55 = vmax.f32 %v2023_v35, 0.0  ;;  %v2025_v6 = vadd.f32 %v2024_v14, %v1834_v48  ;;  %v1836_v52 = vadd.f32 %v1835_v44, %v3410_v12  ;;  %v3646_v44 = vld [vmem:[#allocation3_spill] sm:$0xff] }
 0x1d2   : > { %v1837_v43 = vpop.f32.mrf.mxu0 }
 0x1d3   : > { %v2028_v54 = vpop.f32.mrf.mxu1  ;;  %2193 = vst [vmem:[%s3499_s8 + $0x100] sm:$0xff] %v2131_v55  ;;  %v2132_v61 = vmax.f32 %v2025_v6, 0.0  ;;  %v2027_v9 = vadd.f32 %v2026_v49, %v1836_v52  ;;  %v1838_v60 = vadd.f32 %v1837_v43, %v3413_v22  ;;  %v3647_v43 = vld [vmem:[#allocation4_spill] sm:$0xff] }
 0x1d4   : > { %v1841_v20 = vpop.f32.mrf.mxu0 }
 0x1d5   : > { %v2032_v18 = vpop.f32.mrf.mxu1  ;;  %2194 = vst [vmem:[%s3499_s8 + $0x108] sm:$0xff] %v2132_v61  ;;  %v2133_v5 = vmax.f32 %v2027_v9, 0.0  ;;  %v2029_v58 = vadd.f32 %v2028_v54, %v1838_v60  ;;  %v1842_v51 = vadd.f32 %v1841_v20, %v3416_v29 }
 0x1d6   : > { %v1843_v19 = vpop.f32.mrf.mxu0 }
 0x1d7   : > { %v2034_v2 = vpop.f32.mrf.mxu1  ;;  %2195 = vst [vmem:[%s3499_s8 + $0x110] sm:$0xff] %v2133_v5  ;;  %v2134_v12 = vmax.f32 %v2029_v58, 0.0  ;;  %v2033_v3 = vadd.f32 %v2032_v18, %v1842_v51  ;;  %v1844_v4 = vadd.f32 %v1843_v19, %v3419_v38  ;;  %v3648_v18 = vld [vmem:[#allocation5_spill] sm:$0xff] }
 0x1d8   : > { %v1845_v24 = vpop.f32.mrf.mxu0 }
 0x1d9   : > { %v2036_v63 = vpop.f32.mrf.mxu1  ;;  %2196 = vst [vmem:[%s3499_s8 + $0x118] sm:$0xff] %v2134_v12  ;;  %v2135_v22 = vmax.f32 %v2033_v3, 0.0  ;;  %v2035_v30 = vadd.f32 %v2034_v2, %v1844_v4  ;;  %v1846_v31 = vadd.f32 %v1845_v24, %v3422_v47  ;;  %v3649_v12 = vld [vmem:[#allocation6_spill] sm:$0xff] }
 0x1da   : > { %v1847_v13 = vpop.f32.mrf.mxu0 }
 0x1db   : > { %v2038_v50 = vpop.f32.mrf.mxu1  ;;  %2197 = vst [vmem:[%s3499_s8 + $0x120] sm:$0xff] %v2135_v22  ;;  %v2136_v29 = vmax.f32 %v2035_v30, 0.0  ;;  %v2037_v10 = vadd.f32 %v2036_v63, %v1846_v31  ;;  %v1848_v7 = vadd.f32 %v1847_v13, %v3425_v57  ;;  %v3650_v30 = vld [vmem:[#allocation7_spill] sm:$0xff] }
 0x1dc   : > { %v1851_v11 = vpop.f32.mrf.mxu0 }
 0x1dd   : > { %v2042_v21 = vpop.f32.mrf.mxu1  ;;  %2198 = vst [vmem:[%s3499_s8 + $0x128] sm:$0xff] %v2136_v29  ;;  %v2137_v38 = vmax.f32 %v2037_v10, 0.0  ;;  %v2039_v8 = vadd.f32 %v2038_v50, %v1848_v7  ;;  %v1852_v36 = vadd.f32 %v1851_v11, %v3428_v1  ;;  %v3651_v7 = vld [vmem:[#allocation8_spill] sm:$0xff] }
 0x1de   : > { %v1853_v33 = vpop.f32.mrf.mxu0 }
 0x1df   : > { %v2044_v16 = vpop.f32.mrf.mxu1  ;;  %2199 = vst [vmem:[%s3499_s8 + $0x130] sm:$0xff] %v2137_v38  ;;  %v2138_v47 = vmax.f32 %v2039_v8, 0.0  ;;  %v2043_v26 = vadd.f32 %v2042_v21, %v1852_v36  ;;  %v1854_v17 = vadd.f32 %v1853_v33, %v3431_v15  ;;  %v3652_v33 = vld [vmem:[#allocation9_spill] sm:$0xff] }
 0x1e0   : > { %v1855_v40 = vpop.f32.mrf.mxu0 }
 0x1e1   : > { %v2046_v45 = vpop.f32.mrf.mxu1  ;;  %2200 = vst [vmem:[%s3499_s8 + $0x138] sm:$0xff] %v2138_v47  ;;  %v2139_v57 = vmax.f32 %v2043_v26, 0.0  ;;  %v2045_v53 = vadd.f32 %v2044_v16, %v1854_v17  ;;  %v1856_v32 = vadd.f32 %v1855_v40, %v3434_v25 }
 0x1e2   : > { %v1857_v23 = vpop.f32.mrf.mxu0 }
 0x1e3   : > { %v2048_v42 = vpop.f32.mrf.mxu1  ;;  %2201 = vst [vmem:[%s3499_s8 + $0x140] sm:$0xff] %v2139_v57  ;;  %v2140_v1 = vmax.f32 %v2045_v53, 0.0  ;;  %v2047_v28 = vadd.f32 %v2046_v45, %v1856_v32  ;;  %v1858_v56 = vadd.f32 %v1857_v23, %v3437_v37  ;;  %v3653_v45 = vld [vmem:[#allocation10_spill] sm:$0xff] }
 0x1e4   : > { %v1861_v39 = vpop.f32.mrf.mxu0 }
 0x1e5   : > { %v2052_v59 = vpop.f32.mrf.mxu1  ;;  %2202 = vst [vmem:[%s3499_s8 + $0x148] sm:$0xff] %v2140_v1  ;;  %v2141_v15 = vmax.f32 %v2047_v28, 0.0  ;;  %v2049_v34 = vadd.f32 %v2048_v42, %v1858_v56  ;;  %v1862_v14 = vadd.f32 %v1861_v39, %v3645_v0  ;;  %v3654_v1 = vld [vmem:[#allocation11_spill] sm:$0xff] }
 0x1e6   : > { %v1863_v46 = vpop.f32.mrf.mxu0 }
 0x1e7   : > { %v2054_v35 = vpop.f32.mrf.mxu1  ;;  %2203 = vst [vmem:[%s3499_s8 + $0x150] sm:$0xff] %v2141_v15  ;;  %v2142_v25 = vmax.f32 %v2049_v34, 0.0  ;;  %v2053_v48 = vadd.f32 %v2052_v59, %v1862_v14  ;;  %v1864_v49 = vadd.f32 %v1863_v46, %v3646_v44  ;;  %v3655_v34 = vld [vmem:[#allocation12_spill] sm:$0xff] }
 0x1e8   : > { %v1865_v55 = vpop.f32.mrf.mxu0 }
 0x1e9   : > { %v2056_v6 = vpop.f32.mrf.mxu1  ;;  %2204 = vst [vmem:[%s3499_s8 + $0x158] sm:$0xff] %v2142_v25  ;;  %v2143_v37 = vmax.f32 %v2053_v48, 0.0  ;;  %v2055_v52 = vadd.f32 %v2054_v35, %v1864_v49  ;;  %v1866_v54 = vadd.f32 %v1865_v55, %v3647_v43  ;;  %v3656_v48 = vld [vmem:[#allocation13_spill] sm:$0xff] }
 0x1ea   : > { %v1867_v61 = vpop.f32.mrf.mxu0 }
 0x1eb   : > { %v2058_v9 = vpop.f32.mrf.mxu1  ;;  %2205 = vst [vmem:[%s3499_s8 + $0x160] sm:$0xff] %v2143_v37  ;;  %v2144_v60 = vmax.f32 %v2055_v52, 0.0  ;;  %v2057_v20 = vadd.f32 %v2056_v6, %v1866_v54  ;;  %v1868_v5 = vadd.f32 %v1867_v61, %v3648_v18  ;;  %v3657_v52 = vld [vmem:[#allocation14_spill] sm:$0xff] }
 0x1ec   : > { %v1871_v58 = vpop.f32.mrf.mxu0 }
 0x1ed   : > { %v2062_v51 = vpop.f32.mrf.mxu1  ;;  %2206 = vst [vmem:[%s3499_s8 + $0x168] sm:$0xff] %v2144_v60  ;;  %v2145_v19 = vmax.f32 %v2057_v20, 0.0  ;;  %v2059_v2 = vadd.f32 %v2058_v9, %v1868_v5  ;;  %v1872_v3 = vadd.f32 %v1871_v58, %v3649_v12  ;;  %v3658_v20 = vld [vmem:[#allocation15_spill] sm:$0xff] }
 0x1ee   : > { %v1873_v4 = vpop.f32.mrf.mxu0 }
 0x1ef   : > { %v2064_v24 = vpop.f32.mrf.mxu1  ;;  %2207 = vst [vmem:[%s3499_s8 + $0x170] sm:$0xff] %v2145_v19  ;;  %v2146_v63 = vmax.f32 %v2059_v2, 0.0  ;;  %v2063_v22 = vadd.f32 %v2062_v51, %v1872_v3  ;;  %v1874_v31 = vadd.f32 %v1873_v4, %v3650_v30  ;;  %v3659_v2 = vld [vmem:[#allocation16_spill] sm:$0xff] }
 0x1f0   : > { %v1875_v13 = vpop.f32.mrf.mxu0 }
 0x1f1   : > { %v2066_v50 = vpop.f32.mrf.mxu1  ;;  %2208 = vst [vmem:[%s3499_s8 + $0x178] sm:$0xff] %v2146_v63  ;;  %v2147_v29 = vmax.f32 %v2063_v22, 0.0  ;;  %v2065_v10 = vadd.f32 %v2064_v24, %v1874_v31  ;;  %v1876_v11 = vadd.f32 %v1875_v13, %v3651_v7 }
 0x1f2   : > { %v1877_v21 = vpop.f32.mrf.mxu0 }
 0x1f3   : > { %v2068_v38 = vpop.f32.mrf.mxu1  ;;  %2209 = vst [vmem:[%s3499_s8 + $0x180] sm:$0xff] %v2147_v29  ;;  %v2148_v8 = vmax.f32 %v2065_v10, 0.0  ;;  %v2067_v36 = vadd.f32 %v2066_v50, %v1876_v11  ;;  %v1878_v16 = vadd.f32 %v1877_v21, %v3652_v33 }
 0x1f4   : > { %v1881_v47 = vpop.f32.mrf.mxu0 }
 0x1f5   : > { %v2072_v26 = vpop.f32.mrf.mxu1  ;;  %2210 = vst [vmem:[%s3499_s8 + $0x188] sm:$0xff] %v2148_v8  ;;  %v2149_v17 = vmax.f32 %v2067_v36, 0.0  ;;  %v2069_v40 = vadd.f32 %v2068_v38, %v1878_v16  ;;  %v1882_v57 = vadd.f32 %v1881_v47, %v3653_v45 }
 0x1f6   : > { %v1883_v53 = vpop.f32.mrf.mxu0 }
 0x1f7   : > { %v2074_v32 = vpop.f32.mrf.mxu1  ;;  %2211 = vst [vmem:[%s3499_s8 + $0x190] sm:$0xff] %v2149_v17  ;;  %v2150_v23 = vmax.f32 %v2069_v40, 0.0  ;;  %v2073_v42 = vadd.f32 %v2072_v26, %v1882_v57  ;;  %v1884_v28 = vadd.f32 %v1883_v53, %v3654_v1 }
 0x1f8   : > { %v1885_v56 = vpop.f32.mrf.mxu0 }
 0x1f9   : > { %v2076_v39 = vpop.f32.mrf.mxu1  ;;  %2212 = vst [vmem:[%s3499_s8 + $0x198] sm:$0xff] %v2150_v23  ;;  %v2151_v59 = vmax.f32 %v2073_v42, 0.0  ;;  %v2075_v15 = vadd.f32 %v2074_v32, %v1884_v28  ;;  %v1886_v0 = vadd.f32 %v1885_v56, %v3655_v34 }
 0x1fa   : > { %v1887_v14 = vpop.f32.mrf.mxu0 }
 0x1fb   : > { %v2078_v46 = vpop.f32.mrf.mxu1  ;;  %2213 = vst [vmem:[%s3499_s8 + $0x1a0] sm:$0xff] %v2151_v59  ;;  %v2152_v35 = vmax.f32 %v2075_v15, 0.0  ;;  %v2077_v25 = vadd.f32 %v2076_v39, %v1886_v0  ;;  %v1888_v44 = vadd.f32 %v1887_v14, %v3656_v48 }
 0x1fc   : > { %v1891_v49 = vpop.f32.mrf.mxu0 }
 0x1fd   : > { %v2082_v55 = vpop.f32.mrf.mxu1  ;;  %2214 = vst [vmem:[%s3499_s8 + $0x1a8] sm:$0xff] %v2152_v35  ;;  %v2153_v6 = vmax.f32 %v2077_v25, 0.0  ;;  %v2079_v37 = vadd.f32 %v2078_v46, %v1888_v44  ;;  %v1892_v43 = vadd.f32 %v1891_v49, %v3657_v52 }
 0x1fe   : > { %v1893_v54 = vpop.f32.mrf.mxu0 }
 0x1ff   : > { %v2084_v61 = vpop.f32.mrf.mxu1  ;;  %2215 = vst [vmem:[%s3499_s8 + $0x1b0] sm:$0xff] %v2153_v6  ;;  %v2154_v9 = vmax.f32 %v2079_v37, 0.0  ;;  %v2083_v60 = vadd.f32 %v2082_v55, %v1892_v43  ;;  %v1894_v18 = vadd.f32 %v1893_v54, %v3658_v20 }
 0x200   : > { %v1895_v5 = vpop.f32.mrf.mxu0 }
 0x201   : > { %v2086_v58 = vpop.f32.mrf.mxu1  ;;  %2216 = vst [vmem:[%s3499_s8 + $0x1b8] sm:$0xff] %v2154_v9  ;;  %v2155_v51 = vmax.f32 %v2083_v60, 0.0  ;;  %v2085_v19 = vadd.f32 %v2084_v61, %v1894_v18  ;;  %v1896_v12 = vadd.f32 %v1895_v5, %v3659_v2 }
 0x202   : > { %v1897_v3 = vpop.f32.mrf.mxu0 }
 0x203   : > { %v2088_v4 = vpop.f32.mrf.mxu1  ;;  %2217 = vst [vmem:[%s3499_s8 + $0x1c0] sm:$0xff] %v2155_v51  ;;  %v2156_v24 = vmax.f32 %v2085_v19, 0.0  ;;  %v2087_v63 = vadd.f32 %v2086_v58, %v1896_v12  ;;  %v1898_v22 = vadd.f32 %v1897_v3, %v3485_v27 }
 0x204   : > { %v1901_v30 = vpop.f32.mrf.mxu0 }
 0x205   : > { %v2092_v31 = vpop.f32.mrf.mxu1  ;;  %2218 = vst [vmem:[%s3499_s8 + $0x1c8] sm:$0xff] %v2156_v24  ;;  %v2157_v13 = vmax.f32 %v2087_v63, 0.0  ;;  %v2089_v50 = vadd.f32 %v2088_v4, %v1898_v22  ;;  %v1902_v29 = vadd.f32 %v1901_v30, %v3488_v41 }
 0x206   : > { %v1903_v10 = vpop.f32.mrf.mxu0 }
 0x207   : > { %v2094_v7 = vpop.f32.mrf.mxu1  ;;  %2219 = vst [vmem:[%s3499_s8 + $0x1d0] sm:$0xff] %v2157_v13  ;;  %v2158_v11 = vmax.f32 %v2089_v50, 0.0  ;;  %v2093_v21 = vadd.f32 %v2092_v31, %v1902_v29  ;;  %v1904_v38 = vadd.f32 %v1903_v10, %v3491_v62 }
 0x208   : > { %v1905_v8 = vpop.f32.mrf.mxu0 }
 0x209   : > { %v2096_v36 = vpop.f32.mrf.mxu1  ;;  %2220 = vst [vmem:[%s3499_s8 + $0x1d8] sm:$0xff] %v2158_v11  ;;  %v2159_v27 = vmax.f32 %v2093_v21, 0.0  ;;  %v2095_v33 = vadd.f32 %v2094_v7, %v1904_v38 }
 0x20a   : > { %v1906_v16 = vpop.f32.mrf.mxu0 }
 0x20b   : > { %v2097_v47 = vpop.f32.mrf.mxu1  ;;  %2221 = vst [vmem:[%s3499_s8 + $0x1e0] sm:$0xff] %v2159_v27  ;;  %v2160_v26 = vmax.f32 %v2095_v33, 0.0 }
 0x20d   : > { %2222 = vst [vmem:[%s3499_s8 + $0x1e8] sm:$0xff] %v2160_v26 }
 0x20e PF: > { %s13_s12 = sadd.s32 1, %s2628_s12  }
 0x20f   : > { %p10_p4 = scmp.ge.s32.totalorder %s13_s12, 5  }
 0x211   :  { %12 = sbr.rel (!%p10_p4) target bundleno = 1 (0x1), region = 62 }

// kernel: aux_layers_forward.6
= control target key start
LH: loop header
LB: loop body
LE: loop exit
PB: predicated region body
PF: predicated region fallthrough
CT: control target
= control target key end

     0   :  { %s8358_s21 = smov 0   ;;  %s11956_s0 = inlined_call_operand.vmem [shape: f32[208,2304], index: 0, kind: input, shape index: {}]   ;;  %s11957_s1 = inlined_call_operand.vmem [shape: bf16[2304,512], index: 1, kind: input, shape index: {}]   ;;  %s11958_s2 = inlined_call_operand.vmem [shape: f32[1,512], index: 2, kind: input, shape index: {}]   ;;  %s11959_s3 = inlined_call_operand.vmem [shape: bf16[512,128], index: 3, kind: input, shape index: {}]   ;;  %s11960_s4 = inlined_call_operand.vmem [shape: f32[1,128], index: 4, kind: input, shape index: {}]   ;;  %s11961_s5 = inlined_call_operand.vmem [shape: f32[208,512], index: 5, kind: output, shape index: {0}]   ;;  %s11962_s6 = inlined_call_operand.vmem [shape: f32[208,128], index: 6, kind: output, shape index: {1}]  }
   0x1 LB: > { %s6672_s22 = sadd.s32 4294967295, %s8321_s21   ;;  %p6676_p0 = scmp.ge.s32.totalorder %s8321_s21, 1  ;;  %s8321_s21 = sphi %s8358_s21, %s17_s21  }
   0x2   : > { %p217_p1 = scmp.lt.s32.totalorder %s8321_s21, 3 }
   0x4   : > { %p218_p2 = pnand %p6676_p0, %p217_p1 }
   0x6   : > { %221 = sbr.rel (%p218_p2) target bundleno = 1046 (0x416), region = 40 }
   0xb   : > { %v7418_v0 = vld [vmem:[%s11957_s1 + $0xe4] ss:$16 sps:$4 sm:$0xff]   ;;  %v7422_v2 = vld [vmem:[%s11957_s1 + $0xe0] ss:$16 sps:$4 sm:$0xff]   ;;  %s254_s11 = smul.u32 13, %s6672_s22 }
   0xc   : > { %v7420_v1 = vld [vmem:[%s11957_s1 + $0x2e4] ss:$16 sps:$4 sm:$0xff]   ;;  %4113 = vmatprep.subr.bf16.mxu0 %v7418_v0  ;;  %v7423_v3 = vld [vmem:[%s11957_s1 + $0x2e0] ss:$16 sps:$4 sm:$0xff]  }
   0xd   : > { %4214 = vmatprep.subr.bf16.mxu1 %v7420_v1  ;;  %v7424_v4 = vld [vmem:[%s11957_s1 + $0xc4] ss:$16 sps:$4 sm:$0xff]   ;;  %4114 = vmatpush1.bf16.msra.mxu0 %v7422_v2  ;;  %v7428_v6 = vld [vmem:[%s11957_s1 + $0xc0] ss:$16 sps:$4 sm:$0xff]   ;;  %p255_p3 = scmp.lt.s32.totalorder %s254_s11, 25 }
   0xe   : > { %4215 = vmatpush1.bf16.msra.mxu1 %v7423_v3  ;;  %v7426_v5 = vld [vmem:[%s11957_s1 + $0x2c4] ss:$16 sps:$4 sm:$0xff]   ;;  %4115 = vmatprep.subr.bf16.mxu0 %v7424_v4  ;;  %v7429_v7 = vld [vmem:[%s11957_s1 + $0x2c0] ss:$16 sps:$4 sm:$0xff]  }
   0xf   : > { %4216 = vmatprep.subr.bf16.mxu1 %v7426_v5  ;;  %v7430_v8 = vld [vmem:[%s11957_s1 + $0xa4] ss:$16 sps:$4 sm:$0xff]   ;;  %v7434_v10 = vld [vmem:[%s11957_s1 + $0xa0] ss:$16 sps:$4 sm:$0xff]   ;;  %s12396_s11 = smov (!%p255_p3, %s254_s11), 25 }
  0x10   : > { %v7432_v9 = vld [vmem:[%s11957_s1 + $0x2a4] ss:$16 sps:$4 sm:$0xff]   ;;  %v7435_v11 = vld [vmem:[%s11957_s1 + $0x2a0] ss:$16 sps:$4 sm:$0xff]   ;;  %s7409_s12 = smul.u32 144, %s12396_s11  ;;  %s7292_s16 = sshll.u32 %s12396_s11, 5 }
  0x11   : > { %4116 = vmatpush1.bf16.msra.mxu0 %v7428_v6  ;;  %v7436_v12 = vld [vmem:[%s11957_s1 + $0x84] ss:$16 sps:$4 sm:$0xff]   ;;  %v7440_v14 = vld [vmem:[%s11957_s1 + $0x80] ss:$16 sps:$4 sm:$0xff]   ;;  %s10987_s24 = scalar_lea.vmem %s11961_s5, %s7292_s16  ;;  %s6680_s13 = sshll.u32 %s12396_s11, 3 }
  0x12   : > { %4217 = vmatpush1.bf16.msra.mxu1 %v7429_v7  ;;  %4117 = vmatprep.subr.bf16.mxu0 %v7430_v8  ;;  %v7438_v13 = vld [vmem:[%s11957_s1 + $0x284] ss:$16 sps:$4 sm:$0xff]   ;;  %v7441_v15 = vld [vmem:[%s11957_s1 + $0x280] ss:$16 sps:$4 sm:$0xff]   ;;  %s8506_s26 = scalar_lea.vmem %s11956_s0, %s7409_s12  ;;  %s11919_s16 = scalar_lea.vmem %s11962_s6, %s6680_s13 }
  0x13   : > { %4218 = vmatprep.subr.bf16.mxu1 %v7432_v9  ;;  %v7442_v16 = vld [vmem:[%s11957_s1 + $0x64] ss:$16 sps:$4 sm:$0xff]   ;;  %v7446_v18 = vld [vmem:[%s11957_s1 + $0x60] ss:$16 sps:$4 sm:$0xff]   ;;  %v276_v46 = vld [vmem:[%s8506_s26 + $0x8] sm:$0xff] }
  0x14   : > { %v7444_v17 = vld [vmem:[%s11957_s1 + $0x264] ss:$16 sps:$4 sm:$0xff]   ;;  %v7447_v19 = vld [vmem:[%s11957_s1 + $0x260] ss:$16 sps:$4 sm:$0xff]   ;;  %v294_v47 = vld [vmem:[%s8506_s26 + $0x98] sm:$0xff] }
  0x15   : > { %4118 = vmatpush1.bf16.msra.mxu0 %v7434_v10  ;;  %v7448_v20 = vld [vmem:[%s11957_s1 + $0x44] ss:$16 sps:$4 sm:$0xff]   ;;  %v7452_v22 = vld [vmem:[%s11957_s1 + $0x40] ss:$16 sps:$4 sm:$0xff]   ;;  %v278_v48 = vld [vmem:[%s8506_s26 + $0x18] sm:$0xff]  ;;  %v8527_v53 = vpack.c.bf16 %v294_v47, %v276_v46 }
  0x16   : > { %4219 = vmatpush1.bf16.msra.mxu1 %v7435_v11  ;;  %4119 = vmatprep.subr.bf16.mxu0 %v7436_v12  ;;  %v7450_v21 = vld [vmem:[%s11957_s1 + $0x244] ss:$16 sps:$4 sm:$0xff]   ;;  %v7453_v23 = vld [vmem:[%s11957_s1 + $0x240] ss:$16 sps:$4 sm:$0xff]   ;;  %v296_v49 = vld [vmem:[%s8506_s26 + $0xa8] sm:$0xff] }
  0x17   : > { %4220 = vmatprep.subr.bf16.mxu1 %v7438_v13  ;;  %v7454_v24 = vld [vmem:[%s11957_s1 + $0x24] ss:$16 sps:$4 sm:$0xff]   ;;  %v7458_v26 = vld [vmem:[%s11957_s1 + $0x20] ss:$16 sps:$4 sm:$0xff]   ;;  %v8529_v54 = vpack.c.bf16 %v296_v49, %v278_v48  ;;  %4145 = vmatprep.mubr.bf16.mxu0 %v8527_v53  ;;  %v312_v12 = vld [vmem:[%s8506_s26 + $0x128] sm:$0xff] }
  0x18   : > { %v7456_v25 = vld [vmem:[%s11957_s1 + $0x224] ss:$16 sps:$4 sm:$0xff]   ;;  %v7459_v27 = vld [vmem:[%s11957_s1 + $0x220] ss:$16 sps:$4 sm:$0xff]   ;;  %v330_v13 = vld [vmem:[%s8506_s26 + $0x1b8] sm:$0xff] }
  0x19   : > { %4120 = vmatpush1.bf16.msra.mxu0 %v7440_v14  ;;  %v7460_v28 = vld [vmem:[%s11957_s1 + $0x4] ss:$16 sps:$4 sm:$0xff]   ;;  %v7464_v30 = vld [vmem:[%s11957_s1] ss:$16 sps:$4 sm:$0xff]   ;;  %4246 = vmatprep.mubr.bf16.mxu1 %v8529_v54  ;;  %v314_v14 = vld [vmem:[%s8506_s26 + $0x138] sm:$0xff] }
  0x1a   : > { %4221 = vmatpush1.bf16.msra.mxu1 %v7441_v15  ;;  %4121 = vmatprep.subr.bf16.mxu0 %v7442_v16  ;;  %v7462_v29 = vld [vmem:[%s11957_s1 + $0x204] ss:$16 sps:$4 sm:$0xff]   ;;  %v7465_v31 = vld [vmem:[%s11957_s1 + $0x200] ss:$16 sps:$4 sm:$0xff]  }
  0x1b   : > { %4222 = vmatprep.subr.bf16.mxu1 %v7444_v17  ;;  %v7466_v32 = vld [vmem:[%s11957_s1 + $0x1e4] ss:$16 sps:$4 sm:$0xff]   ;;  %v7470_v34 = vld [vmem:[%s11957_s1 + $0x1e0] ss:$16 sps:$4 sm:$0xff]   ;;  %v332_v17 = vld [vmem:[%s8506_s26 + $0x1c8] sm:$0xff] }
  0x1c   : > { %v7468_v33 = vld [vmem:[%s11957_s1 + $0x3e4] ss:$16 sps:$4 sm:$0xff]   ;;  %v7471_v35 = vld [vmem:[%s11957_s1 + $0x3e0] ss:$16 sps:$4 sm:$0xff]  }
  0x1d   : > { %4122 = vmatpush1.bf16.msra.mxu0 %v7446_v18  ;;  %v7472_v36 = vld [vmem:[%s11957_s1 + $0x1c4] ss:$16 sps:$4 sm:$0xff]   ;;  %v7476_v38 = vld [vmem:[%s11957_s1 + $0x1c0] ss:$16 sps:$4 sm:$0xff]  }
  0x1e   : > { %4223 = vmatpush1.bf16.msra.mxu1 %v7447_v19  ;;  %4123 = vmatprep.subr.bf16.mxu0 %v7448_v20  ;;  %v7474_v37 = vld [vmem:[%s11957_s1 + $0x3c4] ss:$16 sps:$4 sm:$0xff]   ;;  %v7477_v39 = vld [vmem:[%s11957_s1 + $0x3c0] ss:$16 sps:$4 sm:$0xff]  }
  0x1f   : > { %4224 = vmatprep.subr.bf16.mxu1 %v7450_v21  ;;  %v7478_v40 = vld [vmem:[%s11957_s1 + $0x1a4] ss:$16 sps:$4 sm:$0xff]   ;;  %v7482_v42 = vld [vmem:[%s11957_s1 + $0x1a0] ss:$16 sps:$4 sm:$0xff]  }
  0x20   : > { %v7480_v41 = vld [vmem:[%s11957_s1 + $0x3a4] ss:$16 sps:$4 sm:$0xff]   ;;  %v7483_v43 = vld [vmem:[%s11957_s1 + $0x3a0] ss:$16 sps:$4 sm:$0xff]  }
  0x21   : > { %4124 = vmatpush1.bf16.msra.mxu0 %v7452_v22  ;;  %v7484_v44 = vld [vmem:[%s11957_s1 + $0x184] ss:$16 sps:$4 sm:$0xff]   ;;  %v7488_v50 = vld [vmem:[%s11957_s1 + $0x180] ss:$16 sps:$4 sm:$0xff]  }
  0x22   : > { %4225 = vmatpush1.bf16.msra.mxu1 %v7453_v23  ;;  %4125 = vmatprep.subr.bf16.mxu0 %v7454_v24  ;;  %v7486_v45 = vld [vmem:[%s11957_s1 + $0x384] ss:$16 sps:$4 sm:$0xff]   ;;  %v7489_v51 = vld [vmem:[%s11957_s1 + $0x380] ss:$16 sps:$4 sm:$0xff]   ;;  %v8614_v24 = vpack.c.bf16 %v330_v13, %v312_v12  ;;  %v422_v12 = vld [vmem:[%s8506_s26 + $0x498] sm:$0xff] }
  0x23   : > { %4226 = vmatprep.subr.bf16.mxu1 %v7456_v25  ;;  %v7490_v52 = vld [vmem:[%s11957_s1 + $0x164] ss:$16 sps:$4 sm:$0xff]   ;;  %v7494_v56 = vld [vmem:[%s11957_s1 + $0x160] ss:$16 sps:$4 sm:$0xff]  }
  0x24   : > { %v7492_v55 = vld [vmem:[%s11957_s1 + $0x364] ss:$16 sps:$4 sm:$0xff]   ;;  %v7495_v57 = vld [vmem:[%s11957_s1 + $0x360] ss:$16 sps:$4 sm:$0xff]  }
  0x25   : > { %4126 = vmatpush1.bf16.msra.mxu0 %v7458_v26  ;;  %v7496_v58 = vld [vmem:[%s11957_s1 + $0x144] ss:$16 sps:$4 sm:$0xff]   ;;  %v7500_v60 = vld [vmem:[%s11957_s1 + $0x140] ss:$16 sps:$4 sm:$0xff]   ;;  %v8617_v26 = vpack.c.bf16 %v332_v17, %v314_v14  ;;  %v440_v17 = vld [vmem:[%s8506_s26 + $0x528] sm:$0xff] }
  0x26   : > { %4227 = vmatpush1.bf16.msra.mxu1 %v7459_v27  ;;  %4127 = vmatprep.subr.bf16.mxu0 %v7460_v28  ;;  %v7498_v59 = vld [vmem:[%s11957_s1 + $0x344] ss:$16 sps:$4 sm:$0xff]   ;;  %v7501_v61 = vld [vmem:[%s11957_s1 + $0x340] ss:$16 sps:$4 sm:$0xff]  }
  0x27   : > { %4228 = vmatprep.subr.bf16.mxu1 %v7462_v29  ;;  %v7502_v62 = vld [vmem:[%s11957_s1 + $0x124] ss:$16 sps:$4 sm:$0xff]   ;;  %v7506_v0 = vld [vmem:[%s11957_s1 + $0x120] ss:$16 sps:$4 sm:$0xff]  }
  0x28   : > { %v7504_v63 = vld [vmem:[%s11957_s1 + $0x324] ss:$16 sps:$4 sm:$0xff]   ;;  %v7507_v1 = vld [vmem:[%s11957_s1 + $0x320] ss:$16 sps:$4 sm:$0xff]  }
  0x29   : > { %4128 = vmatpush1.bf16.msra.mxu0 %v7464_v30  ;;  %v7508_v2 = vld [vmem:[%s11957_s1 + $0x104] ss:$16 sps:$4 sm:$0xff]   ;;  %v7512_v4 = vld [vmem:[%s11957_s1 + $0x100] ss:$16 sps:$4 sm:$0xff]  }
  0x2a   : > { %4229 = vmatpush1.bf16.msra.mxu1 %v7465_v31  ;;  %4129 = vmatprep.subr.bf16.mxu0 %v7466_v32  ;;  %v7510_v3 = vld [vmem:[%s11957_s1 + $0x304] ss:$16 sps:$4 sm:$0xff]   ;;  %v7513_v5 = vld [vmem:[%s11957_s1 + $0x300] ss:$16 sps:$4 sm:$0xff]   ;;  %v348_v32 = vld [vmem:[%s8506_s26 + $0x248] sm:$0xff] }
  0x2b   : > { %4230 = vmatprep.subr.bf16.mxu1 %v7468_v33  ;;  %v275_v6 = vld [vmem:[%s8506_s26] sm:$0xff]  ;;  %v293_v7 = vld [vmem:[%s8506_s26 + $0x90] sm:$0xff]  ;;  %v366_v33 = vld [vmem:[%s8506_s26 + $0x2d8] sm:$0xff] }
  0x2c   : > { %v277_v8 = vld [vmem:[%s8506_s26 + $0x10] sm:$0xff]  ;;  %v295_v9 = vld [vmem:[%s8506_s26 + $0xa0] sm:$0xff]  ;;  %v8591_v15 = vpack.c.bf16 %v293_v7, %v275_v6 }
  0x2d   : > { %4130 = vmatpush2.bf16.msra.mxu0 %v7470_v34  ;;  %v7516_v10 = vld [vmem:[%s11957_s1 + $0x4e4] ss:$16 sps:$4 sm:$0xff]   ;;  %v8593_v16 = vpack.c.bf16 %v295_v9, %v277_v8  ;;  %v7514_v18 = vld [vmem:[%s11957_s1 + $0x4e0] ss:$16 sps:$4 sm:$0xff]   ;;  %v350_v34 = vld [vmem:[%s8506_s26 + $0x258] sm:$0xff] }
  0x2e   : > { %4231 = vmatpush2.bf16.msra.mxu1 %v7471_v35  ;;  %4131 = vmatprep.subr.bf16.mxu0 %v7472_v36  ;;  %v7519_v11 = vld [vmem:[%s11957_s1 + $0x6e4] ss:$16 sps:$4 sm:$0xff]   ;;  %v7517_v19 = vld [vmem:[%s11957_s1 + $0x6e0] ss:$16 sps:$4 sm:$0xff]  }
  0x2f   : > { %4232 = vmatprep.subr.bf16.mxu1 %v7474_v37  ;;  %v7522_v20 = vld [vmem:[%s11957_s1 + $0x4c4] ss:$16 sps:$4 sm:$0xff]   ;;  %v7520_v22 = vld [vmem:[%s11957_s1 + $0x4c0] ss:$16 sps:$4 sm:$0xff]   ;;  %v368_v37 = vld [vmem:[%s8506_s26 + $0x2e8] sm:$0xff] }
  0x30   : > { %v7525_v21 = vld [vmem:[%s11957_s1 + $0x6c4] ss:$16 sps:$4 sm:$0xff]   ;;  %v7523_v23 = vld [vmem:[%s11957_s1 + $0x6c0] ss:$16 sps:$4 sm:$0xff]   ;;  %v8661_v46 = vpack.c.bf16 %v368_v37, %v350_v34  ;;  %v456_v34 = vld [vmem:[%s8506_s26 + $0x5a8] sm:$0xff] }
  0x31   : > { %4132 = vmatpush2.bf16.msra.mxu0 %v7476_v38  ;;  %v311_v25 = vld [vmem:[%s8506_s26 + $0x120] sm:$0xff]  ;;  %v329_v27 = vld [vmem:[%s8506_s26 + $0x1b0] sm:$0xff] }
  0x32   : > { %4233 = vmatpush2.bf16.msra.mxu1 %v7477_v39  ;;  %4133 = vmatprep.subr.bf16.mxu0 %v7478_v40  ;;  %v313_v28 = vld [vmem:[%s8506_s26 + $0x130] sm:$0xff]  ;;  %v331_v29 = vld [vmem:[%s8506_s26 + $0x1c0] sm:$0xff]  ;;  %v8635_v35 = vpack.c.bf16 %v329_v27, %v311_v25  ;;  %12072 = vst [vmem:[#allocation3_spill] sm:$0xff] %v8661_v46 }
  0x33   : > { %4234 = vmatprep.subr.bf16.mxu1 %v7480_v41  ;;  %v7528_v30 = vld [vmem:[%s11957_s1 + $0x4a4] ss:$16 sps:$4 sm:$0xff]   ;;  %v8637_v36 = vpack.c.bf16 %v331_v29, %v313_v28  ;;  %v7526_v38 = vld [vmem:[%s11957_s1 + $0x4a0] ss:$16 sps:$4 sm:$0xff]   ;;  %v8749_v28 = vpack.c.bf16 %v440_v17, %v422_v12 }
  0x34   : > { %v7531_v31 = vld [vmem:[%s11957_s1 + $0x6a4] ss:$16 sps:$4 sm:$0xff]   ;;  %v7529_v39 = vld [vmem:[%s11957_s1 + $0x6a0] ss:$16 sps:$4 sm:$0xff]  }
  0x35   : > { %4134 = vmatpush2.bf16.msra.mxu0 %v7482_v42  ;;  %12071 = vst [vmem:[#allocation2_spill] sm:$0xff] %v8637_v36  ;;  %v7534_v40 = vld [vmem:[%s11957_s1 + $0x484] ss:$16 sps:$4 sm:$0xff]   ;;  %v7532_v42 = vld [vmem:[%s11957_s1 + $0x480] ss:$16 sps:$4 sm:$0xff]   ;;  %12076 = vst [vmem:[#allocation7_spill] sm:$0xff] %v8749_v28 }
  0x36   : > { %4235 = vmatpush2.bf16.msra.mxu1 %v7483_v43  ;;  %4135 = vmatprep.subr.bf16.mxu0 %v7484_v44  ;;  %v7537_v41 = vld [vmem:[%s11957_s1 + $0x684] ss:$16 sps:$4 sm:$0xff]   ;;  %v7535_v43 = vld [vmem:[%s11957_s1 + $0x680] ss:$16 sps:$4 sm:$0xff]   ;;  %v8658_v44 = vpack.c.bf16 %v366_v33, %v348_v32 }
  0x37   : > { %4236 = vmatprep.subr.bf16.mxu1 %v7486_v45  ;;  %v347_v45 = vld [vmem:[%s8506_s26 + $0x240] sm:$0xff]  ;;  %v365_v47 = vld [vmem:[%s8506_s26 + $0x2d0] sm:$0xff] }
  0x38   : > { %v349_v48 = vld [vmem:[%s8506_s26 + $0x250] sm:$0xff]  ;;  %v367_v49 = vld [vmem:[%s8506_s26 + $0x2e0] sm:$0xff] }
  0x39   : > { %4136 = vmatpush2.bf16.msra.mxu0 %v7488_v50  ;;  %v7540_v50 = vld [vmem:[%s11957_s1 + $0x464] ss:$16 sps:$4 sm:$0xff]   ;;  %v7562_v37 = vld [vmem:[%s11957_s1 + $0x5e0] ss:$16 sps:$4 sm:$0xff]  }
  0x3a   : > { %4237 = vmatpush2.bf16.msra.mxu1 %v7489_v51  ;;  %4137 = vmatprep.subr.bf16.mxu0 %v7490_v52  ;;  %v7543_v51 = vld [vmem:[%s11957_s1 + $0x664] ss:$16 sps:$4 sm:$0xff]   ;;  %v384_v52 = vld [vmem:[%s8506_s26 + $0x368] sm:$0xff] }
  0x3b   : > { %4238 = vmatprep.subr.bf16.mxu1 %v7492_v55  ;;  %v402_v55 = vld [vmem:[%s8506_s26 + $0x3f8] sm:$0xff]  ;;  %v385_v6 = vld [vmem:[%s8506_s26 + $0x370] sm:$0xff]  ;;  %v403_v7 = vld [vmem:[%s8506_s26 + $0x400] sm:$0xff] }
  0x3c   : > { %v7552_v8 = vld [vmem:[%s11957_s1 + $0x424] ss:$16 sps:$4 sm:$0xff]   ;;  %v8725_v14 = vpack.c.bf16 %v403_v7, %v385_v6 }
  0x3d   : > { %4138 = vmatpush2.bf16.msra.mxu0 %v7494_v56  ;;  %v386_v56 = vld [vmem:[%s8506_s26 + $0x378] sm:$0xff]  ;;  %v7555_v9 = vld [vmem:[%s11957_s1 + $0x624] ss:$16 sps:$4 sm:$0xff]  }
  0x3e   : > { %4239 = vmatpush2.bf16.msra.mxu1 %v7495_v57  ;;  %4139 = vmatprep.subr.bf16.mxu0 %v7496_v58  ;;  %v8679_v57 = vpack.c.bf16 %v365_v47, %v347_v45  ;;  %v8681_v58 = vpack.c.bf16 %v367_v49, %v349_v48  ;;  %12075 = vst [vmem:[#allocation6_spill] sm:$0xff] %v8725_v14  ;;  %v419_v27 = vld [vmem:[%s8506_s26 + $0x480] sm:$0xff]  ;;  %v437_v29 = vld [vmem:[%s8506_s26 + $0x510] sm:$0xff] }
  0x3f   : > { %4240 = vmatprep.subr.bf16.mxu1 %v7498_v59  ;;  %v404_v59 = vld [vmem:[%s8506_s26 + $0x408] sm:$0xff]  ;;  %v7564_v32 = vld [vmem:[%s11957_s1 + $0x5e4] ss:$16 sps:$4 sm:$0xff]   ;;  %v7568_v48 = vld [vmem:[%s11957_s1 + $0x5c0] ss:$16 sps:$4 sm:$0xff]  }
  0x40   : > { %12073 = vst [vmem:[#allocation4_spill] sm:$0xff] %v8681_v58  ;;  %v7567_v33 = vld [vmem:[%s11957_s1 + $0x7e4] ss:$16 sps:$4 sm:$0xff]   ;;  %v7571_v49 = vld [vmem:[%s11957_s1 + $0x7c0] ss:$16 sps:$4 sm:$0xff]  }
  0x41   : > { %4140 = vmatpush2.bf16.msra.mxu0 %v7500_v60  ;;  %v7538_v60 = vld [vmem:[%s11957_s1 + $0x460] ss:$16 sps:$4 sm:$0xff]   ;;  %v7570_v45 = vld [vmem:[%s11957_s1 + $0x5c4] ss:$16 sps:$4 sm:$0xff]  }
  0x42   : > { %4241 = vmatpush2.bf16.msra.mxu1 %v7501_v61  ;;  %4141 = vmatprep.subr.bf16.mxu0 %v7502_v62  ;;  %v7541_v61 = vld [vmem:[%s11957_s1 + $0x660] ss:$16 sps:$4 sm:$0xff]   ;;  %v7546_v62 = vld [vmem:[%s11957_s1 + $0x444] ss:$16 sps:$4 sm:$0xff]  }
  0x43   : > { %4242 = vmatprep.subr.bf16.mxu1 %v7504_v63  ;;  %v7549_v63 = vld [vmem:[%s11957_s1 + $0x644] ss:$16 sps:$4 sm:$0xff]  }
  0x44   : > { %v7573_v47 = vld [vmem:[%s11957_s1 + $0x7c4] ss:$16 sps:$4 sm:$0xff]  }
  0x45   : > { %4142 = vmatpush2.bf16.msra.mxu0 %v7506_v0  ;;  %v7544_v0 = vld [vmem:[%s11957_s1 + $0x440] ss:$16 sps:$4 sm:$0xff]   ;;  %v7582_v6 = vld [vmem:[%s11957_s1 + $0x584] ss:$16 sps:$4 sm:$0xff]  }
  0x46   : > { %4243 = vmatpush2.bf16.msra.mxu1 %v7507_v1  ;;  %4143 = vmatprep.subr.bf16.mxu0 %v7508_v2  ;;  %v7547_v1 = vld [vmem:[%s11957_s1 + $0x640] ss:$16 sps:$4 sm:$0xff]   ;;  %v8702_v2 = vpack.c.bf16 %v402_v55, %v384_v52  ;;  %v7576_v55 = vld [vmem:[%s11957_s1 + $0x5a4] ss:$16 sps:$4 sm:$0xff]  }
  0x47   : > { %4244 = vmatprep.subr.bf16.mxu1 %v7510_v3  ;;  %v383_v3 = vld [vmem:[%s8506_s26 + $0x360] sm:$0xff] }
  0x48   : > { %v7585_v7 = vld [vmem:[%s11957_s1 + $0x784] ss:$16 sps:$4 sm:$0xff]  }
  0x49   : > { %4144 = vmatpush2.bf16.msra.mxu0 %v7512_v4  ;;  %v8705_v4 = vpack.c.bf16 %v404_v59, %v386_v56  ;;  %v473_v56 = vld [vmem:[%s8506_s26 + $0x630] sm:$0xff]  ;;  %v491_v17 = vld [vmem:[%s8506_s26 + $0x6c0] sm:$0xff] }
  0x4a   : > { %4245 = vmatpush2.bf16.msra.mxu1 %v7513_v5  ;;  %4315 = vmatprep.subr.bf16.mxu0 %v7516_v10  ;;  %v401_v5 = vld [vmem:[%s8506_s26 + $0x3f0] sm:$0xff]  ;;  %v420_v10 = vld [vmem:[%s8506_s26 + $0x488] sm:$0xff] }
  0x4b   : > { %4416 = vmatprep.subr.bf16.mxu1 %v7519_v11  ;;  %12074 = vst [vmem:[#allocation5_spill] sm:$0xff] %v8705_v4  ;;  %v438_v11 = vld [vmem:[%s8506_s26 + $0x518] sm:$0xff]  ;;  %v8723_v13 = vpack.c.bf16 %v401_v5, %v383_v3  ;;  %v457_v59 = vld [vmem:[%s8506_s26 + $0x5b0] sm:$0xff] }
  0x4c   : > { %4146 = vmatmul.mubr.bf16.vlgmr.msra.gmra.mxu0 %v8591_v15  ;;  %v8746_v25 = vpack.c.bf16 %v438_v11, %v420_v10  ;;  %v7574_v3 = vld [vmem:[%s11957_s1 + $0x5a0] ss:$16 sps:$4 sm:$0xff]   ;;  %v7588_v12 = vld [vmem:[%s11957_s1 + $0x564] ss:$16 sps:$4 sm:$0xff]  }
  0x4d   : > { %4247 = vmatmul.mubr.bf16.vlgmr.msra.gmra.mxu1 %v8593_v16  ;;  %4316 = vmatpush1.bf16.msra.mxu0 %v7514_v18  ;;  %v7550_v18 = vld [vmem:[%s11957_s1 + $0x420] ss:$16 sps:$4 sm:$0xff]  }
  0x4e   : > { %4417 = vmatpush1.bf16.msra.mxu1 %v7517_v19  ;;  %4317 = vmatprep.subr.bf16.mxu0 %v7522_v20  ;;  %v7553_v19 = vld [vmem:[%s11957_s1 + $0x620] ss:$16 sps:$4 sm:$0xff]   ;;  %v7558_v20 = vld [vmem:[%s11957_s1 + $0x404] ss:$16 sps:$4 sm:$0xff]  }
  0x4f   : > { %4418 = vmatprep.subr.bf16.mxu1 %v7525_v21  ;;  %4155 = vmatprep.mubr.bf16.mxu0 %v8614_v24  ;;  %v7561_v21 = vld [vmem:[%s11957_s1 + $0x604] ss:$16 sps:$4 sm:$0xff]   ;;  %v7577_v5 = vld [vmem:[%s11957_s1 + $0x7a0] ss:$16 sps:$4 sm:$0xff]  }
  0x50   : > { %4256 = vmatprep.mubr.bf16.mxu1 %v8617_v26 }
  0x51   : > { %4318 = vmatpush1.bf16.msra.mxu0 %v7520_v22  ;;  %v7556_v22 = vld [vmem:[%s11957_s1 + $0x400] ss:$16 sps:$4 sm:$0xff]  }
  0x52   : > { %4419 = vmatpush1.bf16.msra.mxu1 %v7523_v23  ;;  %4319 = vmatprep.subr.bf16.mxu0 %v7528_v30  ;;  %v7559_v23 = vld [vmem:[%s11957_s1 + $0x600] ss:$16 sps:$4 sm:$0xff]  }
  0x53   : > { %4420 = vmatprep.subr.bf16.mxu1 %v7531_v31  ;;  %v421_v30 = vld [vmem:[%s8506_s26 + $0x490] sm:$0xff]  ;;  %v439_v31 = vld [vmem:[%s8506_s26 + $0x520] sm:$0xff] }
  0x54   : > { %4156 = vmatmul.mubr.bf16.gmra.mxu0 %v8635_v35 }
  0x55   : > { %4257 = vmatmul.mubr.bf16.gmra.mxu1 %v8637_v36  ;;  %4320 = vmatpush1.bf16.msra.mxu0 %v7526_v38  ;;  %v474_v38 = vld [vmem:[%s8506_s26 + $0x638] sm:$0xff] }
  0x56   : > { %4421 = vmatpush1.bf16.msra.mxu1 %v7529_v39  ;;  %4321 = vmatprep.subr.bf16.mxu0 %v7534_v40  ;;  %v8769_v39 = vpack.c.bf16 %v437_v29, %v419_v27  ;;  %v8771_v40 = vpack.c.bf16 %v439_v31, %v421_v30  ;;  %v298_v29 = vld [vmem:[%s8506_s26 + $0xb8] sm:$0xff]  ;;  %v300_v31 = vld [vmem:[%s8506_s26 + $0xc8] sm:$0xff] }
  0x57   : > { %4422 = vmatprep.subr.bf16.mxu1 %v7537_v41  ;;  %4165 = vmatprep.mubr.bf16.mxu0 %v8658_v44  ;;  %v458_v41 = vld [vmem:[%s8506_s26 + $0x5b8] sm:$0xff] }
  0x58   : > { %4266 = vmatprep.mubr.bf16.mxu1 %v8661_v46  ;;  %12077 = vst [vmem:[#allocation8_spill] sm:$0xff] %v8771_v40  ;;  %v282_v30 = vld [vmem:[%s8506_s26 + $0x38] sm:$0xff] }
  0x59   : > { %4322 = vmatpush1.bf16.msra.mxu0 %v7532_v42  ;;  %v476_v42 = vld [vmem:[%s8506_s26 + $0x648] sm:$0xff] }
  0x5a   : > { %4423 = vmatpush1.bf16.msra.mxu1 %v7535_v43  ;;  %4323 = vmatprep.subr.bf16.mxu0 %v7540_v50  ;;  %v7565_v43 = vld [vmem:[%s11957_s1 + $0x7e0] ss:$16 sps:$4 sm:$0xff]   ;;  %v8790_v50 = vpack.c.bf16 %v474_v38, %v456_v34  ;;  %v8793_v52 = vpack.c.bf16 %v476_v42, %v458_v41  ;;  %v7600_v42 = vld [vmem:[%s11957_s1 + $0x524] ss:$16 sps:$4 sm:$0xff]  }
  0x5b   : > { %4424 = vmatprep.subr.bf16.mxu1 %v7543_v51  ;;  %v455_v51 = vld [vmem:[%s8506_s26 + $0x5a0] sm:$0xff] }
  0x5c   : > { %4166 = vmatmul.mubr.bf16.gmra.mxu0 %v8679_v57  ;;  %12078 = vst [vmem:[#allocation9_spill] sm:$0xff] %v8793_v52  ;;  %v7592_v38 = vld [vmem:[%s11957_s1 + $0x540] ss:$16 sps:$4 sm:$0xff]  }
  0x5d   : > { %4267 = vmatmul.mubr.bf16.gmra.mxu1 %v8681_v58  ;;  %4324 = vmatpush1.bf16.msra.mxu0 %v7538_v60  ;;  %v475_v60 = vld [vmem:[%s8506_s26 + $0x640] sm:$0xff] }
  0x5e   : > { %4425 = vmatpush1.bf16.msra.mxu1 %v7541_v61  ;;  %4325 = vmatprep.subr.bf16.mxu0 %v7546_v62  ;;  %v7579_v61 = vld [vmem:[%s11957_s1 + $0x7a4] ss:$16 sps:$4 sm:$0xff]   ;;  %v8808_v62 = vpack.c.bf16 %v473_v56, %v455_v51  ;;  %v7595_v41 = vld [vmem:[%s11957_s1 + $0x740] ss:$16 sps:$4 sm:$0xff]  }
  0x5f   : > { %4426 = vmatprep.subr.bf16.mxu1 %v7549_v63  ;;  %4175 = vmatprep.mubr.bf16.mxu0 %v8702_v2  ;;  %v8810_v63 = vpack.c.bf16 %v475_v60, %v457_v59  ;;  %v7604_v51 = vld [vmem:[%s11957_s1 + $0x500] ss:$16 sps:$4 sm:$0xff]  }
  0x60   : > { %4276 = vmatprep.mubr.bf16.mxu1 %v8705_v4  ;;  %v279_v56 = vld [vmem:[%s8506_s26 + $0x20] sm:$0xff]  ;;  %v297_v59 = vld [vmem:[%s8506_s26 + $0xb0] sm:$0xff] }
  0x61   : > { %4326 = vmatpush1.bf16.msra.mxu0 %v7544_v0  ;;  %12079 = vst [vmem:[#allocation10_spill] sm:$0xff] %v8810_v63  ;;  %v492_v0 = vld [vmem:[%s8506_s26 + $0x6c8] sm:$0xff]  ;;  %v281_v60 = vld [vmem:[%s8506_s26 + $0x30] sm:$0xff] }
  0x62   : > { %4427 = vmatpush1.bf16.msra.mxu1 %v7547_v1  ;;  %4327 = vmatprep.subr.bf16.mxu0 %v7552_v8  ;;  %v494_v1 = vld [vmem:[%s8506_s26 + $0x6d8] sm:$0xff]  ;;  %v7580_v8 = vld [vmem:[%s11957_s1 + $0x580] ss:$16 sps:$4 sm:$0xff]   ;;  %v8832_v10 = vpack.c.bf16 %v492_v0, %v492_v0  ;;  %v7612_v0 = vld [vmem:[%s11957_s1 + $0x8e4] ss:$16 sps:$4 sm:$0xff]  }
  0x63   : > { %4428 = vmatprep.subr.bf16.mxu1 %v7555_v9  ;;  %v7583_v9 = vld [vmem:[%s11957_s1 + $0x780] ss:$16 sps:$4 sm:$0xff]   ;;  %v8834_v11 = vpack.c.bf16 %v494_v1, %v494_v1  ;;  %v7615_v1 = vld [vmem:[%s11957_s1 + $0xae4] ss:$16 sps:$4 sm:$0xff]  }
  0x64   : > { %4176 = vmatmul.mubr.bf16.gmra.mxu0 %v8723_v13 }
  0x65   : > { %4277 = vmatmul.mubr.bf16.gmra.mxu1 %v8725_v14  ;;  %4328 = vmatpush1.bf16.msra.mxu0 %v7550_v18  ;;  %12080 = vst [vmem:[#allocation11_spill] sm:$0xff] %v8834_v11  ;;  %v493_v18 = vld [vmem:[%s8506_s26 + $0x6d0] sm:$0xff]  ;;  %v468_v14 = vld [vmem:[%s8506_s26 + $0x608] sm:$0xff] }
  0x66   : > { %4429 = vmatpush1.bf16.msra.mxu1 %v7553_v19  ;;  %4329 = vmatprep.subr.bf16.mxu0 %v7558_v20  ;;  %v7591_v19 = vld [vmem:[%s11957_s1 + $0x764] ss:$16 sps:$4 sm:$0xff]   ;;  %v7586_v20 = vld [vmem:[%s11957_s1 + $0x560] ss:$16 sps:$4 sm:$0xff]   ;;  %v8857_v27 = vpack.c.bf16 %v493_v18, %v493_v18 }
  0x67   : > { %4430 = vmatprep.subr.bf16.mxu1 %v7561_v21  ;;  %4185 = vmatprep.mubr.bf16.mxu0 %v8746_v25  ;;  %v7589_v21 = vld [vmem:[%s11957_s1 + $0x760] ss:$16 sps:$4 sm:$0xff]   ;;  %v7618_v18 = vld [vmem:[%s11957_s1 + $0x8c4] ss:$16 sps:$4 sm:$0xff]  }
  0x68   : > { %4286 = vmatprep.mubr.bf16.mxu1 %v8749_v28  ;;  %12081 = vst [vmem:[#allocation12_spill] sm:$0xff] %v8857_v27 }
  0x69   : > { %4330 = vmatpush1.bf16.msra.mxu0 %v7556_v22  ;;  %v280_v22 = vld [vmem:[%s8506_s26 + $0x28] sm:$0xff] }
  0x6a   : > { %4431 = vmatpush1.bf16.msra.mxu1 %v7559_v23  ;;  %4331 = vmatprep.subr.bf16.mxu0 %v7564_v32  ;;  %v8855_v23 = vpack.c.bf16 %v491_v17, %v491_v17  ;;  %v7594_v32 = vld [vmem:[%s11957_s1 + $0x544] ss:$16 sps:$4 sm:$0xff]   ;;  %v8868_v34 = vpack.c.bf16 %v298_v29, %v280_v22  ;;  %v336_v17 = vld [vmem:[%s8506_s26 + $0x1e8] sm:$0xff] }
  0x6b   : > { %4432 = vmatprep.subr.bf16.mxu1 %v7567_v33  ;;  %v7597_v33 = vld [vmem:[%s11957_s1 + $0x744] ss:$16 sps:$4 sm:$0xff]  }
  0x6c   : > { %4186 = vmatmul.mubr.bf16.gmra.mxu0 %v8769_v39  ;;  %v315_v29 = vld [vmem:[%s8506_s26 + $0x140] sm:$0xff] }
  0x6d   : > { %4287 = vmatmul.mubr.bf16.gmra.mxu1 %v8771_v40  ;;  %4332 = vmatpush2.bf16.msra.mxu0 %v7562_v37  ;;  %v8870_v37 = vpack.c.bf16 %v300_v31, %v282_v30  ;;  %v333_v31 = vld [vmem:[%s8506_s26 + $0x1d0] sm:$0xff]  ;;  %v432_v40 = vld [vmem:[%s8506_s26 + $0x4e8] sm:$0xff] }
  0x6e   : > { %4433 = vmatpush2.bf16.msra.mxu1 %v7565_v43  ;;  %4333 = vmatprep.subr.bf16.mxu0 %v7570_v45  ;;  %v7603_v43 = vld [vmem:[%s11957_s1 + $0x724] ss:$16 sps:$4 sm:$0xff]   ;;  %v7598_v45 = vld [vmem:[%s11957_s1 + $0x520] ss:$16 sps:$4 sm:$0xff]  }
  0x6f   : > { %4434 = vmatprep.subr.bf16.mxu1 %v7573_v47  ;;  %4195 = vmatprep.mubr.bf16.mxu0 %v8790_v50  ;;  %12082 = vst [vmem:[#allocation13_spill] sm:$0xff] %v8870_v37  ;;  %v7601_v47 = vld [vmem:[%s11957_s1 + $0x720] ss:$16 sps:$4 sm:$0xff]  }
  0x70   : > { %4296 = vmatprep.mubr.bf16.mxu1 %v8793_v52  ;;  %v398_v52 = vld [vmem:[%s8506_s26 + $0x3d8] sm:$0xff] }
  0x71   : > { %4334 = vmatpush2.bf16.msra.mxu0 %v7568_v48  ;;  %v7606_v48 = vld [vmem:[%s11957_s1 + $0x504] ss:$16 sps:$4 sm:$0xff]  }
  0x72   : > { %4435 = vmatpush2.bf16.msra.mxu1 %v7571_v49  ;;  %4335 = vmatprep.subr.bf16.mxu0 %v7576_v55  ;;  %v7609_v49 = vld [vmem:[%s11957_s1 + $0x704] ss:$16 sps:$4 sm:$0xff]   ;;  %v7607_v55 = vld [vmem:[%s11957_s1 + $0x700] ss:$16 sps:$4 sm:$0xff]  }
  0x73   : > { %4436 = vmatprep.subr.bf16.mxu1 %v7579_v61  ;;  %v299_v61 = vld [vmem:[%s8506_s26 + $0xc0] sm:$0xff] }
  0x74   : > { %4196 = vmatmul.mubr.bf16.gmra.mxu0 %v8808_v62 }
  0x75   : > { %4297 = vmatmul.mubr.bf16.gmra.mxu1 %v8810_v63  ;;  %4336 = vmatpush2.bf16.msra.mxu0 %v7574_v3  ;;  %v7610_v3 = vld [vmem:[%s11957_s1 + $0x8e0] ss:$16 sps:$4 sm:$0xff]  }
  0x76   : > { %4437 = vmatpush2.bf16.msra.mxu1 %v7577_v5  ;;  %4337 = vmatprep.subr.bf16.mxu0 %v7582_v6  ;;  %v7613_v5 = vld [vmem:[%s11957_s1 + $0xae0] ss:$16 sps:$4 sm:$0xff]   ;;  %v316_v6 = vld [vmem:[%s8506_s26 + $0x148] sm:$0xff] }
  0x77   : > { %4438 = vmatprep.subr.bf16.mxu1 %v7585_v7  ;;  %4205 = vmatprep.mubr.bf16.mxu0 %v8832_v10  ;;  %v8923_v7 = vpack.c.bf16 %v297_v59, %v279_v56  ;;  %v7630_v56 = vld [vmem:[%s11957_s1 + $0x884] ss:$16 sps:$4 sm:$0xff]  }
  0x78   : > { %4306 = vmatprep.mubr.bf16.mxu1 %v8834_v11  ;;  %v7633_v59 = vld [vmem:[%s11957_s1 + $0xa84] ss:$16 sps:$4 sm:$0xff]  }
  0x79   : > { %4338 = vmatpush2.bf16.msra.mxu0 %v7580_v8  ;;  %v8925_v8 = vpack.c.bf16 %v299_v61, %v281_v60  ;;  %v7628_v60 = vld [vmem:[%s11957_s1 + $0x880] ss:$16 sps:$4 sm:$0xff]  }
  0x7a   : > { %4439 = vmatpush2.bf16.msra.mxu1 %v7583_v9  ;;  %4339 = vmatprep.subr.bf16.mxu0 %v7588_v12  ;;  %v334_v9 = vld [vmem:[%s8506_s26 + $0x1d8] sm:$0xff]  ;;  %v7631_v61 = vld [vmem:[%s11957_s1 + $0xa80] ss:$16 sps:$4 sm:$0xff]  }
  0x7b   : > { %4440 = vmatprep.subr.bf16.mxu1 %v7591_v19  ;;  %12083 = vst [vmem:[#allocation14_spill] sm:$0xff] %v8925_v8  ;;  %v318_v12 = vld [vmem:[%s8506_s26 + $0x158] sm:$0xff]  ;;  %v7621_v19 = vld [vmem:[%s11957_s1 + $0xac4] ss:$16 sps:$4 sm:$0xff]   ;;  %v8942_v22 = vpack.c.bf16 %v334_v9, %v316_v6 }
  0x7c   : > { %4206 = vmatmul.mubr.bf16.gmra.mxu0 %v8855_v23  ;;  %v8945_v30 = vpack.c.bf16 %v336_v17, %v318_v12  ;;  %v7636_v6 = vld [vmem:[%s11957_s1 + $0x864] ss:$16 sps:$4 sm:$0xff]  }
  0x7d   : > { %4307 = vmatmul.mubr.bf16.gmra.mxu1 %v8857_v27  ;;  %4340 = vmatpush2.bf16.msra.mxu0 %v7586_v20  ;;  %v7616_v20 = vld [vmem:[%s11957_s1 + $0x8c0] ss:$16 sps:$4 sm:$0xff]   ;;  %v7639_v17 = vld [vmem:[%s11957_s1 + $0xa64] ss:$16 sps:$4 sm:$0xff]  }
  0x7e   : > { %4441 = vmatpush2.bf16.msra.mxu1 %v7589_v21  ;;  %4341 = vmatprep.subr.bf16.mxu0 %v7594_v32  ;;  %v7619_v21 = vld [vmem:[%s11957_s1 + $0xac0] ss:$16 sps:$4 sm:$0xff]   ;;  %12084 = vst [vmem:[#allocation15_spill] sm:$0xff] %v8945_v30  ;;  %v7624_v32 = vld [vmem:[%s11957_s1 + $0x8a4] ss:$16 sps:$4 sm:$0xff]  }
  0x7f   : > { %4442 = vmatprep.subr.bf16.mxu1 %v7597_v33  ;;  %4347 = vmatprep.mubr.bf16.mxu0 %v8868_v34  ;;  %v317_v33 = vld [vmem:[%s8506_s26 + $0x150] sm:$0xff]  ;;  %v371_v12 = vld [vmem:[%s8506_s26 + $0x300] sm:$0xff] }
  0x80   : > { %4448 = vmatprep.mubr.bf16.mxu1 %v8870_v37  ;;  %v353_v9 = vld [vmem:[%s8506_s26 + $0x270] sm:$0xff] }
  0x81   : > { %4342 = vmatpush2.bf16.msra.mxu0 %v7592_v38  ;;  %v335_v38 = vld [vmem:[%s8506_s26 + $0x1e0] sm:$0xff] }
  0x82   : > { %4443 = vmatpush2.bf16.msra.mxu1 %v7595_v41  ;;  %4343 = vmatprep.subr.bf16.mxu0 %v7600_v42  ;;  %v7627_v41 = vld [vmem:[%s11957_s1 + $0xaa4] ss:$16 sps:$4 sm:$0xff]   ;;  %v7622_v42 = vld [vmem:[%s11957_s1 + $0x8a0] ss:$16 sps:$4 sm:$0xff]  }
  0x83   : > { %4444 = vmatprep.subr.bf16.mxu1 %v7603_v43  ;;  %v7625_v43 = vld [vmem:[%s11957_s1 + $0xaa0] ss:$16 sps:$4 sm:$0xff]  }
  0x85   : > { %4344 = vmatpush2.bf16.msra.mxu0 %v7598_v45  ;;  %v352_v45 = vld [vmem:[%s8506_s26 + $0x268] sm:$0xff] }
  0x86   : > { %4445 = vmatpush2.bf16.msra.mxu1 %v7601_v47  ;;  %4345 = vmatprep.subr.bf16.mxu0 %v7606_v48  ;;  %v8967_v47 = vpack.c.bf16 %v333_v31, %v315_v29  ;;  %v8969_v48 = vpack.c.bf16 %v335_v38, %v317_v33  ;;  %v9013_v29 = vpack.c.bf16 %v371_v12, %v353_v9  ;;  %v406_v31 = vld [vmem:[%s8506_s26 + $0x418] sm:$0xff]  ;;  %v408_v33 = vld [vmem:[%s8506_s26 + $0x428] sm:$0xff]  ;;  %v7642_v38 = vld [vmem:[%s11957_s1 + $0x844] ss:$16 sps:$4 sm:$0xff]  }
  0x87   : > { %4446 = vmatprep.subr.bf16.mxu1 %v7609_v49  ;;  %v370_v49 = vld [vmem:[%s8506_s26 + $0x2f8] sm:$0xff] }
  0x88   : > { %12085 = vst [vmem:[#allocation16_spill] sm:$0xff] %v8967_v47  ;;  %12086 = vst [vmem:[#allocation17_spill] sm:$0xff] %v8969_v48 }
  0x89   : > { %4346 = vmatpush2.bf16.msra.mxu0 %v7604_v51  ;;  %v354_v51 = vld [vmem:[%s8506_s26 + $0x278] sm:$0xff]  ;;  %12090 = vst [vmem:[#allocation21_spill] sm:$0xff] %v9013_v29 }
  0x8a   : > { %4447 = vmatpush2.bf16.msra.mxu1 %v7607_v55  ;;  %4517 = vmatprep.subr.bf16.mxu0 %v7612_v0  ;;  %v372_v55 = vld [vmem:[%s8506_s26 + $0x308] sm:$0xff]  ;;  %v8986_v0 = vpack.c.bf16 %v370_v49, %v352_v45  ;;  %v387_v49 = vld [vmem:[%s8506_s26 + $0x380] sm:$0xff] }
  0x8b   : > { %4618 = vmatprep.subr.bf16.mxu1 %v7615_v1  ;;  %v351_v1 = vld [vmem:[%s8506_s26 + $0x260] sm:$0xff] }
  0x8c   : > { %4348 = vmatmul.mubr.bf16.vlgmr.msra.gmra.mxu0 %v8923_v7  ;;  %12087 = vst [vmem:[#allocation18_spill] sm:$0xff] %v8986_v0 }
  0x8d   : > { %4449 = vmatmul.mubr.bf16.vlgmr.msra.gmra.mxu1 %v8925_v8  ;;  %4518 = vmatpush1.bf16.msra.mxu0 %v7610_v3  ;;  %v8989_v3 = vpack.c.bf16 %v372_v55, %v354_v51  ;;  %v405_v55 = vld [vmem:[%s8506_s26 + $0x410] sm:$0xff] }
  0x8e   : > { %4619 = vmatpush1.bf16.msra.mxu1 %v7613_v5  ;;  %4519 = vmatprep.subr.bf16.mxu0 %v7618_v18  ;;  %v369_v5 = vld [vmem:[%s8506_s26 + $0x2f0] sm:$0xff]  ;;  %v9051_v9 = vpack.c.bf16 %v405_v55, %v387_v49 }
  0x8f   : > { %4620 = vmatprep.subr.bf16.mxu1 %v7621_v19  ;;  %4357 = vmatprep.mubr.bf16.mxu0 %v8942_v22  ;;  %12088 = vst [vmem:[#allocation19_spill] sm:$0xff] %v8989_v3  ;;  %v7634_v18 = vld [vmem:[%s11957_s1 + $0x860] ss:$16 sps:$4 sm:$0xff]   ;;  %v7660_v49 = vld [vmem:[%s11957_s1 + $0x9e4] ss:$16 sps:$4 sm:$0xff]  }
  0x90   : > { %4458 = vmatprep.mubr.bf16.mxu1 %v8945_v30  ;;  %v7637_v19 = vld [vmem:[%s11957_s1 + $0xa60] ss:$16 sps:$4 sm:$0xff]   ;;  %12093 = vst [vmem:[#allocation24_spill] sm:$0xff] %v9051_v9  ;;  %v7726_v30 = vld [vmem:[%s11957_s1 + $0xc84] ss:$16 sps:$4 sm:$0xff]  }
  0x91   : > { %4520 = vmatpush1.bf16.msra.mxu0 %v7616_v20  ;;  %v388_v20 = vld [vmem:[%s8506_s26 + $0x388] sm:$0xff]  ;;  %v425_v55 = vld [vmem:[%s8506_s26 + $0x4b0] sm:$0xff] }
  0x92   : > { %4621 = vmatpush1.bf16.msra.mxu1 %v7619_v21  ;;  %4521 = vmatprep.subr.bf16.mxu0 %v7624_v32  ;;  %v9011_v21 = vpack.c.bf16 %v369_v5, %v351_v1  ;;  %v390_v32 = vld [vmem:[%s8506_s26 + $0x398] sm:$0xff]  ;;  %v9030_v45 = vpack.c.bf16 %v406_v31, %v388_v20  ;;  %v424_v1 = vld [vmem:[%s8506_s26 + $0x4a8] sm:$0xff]  ;;  %v7654_v20 = vld [vmem:[%s11957_s1 + $0x804] ss:$16 sps:$4 sm:$0xff]  }
  0x93   : > { %4622 = vmatprep.subr.bf16.mxu1 %v7627_v41  ;;  %v7645_v41 = vld [vmem:[%s11957_s1 + $0xa44] ss:$16 sps:$4 sm:$0xff]   ;;  %v9033_v51 = vpack.c.bf16 %v408_v33, %v390_v32  ;;  %v442_v5 = vld [vmem:[%s8506_s26 + $0x538] sm:$0xff]  ;;  %v7652_v32 = vld [vmem:[%s11957_s1 + $0x800] ss:$16 sps:$4 sm:$0xff]  }
  0x94   : > { %4358 = vmatmul.mubr.bf16.gmra.mxu0 %v8967_v47  ;;  %12089 = vst [vmem:[#allocation20_spill] sm:$0xff] %v9011_v21  ;;  %12091 = vst [vmem:[#allocation22_spill] sm:$0xff] %v9030_v45  ;;  %v7657_v31 = vld [vmem:[%s11957_s1 + $0xa04] ss:$16 sps:$4 sm:$0xff]   ;;  %v7655_v33 = vld [vmem:[%s11957_s1 + $0xa00] ss:$16 sps:$4 sm:$0xff]  }
  0x95   : > { %4459 = vmatmul.mubr.bf16.gmra.mxu1 %v8969_v48  ;;  %4522 = vmatpush1.bf16.msra.mxu0 %v7622_v42  ;;  %v7640_v42 = vld [vmem:[%s11957_s1 + $0x840] ss:$16 sps:$4 sm:$0xff]   ;;  %12092 = vst [vmem:[#allocation23_spill] sm:$0xff] %v9033_v51  ;;  %v310_v47 = vld [vmem:[%s8506_s26 + $0x118] sm:$0xff] }
  0x96   : > { %4623 = vmatpush1.bf16.msra.mxu1 %v7625_v43  ;;  %4523 = vmatprep.subr.bf16.mxu0 %v7630_v56  ;;  %v7643_v43 = vld [vmem:[%s11957_s1 + $0xa40] ss:$16 sps:$4 sm:$0xff]   ;;  %v7648_v56 = vld [vmem:[%s11957_s1 + $0x824] ss:$16 sps:$4 sm:$0xff]  }
  0x97   : > { %4624 = vmatprep.subr.bf16.mxu1 %v7633_v59  ;;  %4367 = vmatprep.mubr.bf16.mxu0 %v8986_v0  ;;  %v389_v59 = vld [vmem:[%s8506_s26 + $0x390] sm:$0xff] }
  0x98   : > { %4468 = vmatprep.mubr.bf16.mxu1 %v8989_v3  ;;  %v7714_v3 = vld [vmem:[%s11957_s1 + $0xcc4] ss:$16 sps:$4 sm:$0xff]  }
  0x99   : > { %4524 = vmatpush1.bf16.msra.mxu0 %v7628_v60  ;;  %v407_v60 = vld [vmem:[%s8506_s26 + $0x420] sm:$0xff]  ;;  %v321_v48 = vld [vmem:[%s8506_s26 + $0x170] sm:$0xff] }
  0x9a   : > { %4625 = vmatpush1.bf16.msra.mxu1 %v7631_v61  ;;  %4525 = vmatprep.subr.bf16.mxu0 %v7636_v6  ;;  %v7651_v61 = vld [vmem:[%s11957_s1 + $0xa24] ss:$16 sps:$4 sm:$0xff]   ;;  %v426_v6 = vld [vmem:[%s8506_s26 + $0x4b8] sm:$0xff]  ;;  %v9053_v12 = vpack.c.bf16 %v407_v60, %v389_v59  ;;  %v7658_v60 = vld [vmem:[%s11957_s1 + $0x9e0] ss:$16 sps:$4 sm:$0xff]  }
  0x9b   : > { %4626 = vmatprep.subr.bf16.mxu1 %v7639_v17  ;;  %v444_v17 = vld [vmem:[%s8506_s26 + $0x548] sm:$0xff]  ;;  %v7663_v59 = vld [vmem:[%s11957_s1 + $0xbe4] ss:$16 sps:$4 sm:$0xff]  }
  0x9c   : > { %4368 = vmatmul.mubr.bf16.gmra.mxu0 %v9011_v21  ;;  %12094 = vst [vmem:[#allocation25_spill] sm:$0xff] %v9053_v12  ;;  %v488_v21 = vld [vmem:[%s8506_s26 + $0x6a8] sm:$0xff] }
  0x9d   : > { %4469 = vmatmul.mubr.bf16.gmra.mxu1 %v9013_v29  ;;  %4526 = vmatpush1.bf16.msra.mxu0 %v7634_v18  ;;  %v7646_v18 = vld [vmem:[%s11957_s1 + $0x820] ss:$16 sps:$4 sm:$0xff]   ;;  %v340_v29 = vld [vmem:[%s8506_s26 + $0x208] sm:$0xff] }
  0x9e   : > { %4627 = vmatpush1.bf16.msra.mxu1 %v7637_v19  ;;  %4527 = vmatprep.subr.bf16.mxu0 %v7642_v38  ;;  %v7649_v19 = vld [vmem:[%s11957_s1 + $0xa20] ss:$16 sps:$4 sm:$0xff]   ;;  %v9074_v38 = vpack.c.bf16 %v442_v5, %v424_v1  ;;  %v460_v1 = vld [vmem:[%s8506_s26 + $0x5c8] sm:$0xff]  ;;  %v478_v5 = vld [vmem:[%s8506_s26 + $0x658] sm:$0xff] }
  0x9f   : > { %4628 = vmatprep.subr.bf16.mxu1 %v7645_v41  ;;  %4377 = vmatprep.mubr.bf16.mxu0 %v9030_v45  ;;  %v423_v41 = vld [vmem:[%s8506_s26 + $0x4a0] sm:$0xff] }
  0xa0   : > { %4478 = vmatprep.mubr.bf16.mxu1 %v9033_v51  ;;  %12095 = vst [vmem:[#allocation26_spill] sm:$0xff] %v9074_v38 }
  0xa1   : > { %4528 = vmatpush1.bf16.msra.mxu0 %v7640_v42  ;;  %v441_v42 = vld [vmem:[%s8506_s26 + $0x530] sm:$0xff] }
  0xa2   : > { %4629 = vmatpush1.bf16.msra.mxu1 %v7643_v43  ;;  %4529 = vmatprep.subr.bf16.mxu0 %v7648_v56  ;;  %v9078_v43 = vpack.c.bf16 %v444_v17, %v426_v6  ;;  %v443_v56 = vld [vmem:[%s8506_s26 + $0x540] sm:$0xff]  ;;  %v9100_v6 = vpack.c.bf16 %v441_v42, %v423_v41  ;;  %v9115_v42 = vpack.c.bf16 %v478_v5, %v460_v1 }
  0xa3   : > { %4630 = vmatprep.subr.bf16.mxu1 %v7651_v61  ;;  %v7661_v61 = vld [vmem:[%s11957_s1 + $0xbe0] ss:$16 sps:$4 sm:$0xff]   ;;  %v9102_v17 = vpack.c.bf16 %v443_v56, %v425_v55  ;;  %v7672_v56 = vld [vmem:[%s11957_s1 + $0x9a4] ss:$16 sps:$4 sm:$0xff]  }
  0xa4   : > { %12096 = vst [vmem:[#allocation27_spill] sm:$0xff] %v9078_v43  ;;  %4378 = vmatmul.mubr.bf16.gmra.mxu0 %v9051_v9  ;;  %12097 = vst [vmem:[#allocation28_spill] sm:$0xff] %v9100_v6  ;;  %v7664_v41 = vld [vmem:[%s11957_s1 + $0x9c0] ss:$16 sps:$4 sm:$0xff]   ;;  %v7675_v5 = vld [vmem:[%s11957_s1 + $0xba4] ss:$16 sps:$4 sm:$0xff]  }
  0xa5   : > { %4479 = vmatmul.mubr.bf16.gmra.mxu1 %v9053_v12  ;;  %4530 = vmatpush1.bf16.msra.mxu0 %v7646_v18  ;;  %12098 = vst [vmem:[#allocation29_spill] sm:$0xff] %v9102_v17  ;;  %v462_v18 = vld [vmem:[%s8506_s26 + $0x5d8] sm:$0xff]  ;;  %12099 = vst [vmem:[#allocation30_spill] sm:$0xff] %v9115_v42  ;;  %v477_v55 = vld [vmem:[%s8506_s26 + $0x650] sm:$0xff] }
  0xa6   : > { %4631 = vmatpush1.bf16.msra.mxu1 %v7649_v19  ;;  %4531 = vmatprep.subr.bf16.mxu0 %v7654_v20  ;;  %v480_v19 = vld [vmem:[%s8506_s26 + $0x668] sm:$0xff]  ;;  %v7666_v20 = vld [vmem:[%s11957_s1 + $0x9c4] ss:$16 sps:$4 sm:$0xff]  }
  0xa7   : > { %4632 = vmatprep.subr.bf16.mxu1 %v7657_v31  ;;  %4387 = vmatprep.mubr.bf16.mxu0 %v9074_v38  ;;  %v7669_v31 = vld [vmem:[%s11957_s1 + $0xbc4] ss:$16 sps:$4 sm:$0xff]   ;;  %v452_v9 = vld [vmem:[%s8506_s26 + $0x588] sm:$0xff] }
  0xa8   : > { %4488 = vmatprep.mubr.bf16.mxu1 %v9078_v43  ;;  %v479_v1 = vld [vmem:[%s8506_s26 + $0x660] sm:$0xff]  ;;  %v304_v43 = vld [vmem:[%s8506_s26 + $0xe8] sm:$0xff] }
  0xa9   : > { %4532 = vmatpush1.bf16.msra.mxu0 %v7652_v32  ;;  %v9117_v32 = vpack.c.bf16 %v480_v19, %v462_v18  ;;  %v7670_v18 = vld [vmem:[%s11957_s1 + $0x9a0] ss:$16 sps:$4 sm:$0xff]   ;;  %v7690_v12 = vld [vmem:[%s11957_s1 + $0x944] ss:$16 sps:$4 sm:$0xff]  }
  0xaa   : > { %4633 = vmatpush1.bf16.msra.mxu1 %v7655_v33  ;;  %4533 = vmatprep.subr.bf16.mxu0 %v7660_v49  ;;  %v7667_v33 = vld [vmem:[%s11957_s1 + $0xbc0] ss:$16 sps:$4 sm:$0xff]  }
  0xab   : > { %4634 = vmatprep.subr.bf16.mxu1 %v7663_v59  ;;  %12100 = vst [vmem:[#allocation31_spill] sm:$0xff] %v9117_v32  ;;  %v459_v49 = vld [vmem:[%s8506_s26 + $0x5c0] sm:$0xff]  ;;  %v461_v59 = vld [vmem:[%s8506_s26 + $0x5d0] sm:$0xff] }
  0xac   : > { %4388 = vmatmul.mubr.bf16.gmra.mxu0 %v9100_v6  ;;  %v9144_v19 = vpack.c.bf16 %v479_v1, %v461_v59  ;;  %v497_v1 = vld [vmem:[%s8506_s26 + $0x6f0] sm:$0xff] }
  0xad   : > { %4489 = vmatmul.mubr.bf16.gmra.mxu1 %v9102_v17  ;;  %4534 = vmatpush2.bf16.msra.mxu0 %v7658_v60  ;;  %v7673_v60 = vld [vmem:[%s11957_s1 + $0xba0] ss:$16 sps:$4 sm:$0xff]   ;;  %v7678_v17 = vld [vmem:[%s11957_s1 + $0x984] ss:$16 sps:$4 sm:$0xff]  }
  0xae   : > { %4635 = vmatpush2.bf16.msra.mxu1 %v7661_v61  ;;  %4535 = vmatprep.subr.bf16.mxu0 %v7666_v20  ;;  %v9142_v61 = vpack.c.bf16 %v477_v55, %v459_v49  ;;  %12102 = vst [vmem:[#allocation33_spill] sm:$0xff] %v9144_v19  ;;  %v496_v20 = vld [vmem:[%s8506_s26 + $0x6e8] sm:$0xff]  ;;  %v7676_v49 = vld [vmem:[%s11957_s1 + $0x980] ss:$16 sps:$4 sm:$0xff]  }
  0xaf   : > { %4636 = vmatprep.subr.bf16.mxu1 %v7669_v31  ;;  %4397 = vmatprep.mubr.bf16.mxu0 %v9115_v42  ;;  %v498_v31 = vld [vmem:[%s8506_s26 + $0x6f8] sm:$0xff]  ;;  %v9157_v55 = vpack.c.bf16 %v496_v20, %v496_v20  ;;  %v7682_v20 = vld [vmem:[%s11957_s1 + $0x960] ss:$16 sps:$4 sm:$0xff]  }
  0xb0   : > { %4498 = vmatprep.mubr.bf16.mxu1 %v9117_v32  ;;  %12101 = vst [vmem:[#allocation32_spill] sm:$0xff] %v9142_v61  ;;  %v7681_v32 = vld [vmem:[%s11957_s1 + $0xb84] ss:$16 sps:$4 sm:$0xff]   ;;  %v9159_v59 = vpack.c.bf16 %v498_v31, %v498_v31  ;;  %v7685_v31 = vld [vmem:[%s11957_s1 + $0xb60] ss:$16 sps:$4 sm:$0xff]  }
  0xb1   : > { %4536 = vmatpush2.bf16.msra.mxu0 %v7664_v41  ;;  %12103 = vst [vmem:[#allocation34_spill] sm:$0xff] %v9157_v55  ;;  %v7679_v41 = vld [vmem:[%s11957_s1 + $0xb80] ss:$16 sps:$4 sm:$0xff]  }
  0xb2   : > { %4637 = vmatpush2.bf16.msra.mxu1 %v7667_v33  ;;  %4537 = vmatprep.subr.bf16.mxu0 %v7672_v56  ;;  %12104 = vst [vmem:[#allocation35_spill] sm:$0xff] %v9159_v59  ;;  %v495_v33 = vld [vmem:[%s8506_s26 + $0x6e0] sm:$0xff]  ;;  %v397_v6 = vld [vmem:[%s8506_s26 + $0x3d0] sm:$0xff] }
  0xb3   : > { %4638 = vmatprep.subr.bf16.mxu1 %v7675_v5  ;;  %v7684_v56 = vld [vmem:[%s11957_s1 + $0x964] ss:$16 sps:$4 sm:$0xff]  }
  0xb4   : > { %4398 = vmatmul.mubr.bf16.gmra.mxu0 %v9142_v61  ;;  %v7687_v5 = vld [vmem:[%s11957_s1 + $0xb64] ss:$16 sps:$4 sm:$0xff]  }
  0xb5   : > { %4499 = vmatmul.mubr.bf16.gmra.mxu1 %v9144_v19  ;;  %4538 = vmatpush2.bf16.msra.mxu0 %v7670_v18  ;;  %v284_v18 = vld [vmem:[%s8506_s26 + $0x48] sm:$0xff]  ;;  %v286_v19 = vld [vmem:[%s8506_s26 + $0x58] sm:$0xff] }
  0xb6   : > { %4639 = vmatpush2.bf16.msra.mxu1 %v7673_v60  ;;  %4539 = vmatprep.subr.bf16.mxu0 %v7678_v17  ;;  %v9183_v60 = vpack.c.bf16 %v495_v33, %v495_v33  ;;  %v9185_v17 = vpack.c.bf16 %v497_v1, %v497_v1  ;;  %v9198_v33 = vpack.c.bf16 %v304_v43, %v286_v19  ;;  %v7699_v43 = vld [vmem:[%s11957_s1 + $0xb24] ss:$16 sps:$4 sm:$0xff]   ;;  %v7694_v19 = vld [vmem:[%s11957_s1 + $0x920] ss:$16 sps:$4 sm:$0xff]  }
  0xb7   : > { %4640 = vmatprep.subr.bf16.mxu1 %v7681_v32  ;;  %4407 = vmatprep.mubr.bf16.mxu0 %v9157_v55  ;;  %v302_v32 = vld [vmem:[%s8506_s26 + $0xd8] sm:$0xff]  ;;  %v7705_v1 = vld [vmem:[%s11957_s1 + $0xb04] ss:$16 sps:$4 sm:$0xff]  }
  0xb8   : > { %4508 = vmatprep.mubr.bf16.mxu1 %v9159_v59  ;;  %12105 = vst [vmem:[#allocation36_spill] sm:$0xff] %v9183_v60  ;;  %12106 = vst [vmem:[#allocation37_spill] sm:$0xff] %v9185_v17  ;;  %v7693_v59 = vld [vmem:[%s11957_s1 + $0xb44] ss:$16 sps:$4 sm:$0xff]   ;;  %v9196_v51 = vpack.c.bf16 %v302_v32, %v284_v18  ;;  %v378_v55 = vld [vmem:[%s8506_s26 + $0x338] sm:$0xff] }
  0xb9   : > { %4540 = vmatpush2.bf16.msra.mxu0 %v7676_v49  ;;  %12108 = vst [vmem:[#allocation39_spill] sm:$0xff] %v9198_v33  ;;  %v7688_v49 = vld [vmem:[%s11957_s1 + $0x940] ss:$16 sps:$4 sm:$0xff]  }
  0xba   : > { %4641 = vmatpush2.bf16.msra.mxu1 %v7679_v41  ;;  %4541 = vmatprep.subr.bf16.mxu0 %v7684_v56  ;;  %12107 = vst [vmem:[#allocation38_spill] sm:$0xff] %v9196_v51  ;;  %v7691_v41 = vld [vmem:[%s11957_s1 + $0xb40] ss:$16 sps:$4 sm:$0xff]   ;;  %v7696_v56 = vld [vmem:[%s11957_s1 + $0x924] ss:$16 sps:$4 sm:$0xff]  }
  0xbb   : > { %4642 = vmatprep.subr.bf16.mxu1 %v7687_v5  ;;  %v7700_v5 = vld [vmem:[%s11957_s1 + $0x900] ss:$16 sps:$4 sm:$0xff]  }
  0xbc   : > { %4408 = vmatmul.mubr.bf16.gmra.mxu0 %v9183_v60  ;;  %v301_v18 = vld [vmem:[%s8506_s26 + $0xd0] sm:$0xff]  ;;  %v343_v60 = vld [vmem:[%s8506_s26 + $0x220] sm:$0xff] }
  0xbd   : > { %4509 = vmatmul.mubr.bf16.gmra.mxu1 %v9185_v17  ;;  %4542 = vmatpush2.bf16.msra.mxu0 %v7682_v20  ;;  %v7703_v20 = vld [vmem:[%s11957_s1 + $0xb00] ss:$16 sps:$4 sm:$0xff]  }
  0xbe   : > { %4643 = vmatpush2.bf16.msra.mxu1 %v7685_v31  ;;  %4543 = vmatprep.subr.bf16.mxu0 %v7690_v12  ;;  %v7697_v12 = vld [vmem:[%s11957_s1 + $0xb20] ss:$16 sps:$4 sm:$0xff]  }
  0xbf   : > { %4644 = vmatprep.subr.bf16.mxu1 %v7693_v59  ;;  %4549 = vmatprep.mubr.bf16.mxu0 %v9196_v51  ;;  %v7702_v59 = vld [vmem:[%s11957_s1 + $0x904] ss:$16 sps:$4 sm:$0xff]   ;;  %v7805_v51 = vld [vmem:[%s11957_s1 + $0xe8] ss:$16 sps:$4 sm:$0xff]  }
  0xc0   : > { %4650 = vmatprep.mubr.bf16.mxu1 %v9198_v33  ;;  %v283_v31 = vld [vmem:[%s8506_s26 + $0x40] sm:$0xff]  ;;  %v285_v32 = vld [vmem:[%s8506_s26 + $0x50] sm:$0xff] }
  0xc1   : > { %4544 = vmatpush2.bf16.msra.mxu0 %v7688_v49  ;;  %v303_v49 = vld [vmem:[%s8506_s26 + $0xe0] sm:$0xff] }
  0xc2   : > { %4645 = vmatpush2.bf16.msra.mxu1 %v7691_v41  ;;  %4545 = vmatprep.subr.bf16.mxu0 %v7696_v56  ;;  %v7708_v41 = vld [vmem:[%s11957_s1 + $0xce4] ss:$16 sps:$4 sm:$0xff]   ;;  %v7709_v33 = vld [vmem:[%s11957_s1 + $0xee0] ss:$16 sps:$4 sm:$0xff]   ;;  %v9253_v17 = vpack.c.bf16 %v303_v49, %v285_v32 }
  0xc3   : > { %4646 = vmatprep.subr.bf16.mxu1 %v7699_v43  ;;  %v7711_v56 = vld [vmem:[%s11957_s1 + $0xee4] ss:$16 sps:$4 sm:$0xff]   ;;  %v7706_v43 = vld [vmem:[%s11957_s1 + $0xce0] ss:$16 sps:$4 sm:$0xff]  }
  0xc4   : > { %12110 = vst [vmem:[#allocation41_spill] sm:$0xff] %v9253_v17  ;;  %v319_v32 = vld [vmem:[%s8506_s26 + $0x160] sm:$0xff] }
  0xc5   : > { %4546 = vmatpush2.bf16.msra.mxu0 %v7694_v19  ;;  %v320_v19 = vld [vmem:[%s8506_s26 + $0x168] sm:$0xff] }
  0xc6   : > { %4647 = vmatpush2.bf16.msra.mxu1 %v7697_v12  ;;  %4547 = vmatprep.subr.bf16.mxu0 %v7702_v59  ;;  %v9251_v12 = vpack.c.bf16 %v301_v18, %v283_v31  ;;  %v338_v59 = vld [vmem:[%s8506_s26 + $0x1f8] sm:$0xff]  ;;  %v7717_v31 = vld [vmem:[%s11957_s1 + $0xec4] ss:$16 sps:$4 sm:$0xff]   ;;  %v7712_v18 = vld [vmem:[%s11957_s1 + $0xcc0] ss:$16 sps:$4 sm:$0xff]  }
  0xc7   : > { %4648 = vmatprep.subr.bf16.mxu1 %v7705_v1  ;;  %v322_v1 = vld [vmem:[%s8506_s26 + $0x178] sm:$0xff] }
  0xc8   : > { %12109 = vst [vmem:[#allocation40_spill] sm:$0xff] %v9251_v12  ;;  %v9273_v49 = vpack.c.bf16 %v340_v29, %v322_v1  ;;  %v7723_v29 = vld [vmem:[%s11957_s1 + $0xea4] ss:$16 sps:$4 sm:$0xff]   ;;  %v7721_v1 = vld [vmem:[%s11957_s1 + $0xea0] ss:$16 sps:$4 sm:$0xff]  }
  0xc9   : > { %4548 = vmatpush2.bf16.msra.mxu0 %v7700_v5  ;;  %v7715_v5 = vld [vmem:[%s11957_s1 + $0xec0] ss:$16 sps:$4 sm:$0xff]  }
  0xca   : > { %4649 = vmatpush2.bf16.msra.mxu1 %v7703_v20  ;;  %4719 = vmatprep.subr.bf16.mxu0 %v7708_v41  ;;  %v9270_v20 = vpack.c.bf16 %v338_v59, %v320_v19  ;;  %12112 = vst [vmem:[#allocation43_spill] sm:$0xff] %v9273_v49  ;;  %v337_v41 = vld [vmem:[%s8506_s26 + $0x1f0] sm:$0xff]  ;;  %v339_v19 = vld [vmem:[%s8506_s26 + $0x200] sm:$0xff] }
  0xcb   : > { %4820 = vmatprep.subr.bf16.mxu1 %v7711_v56  ;;  %v7720_v56 = vld [vmem:[%s11957_s1 + $0xca4] ss:$16 sps:$4 sm:$0xff]   ;;  %v7718_v59 = vld [vmem:[%s11957_s1 + $0xca0] ss:$16 sps:$4 sm:$0xff]  }
  0xcc   : > { %12111 = vst [vmem:[#allocation42_spill] sm:$0xff] %v9270_v20  ;;  %4550 = vmatmul.mubr.bf16.vlgmr.msra.gmra.mxu0 %v9251_v12  ;;  %v344_v12 = vld [vmem:[%s8506_s26 + $0x228] sm:$0xff] }
  0xcd   : > { %4651 = vmatmul.mubr.bf16.vlgmr.msra.gmra.mxu1 %v9253_v17  ;;  %4720 = vmatpush1.bf16.msra.mxu0 %v7706_v43  ;;  %v9297_v43 = vpack.c.bf16 %v339_v19, %v321_v48  ;;  %v358_v17 = vld [vmem:[%s8506_s26 + $0x298] sm:$0xff]  ;;  %v7724_v48 = vld [vmem:[%s11957_s1 + $0xc80] ss:$16 sps:$4 sm:$0xff]  }
  0xce   : > { %4821 = vmatpush1.bf16.msra.mxu1 %v7709_v33  ;;  %4721 = vmatprep.subr.bf16.mxu0 %v7714_v3  ;;  %v356_v33 = vld [vmem:[%s8506_s26 + $0x288] sm:$0xff]  ;;  %v9295_v3 = vpack.c.bf16 %v337_v41, %v319_v32  ;;  %v7729_v32 = vld [vmem:[%s11957_s1 + $0xe84] ss:$16 sps:$4 sm:$0xff]  }
  0xcf   : > { %4822 = vmatprep.subr.bf16.mxu1 %v7717_v31  ;;  %4559 = vmatprep.mubr.bf16.mxu0 %v9270_v20  ;;  %12114 = vst [vmem:[#allocation45_spill] sm:$0xff] %v9297_v43  ;;  %v374_v31 = vld [vmem:[%s8506_s26 + $0x318] sm:$0xff]  ;;  %v376_v20 = vld [vmem:[%s8506_s26 + $0x328] sm:$0xff]  ;;  %v355_v41 = vld [vmem:[%s8506_s26 + $0x280] sm:$0xff] }
  0xd0   : > { %4660 = vmatprep.mubr.bf16.mxu1 %v9273_v49  ;;  %12113 = vst [vmem:[#allocation44_spill] sm:$0xff] %v9295_v3  ;;  %v9317_v19 = vpack.c.bf16 %v376_v20, %v358_v17  ;;  %v357_v49 = vld [vmem:[%s8506_s26 + $0x290] sm:$0xff] }
  0xd1   : > { %4722 = vmatpush1.bf16.msra.mxu0 %v7712_v18  ;;  %v7727_v18 = vld [vmem:[%s11957_s1 + $0xe80] ss:$16 sps:$4 sm:$0xff]   ;;  %v7735_v17 = vld [vmem:[%s11957_s1 + $0xe64] ss:$16 sps:$4 sm:$0xff]  }
  0xd2   : > { %4823 = vmatpush1.bf16.msra.mxu1 %v7715_v5  ;;  %4723 = vmatprep.subr.bf16.mxu0 %v7720_v56  ;;  %v9314_v5 = vpack.c.bf16 %v374_v31, %v356_v33  ;;  %12116 = vst [vmem:[#allocation47_spill] sm:$0xff] %v9317_v19  ;;  %v373_v56 = vld [vmem:[%s8506_s26 + $0x310] sm:$0xff]  ;;  %v375_v33 = vld [vmem:[%s8506_s26 + $0x320] sm:$0xff] }
  0xd3   : > { %4824 = vmatprep.subr.bf16.mxu1 %v7723_v29  ;;  %v7732_v29 = vld [vmem:[%s11957_s1 + $0xc64] ss:$16 sps:$4 sm:$0xff]   ;;  %v7730_v20 = vld [vmem:[%s11957_s1 + $0xc60] ss:$16 sps:$4 sm:$0xff]  }
  0xd4   : > { %12115 = vst [vmem:[#allocation46_spill] sm:$0xff] %v9314_v5  ;;  %4560 = vmatmul.mubr.bf16.gmra.mxu0 %v9295_v3  ;;  %v7733_v31 = vld [vmem:[%s11957_s1 + $0xe60] ss:$16 sps:$4 sm:$0xff]   ;;  %v7738_v3 = vld [vmem:[%s11957_s1 + $0xc44] ss:$16 sps:$4 sm:$0xff]  }
  0xd5   : > { %4661 = vmatmul.mubr.bf16.gmra.mxu1 %v9297_v43  ;;  %4724 = vmatpush1.bf16.msra.mxu0 %v7718_v59  ;;  %v392_v59 = vld [vmem:[%s8506_s26 + $0x3a8] sm:$0xff]  ;;  %v394_v43 = vld [vmem:[%s8506_s26 + $0x3b8] sm:$0xff] }
  0xd6   : > { %4825 = vmatpush1.bf16.msra.mxu1 %v7721_v1  ;;  %4725 = vmatprep.subr.bf16.mxu0 %v7726_v30  ;;  %v9339_v30 = vpack.c.bf16 %v373_v56, %v355_v41  ;;  %v9341_v1 = vpack.c.bf16 %v375_v33, %v357_v49  ;;  %v7741_v41 = vld [vmem:[%s11957_s1 + $0xe44] ss:$16 sps:$4 sm:$0xff]   ;;  %v7736_v49 = vld [vmem:[%s11957_s1 + $0xc40] ss:$16 sps:$4 sm:$0xff]  }
  0xd7   : > { %4826 = vmatprep.subr.bf16.mxu1 %v7729_v32  ;;  %4569 = vmatprep.mubr.bf16.mxu0 %v9314_v5  ;;  %v410_v32 = vld [vmem:[%s8506_s26 + $0x438] sm:$0xff]  ;;  %v412_v5 = vld [vmem:[%s8506_s26 + $0x448] sm:$0xff]  ;;  %v391_v56 = vld [vmem:[%s8506_s26 + $0x3a0] sm:$0xff] }
  0xd8   : > { %4670 = vmatprep.mubr.bf16.mxu1 %v9317_v19  ;;  %12117 = vst [vmem:[#allocation48_spill] sm:$0xff] %v9339_v30  ;;  %12118 = vst [vmem:[#allocation49_spill] sm:$0xff] %v9341_v1  ;;  %v9361_v33 = vpack.c.bf16 %v412_v5, %v394_v43  ;;  %v411_v19 = vld [vmem:[%s8506_s26 + $0x440] sm:$0xff] }
  0xd9   : > { %4726 = vmatpush1.bf16.msra.mxu0 %v7724_v48  ;;  %v7739_v48 = vld [vmem:[%s11957_s1 + $0xe40] ss:$16 sps:$4 sm:$0xff]   ;;  %v7744_v43 = vld [vmem:[%s11957_s1 + $0xc24] ss:$16 sps:$4 sm:$0xff]  }
  0xda   : > { %4827 = vmatpush1.bf16.msra.mxu1 %v7727_v18  ;;  %4727 = vmatprep.subr.bf16.mxu0 %v7732_v29  ;;  %v9358_v18 = vpack.c.bf16 %v410_v32, %v392_v59  ;;  %12120 = vst [vmem:[#allocation51_spill] sm:$0xff] %v9361_v33  ;;  %v409_v29 = vld [vmem:[%s8506_s26 + $0x430] sm:$0xff]  ;;  %v446_v59 = vld [vmem:[%s8506_s26 + $0x558] sm:$0xff] }
  0xdb   : > { %4828 = vmatprep.subr.bf16.mxu1 %v7735_v17  ;;  %v393_v17 = vld [vmem:[%s8506_s26 + $0x3b0] sm:$0xff]  ;;  %v9384_v32 = vpack.c.bf16 %v409_v29, %v391_v56  ;;  %v427_v56 = vld [vmem:[%s8506_s26 + $0x4c0] sm:$0xff] }
  0xdc   : > { %12119 = vst [vmem:[#allocation50_spill] sm:$0xff] %v9358_v18  ;;  %4570 = vmatmul.mubr.bf16.gmra.mxu0 %v9339_v30  ;;  %v7747_v5 = vld [vmem:[%s11957_s1 + $0xe24] ss:$16 sps:$4 sm:$0xff]  }
  0xdd   : > { %4671 = vmatmul.mubr.bf16.gmra.mxu1 %v9341_v1  ;;  %4728 = vmatpush1.bf16.msra.mxu0 %v7730_v20  ;;  %v7742_v20 = vld [vmem:[%s11957_s1 + $0xc20] ss:$16 sps:$4 sm:$0xff]   ;;  %12121 = vst [vmem:[#allocation52_spill] sm:$0xff] %v9384_v32  ;;  %v430_v1 = vld [vmem:[%s8506_s26 + $0x4d8] sm:$0xff]  ;;  %v7750_v30 = vld [vmem:[%s11957_s1 + $0xc04] ss:$16 sps:$4 sm:$0xff]  }
  0xde   : > { %4829 = vmatpush1.bf16.msra.mxu1 %v7733_v31  ;;  %4729 = vmatprep.subr.bf16.mxu0 %v7738_v3  ;;  %v7745_v31 = vld [vmem:[%s11957_s1 + $0xe20] ss:$16 sps:$4 sm:$0xff]   ;;  %v428_v3 = vld [vmem:[%s8506_s26 + $0x4c8] sm:$0xff] }
  0xdf   : > { %4830 = vmatprep.subr.bf16.mxu1 %v7741_v41  ;;  %4579 = vmatprep.mubr.bf16.mxu0 %v9358_v18  ;;  %v9386_v41 = vpack.c.bf16 %v411_v19, %v393_v17  ;;  %v448_v18 = vld [vmem:[%s8506_s26 + $0x568] sm:$0xff]  ;;  %v7748_v19 = vld [vmem:[%s11957_s1 + $0xc00] ss:$16 sps:$4 sm:$0xff]  }
  0xe0   : > { %4680 = vmatprep.mubr.bf16.mxu1 %v9361_v33  ;;  %v7753_v33 = vld [vmem:[%s11957_s1 + $0xe04] ss:$16 sps:$4 sm:$0xff]   ;;  %v9406_v17 = vpack.c.bf16 %v448_v18, %v430_v1  ;;  %v464_v18 = vld [vmem:[%s8506_s26 + $0x5e8] sm:$0xff] }
  0xe1   : > { %12122 = vst [vmem:[#allocation53_spill] sm:$0xff] %v9386_v41  ;;  %4730 = vmatpush1.bf16.msra.mxu0 %v7736_v49  ;;  %v7751_v49 = vld [vmem:[%s11957_s1 + $0xe00] ss:$16 sps:$4 sm:$0xff]   ;;  %v7759_v1 = vld [vmem:[%s11957_s1 + $0xfe4] ss:$16 sps:$4 sm:$0xff]  }
  0xe2   : > { %4831 = vmatpush1.bf16.msra.mxu1 %v7739_v48  ;;  %4731 = vmatprep.subr.bf16.mxu0 %v7744_v43  ;;  %v9402_v48 = vpack.c.bf16 %v446_v59, %v428_v3  ;;  %v445_v29 = vld [vmem:[%s8506_s26 + $0x550] sm:$0xff]  ;;  %12124 = vst [vmem:[#allocation55_spill] sm:$0xff] %v9406_v17  ;;  %v447_v3 = vld [vmem:[%s8506_s26 + $0x560] sm:$0xff] }
  0xe3   : > { %4832 = vmatprep.subr.bf16.mxu1 %v7747_v5  ;;  %v7756_v43 = vld [vmem:[%s11957_s1 + $0xde4] ss:$16 sps:$4 sm:$0xff]   ;;  %v9421_v59 = vpack.c.bf16 %v445_v29, %v427_v56  ;;  %v7763_v29 = vld [vmem:[%s11957_s1 + $0xfc0] ss:$16 sps:$4 sm:$0xff]  }
  0xe4   : > { %12123 = vst [vmem:[#allocation54_spill] sm:$0xff] %v9402_v48  ;;  %4580 = vmatmul.mubr.bf16.gmra.mxu0 %v9384_v32  ;;  %v429_v5 = vld [vmem:[%s8506_s26 + $0x4d0] sm:$0xff]  ;;  %v484_v32 = vld [vmem:[%s8506_s26 + $0x688] sm:$0xff] }
  0xe5   : > { %4681 = vmatmul.mubr.bf16.gmra.mxu1 %v9386_v41  ;;  %4732 = vmatpush1.bf16.msra.mxu0 %v7742_v20  ;;  %12125 = vst [vmem:[#allocation56_spill] sm:$0xff] %v9421_v59  ;;  %v9423_v41 = vpack.c.bf16 %v447_v3, %v429_v5  ;;  %v482_v20 = vld [vmem:[%s8506_s26 + $0x678] sm:$0xff]  ;;  %v7762_v56 = vld [vmem:[%s11957_s1 + $0xdc4] ss:$16 sps:$4 sm:$0xff]  }
  0xe6   : > { %4833 = vmatpush1.bf16.msra.mxu1 %v7745_v31  ;;  %4733 = vmatprep.subr.bf16.mxu0 %v7750_v30  ;;  %v466_v31 = vld [vmem:[%s8506_s26 + $0x5f8] sm:$0xff]  ;;  %v7754_v30 = vld [vmem:[%s11957_s1 + $0xde0] ss:$16 sps:$4 sm:$0xff]   ;;  %v9446_v5 = vpack.c.bf16 %v482_v20, %v464_v18  ;;  %v7768_v18 = vld [vmem:[%s11957_s1 + $0xda4] ss:$16 sps:$4 sm:$0xff]  }
  0xe7   : > { %4834 = vmatprep.subr.bf16.mxu1 %v7753_v33  ;;  %4589 = vmatprep.mubr.bf16.mxu0 %v9402_v48  ;;  %12126 = vst [vmem:[#allocation57_spill] sm:$0xff] %v9423_v41  ;;  %v7757_v33 = vld [vmem:[%s11957_s1 + $0xfe0] ss:$16 sps:$4 sm:$0xff]  }
  0xe8   : > { %4690 = vmatprep.mubr.bf16.mxu1 %v9406_v17  ;;  %12127 = vst [vmem:[#allocation58_spill] sm:$0xff] %v9446_v5  ;;  %v481_v3 = vld [vmem:[%s8506_s26 + $0x670] sm:$0xff]  ;;  %v483_v48 = vld [vmem:[%s8506_s26 + $0x680] sm:$0xff] }
  0xe9   : > { %4734 = vmatpush1.bf16.msra.mxu0 %v7748_v19  ;;  %v7765_v19 = vld [vmem:[%s11957_s1 + $0xfc4] ss:$16 sps:$4 sm:$0xff]  }
  0xea   : > { %4835 = vmatpush1.bf16.msra.mxu1 %v7751_v49  ;;  %4735 = vmatprep.subr.bf16.mxu0 %v7756_v43  ;;  %v7760_v49 = vld [vmem:[%s11957_s1 + $0xdc0] ss:$16 sps:$4 sm:$0xff]  }
  0xeb   : > { %4836 = vmatprep.subr.bf16.mxu1 %v7759_v1  ;;  %v463_v43 = vld [vmem:[%s8506_s26 + $0x5e0] sm:$0xff]  ;;  %v9450_v1 = vpack.c.bf16 %v484_v32, %v466_v31  ;;  %v465_v17 = vld [vmem:[%s8506_s26 + $0x5f0] sm:$0xff] }
  0xec   : > { %4590 = vmatmul.mubr.bf16.gmra.mxu0 %v9421_v59  ;;  %v7771_v32 = vld [vmem:[%s11957_s1 + $0xfa4] ss:$16 sps:$4 sm:$0xff]   ;;  %v9464_v20 = vpack.c.bf16 %v481_v3, %v463_v43  ;;  %v7766_v31 = vld [vmem:[%s11957_s1 + $0xda0] ss:$16 sps:$4 sm:$0xff]  }
  0xed   : > { %12128 = vst [vmem:[#allocation59_spill] sm:$0xff] %v9450_v1  ;;  %4691 = vmatmul.mubr.bf16.gmra.mxu1 %v9423_v41  ;;  %4736 = vmatpush2.bf16.msra.mxu0 %v7754_v30  ;;  %v9469_v30 = vpack.c.bf16 %v483_v48, %v465_v17  ;;  %v7774_v43 = vld [vmem:[%s11957_s1 + $0xd84] ss:$16 sps:$4 sm:$0xff]   ;;  %v308_v41 = vld [vmem:[%s8506_s26 + $0x108] sm:$0xff] }
  0xee   : > { %4837 = vmatpush2.bf16.msra.mxu1 %v7757_v33  ;;  %4737 = vmatprep.subr.bf16.mxu0 %v7762_v56  ;;  %12129 = vst [vmem:[#allocation60_spill] sm:$0xff] %v9464_v20  ;;  %v500_v33 = vld [vmem:[%s8506_s26 + $0x708] sm:$0xff]  ;;  %v502_v56 = vld [vmem:[%s8506_s26 + $0x718] sm:$0xff]  ;;  %v7777_v48 = vld [vmem:[%s11957_s1 + $0xf84] ss:$16 sps:$4 sm:$0xff]  }
  0xef   : > { %4838 = vmatprep.subr.bf16.mxu1 %v7765_v19  ;;  %4599 = vmatprep.mubr.bf16.mxu0 %v9446_v5  ;;  %12130 = vst [vmem:[#allocation61_spill] sm:$0xff] %v9469_v30  ;;  %v7769_v19 = vld [vmem:[%s11957_s1 + $0xfa0] ss:$16 sps:$4 sm:$0xff]   ;;  %v9482_v17 = vpack.c.bf16 %v500_v33, %v500_v33  ;;  %v9484_v3 = vpack.c.bf16 %v502_v56, %v502_v56  ;;  %v7780_v33 = vld [vmem:[%s11957_s1 + $0xd64] ss:$16 sps:$4 sm:$0xff]  }
  0xf0   : > { %4700 = vmatprep.mubr.bf16.mxu1 %v9450_v1  ;;  %v7783_v56 = vld [vmem:[%s11957_s1 + $0xf64] ss:$16 sps:$4 sm:$0xff]   ;;  %v290_v1 = vld [vmem:[%s8506_s26 + $0x78] sm:$0xff] }
  0xf1   : > { %4738 = vmatpush2.bf16.msra.mxu0 %v7760_v49  ;;  %12131 = vst [vmem:[#allocation62_spill] sm:$0xff] %v9482_v17  ;;  %12132 = vst [vmem:[#allocation63_spill] sm:$0xff] %v9484_v3  ;;  %v7772_v49 = vld [vmem:[%s11957_s1 + $0xd80] ss:$16 sps:$4 sm:$0xff]  }
  0xf2   : > { %4839 = vmatpush2.bf16.msra.mxu1 %v7763_v29  ;;  %4739 = vmatprep.subr.bf16.mxu0 %v7768_v18  ;;  %v7775_v29 = vld [vmem:[%s11957_s1 + $0xf80] ss:$16 sps:$4 sm:$0xff]  }
  0xf3   : > { %4840 = vmatprep.subr.bf16.mxu1 %v7771_v32  ;;  %v499_v18 = vld [vmem:[%s8506_s26 + $0x700] sm:$0xff]  ;;  %v501_v32 = vld [vmem:[%s8506_s26 + $0x710] sm:$0xff] }
  0xf4   : > { %4600 = vmatmul.mubr.bf16.gmra.mxu0 %v9464_v20  ;;  %v9526_v20 = vpack.c.bf16 %v308_v41, %v290_v1  ;;  %v7792_v41 = vld [vmem:[%s11957_s1 + $0xd24] ss:$16 sps:$4 sm:$0xff]  }
  0xf5   : > { %4701 = vmatmul.mubr.bf16.gmra.mxu1 %v9469_v30  ;;  %4740 = vmatpush2.bf16.msra.mxu0 %v7766_v31  ;;  %v7778_v30 = vld [vmem:[%s11957_s1 + $0xd60] ss:$16 sps:$4 sm:$0xff]   ;;  %v288_v31 = vld [vmem:[%s8506_s26 + $0x68] sm:$0xff]  ;;  %v7795_v1 = vld [vmem:[%s11957_s1 + $0xf24] ss:$16 sps:$4 sm:$0xff]  }
  0xf6   : > { %4841 = vmatpush2.bf16.msra.mxu1 %v7769_v19  ;;  %4741 = vmatprep.subr.bf16.mxu0 %v7774_v43  ;;  %v9508_v19 = vpack.c.bf16 %v499_v18, %v499_v18  ;;  %v9510_v43 = vpack.c.bf16 %v501_v32, %v501_v32  ;;  %v7789_v18 = vld [vmem:[%s11957_s1 + $0xf44] ss:$16 sps:$4 sm:$0xff]   ;;  %12136 = vst [vmem:[#allocation67_spill] sm:$0xff] %v9526_v20 }
  0xf7   : > { %4842 = vmatprep.subr.bf16.mxu1 %v7777_v48  ;;  %4609 = vmatprep.mubr.bf16.mxu0 %v9482_v17  ;;  %v306_v48 = vld [vmem:[%s8506_s26 + $0xf8] sm:$0xff]  ;;  %v7781_v17 = vld [vmem:[%s11957_s1 + $0xf60] ss:$16 sps:$4 sm:$0xff]  }
  0xf8   : > { %4710 = vmatprep.mubr.bf16.mxu1 %v9484_v3  ;;  %12133 = vst [vmem:[#allocation64_spill] sm:$0xff] %v9508_v19  ;;  %12134 = vst [vmem:[#allocation65_spill] sm:$0xff] %v9510_v43  ;;  %v7786_v3 = vld [vmem:[%s11957_s1 + $0xd44] ss:$16 sps:$4 sm:$0xff]   ;;  %v9524_v32 = vpack.c.bf16 %v306_v48, %v288_v31  ;;  %v7796_v48 = vld [vmem:[%s11957_s1 + $0xd00] ss:$16 sps:$4 sm:$0xff]  }
  0xf9   : > { %4742 = vmatpush2.bf16.msra.mxu0 %v7772_v49  ;;  %v7784_v49 = vld [vmem:[%s11957_s1 + $0xd40] ss:$16 sps:$4 sm:$0xff]   ;;  %v7801_v31 = vld [vmem:[%s11957_s1 + $0xf04] ss:$16 sps:$4 sm:$0xff]  }
  0xfa   : > { %4843 = vmatpush2.bf16.msra.mxu1 %v7775_v29  ;;  %4743 = vmatprep.subr.bf16.mxu0 %v7780_v33  ;;  %12135 = vst [vmem:[#allocation66_spill] sm:$0xff] %v9524_v32  ;;  %v7787_v29 = vld [vmem:[%s11957_s1 + $0xf40] ss:$16 sps:$4 sm:$0xff]   ;;  %v1213_v33 = vlaneseq }
  0xfb   : > { %4844 = vmatprep.subr.bf16.mxu1 %v7783_v56  ;;  %v7798_v56 = vld [vmem:[%s11957_s1 + $0xd04] ss:$16 sps:$4 sm:$0xff]  }
  0xfc   : > { %4610 = vmatmul.mubr.bf16.gmra.mxu0 %v9508_v19  ;;  %v7802_v19 = vld [vmem:[%s11957_s1 + $0x10e0] ss:$16 sps:$4 sm:$0xff]  }
  0xfd   : > { %4711 = vmatmul.mubr.bf16.gmra.mxu1 %v9510_v43  ;;  %4744 = vmatpush2.bf16.msra.mxu0 %v7778_v30  ;;  %v7790_v30 = vld [vmem:[%s11957_s1 + $0xd20] ss:$16 sps:$4 sm:$0xff]   ;;  %v7804_v43 = vld [vmem:[%s11957_s1 + $0x10e4] ss:$16 sps:$4 sm:$0xff]  }
  0xfe   : > { %4845 = vmatpush2.bf16.msra.mxu1 %v7781_v17  ;;  %4745 = vmatprep.subr.bf16.mxu0 %v7786_v3  ;;  %v7793_v17 = vld [vmem:[%s11957_s1 + $0xf20] ss:$16 sps:$4 sm:$0xff]   ;;  %v9550_v3 = vshrl.u32 %v1213_v33, 7 }
  0xff   : > { %4846 = vmatprep.subr.bf16.mxu1 %v7789_v18  ;;  %4751 = vmatprep.mubr.bf16.mxu0 %v9524_v32  ;;  %v7799_v18 = vld [vmem:[%s11957_s1 + $0xf00] ss:$16 sps:$4 sm:$0xff]   ;;  %v7807_v32 = vld [vmem:[%s11957_s1 + $0xec] ss:$16 sps:$4 sm:$0xff]  }
 0x100   : > { %4852 = vmatprep.mubr.bf16.mxu1 %v9526_v20  ;;  %12137 = vst [vmem:[#allocation68_spill] sm:$0xff] %v9550_v3  ;;  %v305_v33 = vld [vmem:[%s8506_s26 + $0xf0] sm:$0xff]  ;;  %v307_v20 = vld [vmem:[%s8506_s26 + $0x100] sm:$0xff] }
 0x101   : > { %4746 = vmatpush2.bf16.msra.mxu0 %v7784_v49  ;;  %v1211_v49 = vld [vmem:[%s11958_s2] sm:$0xf] }
 0x102   : > { %4847 = vmatpush2.bf16.msra.mxu1 %v7787_v29  ;;  %4747 = vmatprep.subr.bf16.mxu0 %v7792_v41  ;;  %v287_v29 = vld [vmem:[%s8506_s26 + $0x60] sm:$0xff]  ;;  %v289_v41 = vld [vmem:[%s8506_s26 + $0x70] sm:$0xff] }
 0x103   : > { %4848 = vmatprep.subr.bf16.mxu1 %v7795_v1  ;;  %v1215_v1 = vsub.s32 0, %v9550_v3  ;;  %v9583_v5 = vpack.c.bf16 %v305_v33, %v287_v29  ;;  %v9585_v59 = vpack.c.bf16 %v307_v20, %v289_v41  ;;  %v7810_v20 = vld [vmem:[%s11957_s1 + $0x10c4] ss:$16 sps:$4 sm:$0xff]   ;;  %v7808_v29 = vld [vmem:[%s11957_s1 + $0x10c0] ss:$16 sps:$4 sm:$0xff]  }
 0x105   : > { %4748 = vmatpush2.bf16.msra.mxu0 %v7790_v30  ;;  %v1219_v30 = vsub.s32 1, %v9550_v3  ;;  %12138 = vst [vmem:[#allocation69_spill] sm:$0xff] %v9583_v5  ;;  %12139 = vst [vmem:[#allocation70_spill] sm:$0xff] %v9585_v59  ;;  %v9590_v8 = vrot.slane %v1211_v49, %v1215_v1  ;;  %v325_v3 = vld [vmem:[%s8506_s26 + $0x190] sm:$0xff] }
 0x106   : > { %4849 = vmatpush2.bf16.msra.mxu1 %v7793_v17  ;;  %4749 = vmatprep.subr.bf16.mxu0 %v7798_v56  ;;  %v324_v17 = vld [vmem:[%s8506_s26 + $0x188] sm:$0xff]  ;;  %v342_v56 = vld [vmem:[%s8506_s26 + $0x218] sm:$0xff] }
 0x107   : > { %4850 = vmatprep.subr.bf16.mxu1 %v7801_v31  ;;  %v326_v31 = vld [vmem:[%s8506_s26 + $0x198] sm:$0xff] }
 0x108   : > { %v9611_v33 = vpack.c.bf16 %v344_v12, %v326_v31  ;;  %v7816_v12 = vld [vmem:[%s11957_s1 + $0x10a4] ss:$16 sps:$4 sm:$0xff]  }
 0x109   : > { %4750 = vmatpush2.bf16.msra.mxu0 %v7796_v48  ;;  %v7813_v48 = vld [vmem:[%s11957_s1 + $0xcc] ss:$16 sps:$4 sm:$0xff]  }
 0x10a   : > { %4851 = vmatpush2.bf16.msra.mxu1 %v7799_v18  ;;  %4921 = vmatprep.subr.bf16.mxu0 %v7804_v43  ;;  %v9601_v18 = vrot.slane %v1211_v49, %v1219_v30  ;;  %v7811_v43 = vld [vmem:[%s11957_s1 + $0xc8] ss:$16 sps:$4 sm:$0xff]   ;;  %12141 = vst [vmem:[#allocation72_spill] sm:$0xff] %v9611_v33  ;;  %v323_v49 = vld [vmem:[%s8506_s26 + $0x180] sm:$0xff]  ;;  %v341_v30 = vld [vmem:[%s8506_s26 + $0x210] sm:$0xff] }
 0x10b   : > { %5022 = vmatprep.subr.bf16.mxu1 %v7807_v32  ;;  %v9609_v32 = vpack.c.bf16 %v342_v56, %v324_v17  ;;  %v7819_v56 = vld [vmem:[%s11957_s1 + $0xac] ss:$16 sps:$4 sm:$0xff]  }
 0x10c   : > { %v4147_v41 = vpop.f32.mrf.mxu0  ;;  %4752 = vmatmul.mubr.bf16.vlgmr.msra.gmra.mxu0 %v9583_v5  ;;  %v9637_v5 = vpack.c.bf16 %v343_v60, %v325_v3  ;;  %v7822_v60 = vld [vmem:[%s11957_s1 + $0x1084] ss:$16 sps:$4 sm:$0xff]   ;;  %v7825_v3 = vld [vmem:[%s11957_s1 + $0x8c] ss:$16 sps:$4 sm:$0xff]  }
 0x10d   : > { %12140 = vst [vmem:[#allocation71_spill] sm:$0xff] %v9609_v32  ;;  %v4248_v1 = vpop.f32.mrf.mxu1  ;;  %4853 = vmatmul.mubr.bf16.vlgmr.msra.gmra.mxu1 %v9585_v59  ;;  %v4148_v37 = vadd.f32 %v4147_v41, %v9590_v8  ;;  %4922 = vmatpush1.bf16.msra.mxu0 %v7802_v19  ;;  %v7814_v19 = vld [vmem:[%s11957_s1 + $0x10a0] ss:$16 sps:$4 sm:$0xff]   ;;  %v9635_v59 = vpack.c.bf16 %v341_v30, %v323_v49  ;;  %v7823_v30 = vld [vmem:[%s11957_s1 + $0x88] ss:$16 sps:$4 sm:$0xff]  }
 0x10e   : > { %5023 = vmatpush1.bf16.msra.mxu1 %v7805_v51  ;;  %v4149_v27 = vpop.f32.mrf.mxu0  ;;  %4923 = vmatprep.subr.bf16.mxu0 %v7810_v20  ;;  %v360_v20 = vld [vmem:[%s8506_s26 + $0x2a8] sm:$0xff]  ;;  %12143 = vst [vmem:[#allocation74_spill] sm:$0xff] %v9637_v5  ;;  %v7820_v49 = vld [vmem:[%s11957_s1 + $0x1080] ss:$16 sps:$4 sm:$0xff]  }
 0x10f   : > { %v4250_v17 = vpop.f32.mrf.mxu1  ;;  %5024 = vmatprep.subr.bf16.mxu1 %v7813_v48  ;;  %v9626_v31 = vadd.f32 %v4248_v1, %v4148_v37  ;;  %v4150_v51 = vadd.f32 %v4149_v27, %v9601_v18  ;;  %4761 = vmatprep.mubr.bf16.mxu0 %v9609_v32  ;;  %12142 = vst [vmem:[#allocation73_spill] sm:$0xff] %v9635_v59  ;;  %v362_v37 = vld [vmem:[%s8506_s26 + $0x2b8] sm:$0xff]  ;;  %v380_v1 = vld [vmem:[%s8506_s26 + $0x348] sm:$0xff] }
 0x110   : > { %4862 = vmatprep.mubr.bf16.mxu1 %v9611_v33  ;;  %v4151_v48 = vpop.f32.mrf.mxu0  ;;  %v7817_v33 = vld [vmem:[%s11957_s1 + $0xa8] ss:$16 sps:$4 sm:$0xff]  }
 0x111   : > { %v4252_v41 = vpop.f32.mrf.mxu1  ;;  %v9642_v11 = vadd.f32 %v4250_v17, %v4150_v51  ;;  %v4152_v27 = vadd.f32 %v4151_v48, %v9590_v8  ;;  %4924 = vmatpush1.bf16.msra.mxu0 %v7808_v29  ;;  %v9663_v17 = vpack.c.bf16 %v378_v55, %v360_v20  ;;  %v377_v48 = vld [vmem:[%s8506_s26 + $0x330] sm:$0xff]  ;;  %v379_v20 = vld [vmem:[%s8506_s26 + $0x340] sm:$0xff] }
 0x112   : > { %5025 = vmatpush1.bf16.msra.mxu1 %v7811_v43  ;;  %v4153_v32 = vpop.f32.mrf.mxu0  ;;  %4925 = vmatprep.subr.bf16.mxu0 %v7816_v12  ;;  %v9665_v12 = vpack.c.bf16 %v380_v1, %v362_v37 }
 0x113   : > { %v4254_v61 = vpop.f32.mrf.mxu1  ;;  %5026 = vmatprep.subr.bf16.mxu1 %v7819_v56  ;;  %v9654_v29 = vadd.f32 %v4252_v41, %v4152_v27  ;;  %v4154_v43 = vadd.f32 %v4153_v32, %v9601_v18  ;;  %12144 = vst [vmem:[#allocation75_spill] sm:$0xff] %v9663_v17  ;;  %v359_v32 = vld [vmem:[%s8506_s26 + $0x2a0] sm:$0xff]  ;;  %v361_v41 = vld [vmem:[%s8506_s26 + $0x2b0] sm:$0xff] }
 0x114   : > { %12145 = vst [vmem:[#allocation76_spill] sm:$0xff] %v9665_v12  ;;  %4762 = vmatmul.mubr.bf16.gmra.mxu0 %v9635_v59  ;;  %v4157_v56 = vpop.f32.mrf.mxu0  ;;  %v9692_v59 = vpack.c.bf16 %v377_v48, %v359_v32  ;;  %v9694_v42 = vpack.c.bf16 %v379_v20, %v361_v41  ;;  %v7834_v32 = vld [vmem:[%s11957_s1 + $0x1044] ss:$16 sps:$4 sm:$0xff]  }
 0x115   : > { %4863 = vmatmul.mubr.bf16.gmra.mxu1 %v9637_v5  ;;  %v4258_v51 = vpop.f32.mrf.mxu1  ;;  %v9672_v27 = vadd.f32 %v4254_v61, %v4154_v43  ;;  %4926 = vmatpush1.bf16.msra.mxu0 %v7814_v19  ;;  %v4158_v55 = vadd.f32 %v4157_v56, %v9590_v8  ;;  %v7828_v5 = vld [vmem:[%s11957_s1 + $0x1064] ss:$16 sps:$4 sm:$0xff]   ;;  %v7831_v61 = vld [vmem:[%s11957_s1 + $0x6c] ss:$16 sps:$4 sm:$0xff]  }
 0x116   : > { %5027 = vmatpush1.bf16.msra.mxu1 %v7817_v33  ;;  %4927 = vmatprep.subr.bf16.mxu0 %v7822_v60  ;;  %v4159_v37 = vpop.f32.mrf.mxu0  ;;  %v7826_v60 = vld [vmem:[%s11957_s1 + $0x1060] ss:$16 sps:$4 sm:$0xff]   ;;  %v414_v43 = vld [vmem:[%s8506_s26 + $0x458] sm:$0xff]  ;;  %12146 = vst [vmem:[#allocation77_spill] sm:$0xff] %v9692_v59  ;;  %12147 = vst [vmem:[#allocation78_spill] sm:$0xff] %v9694_v42 }
 0x117   : > { %5028 = vmatprep.subr.bf16.mxu1 %v7825_v3  ;;  %v4260_v1 = vpop.f32.mrf.mxu1  ;;  %v4160_v19 = vadd.f32 %v4159_v37, %v9601_v18  ;;  %v9683_v33 = vadd.f32 %v4258_v51, %v4158_v55  ;;  %4771 = vmatprep.mubr.bf16.mxu0 %v9663_v17  ;;  %v396_v3 = vld [vmem:[%s8506_s26 + $0x3c8] sm:$0xff] }
 0x118   : > { %4872 = vmatprep.mubr.bf16.mxu1 %v9665_v12  ;;  %v4161_v56 = vpop.f32.mrf.mxu0  ;;  %v416_v37 = vld [vmem:[%s8506_s26 + $0x468] sm:$0xff] }
 0x119   : > { %v4262_v63 = vpop.f32.mrf.mxu1  ;;  %4928 = vmatpush1.bf16.msra.mxu0 %v7820_v49  ;;  %v4162_v51 = vadd.f32 %v4161_v56, %v9590_v8  ;;  %v9699_v55 = vadd.f32 %v4260_v1, %v4160_v19  ;;  %v7829_v12 = vld [vmem:[%s11957_s1 + $0x68] ss:$16 sps:$4 sm:$0xff]   ;;  %v7832_v1 = vld [vmem:[%s11957_s1 + $0x1040] ss:$16 sps:$4 sm:$0xff]   ;;  %v9723_v17 = vpack.c.bf16 %v416_v37, %v398_v52 }
 0x11a   : > { %5029 = vmatpush1.bf16.msra.mxu1 %v7823_v30  ;;  %4929 = vmatprep.subr.bf16.mxu0 %v7828_v5  ;;  %v4163_v48 = vpop.f32.mrf.mxu0  ;;  %v7837_v30 = vld [vmem:[%s11957_s1 + $0x4c] ss:$16 sps:$4 sm:$0xff]   ;;  %v7835_v5 = vld [vmem:[%s11957_s1 + $0x48] ss:$16 sps:$4 sm:$0xff]   ;;  %v395_v19 = vld [vmem:[%s8506_s26 + $0x3c0] sm:$0xff] }
 0x11b   : > { %5030 = vmatprep.subr.bf16.mxu1 %v7831_v61  ;;  %v4264_v49 = vpop.f32.mrf.mxu1  ;;  %v4164_v41 = vadd.f32 %v4163_v48, %v9601_v18  ;;  %v9711_v20 = vadd.f32 %v4262_v63, %v4162_v51  ;;  %v9719_v61 = vpack.c.bf16 %v414_v43, %v396_v3  ;;  %v413_v56 = vld [vmem:[%s8506_s26 + $0x450] sm:$0xff]  ;;  %12149 = vst [vmem:[#allocation80_spill] sm:$0xff] %v9723_v17  ;;  %v415_v43 = vld [vmem:[%s8506_s26 + $0x460] sm:$0xff] }
 0x11c   : > { %4772 = vmatmul.mubr.bf16.gmra.mxu0 %v9692_v59  ;;  %v4167_v63 = vpop.f32.mrf.mxu0  ;;  %v7840_v48 = vld [vmem:[%s11957_s1 + $0x1024] ss:$16 sps:$4 sm:$0xff]   ;;  %v7843_v59 = vld [vmem:[%s11957_s1 + $0x2c] ss:$16 sps:$4 sm:$0xff]   ;;  %v9751_v28 = vpack.c.bf16 %v415_v43, %v397_v6 }
 0x11d   : > { %12148 = vst [vmem:[#allocation79_spill] sm:$0xff] %v9719_v61  ;;  %4873 = vmatmul.mubr.bf16.gmra.mxu1 %v9694_v42  ;;  %v4268_v51 = vpop.f32.mrf.mxu1  ;;  %4930 = vmatpush1.bf16.msra.mxu0 %v7826_v60  ;;  %v4168_v3 = vadd.f32 %v4167_v63, %v9590_v8  ;;  %v9732_v52 = vadd.f32 %v4264_v49, %v4164_v41  ;;  %v434_v49 = vld [vmem:[%s8506_s26 + $0x4f8] sm:$0xff]  ;;  %v7846_v6 = vld [vmem:[%s11957_s1 + $0x1004] ss:$16 sps:$4 sm:$0xff]  }
 0x11e   : > { %5031 = vmatpush1.bf16.msra.mxu1 %v7829_v12  ;;  %4931 = vmatprep.subr.bf16.mxu0 %v7834_v32  ;;  %v4169_v37 = vpop.f32.mrf.mxu0  ;;  %v7838_v12 = vld [vmem:[%s11957_s1 + $0x1020] ss:$16 sps:$4 sm:$0xff]   ;;  %v450_v32 = vld [vmem:[%s8506_s26 + $0x578] sm:$0xff]  ;;  %v9749_v41 = vpack.c.bf16 %v413_v56, %v395_v19  ;;  %12151 = vst [vmem:[#allocation82_spill] sm:$0xff] %v9751_v28 }
 0x11f   : > { %5032 = vmatprep.subr.bf16.mxu1 %v7837_v30  ;;  %v4270_v42 = vpop.f32.mrf.mxu1  ;;  %v4170_v60 = vadd.f32 %v4169_v37, %v9601_v18  ;;  %v9740_v38 = vadd.f32 %v4268_v51, %v4168_v3  ;;  %4781 = vmatprep.mubr.bf16.mxu0 %v9719_v61  ;;  %v7841_v37 = vld [vmem:[%s11957_s1 + $0x28] ss:$16 sps:$4 sm:$0xff]   ;;  %v9775_v43 = vpack.c.bf16 %v450_v32, %v432_v40  ;;  %v433_v61 = vld [vmem:[%s8506_s26 + $0x4f0] sm:$0xff]  ;;  %v451_v32 = vld [vmem:[%s8506_s26 + $0x580] sm:$0xff] }
 0x120   : > { %4882 = vmatprep.mubr.bf16.mxu1 %v9723_v17  ;;  %v4171_v30 = vpop.f32.mrf.mxu0  ;;  %12150 = vst [vmem:[#allocation81_spill] sm:$0xff] %v9749_v41  ;;  %v7852_v17 = vld [vmem:[%s11957_s1 + $0x11e4] ss:$16 sps:$4 sm:$0xff]   ;;  %v9807_v4 = vpack.c.bf16 %v451_v32, %v433_v61 }
 0x121   : > { %v4272_v63 = vpop.f32.mrf.mxu1  ;;  %4932 = vmatpush1.bf16.msra.mxu0 %v7832_v1  ;;  %v4172_v51 = vadd.f32 %v4171_v30, %v9590_v8  ;;  %v9755_v3 = vadd.f32 %v4270_v42, %v4170_v60  ;;  %v7849_v1 = vld [vmem:[%s11957_s1 + $0xc] ss:$16 sps:$4 sm:$0xff]   ;;  %12152 = vst [vmem:[#allocation83_spill] sm:$0xff] %v9775_v43  ;;  %v431_v60 = vld [vmem:[%s8506_s26 + $0x4e0] sm:$0xff]  ;;  %v9778_v30 = vpack.c.bf16 %v452_v9, %v434_v49 }
 0x122   : > { %5033 = vmatpush1.bf16.msra.mxu1 %v7835_v5  ;;  %4933 = vmatprep.subr.bf16.mxu0 %v7840_v48  ;;  %v4173_v19 = vpop.f32.mrf.mxu0  ;;  %v7847_v48 = vld [vmem:[%s11957_s1 + $0x8] ss:$16 sps:$4 sm:$0xff]   ;;  %12155 = vst [vmem:[#allocation86_spill] sm:$0xff] %v9807_v4  ;;  %v7858_v61 = vld [vmem:[%s11957_s1 + $0x11c4] ss:$16 sps:$4 sm:$0xff]  }
 0x123   : > { %5034 = vmatprep.subr.bf16.mxu1 %v7843_v59  ;;  %v4274_v56 = vpop.f32.mrf.mxu1  ;;  %v4174_v42 = vadd.f32 %v4173_v19, %v9601_v18  ;;  %v9767_v5 = vadd.f32 %v4272_v63, %v4172_v51  ;;  %v7844_v59 = vld [vmem:[%s11957_s1 + $0x1000] ss:$16 sps:$4 sm:$0xff]   ;;  %12153 = vst [vmem:[#allocation84_spill] sm:$0xff] %v9778_v30 }
 0x124   : > { %4782 = vmatmul.mubr.bf16.gmra.mxu0 %v9749_v41  ;;  %v4177_v63 = vpop.f32.mrf.mxu0  ;;  %v449_v19 = vld [vmem:[%s8506_s26 + $0x570] sm:$0xff]  ;;  %v7855_v41 = vld [vmem:[%s11957_s1 + $0x1ec] ss:$16 sps:$4 sm:$0xff]  }
 0x125   : > { %4883 = vmatmul.mubr.bf16.gmra.mxu1 %v9751_v28  ;;  %v4278_v51 = vpop.f32.mrf.mxu1  ;;  %4934 = vmatpush1.bf16.msra.mxu0 %v7838_v12  ;;  %v4178_v40 = vadd.f32 %v4177_v63, %v9590_v8  ;;  %v9788_v9 = vadd.f32 %v4274_v56, %v4174_v42  ;;  %v486_v56 = vld [vmem:[%s8506_s26 + $0x698] sm:$0xff]  ;;  %v9805_v42 = vpack.c.bf16 %v449_v19, %v431_v60 }
 0x126   : > { %5035 = vmatpush1.bf16.msra.mxu1 %v7841_v37  ;;  %4935 = vmatprep.subr.bf16.mxu0 %v7846_v6  ;;  %v4179_v49 = vpop.f32.mrf.mxu0  ;;  %v7850_v37 = vld [vmem:[%s11957_s1 + $0x11e0] ss:$16 sps:$4 sm:$0xff]   ;;  %v470_v6 = vld [vmem:[%s8506_s26 + $0x618] sm:$0xff]  ;;  %v9831_v32 = vpack.c.bf16 %v486_v56, %v468_v14 }
 0x127   : > { %5036 = vmatprep.subr.bf16.mxu1 %v7849_v1  ;;  %v4280_v28 = vpop.f32.mrf.mxu1  ;;  %v4180_v12 = vadd.f32 %v4179_v49, %v9601_v18  ;;  %v9796_v45 = vadd.f32 %v4278_v51, %v4178_v40  ;;  %4791 = vmatprep.mubr.bf16.mxu0 %v9775_v43  ;;  %12154 = vst [vmem:[#allocation85_spill] sm:$0xff] %v9805_v42  ;;  %v7853_v49 = vld [vmem:[%s11957_s1 + $0x1e8] ss:$16 sps:$4 sm:$0xff]   ;;  %v487_v14 = vld [vmem:[%s8506_s26 + $0x6a0] sm:$0xff] }
 0x128   : > { %4892 = vmatprep.mubr.bf16.mxu1 %v9778_v30  ;;  %v4181_v1 = vpop.f32.mrf.mxu0  ;;  %12156 = vst [vmem:[#allocation87_spill] sm:$0xff] %v9831_v32  ;;  %v9835_v30 = vpack.c.bf16 %v488_v21, %v470_v6  ;;  %v7864_v6 = vld [vmem:[%s11957_s1 + $0x11a4] ss:$16 sps:$4 sm:$0xff]  }
 0x129   : > { %v4282_v63 = vpop.f32.mrf.mxu1  ;;  %4936 = vmatpush1.bf16.msra.mxu0 %v7844_v59  ;;  %v4182_v51 = vadd.f32 %v4181_v1, %v9590_v8  ;;  %v9811_v40 = vadd.f32 %v4280_v28, %v4180_v12  ;;  %v7861_v59 = vld [vmem:[%s11957_s1 + $0x1cc] ss:$16 sps:$4 sm:$0xff]   ;;  %v467_v12 = vld [vmem:[%s8506_s26 + $0x600] sm:$0xff]  ;;  %v485_v1 = vld [vmem:[%s8506_s26 + $0x690] sm:$0xff] }
 0x12a   : > { %5037 = vmatpush1.bf16.msra.mxu1 %v7847_v48  ;;  %4937 = vmatprep.subr.bf16.mxu0 %v7852_v17  ;;  %v4183_v60 = vpop.f32.mrf.mxu0  ;;  %v7856_v17 = vld [vmem:[%s11957_s1 + $0x11c0] ss:$16 sps:$4 sm:$0xff]   ;;  %12157 = vst [vmem:[#allocation88_spill] sm:$0xff] %v9835_v30 }
 0x12b   : > { %5038 = vmatprep.subr.bf16.mxu1 %v7855_v41  ;;  %v4284_v19 = vpop.f32.mrf.mxu1  ;;  %v4184_v28 = vadd.f32 %v4183_v60, %v9601_v18  ;;  %v9823_v48 = vadd.f32 %v4282_v63, %v4182_v51  ;;  %v7859_v41 = vld [vmem:[%s11957_s1 + $0x1c8] ss:$16 sps:$4 sm:$0xff]   ;;  %v469_v60 = vld [vmem:[%s8506_s26 + $0x610] sm:$0xff] }
 0x12c   : > { %4792 = vmatmul.mubr.bf16.gmra.mxu0 %v9805_v42  ;;  %v4187_v63 = vpop.f32.mrf.mxu0  ;;  %v506_v42 = vld [vmem:[%s8506_s26 + $0x738] sm:$0xff] }
 0x12d   : > { %4893 = vmatmul.mubr.bf16.gmra.mxu1 %v9807_v4  ;;  %v4288_v51 = vpop.f32.mrf.mxu1  ;;  %4938 = vmatpush2.bf16.msra.mxu0 %v7850_v37  ;;  %v4188_v43 = vadd.f32 %v4187_v63, %v9590_v8  ;;  %v9841_v58 = vadd.f32 %v4284_v19, %v4184_v28  ;;  %v7867_v4 = vld [vmem:[%s11957_s1 + $0x1ac] ss:$16 sps:$4 sm:$0xff]   ;;  %v9858_v63 = vpack.c.bf16 %v487_v14, %v469_v60 }
 0x12e   : > { %5039 = vmatpush2.bf16.msra.mxu1 %v7853_v49  ;;  %4939 = vmatprep.subr.bf16.mxu0 %v7858_v61  ;;  %v4189_v21 = vpop.f32.mrf.mxu0  ;;  %v504_v19 = vld [vmem:[%s8506_s26 + $0x728] sm:$0xff] }
 0x12f   : > { %5040 = vmatprep.subr.bf16.mxu1 %v7861_v59  ;;  %v4290_v56 = vpop.f32.mrf.mxu1  ;;  %v4190_v37 = vadd.f32 %v4189_v21, %v9601_v18  ;;  %v9851_v49 = vadd.f32 %v4288_v51, %v4188_v43  ;;  %4801 = vmatprep.mubr.bf16.mxu0 %v9831_v32  ;;  %v9856_v59 = vpack.c.bf16 %v485_v1, %v467_v12  ;;  %v7862_v43 = vld [vmem:[%s11957_s1 + $0x11a0] ss:$16 sps:$4 sm:$0xff]   ;;  %v7865_v51 = vld [vmem:[%s11957_s1 + $0x1a8] ss:$16 sps:$4 sm:$0xff]  }
 0x130   : > { %4902 = vmatprep.mubr.bf16.mxu1 %v9835_v30  ;;  %v4191_v61 = vpop.f32.mrf.mxu0  ;;  %12159 = vst [vmem:[#allocation90_spill] sm:$0xff] %v9858_v63  ;;  %v7868_v21 = vld [vmem:[%s11957_s1 + $0x1180] ss:$16 sps:$4 sm:$0xff]   ;;  %v292_v32 = vld [vmem:[%s8506_s26 + $0x88] sm:$0xff] }
 0x131   : > { %12158 = vst [vmem:[#allocation89_spill] sm:$0xff] %v9856_v59  ;;  %v4292_v28 = vpop.f32.mrf.mxu1  ;;  %4940 = vmatpush2.bf16.msra.mxu0 %v7856_v17  ;;  %v4192_v0 = vadd.f32 %v4191_v61, %v9590_v8  ;;  %v9862_v46 = vadd.f32 %v4290_v56, %v4190_v37  ;;  %v7870_v17 = vld [vmem:[%s11957_s1 + $0x1184] ss:$16 sps:$4 sm:$0xff]   ;;  %v9885_v56 = vpack.c.bf16 %v504_v19, %v504_v19 }
 0x132   : > { %5041 = vmatpush2.bf16.msra.mxu1 %v7859_v41  ;;  %4941 = vmatprep.subr.bf16.mxu0 %v7864_v6  ;;  %v4193_v12 = vpop.f32.mrf.mxu0  ;;  %v7873_v41 = vld [vmem:[%s11957_s1 + $0x18c] ss:$16 sps:$4 sm:$0xff]   ;;  %v9887_v6 = vpack.c.bf16 %v506_v42, %v506_v42  ;;  %v505_v30 = vld [vmem:[%s8506_s26 + $0x730] sm:$0xff] }
 0x133   : > { %5042 = vmatprep.subr.bf16.mxu1 %v7867_v4  ;;  %v4294_v1 = vpop.f32.mrf.mxu1  ;;  %v4194_v60 = vadd.f32 %v4193_v12, %v9601_v18  ;;  %v9877_v14 = vadd.f32 %v4292_v28, %v4192_v0  ;;  %v7871_v4 = vld [vmem:[%s11957_s1 + $0x188] ss:$16 sps:$4 sm:$0xff]   ;;  %12160 = vst [vmem:[#allocation91_spill] sm:$0xff] %v9885_v56  ;;  %v503_v0 = vld [vmem:[%s8506_s26 + $0x720] sm:$0xff] }
 0x134   : > { %12161 = vst [vmem:[#allocation92_spill] sm:$0xff] %v9887_v6  ;;  %4802 = vmatmul.mubr.bf16.gmra.mxu0 %v9856_v59  ;;  %v4197_v37 = vpop.f32.mrf.mxu0  ;;  %v9912_v59 = vpack.c.bf16 %v505_v30, %v505_v30  ;;  %v7882_v30 = vld [vmem:[%s11957_s1 + $0x1144] ss:$16 sps:$4 sm:$0xff]  }
 0x135   : > { %4903 = vmatmul.mubr.bf16.gmra.mxu1 %v9858_v63  ;;  %v4298_v61 = vpop.f32.mrf.mxu1  ;;  %4942 = vmatpush2.bf16.msra.mxu0 %v7862_v43  ;;  %v4198_v28 = vadd.f32 %v4197_v37, %v9590_v8  ;;  %v9893_v12 = vadd.f32 %v4294_v1, %v4194_v60  ;;  %v7876_v63 = vld [vmem:[%s11957_s1 + $0x1164] ss:$16 sps:$4 sm:$0xff]   ;;  %v7879_v43 = vld [vmem:[%s11957_s1 + $0x16c] ss:$16 sps:$4 sm:$0xff]  }
 0x136   : > { %5043 = vmatpush2.bf16.msra.mxu1 %v7865_v51  ;;  %4943 = vmatprep.subr.bf16.mxu0 %v7870_v17  ;;  %v4199_v42 = vpop.f32.mrf.mxu0  ;;  %v9907_v17 = vpack.c.bf16 %v503_v0, %v503_v0  ;;  %12163 = vst [vmem:[#allocation94_spill] sm:$0xff] %v9912_v59  ;;  %v7877_v0 = vld [vmem:[%s11957_s1 + $0x168] ss:$16 sps:$4 sm:$0xff]  }
 0x137   : > { %5044 = vmatprep.subr.bf16.mxu1 %v7873_v41  ;;  %v4300_v19 = vpop.f32.mrf.mxu1  ;;  %v4200_v51 = vadd.f32 %v4199_v42, %v9601_v18  ;;  %v9903_v37 = vadd.f32 %v4298_v61, %v4198_v28  ;;  %4811 = vmatprep.mubr.bf16.mxu0 %v9885_v56  ;;  %v7874_v41 = vld [vmem:[%s11957_s1 + $0x1160] ss:$16 sps:$4 sm:$0xff]  }
 0x138   : > { %4912 = vmatprep.mubr.bf16.mxu1 %v9887_v6  ;;  %v4201_v1 = vpop.f32.mrf.mxu0  ;;  %12162 = vst [vmem:[#allocation93_spill] sm:$0xff] %v9907_v17 }
 0x139   : > { %v4302_v60 = vpop.f32.mrf.mxu1  ;;  %4944 = vmatpush2.bf16.msra.mxu0 %v7868_v21  ;;  %v4202_v61 = vadd.f32 %v4201_v1, %v9590_v8  ;;  %v9917_v28 = vadd.f32 %v4300_v19, %v4200_v51  ;;  %v7885_v21 = vld [vmem:[%s11957_s1 + $0x14c] ss:$16 sps:$4 sm:$0xff]   ;;  %v9931_v51 = vpack.c.bf16 %v310_v47, %v292_v32  ;;  %v7883_v47 = vld [vmem:[%s11957_s1 + $0x148] ss:$16 sps:$4 sm:$0xff]  }
 0x13a   : > { %5045 = vmatpush2.bf16.msra.mxu1 %v7871_v4  ;;  %4945 = vmatprep.subr.bf16.mxu0 %v7876_v63  ;;  %v4203_v42 = vpop.f32.mrf.mxu0 }
 0x13b   : > { %5046 = vmatprep.subr.bf16.mxu1 %v7879_v43  ;;  %v4304_v6 = vpop.f32.mrf.mxu1  ;;  %v4204_v4 = vadd.f32 %v4203_v42, %v9601_v18  ;;  %v9929_v19 = vadd.f32 %v4302_v60, %v4202_v61  ;;  %12164 = vst [vmem:[#allocation95_spill] sm:$0xff] %v9931_v51  ;;  %v7880_v43 = vld [vmem:[%s11957_s1 + $0x1140] ss:$16 sps:$4 sm:$0xff]   ;;  %v7888_v61 = vld [vmem:[%s11957_s1 + $0x1124] ss:$16 sps:$4 sm:$0xff]  }
 0x13c   : > { %4812 = vmatmul.mubr.bf16.gmra.mxu0 %v9907_v17  ;;  %v4207_v63 = vpop.f32.mrf.mxu0  ;;  %v7886_v42 = vld [vmem:[%s11957_s1 + $0x1120] ss:$16 sps:$4 sm:$0xff]   ;;  %v12224_v17 = vld [vmem:[#allocation27_spill] sm:$0xff] }
 0x13d   : > { %4913 = vmatmul.mubr.bf16.gmra.mxu1 %v9912_v59  ;;  %v4308_v1 = vpop.f32.mrf.mxu1  ;;  %4946 = vmatpush2.bf16.msra.mxu0 %v7874_v41  ;;  %v4208_v56 = vadd.f32 %v4207_v63, %v9590_v8  ;;  %v9939_v36 = vadd.f32 %v4304_v6, %v4204_v4  ;;  %v7891_v41 = vld [vmem:[%s11957_s1 + $0x12c] ss:$16 sps:$4 sm:$0xff]   ;;  %v7894_v4 = vld [vmem:[%s11957_s1 + $0x1104] ss:$16 sps:$4 sm:$0xff]  }
 0x13e   : > { %5047 = vmatpush2.bf16.msra.mxu1 %v7877_v0  ;;  %4947 = vmatprep.subr.bf16.mxu0 %v7882_v30  ;;  %v4209_v32 = vpop.f32.mrf.mxu0  ;;  %v7897_v63 = vld [vmem:[%s11957_s1 + $0x10c] ss:$16 sps:$4 sm:$0xff]  }
 0x13f   : > { %5048 = vmatprep.subr.bf16.mxu1 %v7885_v21  ;;  %v4310_v60 = vpop.f32.mrf.mxu1  ;;  %v4210_v8 = vadd.f32 %v4209_v32, %v9601_v18  ;;  %v9951_v6 = vadd.f32 %v4308_v1, %v4208_v56  ;;  %4953 = vmatprep.mubr.bf16.mxu0 %v9931_v51  ;;  %v7889_v18 = vld [vmem:[%s11957_s1 + $0x128] ss:$16 sps:$4 sm:$0xff]   ;;  %v309_v32 = vld [vmem:[%s8506_s26 + $0x110] sm:$0xff] }
 0x140   : > { %5054 = vmatprep.mubr.bf16.mxu1 %v8527_v53  ;;  %v4211_v0 = vpop.f32.mrf.mxu0  ;;  %v7895_v1 = vld [vmem:[%s11957_s1 + $0x108] ss:$16 sps:$4 sm:$0xff]  }
 0x141   : > { %v4312_v30 = vpop.f32.mrf.mxu1  ;;  %4948 = vmatpush2.bf16.msra.mxu0 %v7880_v43  ;;  %v9958_v21 = vadd.f32 %v4310_v60, %v4210_v8  ;;  %v7892_v43 = vld [vmem:[%s11957_s1 + $0x1100] ss:$16 sps:$4 sm:$0xff]   ;;  %v7900_v60 = vld [vmem:[%s11957_s1 + $0x2ec] ss:$16 sps:$4 sm:$0xff]  }
 0x142   : > { %5049 = vmatpush2.bf16.msra.mxu1 %v7883_v47  ;;  %4949 = vmatprep.subr.bf16.mxu0 %v7888_v61  ;;  %v4212_v53 = vpop.f32.mrf.mxu0  ;;  %v291_v47 = vld [vmem:[%s8506_s26 + $0x80] sm:$0xff]  ;;  %v7903_v61 = vld [vmem:[%s11957_s1 + $0x4ec] ss:$16 sps:$4 sm:$0xff]   ;;  %v7901_v30 = vld [vmem:[%s11957_s1 + $0x4e8] ss:$16 sps:$4 sm:$0xff]  }
 0x143   : > { %5050 = vmatprep.subr.bf16.mxu1 %v7891_v41  ;;  %v4313_v56 = vpop.f32.mrf.mxu1  ;;  %v7898_v41 = vld [vmem:[%s11957_s1 + $0x2e8] ss:$16 sps:$4 sm:$0xff]   ;;  %v9987_v0 = vpack.c.bf16 %v309_v32, %v291_v47  ;;  %v7909_v53 = vld [vmem:[%s11957_s1 + $0x4cc] ss:$16 sps:$4 sm:$0xff]   ;;  %v327_v47 = vld [vmem:[%s8506_s26 + $0x1a0] sm:$0xff] }
 0x144   : > { %v328_v8 = vld [vmem:[%s8506_s26 + $0x1a8] sm:$0xff] }
 0x145   : > { %4950 = vmatpush2.bf16.msra.mxu0 %v7886_v42  ;;  %12165 = vst [vmem:[#allocation96_spill] sm:$0xff] %v9987_v0  ;;  %v346_v42 = vld [vmem:[%s8506_s26 + $0x238] sm:$0xff] }
 0x146   : > { %5051 = vmatpush2.bf16.msra.mxu1 %v7889_v18  ;;  %4951 = vmatprep.subr.bf16.mxu0 %v7894_v4  ;;  %v7906_v18 = vld [vmem:[%s11957_s1 + $0x2cc] ss:$16 sps:$4 sm:$0xff]   ;;  %v7904_v56 = vld [vmem:[%s11957_s1 + $0x2c8] ss:$16 sps:$4 sm:$0xff]   ;;  %v10002_v4 = vpack.c.bf16 %v346_v42, %v328_v8 }
 0x147   : > { %5052 = vmatprep.subr.bf16.mxu1 %v7897_v63 }
 0x148   : > { %12166 = vst [vmem:[#allocation97_spill] sm:$0xff] %v10002_v4 }
 0x149   : > { %4952 = vmatpush2.bf16.msra.mxu0 %v7892_v43 }
 0x14a   : > { %5053 = vmatpush2.bf16.msra.mxu1 %v7895_v1  ;;  %5123 = vmatprep.subr.bf16.mxu0 %v7900_v60  ;;  %v7907_v1 = vld [vmem:[%s11957_s1 + $0x4c8] ss:$16 sps:$4 sm:$0xff]   ;;  %v345_v60 = vld [vmem:[%s8506_s26 + $0x230] sm:$0xff] }
 0x14b   : > { %5224 = vmatprep.subr.bf16.mxu1 %v7903_v61  ;;  %v7912_v61 = vld [vmem:[%s11957_s1 + $0x2ac] ss:$16 sps:$4 sm:$0xff]  }
 0x14c   : > { %v4349_v63 = vpop.f32.mrf.mxu0  ;;  %4954 = vmatmul.mubr.bf16.vlgmr.msra.gmra.mxu0 %v9987_v0  ;;  %v382_v0 = vld [vmem:[%s8506_s26 + $0x358] sm:$0xff] }
 0x14d   : > { %v4450_v43 = vpop.f32.mrf.mxu1  ;;  %5055 = vmatmul.mubr.bf16.vlgmr.msra.gmra.mxu1 %v8591_v15  ;;  %v4350_v32 = vadd.f32 %v4349_v63, %v9626_v31  ;;  %5124 = vmatpush1.bf16.msra.mxu0 %v7898_v41  ;;  %v7915_v15 = vld [vmem:[%s11957_s1 + $0x4ac] ss:$16 sps:$4 sm:$0xff]   ;;  %v7910_v41 = vld [vmem:[%s11957_s1 + $0x2a8] ss:$16 sps:$4 sm:$0xff]  }
 0x14e   : > { %5225 = vmatpush1.bf16.msra.mxu1 %v7901_v30  ;;  %v4351_v8 = vpop.f32.mrf.mxu0  ;;  %5125 = vmatprep.subr.bf16.mxu0 %v7906_v18  ;;  %v10026_v18 = vpack.c.bf16 %v345_v60, %v327_v47  ;;  %v7916_v60 = vld [vmem:[%s11957_s1 + $0x288] ss:$16 sps:$4 sm:$0xff]  }
 0x14f   : > { %v4452_v42 = vpop.f32.mrf.mxu1  ;;  %5226 = vmatprep.subr.bf16.mxu1 %v7909_v53  ;;  %v10018_v59 = vadd.f32 %v4450_v43, %v4350_v32  ;;  %v4352_v31 = vadd.f32 %v4351_v8, %v9642_v11  ;;  %4963 = vmatprep.mubr.bf16.mxu0 %v10002_v4  ;;  %v364_v53 = vld [vmem:[%s8506_s26 + $0x2c8] sm:$0xff] }
 0x150   : > { %5064 = vmatprep.mubr.bf16.mxu1 %v8614_v24  ;;  %v4353_v30 = vpop.f32.mrf.mxu0  ;;  %12167 = vst [vmem:[#allocation98_spill] sm:$0xff] %v10026_v18  ;;  %v7913_v11 = vld [vmem:[%s11957_s1 + $0x4a8] ss:$16 sps:$4 sm:$0xff]   ;;  %v7918_v24 = vld [vmem:[%s11957_s1 + $0x28c] ss:$16 sps:$4 sm:$0xff]   ;;  %v10048_v8 = vpack.c.bf16 %v382_v0, %v364_v53  ;;  %v381_v0 = vld [vmem:[%s8506_s26 + $0x350] sm:$0xff] }
 0x151   : > { %v4454_v63 = vpop.f32.mrf.mxu1  ;;  %v10030_v51 = vadd.f32 %v4452_v42, %v4352_v31  ;;  %v4354_v43 = vadd.f32 %v4353_v30, %v9654_v29  ;;  %5126 = vmatpush1.bf16.msra.mxu0 %v7904_v56  ;;  %v7921_v29 = vld [vmem:[%s11957_s1 + $0x48c] ss:$16 sps:$4 sm:$0xff]   ;;  %v363_v31 = vld [vmem:[%s8506_s26 + $0x2c0] sm:$0xff] }
 0x152   : > { %5227 = vmatpush1.bf16.msra.mxu1 %v7907_v1  ;;  %v4355_v32 = vpop.f32.mrf.mxu0  ;;  %5127 = vmatprep.subr.bf16.mxu0 %v7912_v61  ;;  %12168 = vst [vmem:[#allocation99_spill] sm:$0xff] %v10048_v8 }
 0x153   : > { %v4456_v47 = vpop.f32.mrf.mxu1  ;;  %5228 = vmatprep.subr.bf16.mxu1 %v7915_v15  ;;  %v10042_v56 = vadd.f32 %v4454_v63, %v4354_v43  ;;  %v4356_v1 = vadd.f32 %v4355_v32, %v9672_v27  ;;  %v7919_v15 = vld [vmem:[%s11957_s1 + $0x488] ss:$16 sps:$4 sm:$0xff]   ;;  %v7924_v63 = vld [vmem:[%s11957_s1 + $0x26c] ss:$16 sps:$4 sm:$0xff]  }
 0x154   : > { %v4359_v42 = vpop.f32.mrf.mxu0  ;;  %4964 = vmatmul.mubr.bf16.gmra.mxu0 %v10026_v18 }
 0x155   : > { %v4460_v61 = vpop.f32.mrf.mxu1  ;;  %5065 = vmatmul.mubr.bf16.gmra.mxu1 %v8635_v35  ;;  %v10056_v30 = vadd.f32 %v4456_v47, %v4356_v1  ;;  %v4360_v27 = vadd.f32 %v4359_v42, %v9683_v33  ;;  %5128 = vmatpush1.bf16.msra.mxu0 %v7910_v41  ;;  %v7927_v35 = vld [vmem:[%s11957_s1 + $0x46c] ss:$16 sps:$4 sm:$0xff]   ;;  %v7922_v41 = vld [vmem:[%s11957_s1 + $0x268] ss:$16 sps:$4 sm:$0xff]  }
 0x156   : > { %5229 = vmatpush1.bf16.msra.mxu1 %v7913_v11  ;;  %v4361_v53 = vpop.f32.mrf.mxu0  ;;  %5129 = vmatprep.subr.bf16.mxu0 %v7918_v24  ;;  %v10074_v24 = vpack.c.bf16 %v381_v0, %v363_v31  ;;  %v418_v1 = vld [vmem:[%s8506_s26 + $0x478] sm:$0xff] }
 0x157   : > { %v4462_v43 = vpop.f32.mrf.mxu1  ;;  %5230 = vmatprep.subr.bf16.mxu1 %v7921_v29  ;;  %v4362_v32 = vadd.f32 %v4361_v53, %v9699_v55  ;;  %v10067_v33 = vadd.f32 %v4460_v61, %v4360_v27  ;;  %4973 = vmatprep.mubr.bf16.mxu0 %v10048_v8  ;;  %v400_v29 = vld [vmem:[%s8506_s26 + $0x3e8] sm:$0xff] }
 0x158   : > { %5074 = vmatprep.mubr.bf16.mxu1 %v8658_v44  ;;  %v4363_v11 = vpop.f32.mrf.mxu0  ;;  %12169 = vst [vmem:[#allocation100_spill] sm:$0xff] %v10074_v24  ;;  %v7925_v55 = vld [vmem:[%s11957_s1 + $0x468] ss:$16 sps:$4 sm:$0xff]   ;;  %v7930_v44 = vld [vmem:[%s11957_s1 + $0x24c] ss:$16 sps:$4 sm:$0xff]   ;;  %v10096_v0 = vpack.c.bf16 %v418_v1, %v400_v29 }
 0x159   : > { %v4464_v47 = vpop.f32.mrf.mxu1  ;;  %v4364_v42 = vadd.f32 %v4363_v11, %v9711_v20  ;;  %v10079_v18 = vadd.f32 %v4462_v43, %v4362_v32  ;;  %5130 = vmatpush1.bf16.msra.mxu0 %v7916_v60  ;;  %v7933_v20 = vld [vmem:[%s11957_s1 + $0x44c] ss:$16 sps:$4 sm:$0xff]   ;;  %v7928_v27 = vld [vmem:[%s11957_s1 + $0x248] ss:$16 sps:$4 sm:$0xff]   ;;  %v417_v11 = vld [vmem:[%s8506_s26 + $0x470] sm:$0xff] }
 0x15a   : > { %5231 = vmatpush1.bf16.msra.mxu1 %v7919_v15  ;;  %v4365_v61 = vpop.f32.mrf.mxu0  ;;  %5131 = vmatprep.subr.bf16.mxu0 %v7924_v63  ;;  %12170 = vst [vmem:[#allocation101_spill] sm:$0xff] %v10096_v0  ;;  %v7931_v43 = vld [vmem:[%s11957_s1 + $0x448] ss:$16 sps:$4 sm:$0xff]  }
 0x15b   : > { %v4466_v31 = vpop.f32.mrf.mxu1  ;;  %5232 = vmatprep.subr.bf16.mxu1 %v7927_v35  ;;  %v4366_v60 = vadd.f32 %v4365_v61, %v9732_v52  ;;  %v10091_v15 = vadd.f32 %v4464_v47, %v4364_v42  ;;  %v399_v35 = vld [vmem:[%s8506_s26 + $0x3e0] sm:$0xff]  ;;  %v7936_v47 = vld [vmem:[%s11957_s1 + $0x22c] ss:$16 sps:$4 sm:$0xff]  }
 0x15c   : > { %v4369_v53 = vpop.f32.mrf.mxu0  ;;  %4974 = vmatmul.mubr.bf16.gmra.mxu0 %v10074_v24 }
 0x15d   : > { %v4470_v63 = vpop.f32.mrf.mxu1  ;;  %5075 = vmatmul.mubr.bf16.gmra.mxu1 %v8679_v57  ;;  %v4370_v52 = vadd.f32 %v4369_v53, %v9740_v38  ;;  %v10105_v32 = vadd.f32 %v4466_v31, %v4366_v60  ;;  %5132 = vmatpush1.bf16.msra.mxu0 %v7922_v41  ;;  %v7939_v57 = vld [vmem:[%s11957_s1 + $0x42c] ss:$16 sps:$4 sm:$0xff]   ;;  %v7934_v41 = vld [vmem:[%s11957_s1 + $0x228] ss:$16 sps:$4 sm:$0xff]  }
 0x15e   : > { %5233 = vmatpush1.bf16.msra.mxu1 %v7925_v55  ;;  %v4371_v29 = vpop.f32.mrf.mxu0  ;;  %5133 = vmatprep.subr.bf16.mxu0 %v7930_v44  ;;  %v10122_v44 = vpack.c.bf16 %v417_v11, %v399_v35  ;;  %v436_v31 = vld [vmem:[%s8506_s26 + $0x508] sm:$0xff] }
 0x15f   : > { %v4472_v1 = vpop.f32.mrf.mxu1  ;;  %5234 = vmatprep.subr.bf16.mxu1 %v7933_v20  ;;  %v4372_v38 = vadd.f32 %v4371_v29, %v9755_v3  ;;  %v10115_v42 = vadd.f32 %v4470_v63, %v4370_v52  ;;  %4983 = vmatprep.mubr.bf16.mxu0 %v10096_v0  ;;  %v454_v20 = vld [vmem:[%s8506_s26 + $0x598] sm:$0xff] }
 0x160   : > { %5084 = vmatprep.mubr.bf16.mxu1 %v8702_v2  ;;  %v4373_v55 = vpop.f32.mrf.mxu0  ;;  %12171 = vst [vmem:[#allocation102_spill] sm:$0xff] %v10122_v44  ;;  %v7937_v3 = vld [vmem:[%s11957_s1 + $0x428] ss:$16 sps:$4 sm:$0xff]   ;;  %v7942_v2 = vld [vmem:[%s11957_s1 + $0x20c] ss:$16 sps:$4 sm:$0xff]   ;;  %v10144_v11 = vpack.c.bf16 %v454_v20, %v436_v31 }
 0x161   : > { %v4474_v61 = vpop.f32.mrf.mxu1  ;;  %v4374_v60 = vadd.f32 %v4373_v55, %v9767_v5  ;;  %v10127_v53 = vadd.f32 %v4472_v1, %v4372_v38  ;;  %5134 = vmatpush1.bf16.msra.mxu0 %v7928_v27  ;;  %v7945_v5 = vld [vmem:[%s11957_s1 + $0x40c] ss:$16 sps:$4 sm:$0xff]   ;;  %v7940_v52 = vld [vmem:[%s11957_s1 + $0x208] ss:$16 sps:$4 sm:$0xff]   ;;  %v453_v55 = vld [vmem:[%s8506_s26 + $0x590] sm:$0xff] }
 0x162   : > { %5235 = vmatpush1.bf16.msra.mxu1 %v7931_v43  ;;  %v4375_v63 = vpop.f32.mrf.mxu0  ;;  %5135 = vmatprep.subr.bf16.mxu0 %v7936_v47  ;;  %12172 = vst [vmem:[#allocation103_spill] sm:$0xff] %v10144_v11  ;;  %v7943_v1 = vld [vmem:[%s11957_s1 + $0x408] ss:$16 sps:$4 sm:$0xff]  }
 0x163   : > { %v4476_v35 = vpop.f32.mrf.mxu1  ;;  %5236 = vmatprep.subr.bf16.mxu1 %v7939_v57  ;;  %v4376_v27 = vadd.f32 %v4375_v63, %v9788_v9  ;;  %v10139_v43 = vadd.f32 %v4474_v61, %v4374_v60  ;;  %v435_v57 = vld [vmem:[%s8506_s26 + $0x500] sm:$0xff]  ;;  %v7948_v61 = vld [vmem:[%s11957_s1 + $0x3ec] ss:$16 sps:$4 sm:$0xff]   ;;  %v8135_v0 = vld [vmem:[%s11957_s1 + $0xc08] ss:$16 sps:$4 sm:$0xff]  }
 0x164   : > { %v4379_v29 = vpop.f32.mrf.mxu0  ;;  %4984 = vmatmul.mubr.bf16.gmra.mxu0 %v10122_v44  ;;  %v8132_v44 = vld [vmem:[%s11957_s1 + $0xa08] ss:$16 sps:$4 sm:$0xff]  }
 0x165   : > { %v4480_v47 = vpop.f32.mrf.mxu1  ;;  %5085 = vmatmul.mubr.bf16.gmra.mxu1 %v8723_v13  ;;  %v4380_v9 = vadd.f32 %v4379_v29, %v9796_v45  ;;  %v10153_v38 = vadd.f32 %v4476_v35, %v4376_v27  ;;  %5136 = vmatpush1.bf16.msra.mxu0 %v7934_v41  ;;  %v7951_v13 = vld [vmem:[%s11957_s1 + $0x5ec] ss:$16 sps:$4 sm:$0xff]   ;;  %v7946_v41 = vld [vmem:[%s11957_s1 + $0x3e8] ss:$16 sps:$4 sm:$0xff]  }
 0x166   : > { %5237 = vmatpush1.bf16.msra.mxu1 %v7937_v3  ;;  %v4381_v31 = vpop.f32.mrf.mxu0  ;;  %5137 = vmatprep.subr.bf16.mxu0 %v7942_v2  ;;  %v10170_v2 = vpack.c.bf16 %v453_v55, %v435_v57  ;;  %v472_v35 = vld [vmem:[%s8506_s26 + $0x628] sm:$0xff] }
 0x167   : > { %v4482_v20 = vpop.f32.mrf.mxu1  ;;  %5238 = vmatprep.subr.bf16.mxu1 %v7945_v5  ;;  %v4382_v45 = vadd.f32 %v4381_v31, %v9811_v40  ;;  %v10163_v60 = vadd.f32 %v4480_v47, %v4380_v9  ;;  %4993 = vmatprep.mubr.bf16.mxu0 %v10144_v11  ;;  %v490_v5 = vld [vmem:[%s8506_s26 + $0x6b8] sm:$0xff]  ;;  %v12221_v11 = vld [vmem:[#allocation50_spill] sm:$0xff] }
 0x168   : > { %5094 = vmatprep.mubr.bf16.mxu1 %v8746_v25  ;;  %v4383_v3 = vpop.f32.mrf.mxu0  ;;  %12173 = vst [vmem:[#allocation104_spill] sm:$0xff] %v10170_v2  ;;  %v7949_v40 = vld [vmem:[%s11957_s1 + $0x5e8] ss:$16 sps:$4 sm:$0xff]   ;;  %v7954_v25 = vld [vmem:[%s11957_s1 + $0x3cc] ss:$16 sps:$4 sm:$0xff]   ;;  %v10192_v55 = vpack.c.bf16 %v490_v5, %v472_v35 }
 0x169   : > { %v4484_v63 = vpop.f32.mrf.mxu1  ;;  %v4384_v27 = vadd.f32 %v4383_v3, %v9823_v48  ;;  %v10175_v29 = vadd.f32 %v4482_v20, %v4382_v45  ;;  %5138 = vmatpush1.bf16.msra.mxu0 %v7940_v52  ;;  %v7957_v48 = vld [vmem:[%s11957_s1 + $0x5cc] ss:$16 sps:$4 sm:$0xff]   ;;  %v7952_v9 = vld [vmem:[%s11957_s1 + $0x3c8] ss:$16 sps:$4 sm:$0xff]   ;;  %v489_v3 = vld [vmem:[%s8506_s26 + $0x6b0] sm:$0xff] }
 0x16a   : > { %5239 = vmatpush1.bf16.msra.mxu1 %v7943_v1  ;;  %v4385_v47 = vpop.f32.mrf.mxu0  ;;  %5139 = vmatprep.subr.bf16.mxu0 %v7948_v61  ;;  %12174 = vst [vmem:[#allocation105_spill] sm:$0xff] %v10192_v55  ;;  %v7955_v20 = vld [vmem:[%s11957_s1 + $0x5c8] ss:$16 sps:$4 sm:$0xff]  }
 0x16b   : > { %v4486_v57 = vpop.f32.mrf.mxu1  ;;  %5240 = vmatprep.subr.bf16.mxu1 %v7951_v13  ;;  %v4386_v52 = vadd.f32 %v4385_v47, %v9841_v58  ;;  %v10187_v1 = vadd.f32 %v4484_v63, %v4384_v27  ;;  %v471_v13 = vld [vmem:[%s8506_s26 + $0x620] sm:$0xff]  ;;  %v7960_v63 = vld [vmem:[%s11957_s1 + $0x3ac] ss:$16 sps:$4 sm:$0xff]  }
 0x16c   : > { %v4389_v31 = vpop.f32.mrf.mxu0  ;;  %4994 = vmatmul.mubr.bf16.gmra.mxu0 %v10170_v2  ;;  %v10215_v47 = vpack.c.bf16 %v489_v3, %v471_v13  ;;  %v8129_v2 = vld [vmem:[%s11957_s1 + $0xc28] ss:$16 sps:$4 sm:$0xff]  }
 0x16d   : > { %v4490_v61 = vpop.f32.mrf.mxu1  ;;  %5095 = vmatmul.mubr.bf16.gmra.mxu1 %v8769_v39  ;;  %v4390_v58 = vadd.f32 %v4389_v31, %v9851_v49  ;;  %v10201_v45 = vadd.f32 %v4486_v57, %v4386_v52  ;;  %5140 = vmatpush2.bf16.msra.mxu0 %v7946_v41  ;;  %v7963_v39 = vld [vmem:[%s11957_s1 + $0x5ac] ss:$16 sps:$4 sm:$0xff]  }
 0x16e   : > { %5241 = vmatpush2.bf16.msra.mxu1 %v7949_v40  ;;  %v4391_v35 = vpop.f32.mrf.mxu0  ;;  %5141 = vmatprep.subr.bf16.mxu0 %v7954_v25  ;;  %12175 = vst [vmem:[#allocation106_spill] sm:$0xff] %v10215_v47  ;;  %v7958_v25 = vld [vmem:[%s11957_s1 + $0x3a8] ss:$16 sps:$4 sm:$0xff]  }
 0x16f   : > { %v4492_v5 = vpop.f32.mrf.mxu1  ;;  %5242 = vmatprep.subr.bf16.mxu1 %v7957_v48  ;;  %v4392_v49 = vadd.f32 %v4391_v35, %v9862_v46  ;;  %v10211_v27 = vadd.f32 %v4490_v61, %v4390_v58  ;;  %5003 = vmatprep.mubr.bf16.mxu0 %v10192_v55  ;;  %v508_v57 = vld [vmem:[%s8506_s26 + $0x748] sm:$0xff] }
 0x170   : > { %5104 = vmatprep.mubr.bf16.mxu1 %v8790_v50  ;;  %v4393_v41 = vpop.f32.mrf.mxu0  ;;  %v7961_v46 = vld [vmem:[%s11957_s1 + $0x5a8] ss:$16 sps:$4 sm:$0xff]   ;;  %v7966_v50 = vld [vmem:[%s11957_s1 + $0x38c] ss:$16 sps:$4 sm:$0xff]   ;;  %v10236_v13 = vpack.c.bf16 %v508_v57, %v508_v57 }
 0x171   : > { %v4494_v40 = vpop.f32.mrf.mxu1  ;;  %v4394_v48 = vadd.f32 %v4393_v41, %v9877_v14  ;;  %v10222_v52 = vadd.f32 %v4492_v5, %v4392_v49  ;;  %5142 = vmatpush2.bf16.msra.mxu0 %v7952_v9  ;;  %v7969_v14 = vld [vmem:[%s11957_s1 + $0x58c] ss:$16 sps:$4 sm:$0xff]   ;;  %v7967_v35 = vld [vmem:[%s11957_s1 + $0x588] ss:$16 sps:$4 sm:$0xff]  }
 0x172   : > { %5243 = vmatpush2.bf16.msra.mxu1 %v7955_v20  ;;  %v4395_v31 = vpop.f32.mrf.mxu0  ;;  %5143 = vmatprep.subr.bf16.mxu0 %v7960_v63  ;;  %12176 = vst [vmem:[#allocation107_spill] sm:$0xff] %v10236_v13  ;;  %v7964_v63 = vld [vmem:[%s11957_s1 + $0x388] ss:$16 sps:$4 sm:$0xff]   ;;  %v7972_v49 = vld [vmem:[%s11957_s1 + $0x36c] ss:$16 sps:$4 sm:$0xff]  }
 0x173   : > { %v4496_v61 = vpop.f32.mrf.mxu1  ;;  %5244 = vmatprep.subr.bf16.mxu1 %v7963_v39  ;;  %v4396_v9 = vadd.f32 %v4395_v31, %v9893_v12  ;;  %v10234_v20 = vadd.f32 %v4494_v40, %v4394_v48  ;;  %v507_v39 = vld [vmem:[%s8506_s26 + $0x740] sm:$0xff]  ;;  %v7975_v57 = vld [vmem:[%s11957_s1 + $0x56c] ss:$16 sps:$4 sm:$0xff]  }
 0x174   : > { %v4399_v58 = vpop.f32.mrf.mxu0  ;;  %5004 = vmatmul.mubr.bf16.gmra.mxu0 %v10215_v47 }
 0x175   : > { %v4500_v3 = vpop.f32.mrf.mxu1  ;;  %5105 = vmatmul.mubr.bf16.gmra.mxu1 %v8808_v62  ;;  %v4400_v12 = vadd.f32 %v4399_v58, %v9903_v37  ;;  %v10247_v5 = vadd.f32 %v4496_v61, %v4396_v9  ;;  %5144 = vmatpush2.bf16.msra.mxu0 %v7958_v25 }
 0x176   : > { %5245 = vmatpush2.bf16.msra.mxu1 %v7961_v46  ;;  %v4401_v41 = vpop.f32.mrf.mxu0  ;;  %5145 = vmatprep.subr.bf16.mxu0 %v7966_v50  ;;  %v10261_v46 = vpack.c.bf16 %v507_v39, %v507_v39  ;;  %v7970_v50 = vld [vmem:[%s11957_s1 + $0x368] ss:$16 sps:$4 sm:$0xff]  }
 0x177   : > { %v4502_v40 = vpop.f32.mrf.mxu1  ;;  %5246 = vmatprep.subr.bf16.mxu1 %v7969_v14  ;;  %v4402_v62 = vadd.f32 %v4401_v41, %v9917_v28  ;;  %v10257_v37 = vadd.f32 %v4500_v3, %v4400_v12  ;;  %5013 = vmatprep.mubr.bf16.mxu0 %v10236_v13  ;;  %v7973_v28 = vld [vmem:[%s11957_s1 + $0x568] ss:$16 sps:$4 sm:$0xff]   ;;  %v7984_v41 = vld [vmem:[%s11957_s1 + $0x32c] ss:$16 sps:$4 sm:$0xff]  }
 0x178   : > { %5114 = vmatprep.mubr.bf16.mxu1 %v8832_v10  ;;  %v4403_v25 = vpop.f32.mrf.mxu0  ;;  %12177 = vst [vmem:[#allocation108_spill] sm:$0xff] %v10261_v46  ;;  %v7978_v10 = vld [vmem:[%s11957_s1 + $0x34c] ss:$16 sps:$4 sm:$0xff]   ;;  %v7976_v12 = vld [vmem:[%s11957_s1 + $0x348] ss:$16 sps:$4 sm:$0xff]  }
 0x179   : > { %v4504_v48 = vpop.f32.mrf.mxu1  ;;  %v4404_v31 = vadd.f32 %v4403_v25, %v9929_v19  ;;  %v10267_v61 = vadd.f32 %v4502_v40, %v4402_v62  ;;  %5146 = vmatpush2.bf16.msra.mxu0 %v7964_v63  ;;  %v7981_v19 = vld [vmem:[%s11957_s1 + $0x54c] ss:$16 sps:$4 sm:$0xff]  }
 0x17a   : > { %5247 = vmatpush2.bf16.msra.mxu1 %v7967_v35  ;;  %v4405_v14 = vpop.f32.mrf.mxu0  ;;  %5147 = vmatprep.subr.bf16.mxu0 %v7972_v49  ;;  %v12218_v13 = vld [vmem:[#allocation21_spill] sm:$0xff] }
 0x17b   : > { %v4506_v9 = vpop.f32.mrf.mxu1  ;;  %5248 = vmatprep.subr.bf16.mxu1 %v7975_v57  ;;  %v4406_v58 = vadd.f32 %v4405_v14, %v9939_v36  ;;  %v10279_v3 = vadd.f32 %v4504_v48, %v4404_v31  ;;  %v7979_v36 = vld [vmem:[%s11957_s1 + $0x548] ss:$16 sps:$4 sm:$0xff]  }
 0x17c   : > { %v4409_v63 = vpop.f32.mrf.mxu0  ;;  %5014 = vmatmul.mubr.bf16.gmra.mxu0 %v10261_v46  ;;  %v7982_v48 = vld [vmem:[%s11957_s1 + $0x328] ss:$16 sps:$4 sm:$0xff]  }
 0x17d   : > { %v4510_v35 = vpop.f32.mrf.mxu1  ;;  %5115 = vmatmul.mubr.bf16.gmra.mxu1 %v8855_v23  ;;  %v4410_v39 = vadd.f32 %v4409_v63, %v9951_v6  ;;  %v10287_v49 = vadd.f32 %v4506_v9, %v4406_v58  ;;  %5148 = vmatpush2.bf16.msra.mxu0 %v7970_v50  ;;  %v7987_v23 = vld [vmem:[%s11957_s1 + $0x52c] ss:$16 sps:$4 sm:$0xff]   ;;  %v7988_v14 = vld [vmem:[%s11957_s1 + $0x308] ss:$16 sps:$4 sm:$0xff]  }
 0x17e   : > { %5249 = vmatpush2.bf16.msra.mxu1 %v7973_v28  ;;  %v4411_v40 = vpop.f32.mrf.mxu0  ;;  %5149 = vmatprep.subr.bf16.mxu0 %v7978_v10  ;;  %v7993_v10 = vld [vmem:[%s11957_s1 + $0x50c] ss:$16 sps:$4 sm:$0xff]   ;;  %v7991_v9 = vld [vmem:[%s11957_s1 + $0x508] ss:$16 sps:$4 sm:$0xff]  }
 0x17f   : > { %v4512_v57 = vpop.f32.mrf.mxu1  ;;  %5250 = vmatprep.subr.bf16.mxu1 %v7981_v19  ;;  %v4412_v6 = vadd.f32 %v4411_v40, %v9958_v21  ;;  %v10299_v62 = vadd.f32 %v4510_v35, %v4410_v39  ;;  %5155 = vmatprep.mubr.bf16.mxu0 %v8529_v54  ;;  %v7985_v21 = vld [vmem:[%s11957_s1 + $0x528] ss:$16 sps:$4 sm:$0xff]   ;;  %v7990_v54 = vld [vmem:[%s11957_s1 + $0x30c] ss:$16 sps:$4 sm:$0xff]  }
 0x180   : > { %5256 = vmatprep.mubr.bf16.mxu1 %v8868_v34  ;;  %v4413_v25 = vpop.f32.mrf.mxu0  ;;  %v7996_v19 = vld [vmem:[%s11957_s1 + $0x6ec] ss:$16 sps:$4 sm:$0xff]   ;;  %v7994_v63 = vld [vmem:[%s11957_s1 + $0x6e8] ss:$16 sps:$4 sm:$0xff]  }
 0x181   : > { %v4514_v50 = vpop.f32.mrf.mxu1  ;;  %v10306_v31 = vadd.f32 %v4512_v57, %v4412_v6  ;;  %5150 = vmatpush2.bf16.msra.mxu0 %v7976_v12  ;;  %v7999_v58 = vld [vmem:[%s11957_s1 + $0x8ec] ss:$16 sps:$4 sm:$0xff]   ;;  %v7997_v35 = vld [vmem:[%s11957_s1 + $0x8e8] ss:$16 sps:$4 sm:$0xff]  }
 0x182   : > { %5251 = vmatpush2.bf16.msra.mxu1 %v7979_v36  ;;  %5151 = vmatprep.subr.bf16.mxu0 %v7984_v41  ;;  %v4414_v34 = vpop.f32.mrf.mxu0  ;;  %v8002_v12 = vld [vmem:[%s11957_s1 + $0x6cc] ss:$16 sps:$4 sm:$0xff]   ;;  %v8000_v40 = vld [vmem:[%s11957_s1 + $0x6c8] ss:$16 sps:$4 sm:$0xff]  }
 0x183   : > { %5252 = vmatprep.subr.bf16.mxu1 %v7987_v23  ;;  %v4515_v28 = vpop.f32.mrf.mxu1  ;;  %v8005_v39 = vld [vmem:[%s11957_s1 + $0x8cc] ss:$16 sps:$4 sm:$0xff]   ;;  %v8003_v23 = vld [vmem:[%s11957_s1 + $0x8c8] ss:$16 sps:$4 sm:$0xff]  }
 0x184   : > { %v8008_v6 = vld [vmem:[%s11957_s1 + $0x6ac] ss:$16 sps:$4 sm:$0xff]  }
 0x185   : > { %5152 = vmatpush2.bf16.msra.mxu0 %v7982_v48 }
 0x186   : > { %5253 = vmatpush2.bf16.msra.mxu1 %v7985_v21  ;;  %5153 = vmatprep.subr.bf16.mxu0 %v7990_v54  ;;  %v8006_v54 = vld [vmem:[%s11957_s1 + $0x6a8] ss:$16 sps:$4 sm:$0xff]  }
 0x187   : > { %5254 = vmatprep.subr.bf16.mxu1 %v7993_v10 }
 0x189   : > { %5154 = vmatpush2.bf16.msra.mxu0 %v7988_v14  ;;  %v8017_v14 = vld [vmem:[%s11957_s1 + $0x88c] ss:$16 sps:$4 sm:$0xff]  }
 0x18a   : > { %5255 = vmatpush2.bf16.msra.mxu1 %v7991_v9  ;;  %5325 = vmatprep.subr.bf16.mxu0 %v7996_v19 }
 0x18b   : > { %5426 = vmatprep.subr.bf16.mxu1 %v7999_v58  ;;  %v12178_v58 = vld [vmem:[#allocation2_spill] sm:$0xff] }
 0x18c   : > { %v4551_v36 = vpop.f32.mrf.mxu0  ;;  %5156 = vmatmul.mubr.bf16.vlgmr.msra.gmra.mxu0 %v8593_v16 }
 0x18d   : > { %v4652_v41 = vpop.f32.mrf.mxu1  ;;  %5257 = vmatmul.mubr.bf16.vlgmr.msra.gmra.mxu1 %v8923_v7  ;;  %v4552_v57 = vadd.f32 %v4551_v36, %v10018_v59  ;;  %5326 = vmatpush1.bf16.msra.mxu0 %v7994_v63  ;;  %v8011_v7 = vld [vmem:[%s11957_s1 + $0x8ac] ss:$16 sps:$4 sm:$0xff]  }
 0x18e   : > { %5427 = vmatpush1.bf16.msra.mxu1 %v7997_v35  ;;  %v4553_v25 = vpop.f32.mrf.mxu0  ;;  %5327 = vmatprep.subr.bf16.mxu0 %v8002_v12  ;;  %v12179_v35 = vld [vmem:[#allocation16_spill] sm:$0xff]  ;;  %v8012_v12 = vld [vmem:[%s11957_s1 + $0x688] ss:$16 sps:$4 sm:$0xff]  }
 0x18f   : > { %v4654_v16 = vpop.f32.mrf.mxu1  ;;  %5428 = vmatprep.subr.bf16.mxu1 %v8005_v39  ;;  %v10356_v48 = vadd.f32 %v4652_v41, %v4552_v57  ;;  %v4554_v59 = vadd.f32 %v4553_v25, %v10030_v51  ;;  %5165 = vmatprep.mubr.bf16.mxu0 %v8617_v26  ;;  %v8009_v51 = vld [vmem:[%s11957_s1 + $0x8a8] ss:$16 sps:$4 sm:$0xff]   ;;  %v8014_v26 = vld [vmem:[%s11957_s1 + $0x68c] ss:$16 sps:$4 sm:$0xff]  }
 0x190   : > { %5266 = vmatprep.mubr.bf16.mxu1 %v8942_v22  ;;  %v4555_v50 = vpop.f32.mrf.mxu0  ;;  %v8020_v41 = vld [vmem:[%s11957_s1 + $0x66c] ss:$16 sps:$4 sm:$0xff]  }
 0x191   : > { %v4656_v21 = vpop.f32.mrf.mxu1  ;;  %v10364_v34 = vadd.f32 %v4654_v16, %v4554_v59  ;;  %v4556_v28 = vadd.f32 %v4555_v50, %v10042_v56  ;;  %5328 = vmatpush1.bf16.msra.mxu0 %v8000_v40  ;;  %v12180_v25 = vld [vmem:[#allocation3_spill] sm:$0xff]  ;;  %v12181_v16 = vld [vmem:[#allocation18_spill] sm:$0xff] }
 0x192   : > { %5429 = vmatpush1.bf16.msra.mxu1 %v8003_v23  ;;  %v4557_v22 = vpop.f32.mrf.mxu0  ;;  %5329 = vmatprep.subr.bf16.mxu0 %v8008_v6  ;;  %v8023_v23 = vld [vmem:[%s11957_s1 + $0x86c] ss:$16 sps:$4 sm:$0xff]   ;;  %v8018_v50 = vld [vmem:[%s11957_s1 + $0x668] ss:$16 sps:$4 sm:$0xff]  }
 0x193   : > { %v4658_v10 = vpop.f32.mrf.mxu1  ;;  %5430 = vmatprep.subr.bf16.mxu1 %v8011_v7  ;;  %v10376_v9 = vadd.f32 %v4656_v21, %v4556_v28  ;;  %v4558_v56 = vadd.f32 %v4557_v22, %v10056_v30  ;;  %v8015_v30 = vld [vmem:[%s11957_s1 + $0x888] ss:$16 sps:$4 sm:$0xff]   ;;  %v8026_v28 = vld [vmem:[%s11957_s1 + $0x64c] ss:$16 sps:$4 sm:$0xff]  }
 0x194   : > { %v4561_v19 = vpop.f32.mrf.mxu0  ;;  %5166 = vmatmul.mubr.bf16.gmra.mxu0 %v12178_v58  ;;  %v12183_v58 = vld [vmem:[#allocation20_spill] sm:$0xff] }
 0x195   : > { %v4662_v63 = vpop.f32.mrf.mxu1  ;;  %5267 = vmatmul.mubr.bf16.gmra.mxu1 %v12179_v35  ;;  %v10384_v39 = vadd.f32 %v4658_v10, %v4558_v56  ;;  %v4562_v36 = vadd.f32 %v4561_v19, %v10067_v33  ;;  %5330 = vmatpush1.bf16.msra.mxu0 %v8006_v54  ;;  %v12182_v56 = vld [vmem:[#allocation4_spill] sm:$0xff] }
 0x196   : > { %5431 = vmatpush1.bf16.msra.mxu1 %v8009_v51  ;;  %v4563_v40 = vpop.f32.mrf.mxu0  ;;  %5331 = vmatprep.subr.bf16.mxu0 %v8014_v26 }
 0x197   : > { %v4664_v57 = vpop.f32.mrf.mxu1  ;;  %5432 = vmatprep.subr.bf16.mxu1 %v8017_v14  ;;  %v4564_v33 = vadd.f32 %v4563_v40, %v10079_v18  ;;  %v10397_v6 = vadd.f32 %v4662_v63, %v4562_v36  ;;  %5175 = vmatprep.mubr.bf16.mxu0 %v12180_v25  ;;  %v8021_v18 = vld [vmem:[%s11957_s1 + $0x868] ss:$16 sps:$4 sm:$0xff]   ;;  %v8032_v36 = vld [vmem:[%s11957_s1 + $0x62c] ss:$16 sps:$4 sm:$0xff]  }
 0x198   : > { %5276 = vmatprep.mubr.bf16.mxu1 %v12181_v16  ;;  %v4565_v7 = vpop.f32.mrf.mxu0  ;;  %v8024_v63 = vld [vmem:[%s11957_s1 + $0x648] ss:$16 sps:$4 sm:$0xff]  }
 0x199   : > { %v4666_v59 = vpop.f32.mrf.mxu1  ;;  %v4566_v21 = vadd.f32 %v4565_v7, %v10091_v15  ;;  %v10405_v54 = vadd.f32 %v4664_v57, %v4564_v33  ;;  %5332 = vmatpush1.bf16.msra.mxu0 %v8012_v12  ;;  %v8029_v15 = vld [vmem:[%s11957_s1 + $0x84c] ss:$16 sps:$4 sm:$0xff]   ;;  %v12185_v33 = vld [vmem:[#allocation22_spill] sm:$0xff]  ;;  %v8030_v7 = vld [vmem:[%s11957_s1 + $0x628] ss:$16 sps:$4 sm:$0xff]  }
 0x19a   : > { %5433 = vmatpush1.bf16.msra.mxu1 %v8015_v30  ;;  %v4567_v51 = vpop.f32.mrf.mxu0  ;;  %5333 = vmatprep.subr.bf16.mxu0 %v8020_v41 }
 0x19b   : > { %v4668_v26 = vpop.f32.mrf.mxu1  ;;  %5434 = vmatprep.subr.bf16.mxu1 %v8023_v23  ;;  %v4568_v22 = vadd.f32 %v4567_v51, %v10105_v32  ;;  %v10417_v10 = vadd.f32 %v4666_v59, %v4566_v21  ;;  %v8027_v32 = vld [vmem:[%s11957_s1 + $0x848] ss:$16 sps:$4 sm:$0xff]   ;;  %v8038_v21 = vld [vmem:[%s11957_s1 + $0x60c] ss:$16 sps:$4 sm:$0xff]  }
 0x19c   : > { %v4571_v14 = vpop.f32.mrf.mxu0  ;;  %5176 = vmatmul.mubr.bf16.gmra.mxu0 %v12182_v56  ;;  %v12184_v23 = vld [vmem:[#allocation5_spill] sm:$0xff]  ;;  %v12187_v56 = vld [vmem:[#allocation24_spill] sm:$0xff] }
 0x19d   : > { %v4672_v19 = vpop.f32.mrf.mxu1  ;;  %5277 = vmatmul.mubr.bf16.gmra.mxu1 %v12183_v58  ;;  %v4572_v35 = vadd.f32 %v4571_v14, %v10115_v42  ;;  %v10425_v12 = vadd.f32 %v4668_v26, %v4568_v22  ;;  %5334 = vmatpush1.bf16.msra.mxu0 %v8018_v50  ;;  %v8035_v42 = vld [vmem:[%s11957_s1 + $0x82c] ss:$16 sps:$4 sm:$0xff]   ;;  %v12186_v22 = vld [vmem:[#allocation6_spill] sm:$0xff] }
 0x19e   : > { %5435 = vmatpush1.bf16.msra.mxu1 %v8021_v18  ;;  %v4573_v30 = vpop.f32.mrf.mxu0  ;;  %5335 = vmatprep.subr.bf16.mxu0 %v8026_v28 }
 0x19f   : > { %v4674_v41 = vpop.f32.mrf.mxu1  ;;  %5436 = vmatprep.subr.bf16.mxu1 %v8029_v15  ;;  %v4574_v40 = vadd.f32 %v4573_v30, %v10127_v53  ;;  %v10437_v57 = vadd.f32 %v4672_v19, %v4572_v35  ;;  %5185 = vmatprep.mubr.bf16.mxu0 %v12184_v23  ;;  %v8033_v53 = vld [vmem:[%s11957_s1 + $0x828] ss:$16 sps:$4 sm:$0xff]   ;;  %v8044_v35 = vld [vmem:[%s11957_s1 + $0x7ec] ss:$16 sps:$4 sm:$0xff]  }
 0x1a0   : > { %5286 = vmatprep.mubr.bf16.mxu1 %v12185_v33  ;;  %v4575_v25 = vpop.f32.mrf.mxu0  ;;  %v8036_v19 = vld [vmem:[%s11957_s1 + $0x608] ss:$16 sps:$4 sm:$0xff]  }
 0x1a1   : > { %v4676_v16 = vpop.f32.mrf.mxu1  ;;  %v4576_v59 = vadd.f32 %v4575_v25, %v10139_v43  ;;  %v10445_v50 = vadd.f32 %v4674_v41, %v4574_v40  ;;  %5336 = vmatpush1.bf16.msra.mxu0 %v8024_v63  ;;  %v8041_v43 = vld [vmem:[%s11957_s1 + $0x80c] ss:$16 sps:$4 sm:$0xff]   ;;  %v12189_v40 = vld [vmem:[#allocation26_spill] sm:$0xff]  ;;  %v8042_v25 = vld [vmem:[%s11957_s1 + $0x7e8] ss:$16 sps:$4 sm:$0xff]  }
 0x1a2   : > { %5437 = vmatpush1.bf16.msra.mxu1 %v8027_v32  ;;  %v4577_v18 = vpop.f32.mrf.mxu0  ;;  %5337 = vmatprep.subr.bf16.mxu0 %v8032_v36 }
 0x1a3   : > { %v4678_v28 = vpop.f32.mrf.mxu1  ;;  %5438 = vmatprep.subr.bf16.mxu1 %v8035_v42  ;;  %v4578_v51 = vadd.f32 %v4577_v18, %v10153_v38  ;;  %v10457_v26 = vadd.f32 %v4676_v16, %v4576_v59  ;;  %v8039_v38 = vld [vmem:[%s11957_s1 + $0x808] ss:$16 sps:$4 sm:$0xff]   ;;  %v8050_v59 = vld [vmem:[%s11957_s1 + $0x7cc] ss:$16 sps:$4 sm:$0xff]  }
 0x1a4   : > { %v4581_v15 = vpop.f32.mrf.mxu0  ;;  %5186 = vmatmul.mubr.bf16.gmra.mxu0 %v12186_v22  ;;  %v12188_v42 = vld [vmem:[#allocation7_spill] sm:$0xff]  ;;  %v12191_v22 = vld [vmem:[#allocation28_spill] sm:$0xff] }
 0x1a5   : > { %v4682_v14 = vpop.f32.mrf.mxu1  ;;  %5287 = vmatmul.mubr.bf16.gmra.mxu1 %v12187_v56  ;;  %v4582_v58 = vadd.f32 %v4581_v15, %v10163_v60  ;;  %v10465_v63 = vadd.f32 %v4678_v28, %v4578_v51  ;;  %5338 = vmatpush1.bf16.msra.mxu0 %v8030_v7  ;;  %v8047_v60 = vld [vmem:[%s11957_s1 + $0x9ec] ss:$16 sps:$4 sm:$0xff]   ;;  %v12190_v51 = vld [vmem:[#allocation8_spill] sm:$0xff] }
 0x1a6   : > { %5439 = vmatpush1.bf16.msra.mxu1 %v8033_v53  ;;  %v4583_v32 = vpop.f32.mrf.mxu0  ;;  %5339 = vmatprep.subr.bf16.mxu0 %v8038_v21 }
 0x1a7   : > { %v4684_v36 = vpop.f32.mrf.mxu1  ;;  %5440 = vmatprep.subr.bf16.mxu1 %v8041_v43  ;;  %v4584_v30 = vadd.f32 %v4583_v32, %v10175_v29  ;;  %v10477_v41 = vadd.f32 %v4682_v14, %v4582_v58  ;;  %5195 = vmatprep.mubr.bf16.mxu0 %v12188_v42  ;;  %v8045_v29 = vld [vmem:[%s11957_s1 + $0x9e8] ss:$16 sps:$4 sm:$0xff]   ;;  %v8056_v58 = vld [vmem:[%s11957_s1 + $0x7ac] ss:$16 sps:$4 sm:$0xff]  }
 0x1a8   : > { %5296 = vmatprep.mubr.bf16.mxu1 %v12189_v40  ;;  %v4585_v23 = vpop.f32.mrf.mxu0  ;;  %v8048_v14 = vld [vmem:[%s11957_s1 + $0x7c8] ss:$16 sps:$4 sm:$0xff]  }
 0x1a9   : > { %v4686_v33 = vpop.f32.mrf.mxu1  ;;  %v4586_v16 = vadd.f32 %v4585_v23, %v10187_v1  ;;  %v10485_v7 = vadd.f32 %v4684_v36, %v4584_v30  ;;  %5340 = vmatpush1.bf16.msra.mxu0 %v8036_v19  ;;  %v8053_v1 = vld [vmem:[%s11957_s1 + $0x9cc] ss:$16 sps:$4 sm:$0xff]   ;;  %v12193_v30 = vld [vmem:[#allocation30_spill] sm:$0xff]  ;;  %v8054_v23 = vld [vmem:[%s11957_s1 + $0x7a8] ss:$16 sps:$4 sm:$0xff]  }
 0x1aa   : > { %5441 = vmatpush1.bf16.msra.mxu1 %v8039_v38  ;;  %v4587_v53 = vpop.f32.mrf.mxu0  ;;  %5341 = vmatprep.subr.bf16.mxu0 %v8044_v35 }
 0x1ab   : > { %v4688_v21 = vpop.f32.mrf.mxu1  ;;  %5442 = vmatprep.subr.bf16.mxu1 %v8047_v60  ;;  %v4588_v18 = vadd.f32 %v4587_v53, %v10201_v45  ;;  %v10497_v28 = vadd.f32 %v4686_v33, %v4586_v16  ;;  %v8051_v45 = vld [vmem:[%s11957_s1 + $0x9c8] ss:$16 sps:$4 sm:$0xff]   ;;  %v8062_v16 = vld [vmem:[%s11957_s1 + $0x78c] ss:$16 sps:$4 sm:$0xff]  }
 0x1ac   : > { %v4591_v43 = vpop.f32.mrf.mxu0  ;;  %5196 = vmatmul.mubr.bf16.gmra.mxu0 %v12190_v51  ;;  %v12192_v60 = vld [vmem:[#allocation9_spill] sm:$0xff]  ;;  %v12196_v51 = vld [vmem:[#allocation32_spill] sm:$0xff] }
 0x1ad   : > { %v4692_v15 = vpop.f32.mrf.mxu1  ;;  %5297 = vmatmul.mubr.bf16.gmra.mxu1 %v12191_v22  ;;  %v4592_v56 = vadd.f32 %v4591_v43, %v10211_v27  ;;  %v10505_v19 = vadd.f32 %v4688_v21, %v4588_v18  ;;  %5342 = vmatpush2.bf16.msra.mxu0 %v8042_v25  ;;  %v8059_v27 = vld [vmem:[%s11957_s1 + $0x9ac] ss:$16 sps:$4 sm:$0xff]   ;;  %v12195_v18 = vld [vmem:[#allocation10_spill] sm:$0xff] }
 0x1ae   : > { %5443 = vmatpush2.bf16.msra.mxu1 %v8045_v29  ;;  %v4593_v38 = vpop.f32.mrf.mxu0  ;;  %5343 = vmatprep.subr.bf16.mxu0 %v8050_v59 }
 0x1af   : > { %v4694_v35 = vpop.f32.mrf.mxu1  ;;  %5444 = vmatprep.subr.bf16.mxu1 %v8053_v1  ;;  %v4594_v32 = vadd.f32 %v4593_v38, %v10222_v52  ;;  %v10517_v36 = vadd.f32 %v4692_v15, %v4592_v56  ;;  %5205 = vmatprep.mubr.bf16.mxu0 %v12192_v60  ;;  %v8057_v52 = vld [vmem:[%s11957_s1 + $0x9a8] ss:$16 sps:$4 sm:$0xff]   ;;  %v8068_v56 = vld [vmem:[%s11957_s1 + $0x76c] ss:$16 sps:$4 sm:$0xff]  }
 0x1b0   : > { %5306 = vmatprep.mubr.bf16.mxu1 %v12193_v30  ;;  %v4595_v42 = vpop.f32.mrf.mxu0  ;;  %v8060_v15 = vld [vmem:[%s11957_s1 + $0x788] ss:$16 sps:$4 sm:$0xff]  }
 0x1b1   : > { %v4696_v40 = vpop.f32.mrf.mxu1  ;;  %v4596_v33 = vadd.f32 %v4595_v42, %v10234_v20  ;;  %v10525_v25 = vadd.f32 %v4694_v35, %v4594_v32  ;;  %5344 = vmatpush2.bf16.msra.mxu0 %v8048_v14  ;;  %v8065_v20 = vld [vmem:[%s11957_s1 + $0x98c] ss:$16 sps:$4 sm:$0xff]   ;;  %v12200_v32 = vld [vmem:[#allocation34_spill] sm:$0xff]  ;;  %v8066_v42 = vld [vmem:[%s11957_s1 + $0x768] ss:$16 sps:$4 sm:$0xff]  }
 0x1b2   : > { %5445 = vmatpush2.bf16.msra.mxu1 %v8051_v45  ;;  %v4597_v29 = vpop.f32.mrf.mxu0  ;;  %5345 = vmatprep.subr.bf16.mxu0 %v8056_v58 }
 0x1b3   : > { %v4698_v59 = vpop.f32.mrf.mxu1  ;;  %5446 = vmatprep.subr.bf16.mxu1 %v8059_v27  ;;  %v4598_v53 = vadd.f32 %v4597_v29, %v10247_v5  ;;  %v10537_v21 = vadd.f32 %v4696_v40, %v4596_v33  ;;  %v8063_v5 = vld [vmem:[%s11957_s1 + $0x988] ss:$16 sps:$4 sm:$0xff]   ;;  %v8074_v33 = vld [vmem:[%s11957_s1 + $0x74c] ss:$16 sps:$4 sm:$0xff]  }
 0x1b4   : > { %v4601_v1 = vpop.f32.mrf.mxu0  ;;  %5206 = vmatmul.mubr.bf16.gmra.mxu0 %v12195_v18  ;;  %v12199_v27 = vld [vmem:[#allocation11_spill] sm:$0xff]  ;;  %v12204_v18 = vld [vmem:[#allocation36_spill] sm:$0xff] }
 0x1b5   : > { %12194 = vst [vmem:[#allocation2_spill] sm:$0xff] %v10537_v21  ;;  %v4702_v43 = vpop.f32.mrf.mxu1  ;;  %5307 = vmatmul.mubr.bf16.gmra.mxu1 %v12196_v51  ;;  %v4602_v22 = vadd.f32 %v4601_v1, %v10257_v37  ;;  %v10545_v14 = vadd.f32 %v4698_v59, %v4598_v53  ;;  %5346 = vmatpush2.bf16.msra.mxu0 %v8054_v23  ;;  %v8071_v37 = vld [vmem:[%s11957_s1 + $0x96c] ss:$16 sps:$4 sm:$0xff]   ;;  %v12203_v53 = vld [vmem:[#allocation12_spill] sm:$0xff] }
 0x1b6   : > { %5447 = vmatpush2.bf16.msra.mxu1 %v8057_v52  ;;  %v4603_v45 = vpop.f32.mrf.mxu0  ;;  %5347 = vmatprep.subr.bf16.mxu0 %v8062_v16  ;;  %v12231_v21 = vld [vmem:[#allocation31_spill] sm:$0xff] }
 0x1b7   : > { %12197 = vst [vmem:[#allocation16_spill] sm:$0xff] %v10545_v14  ;;  %v4704_v58 = vpop.f32.mrf.mxu1  ;;  %5448 = vmatprep.subr.bf16.mxu1 %v8065_v20  ;;  %v4604_v38 = vadd.f32 %v4603_v45, %v10267_v61  ;;  %v10557_v35 = vadd.f32 %v4702_v43, %v4602_v22  ;;  %5215 = vmatprep.mubr.bf16.mxu0 %v12199_v27  ;;  %v8069_v61 = vld [vmem:[%s11957_s1 + $0x968] ss:$16 sps:$4 sm:$0xff]   ;;  %v8080_v22 = vld [vmem:[%s11957_s1 + $0x72c] ss:$16 sps:$4 sm:$0xff]  }
 0x1b8   : > { %5316 = vmatprep.mubr.bf16.mxu1 %v12200_v32  ;;  %v4605_v60 = vpop.f32.mrf.mxu0  ;;  %v8072_v43 = vld [vmem:[%s11957_s1 + $0x748] ss:$16 sps:$4 sm:$0xff]  }
 0x1b9   : > { %12198 = vst [vmem:[#allocation3_spill] sm:$0xff] %v10557_v35  ;;  %v4706_v30 = vpop.f32.mrf.mxu1  ;;  %v4606_v40 = vadd.f32 %v4605_v60, %v10279_v3  ;;  %v10565_v23 = vadd.f32 %v4704_v58, %v4604_v38  ;;  %5348 = vmatpush2.bf16.msra.mxu0 %v8060_v15  ;;  %v8077_v3 = vld [vmem:[%s11957_s1 + $0x94c] ss:$16 sps:$4 sm:$0xff]   ;;  %v12208_v38 = vld [vmem:[#allocation38_spill] sm:$0xff]  ;;  %v8078_v32 = vld [vmem:[%s11957_s1 + $0x728] ss:$16 sps:$4 sm:$0xff]  }
 0x1ba   : > { %5449 = vmatpush2.bf16.msra.mxu1 %v8063_v5  ;;  %v4607_v52 = vpop.f32.mrf.mxu0  ;;  %5349 = vmatprep.subr.bf16.mxu0 %v8068_v56 }
 0x1bb   : > { %12201 = vst [vmem:[#allocation18_spill] sm:$0xff] %v10565_v23  ;;  %v4708_v16 = vpop.f32.mrf.mxu1  ;;  %5450 = vmatprep.subr.bf16.mxu1 %v8071_v37  ;;  %v4608_v29 = vadd.f32 %v4607_v52, %v10287_v49  ;;  %v10577_v59 = vadd.f32 %v4706_v30, %v4606_v40  ;;  %v8075_v49 = vld [vmem:[%s11957_s1 + $0x948] ss:$16 sps:$4 sm:$0xff]  }
 0x1bc   : > { %v4611_v20 = vpop.f32.mrf.mxu0  ;;  %5216 = vmatmul.mubr.bf16.gmra.mxu0 %v12203_v53  ;;  %v12207_v37 = vld [vmem:[#allocation13_spill] sm:$0xff] }
 0x1bd   : > { %12202 = vst [vmem:[#allocation4_spill] sm:$0xff] %v10577_v59  ;;  %v4712_v1 = vpop.f32.mrf.mxu1  ;;  %5317 = vmatmul.mubr.bf16.gmra.mxu1 %v12204_v18  ;;  %v4612_v51 = vadd.f32 %v4611_v20, %v10299_v62  ;;  %v10585_v15 = vadd.f32 %v4708_v16, %v4608_v29  ;;  %5350 = vmatpush2.bf16.msra.mxu0 %v8066_v42  ;;  %v8083_v62 = vld [vmem:[%s11957_s1 + $0x92c] ss:$16 sps:$4 sm:$0xff]   ;;  %v8084_v52 = vld [vmem:[%s11957_s1 + $0x708] ss:$16 sps:$4 sm:$0xff]  }
 0x1be   : > { %5451 = vmatpush2.bf16.msra.mxu1 %v8069_v61  ;;  %v4613_v5 = vpop.f32.mrf.mxu0  ;;  %5351 = vmatprep.subr.bf16.mxu0 %v8074_v33  ;;  %v8086_v42 = vld [vmem:[%s11957_s1 + $0x70c] ss:$16 sps:$4 sm:$0xff]   ;;  %v8087_v16 = vld [vmem:[%s11957_s1 + $0x908] ss:$16 sps:$4 sm:$0xff]  }
 0x1bf   : > { %12205 = vst [vmem:[#allocation20_spill] sm:$0xff] %v10585_v15  ;;  %v4714_v56 = vpop.f32.mrf.mxu1  ;;  %5452 = vmatprep.subr.bf16.mxu1 %v8077_v3  ;;  %v4614_v45 = vadd.f32 %v4613_v5, %v10306_v31  ;;  %v10597_v58 = vadd.f32 %v4712_v1, %v4612_v51  ;;  %5357 = vmatprep.mubr.bf16.mxu0 %v12207_v37  ;;  %v8081_v31 = vld [vmem:[%s11957_s1 + $0x928] ss:$16 sps:$4 sm:$0xff]   ;;  %v8089_v33 = vld [vmem:[%s11957_s1 + $0x90c] ss:$16 sps:$4 sm:$0xff]  }
 0x1c0   : > { %5458 = vmatprep.mubr.bf16.mxu1 %v12208_v38  ;;  %v4615_v27 = vpop.f32.mrf.mxu0  ;;  %v8092_v3 = vld [vmem:[%s11957_s1 + $0xaec] ss:$16 sps:$4 sm:$0xff]   ;;  %v8090_v20 = vld [vmem:[%s11957_s1 + $0xae8] ss:$16 sps:$4 sm:$0xff]  }
 0x1c1   : > { %12206 = vst [vmem:[#allocation5_spill] sm:$0xff] %v10597_v58  ;;  %v4716_v60 = vpop.f32.mrf.mxu1  ;;  %v10604_v30 = vadd.f32 %v4714_v56, %v4614_v45  ;;  %5352 = vmatpush2.bf16.msra.mxu0 %v8072_v43  ;;  %v8095_v29 = vld [vmem:[%s11957_s1 + $0xcec] ss:$16 sps:$4 sm:$0xff]   ;;  %v8093_v53 = vld [vmem:[%s11957_s1 + $0xce8] ss:$16 sps:$4 sm:$0xff]  }
 0x1c2   : > { %5453 = vmatpush2.bf16.msra.mxu1 %v8075_v49  ;;  %5353 = vmatprep.subr.bf16.mxu0 %v8080_v22  ;;  %v4616_v40 = vpop.f32.mrf.mxu0  ;;  %v8098_v1 = vld [vmem:[%s11957_s1 + $0xacc] ss:$16 sps:$4 sm:$0xff]   ;;  %v12210_v49 = vld [vmem:[#allocation14_spill] sm:$0xff]  ;;  %v12211_v22 = vld [vmem:[#allocation40_spill] sm:$0xff] }
 0x1c3   : > { %12209 = vst [vmem:[#allocation22_spill] sm:$0xff] %v10604_v30  ;;  %5454 = vmatprep.subr.bf16.mxu1 %v8083_v62  ;;  %v4717_v61 = vpop.f32.mrf.mxu1  ;;  %v8101_v18 = vld [vmem:[%s11957_s1 + $0xccc] ss:$16 sps:$4 sm:$0xff]   ;;  %v8096_v5 = vld [vmem:[%s11957_s1 + $0xac8] ss:$16 sps:$4 sm:$0xff]  }
 0x1c4   : > { %v8099_v56 = vld [vmem:[%s11957_s1 + $0xcc8] ss:$16 sps:$4 sm:$0xff]   ;;  %v8104_v62 = vld [vmem:[%s11957_s1 + $0xaac] ss:$16 sps:$4 sm:$0xff]  }
 0x1c5   : > { %5354 = vmatpush2.bf16.msra.mxu0 %v8078_v32  ;;  %v8107_v38 = vld [vmem:[%s11957_s1 + $0xcac] ss:$16 sps:$4 sm:$0xff]   ;;  %v12213_v32 = vld [vmem:[#allocation42_spill] sm:$0xff]  ;;  %v8105_v40 = vld [vmem:[%s11957_s1 + $0xca8] ss:$16 sps:$4 sm:$0xff]  }
 0x1c6   : > { %5455 = vmatpush2.bf16.msra.mxu1 %v8081_v31  ;;  %5355 = vmatprep.subr.bf16.mxu0 %v8086_v42  ;;  %v12212_v27 = vld [vmem:[#allocation15_spill] sm:$0xff] }
 0x1c7   : > { %5456 = vmatprep.subr.bf16.mxu1 %v8089_v33  ;;  %v8102_v42 = vld [vmem:[%s11957_s1 + $0xaa8] ss:$16 sps:$4 sm:$0xff]   ;;  %v8110_v61 = vld [vmem:[%s11957_s1 + $0xa8c] ss:$16 sps:$4 sm:$0xff]  }
 0x1c8   : > { %v8144_v15 = vld [vmem:[%s11957_s1 + $0xbc8] ss:$16 sps:$4 sm:$0xff]  }
 0x1c9   : > { %5356 = vmatpush2.bf16.msra.mxu0 %v8084_v52  ;;  %v8147_v59 = vld [vmem:[%s11957_s1 + $0xdc8] ss:$16 sps:$4 sm:$0xff]  }
 0x1ca   : > { %5457 = vmatpush2.bf16.msra.mxu1 %v8087_v16  ;;  %5527 = vmatprep.subr.bf16.mxu0 %v8092_v3  ;;  %v8113_v16 = vld [vmem:[%s11957_s1 + $0xc8c] ss:$16 sps:$4 sm:$0xff]  }
 0x1cb   : > { %5628 = vmatprep.subr.bf16.mxu1 %v8095_v29  ;;  %v12214_v29 = vld [vmem:[#allocation17_spill] sm:$0xff] }
 0x1cc   : > { %v10639_v43 = vpop.f32.mrf.mxu0  ;;  %5358 = vmatmul.mubr.bf16.vlgmr.msra.gmra.mxu0 %v12210_v49  ;;  %v8116_v49 = vld [vmem:[%s11957_s1 + $0xa6c] ss:$16 sps:$4 sm:$0xff]  }
 0x1cd   : > { %v10641_v51 = vpop.f32.mrf.mxu1  ;;  %5459 = vmatmul.mubr.bf16.vlgmr.msra.gmra.mxu1 %v12211_v22  ;;  %5528 = vmatpush1.bf16.msra.mxu0 %v8090_v20 }
 0x1ce   : > { %5629 = vmatpush1.bf16.msra.mxu1 %v8093_v53  ;;  %v10654_v45 = vpop.f32.mrf.mxu0  ;;  %5529 = vmatprep.subr.bf16.mxu0 %v8098_v1  ;;  %v12215_v53 = vld [vmem:[#allocation44_spill] sm:$0xff]  ;;  %v8108_v1 = vld [vmem:[%s11957_s1 + $0xa88] ss:$16 sps:$4 sm:$0xff]  }
 0x1cf   : > { %v10656_v37 = vpop.f32.mrf.mxu1  ;;  %5630 = vmatprep.subr.bf16.mxu1 %v8101_v18  ;;  %5367 = vmatprep.mubr.bf16.mxu0 %v12212_v27  ;;  %v8111_v18 = vld [vmem:[%s11957_s1 + $0xc88] ss:$16 sps:$4 sm:$0xff]  }
 0x1d0   : > { %5468 = vmatprep.mubr.bf16.mxu1 %v12213_v32  ;;  %v10663_v60 = vpop.f32.mrf.mxu0  ;;  %v8117_v27 = vld [vmem:[%s11957_s1 + $0xc68] ss:$16 sps:$4 sm:$0xff]   ;;  %v12217_v32 = vld [vmem:[#allocation46_spill] sm:$0xff] }
 0x1d1   : > { %v10665_v31 = vpop.f32.mrf.mxu1  ;;  %5530 = vmatpush1.bf16.msra.mxu0 %v8096_v5 }
 0x1d2   : > { %5631 = vmatpush1.bf16.msra.mxu1 %v8099_v56  ;;  %v10676_v33 = vpop.f32.mrf.mxu0  ;;  %5531 = vmatprep.subr.bf16.mxu0 %v8104_v62  ;;  %v8119_v56 = vld [vmem:[%s11957_s1 + $0xc6c] ss:$16 sps:$4 sm:$0xff]  }
 0x1d3   : > { %v10678_v52 = vpop.f32.mrf.mxu1  ;;  %5632 = vmatprep.subr.bf16.mxu1 %v8107_v38  ;;  %v12216_v62 = vld [vmem:[#allocation19_spill] sm:$0xff] }
 0x1d4   : > { %v10683_v3 = vpop.f32.mrf.mxu0  ;;  %5368 = vmatmul.mubr.bf16.gmra.mxu0 %v12214_v29  ;;  %v8114_v38 = vld [vmem:[%s11957_s1 + $0xa68] ss:$16 sps:$4 sm:$0xff]  }
 0x1d5   : > { %v10686_v20 = vpop.f32.mrf.mxu1  ;;  %5469 = vmatmul.mubr.bf16.gmra.mxu1 %v12215_v53  ;;  %5532 = vmatpush1.bf16.msra.mxu0 %v8102_v42 }
 0x1d6   : > { %5633 = vmatpush1.bf16.msra.mxu1 %v8105_v40  ;;  %v10698_v22 = vpop.f32.mrf.mxu0  ;;  %5533 = vmatprep.subr.bf16.mxu0 %v8110_v61  ;;  %v8122_v61 = vld [vmem:[%s11957_s1 + $0xa4c] ss:$16 sps:$4 sm:$0xff]  }
 0x1d7   : > { %v10700_v5 = vpop.f32.mrf.mxu1  ;;  %5634 = vmatprep.subr.bf16.mxu1 %v8113_v16  ;;  %5377 = vmatprep.mubr.bf16.mxu0 %v12216_v62  ;;  %v8125_v16 = vld [vmem:[%s11957_s1 + $0xc4c] ss:$16 sps:$4 sm:$0xff]   ;;  %v8120_v62 = vld [vmem:[%s11957_s1 + $0xa48] ss:$16 sps:$4 sm:$0xff]  }
 0x1d8   : > { %5478 = vmatprep.mubr.bf16.mxu1 %v12217_v32  ;;  %v10713_v42 = vpop.f32.mrf.mxu0  ;;  %v8123_v32 = vld [vmem:[%s11957_s1 + $0xc48] ss:$16 sps:$4 sm:$0xff]  }
 0x1d9   : > { %v10715_v40 = vpop.f32.mrf.mxu1  ;;  %5534 = vmatpush1.bf16.msra.mxu0 %v8108_v1 }
 0x1da   : > { %5635 = vmatpush1.bf16.msra.mxu1 %v8111_v18  ;;  %v10723_v29 = vpop.f32.mrf.mxu0  ;;  %5535 = vmatprep.subr.bf16.mxu0 %v8116_v49  ;;  %v12219_v18 = vld [vmem:[#allocation48_spill] sm:$0xff]  ;;  %v8128_v49 = vld [vmem:[%s11957_s1 + $0xa2c] ss:$16 sps:$4 sm:$0xff]  }
 0x1db   : > { %v10725_v53 = vpop.f32.mrf.mxu1  ;;  %5636 = vmatprep.subr.bf16.mxu1 %v8119_v56  ;;  %v8131_v56 = vld [vmem:[%s11957_s1 + $0xc2c] ss:$16 sps:$4 sm:$0xff]  }
 0x1dc   : > { %v10733_v46 = vpop.f32.mrf.mxu0  ;;  %5378 = vmatmul.mubr.bf16.gmra.mxu0 %v12218_v13  ;;  %v12220_v13 = vld [vmem:[#allocation23_spill] sm:$0xff] }
 0x1dd   : > { %v10736_v1 = vpop.f32.mrf.mxu1  ;;  %5479 = vmatmul.mubr.bf16.gmra.mxu1 %v12219_v18  ;;  %5536 = vmatpush1.bf16.msra.mxu0 %v8114_v38  ;;  %v8126_v18 = vld [vmem:[%s11957_s1 + $0xa28] ss:$16 sps:$4 sm:$0xff]  }
 0x1de   : > { %5637 = vmatpush1.bf16.msra.mxu1 %v8117_v27  ;;  %v10745_v47 = vpop.f32.mrf.mxu0  ;;  %5537 = vmatprep.subr.bf16.mxu0 %v8122_v61  ;;  %v8134_v61 = vld [vmem:[%s11957_s1 + $0xa0c] ss:$16 sps:$4 sm:$0xff]  }
 0x1df   : > { %v10747_v55 = vpop.f32.mrf.mxu1  ;;  %5638 = vmatprep.subr.bf16.mxu1 %v8125_v16  ;;  %5387 = vmatprep.mubr.bf16.mxu0 %v12220_v13 }
 0x1e0   : > { %5488 = vmatprep.mubr.bf16.mxu1 %v12221_v11  ;;  %v10757_v38 = vpop.f32.mrf.mxu0  ;;  %v8137_v11 = vld [vmem:[%s11957_s1 + $0xc0c] ss:$16 sps:$4 sm:$0xff]  }
 0x1e1   : > { %v10759_v27 = vpop.f32.mrf.mxu1  ;;  %5538 = vmatpush1.bf16.msra.mxu0 %v8120_v62 }
 0x1e2   : > { %5639 = vmatpush1.bf16.msra.mxu1 %v8123_v32  ;;  %v10764_v16 = vpop.f32.mrf.mxu0  ;;  %5539 = vmatprep.subr.bf16.mxu0 %v8128_v49  ;;  %v12222_v32 = vld [vmem:[#allocation25_spill] sm:$0xff]  ;;  %v12223_v49 = vld [vmem:[#allocation52_spill] sm:$0xff] }
 0x1e3   : > { %v10766_v13 = vpop.f32.mrf.mxu1  ;;  %5640 = vmatprep.subr.bf16.mxu1 %v8131_v56  ;;  %v8140_v56 = vld [vmem:[%s11957_s1 + $0xbec] ss:$16 sps:$4 sm:$0xff]  }
 0x1e4   : > { %v10777_v62 = vpop.f32.mrf.mxu0  ;;  %5388 = vmatmul.mubr.bf16.gmra.mxu0 %v12222_v32  ;;  %v8143_v32 = vld [vmem:[%s11957_s1 + $0xdec] ss:$16 sps:$4 sm:$0xff]  }
 0x1e5   : > { %v10780_v24 = vpop.f32.mrf.mxu1  ;;  %5489 = vmatmul.mubr.bf16.gmra.mxu1 %v12223_v49  ;;  %5540 = vmatpush1.bf16.msra.mxu0 %v8126_v18  ;;  %v8138_v49 = vld [vmem:[%s11957_s1 + $0xbe8] ss:$16 sps:$4 sm:$0xff]   ;;  %v12225_v18 = vld [vmem:[#allocation54_spill] sm:$0xff] }
 0x1e6   : > { %5641 = vmatpush1.bf16.msra.mxu1 %v8129_v2  ;;  %v10786_v8 = vpop.f32.mrf.mxu0  ;;  %5541 = vmatprep.subr.bf16.mxu0 %v8134_v61  ;;  %v8141_v2 = vld [vmem:[%s11957_s1 + $0xde8] ss:$16 sps:$4 sm:$0xff]  }
 0x1e7   : > { %v10788_v4 = vpop.f32.mrf.mxu1  ;;  %5642 = vmatprep.subr.bf16.mxu1 %v8137_v11  ;;  %5397 = vmatprep.mubr.bf16.mxu0 %v12224_v17  ;;  %v8146_v11 = vld [vmem:[%s11957_s1 + $0xbcc] ss:$16 sps:$4 sm:$0xff]  }
 0x1e8   : > { %5498 = vmatprep.mubr.bf16.mxu1 %v12225_v18  ;;  %v10801_v30 = vpop.f32.mrf.mxu0  ;;  %v8149_v18 = vld [vmem:[%s11957_s1 + $0xdcc] ss:$16 sps:$4 sm:$0xff]  }
 0x1e9   : > { %v10803_v61 = vpop.f32.mrf.mxu1  ;;  %5542 = vmatpush1.bf16.msra.mxu0 %v8132_v44 }
 0x1ea   : > { %5643 = vmatpush1.bf16.msra.mxu1 %v8135_v0  ;;  %v10808_v17 = vpop.f32.mrf.mxu0  ;;  %5543 = vmatprep.subr.bf16.mxu0 %v8140_v56  ;;  %v12227_v0 = vld [vmem:[#allocation29_spill] sm:$0xff]  ;;  %v12229_v56 = vld [vmem:[#allocation56_spill] sm:$0xff] }
 0x1eb   : > { %v10810_v58 = vpop.f32.mrf.mxu1  ;;  %5644 = vmatprep.subr.bf16.mxu1 %v8143_v32  ;;  %v8152_v32 = vld [vmem:[%s11957_s1 + $0xbac] ss:$16 sps:$4 sm:$0xff]  }
 0x1ec   : > { %12226 = vst [vmem:[#allocation6_spill] sm:$0xff] %v10810_v58  ;;  %v10821_v44 = vpop.f32.mrf.mxu0  ;;  %5398 = vmatmul.mubr.bf16.gmra.mxu0 %v12227_v0  ;;  %v8155_v0 = vld [vmem:[%s11957_s1 + $0xdac] ss:$16 sps:$4 sm:$0xff]  }
 0x1ed   : > { %v10824_v23 = vpop.f32.mrf.mxu1  ;;  %5499 = vmatmul.mubr.bf16.gmra.mxu1 %v12229_v56  ;;  %5544 = vmatpush2.bf16.msra.mxu0 %v8138_v49  ;;  %v8150_v49 = vld [vmem:[%s11957_s1 + $0xba8] ss:$16 sps:$4 sm:$0xff]  }
 0x1ee   : > { %12228 = vst [vmem:[#allocation24_spill] sm:$0xff] %v10824_v23  ;;  %5645 = vmatpush2.bf16.msra.mxu1 %v8141_v2  ;;  %v10830_v35 = vpop.f32.mrf.mxu0  ;;  %5545 = vmatprep.subr.bf16.mxu0 %v8146_v11  ;;  %v12232_v23 = vld [vmem:[#allocation58_spill] sm:$0xff]  ;;  %v8153_v2 = vld [vmem:[%s11957_s1 + $0xda8] ss:$16 sps:$4 sm:$0xff]  }
 0x1ef   : > { %v10832_v14 = vpop.f32.mrf.mxu1  ;;  %5646 = vmatprep.subr.bf16.mxu1 %v8149_v18  ;;  %5407 = vmatprep.mubr.bf16.mxu0 %v12231_v21  ;;  %v8158_v21 = vld [vmem:[%s11957_s1 + $0xb8c] ss:$16 sps:$4 sm:$0xff]  }
 0x1f0   : > { %12230 = vst [vmem:[#allocation7_spill] sm:$0xff] %v10832_v14  ;;  %5508 = vmatprep.mubr.bf16.mxu1 %v12232_v23  ;;  %v10839_v56 = vpop.f32.mrf.mxu0  ;;  %v8161_v23 = vld [vmem:[%s11957_s1 + $0xd8c] ss:$16 sps:$4 sm:$0xff]   ;;  %v12239_v14 = vld [vmem:[#allocation60_spill] sm:$0xff] }
 0x1f1   : > { %v10841_v58 = vpop.f32.mrf.mxu1  ;;  %5546 = vmatpush2.bf16.msra.mxu0 %v8144_v15  ;;  %v12237_v15 = vld [vmem:[#allocation33_spill] sm:$0xff] }
 0x1f2   : > { %12233 = vst [vmem:[#allocation26_spill] sm:$0xff] %v10841_v58  ;;  %5647 = vmatpush2.bf16.msra.mxu1 %v8147_v59  ;;  %v10849_v11 = vpop.f32.mrf.mxu0  ;;  %5547 = vmatprep.subr.bf16.mxu0 %v8152_v32  ;;  %v8156_v32 = vld [vmem:[%s11957_s1 + $0xb88] ss:$16 sps:$4 sm:$0xff]  }
 0x1f3   : > { %12234 = vst [vmem:[#allocation8_spill] sm:$0xff] %v10849_v11  ;;  %v10851_v18 = vpop.f32.mrf.mxu1  ;;  %5648 = vmatprep.subr.bf16.mxu1 %v8155_v0  ;;  %v8159_v0 = vld [vmem:[%s11957_s1 + $0xd88] ss:$16 sps:$4 sm:$0xff]  }
 0x1f4   : > { %12235 = vst [vmem:[#allocation28_spill] sm:$0xff] %v10851_v18  ;;  %v10859_v59 = vpop.f32.mrf.mxu0  ;;  %5408 = vmatmul.mubr.bf16.gmra.mxu0 %v12237_v15  ;;  %v12243_v15 = vld [vmem:[#allocation62_spill] sm:$0xff] }
 0x1f5   : > { %12236 = vst [vmem:[#allocation9_spill] sm:$0xff] %v10859_v59  ;;  %v10862_v58 = vpop.f32.mrf.mxu1  ;;  %5509 = vmatmul.mubr.bf16.gmra.mxu1 %v12239_v14  ;;  %5548 = vmatpush2.bf16.msra.mxu0 %v8150_v49  ;;  %v8164_v14 = vld [vmem:[%s11957_s1 + $0xb6c] ss:$16 sps:$4 sm:$0xff]  }
 0x1f6   : > { %12238 = vst [vmem:[#allocation30_spill] sm:$0xff] %v10862_v58  ;;  %5649 = vmatpush2.bf16.msra.mxu1 %v8153_v2  ;;  %v10871_v18 = vpop.f32.mrf.mxu0  ;;  %5549 = vmatprep.subr.bf16.mxu0 %v8158_v21  ;;  %v8167_v49 = vld [vmem:[%s11957_s1 + $0xd6c] ss:$16 sps:$4 sm:$0xff]   ;;  %v8162_v21 = vld [vmem:[%s11957_s1 + $0xb68] ss:$16 sps:$4 sm:$0xff]  }
 0x1f7   : > { %12240 = vst [vmem:[#allocation10_spill] sm:$0xff] %v10871_v18  ;;  %v10873_v11 = vpop.f32.mrf.mxu1  ;;  %5650 = vmatprep.subr.bf16.mxu1 %v8161_v23  ;;  %v12242_v2 = vld [vmem:[#allocation35_spill] sm:$0xff]  ;;  %5518 = vmatprep.mubr.bf16.mxu1 %v12243_v15  ;;  %v12249_v15 = vld [vmem:[#allocation37_spill] sm:$0xff] }
 0x1f8   : > { %12241 = vst [vmem:[#allocation32_spill] sm:$0xff] %v10873_v11  ;;  %5417 = vmatprep.mubr.bf16.mxu0 %v12242_v2  ;;  %v10883_v58 = vpop.f32.mrf.mxu0  ;;  %v8165_v23 = vld [vmem:[%s11957_s1 + $0xd68] ss:$16 sps:$4 sm:$0xff]   ;;  %v8170_v2 = vld [vmem:[%s11957_s1 + $0xb4c] ss:$16 sps:$4 sm:$0xff]  }
 0x1f9   : > { %12244 = vst [vmem:[#allocation11_spill] sm:$0xff] %v10883_v58  ;;  %v10885_v59 = vpop.f32.mrf.mxu1  ;;  %5550 = vmatpush2.bf16.msra.mxu0 %v8156_v32  ;;  %v8173_v32 = vld [vmem:[%s11957_s1 + $0xd4c] ss:$16 sps:$4 sm:$0xff]   ;;  %v12251_v58 = vld [vmem:[#allocation64_spill] sm:$0xff] }
 0x1fa   : > { %12245 = vst [vmem:[#allocation34_spill] sm:$0xff] %v10885_v59  ;;  %5651 = vmatpush2.bf16.msra.mxu1 %v8159_v0  ;;  %v10893_v11 = vpop.f32.mrf.mxu0  ;;  %5551 = vmatprep.subr.bf16.mxu0 %v8164_v14  ;;  %v8168_v14 = vld [vmem:[%s11957_s1 + $0xb48] ss:$16 sps:$4 sm:$0xff]  }
 0x1fb   : > { %12246 = vst [vmem:[#allocation12_spill] sm:$0xff] %v10893_v11  ;;  %v10895_v18 = vpop.f32.mrf.mxu1  ;;  %5652 = vmatprep.subr.bf16.mxu1 %v8167_v49  ;;  %v8171_v49 = vld [vmem:[%s11957_s1 + $0xd48] ss:$16 sps:$4 sm:$0xff]  }
 0x1fc   : > { %12247 = vst [vmem:[#allocation36_spill] sm:$0xff] %v10895_v18  ;;  %v10903_v0 = vpop.f32.mrf.mxu0  ;;  %5418 = vmatmul.mubr.bf16.gmra.mxu0 %v12249_v15  ;;  %v12255_v15 = vld [vmem:[#allocation66_spill] sm:$0xff] }
 0x1fd   : > { %12248 = vst [vmem:[#allocation13_spill] sm:$0xff] %v10903_v0  ;;  %v10906_v59 = vpop.f32.mrf.mxu1  ;;  %5519 = vmatmul.mubr.bf16.gmra.mxu1 %v12251_v58  ;;  %5552 = vmatpush2.bf16.msra.mxu0 %v8162_v21  ;;  %v8176_v58 = vld [vmem:[%s11957_s1 + $0xb2c] ss:$16 sps:$4 sm:$0xff]  }
 0x1fe   : > { %12250 = vst [vmem:[#allocation38_spill] sm:$0xff] %v10906_v59  ;;  %5653 = vmatpush2.bf16.msra.mxu1 %v8165_v23  ;;  %v10915_v18 = vpop.f32.mrf.mxu0  ;;  %5553 = vmatprep.subr.bf16.mxu0 %v8170_v2  ;;  %v8179_v21 = vld [vmem:[%s11957_s1 + $0xd2c] ss:$16 sps:$4 sm:$0xff]   ;;  %v8174_v2 = vld [vmem:[%s11957_s1 + $0xb28] ss:$16 sps:$4 sm:$0xff]  }
 0x1ff   : > { %12252 = vst [vmem:[#allocation14_spill] sm:$0xff] %v10915_v18  ;;  %v10917_v11 = vpop.f32.mrf.mxu1  ;;  %5654 = vmatprep.subr.bf16.mxu1 %v8173_v32  ;;  %v12254_v23 = vld [vmem:[#allocation39_spill] sm:$0xff]  ;;  %5660 = vmatprep.mubr.bf16.mxu1 %v12255_v15 }
 0x200   : > { %12253 = vst [vmem:[#allocation40_spill] sm:$0xff] %v10917_v11  ;;  %5559 = vmatprep.mubr.bf16.mxu0 %v12254_v23  ;;  %v4817_v59 = vpop.f32.mrf.mxu0  ;;  %v8177_v32 = vld [vmem:[%s11957_s1 + $0xd28] ss:$16 sps:$4 sm:$0xff]   ;;  %v8182_v23 = vld [vmem:[%s11957_s1 + $0xb0c] ss:$16 sps:$4 sm:$0xff]  }
 0x201   : > { %v4918_v0 = vpop.f32.mrf.mxu1  ;;  %5554 = vmatpush2.bf16.msra.mxu0 %v8168_v14  ;;  %v8185_v59 = vld [vmem:[%s11957_s1 + $0xd0c] ss:$16 sps:$4 sm:$0xff]   ;;  %v8183_v14 = vld [vmem:[%s11957_s1 + $0xd08] ss:$16 sps:$4 sm:$0xff]  }
 0x202   : > { %5655 = vmatpush2.bf16.msra.mxu1 %v8171_v49  ;;  %5555 = vmatprep.subr.bf16.mxu0 %v8176_v58  ;;  %v4818_v11 = vpop.f32.mrf.mxu0  ;;  %v8180_v0 = vld [vmem:[%s11957_s1 + $0xb08] ss:$16 sps:$4 sm:$0xff]   ;;  %v4754_v49 = vadd.f32 %v10639_v43, %v10356_v48  ;;  %v4756_v58 = vadd.f32 %v10654_v45, %v10364_v34  ;;  %v8197_v48 = vld [vmem:[%s11957_s1 + $0x10cc] ss:$16 sps:$4 sm:$0xff]   ;;  %v4758_v43 = vadd.f32 %v10663_v60, %v10376_v9 }
 0x203   : > { %5656 = vmatprep.subr.bf16.mxu1 %v8179_v21  ;;  %v4919_v18 = vpop.f32.mrf.mxu1  ;;  %v8188_v11 = vld [vmem:[%s11957_s1 + $0xeec] ss:$16 sps:$4 sm:$0xff]   ;;  %v8186_v21 = vld [vmem:[%s11957_s1 + $0xee8] ss:$16 sps:$4 sm:$0xff]  }
 0x204   : > { %v8191_v18 = vld [vmem:[%s11957_s1 + $0x10ec] ss:$16 sps:$4 sm:$0xff]   ;;  %v8189_v15 = vld [vmem:[%s11957_s1 + $0x10e8] ss:$16 sps:$4 sm:$0xff]   ;;  %v4855_v34 = vadd.f32 %v10641_v51, %v4754_v49  ;;  %v4764_v49 = vadd.f32 %v10683_v3, %v10397_v6 }
 0x205   : > { %5556 = vmatpush2.bf16.msra.mxu0 %v8174_v2  ;;  %v8194_v2 = vld [vmem:[%s11957_s1 + $0xecc] ss:$16 sps:$4 sm:$0xff]   ;;  %v8192_v9 = vld [vmem:[%s11957_s1 + $0xec8] ss:$16 sps:$4 sm:$0xff]  }
 0x206   : > { %5657 = vmatpush2.bf16.msra.mxu1 %v8177_v32  ;;  %5557 = vmatprep.subr.bf16.mxu0 %v8182_v23  ;;  %v12256_v23 = vld [vmem:[#allocation41_spill] sm:$0xff] }
 0x207   : > { %5658 = vmatprep.subr.bf16.mxu1 %v8185_v59  ;;  %v12257_v59 = vld [vmem:[#allocation69_spill] sm:$0xff] }
 0x208   : > { %v8195_v51 = vld [vmem:[%s11957_s1 + $0x10c8] ss:$16 sps:$4 sm:$0xff]  }
 0x209   : > { %5558 = vmatpush2.bf16.msra.mxu0 %v8180_v0  ;;  %v4857_v0 = vadd.f32 %v10656_v37, %v4756_v58  ;;  %v8198_v6 = vld [vmem:[%s11957_s1 + $0xea8] ss:$16 sps:$4 sm:$0xff]  }
 0x20a   : > { %5659 = vmatpush2.bf16.msra.mxu1 %v8183_v14  ;;  %5729 = vmatprep.subr.bf16.mxu0 %v8188_v11  ;;  %v4760_v14 = vadd.f32 %v10676_v33, %v10384_v39  ;;  %v8200_v39 = vld [vmem:[%s11957_s1 + $0xeac] ss:$16 sps:$4 sm:$0xff]   ;;  %v8201_v3 = vld [vmem:[%s11957_s1 + $0x10a8] ss:$16 sps:$4 sm:$0xff]  }
 0x20b   : > { %5830 = vmatprep.subr.bf16.mxu1 %v8191_v18  ;;  %v8203_v33 = vld [vmem:[%s11957_s1 + $0x10ac] ss:$16 sps:$4 sm:$0xff]   ;;  %v4859_v18 = vadd.f32 %v10665_v31, %v4758_v43 }
 0x20c   : > { %v4955_v45 = vpop.f32.mrf.mxu0  ;;  %5560 = vmatmul.mubr.bf16.vlgmr.msra.gmra.mxu0 %v12256_v23  ;;  %v4766_v23 = vadd.f32 %v10698_v22, %v10405_v54  ;;  %v8206_v54 = vld [vmem:[%s11957_s1 + $0xe8c] ss:$16 sps:$4 sm:$0xff]   ;;  %v4865_v22 = vadd.f32 %v10686_v20, %v4764_v49 }
 0x20d   : > { %v10971_v32 = vpop.f32.mrf.mxu1  ;;  %5661 = vmatmul.mubr.bf16.vlgmr.msra.gmra.mxu1 %v12257_v59  ;;  %v4956_v11 = vadd.f32 %v4955_v45, %v4855_v34  ;;  %5730 = vmatpush1.bf16.msra.mxu0 %v8186_v21  ;;  %v12259_v34 = vld [vmem:[#allocation71_spill] sm:$0xff]  ;;  %v4861_v45 = vadd.f32 %v10678_v52, %v4760_v14  ;;  %v4768_v14 = vadd.f32 %v10713_v42, %v10417_v10 }
 0x20e   : > { %5831 = vmatpush1.bf16.msra.mxu1 %v8189_v15  ;;  %v4957_v37 = vpop.f32.mrf.mxu0  ;;  %5731 = vmatprep.subr.bf16.mxu0 %v8194_v2  ;;  %v12258_v15 = vld [vmem:[#allocation43_spill] sm:$0xff] }
 0x20f   : > { %v10989_v60 = vpop.f32.mrf.mxu1  ;;  %5832 = vmatprep.subr.bf16.mxu1 %v8197_v48  ;;  %v5931_v58 = vmax.f32 %v4956_v11, 0.0  ;;  %v4958_v21 = vadd.f32 %v4957_v37, %v4857_v0  ;;  %5569 = vmatprep.mubr.bf16.mxu0 %v12258_v15  ;;  %v8209_v52 = vld [vmem:[%s11957_s1 + $0x108c] ss:$16 sps:$4 sm:$0xff]   ;;  %v8204_v10 = vld [vmem:[%s11957_s1 + $0xe88] ss:$16 sps:$4 sm:$0xff]   ;;  %v4869_v15 = vadd.f32 %v10715_v40, %v4768_v14  ;;  %v4778_v14 = vadd.f32 %v10757_v38, %v10457_v26 }
 0x210   : > { %5670 = vmatprep.mubr.bf16.mxu1 %v12259_v34  ;;  %v4959_v2 = vpop.f32.mrf.mxu0  ;;  %v12260_v37 = vld [vmem:[#allocation45_spill] sm:$0xff]  ;;  %v4774_v34 = vadd.f32 %v10733_v46, %v10437_v57 }
 0x211   : > { %v11002_v48 = vpop.f32.mrf.mxu1  ;;  %5983 = vst [vmem:[%s10987_s24] sm:$0xff] %v5931_v58  ;;  %v5932_v31 = vmax.f32 %v4958_v21, 0.0  ;;  %v4960_v43 = vadd.f32 %v4959_v2, %v4859_v18  ;;  %5732 = vmatpush1.bf16.msra.mxu0 %v8192_v9  ;;  %v4867_v18 = vadd.f32 %v10700_v5, %v4766_v23  ;;  %v4770_v58 = vadd.f32 %v10723_v29, %v10425_v12  ;;  %v8207_v42 = vld [vmem:[%s11957_s1 + $0x1088] ss:$16 sps:$4 sm:$0xff]   ;;  %v8212_v12 = vld [vmem:[%s11957_s1 + $0xe6c] ss:$16 sps:$4 sm:$0xff]  }
 0x212   : > { %5833 = vmatpush1.bf16.msra.mxu1 %v8195_v51  ;;  %v4961_v59 = vpop.f32.mrf.mxu0  ;;  %5733 = vmatprep.subr.bf16.mxu0 %v8200_v39  ;;  %v12261_v39 = vld [vmem:[#allocation73_spill] sm:$0xff]  ;;  %v12262_v23 = vld [vmem:[#allocation47_spill] sm:$0xff] }
 0x213   : > { %v11014_v0 = vpop.f32.mrf.mxu1  ;;  %5834 = vmatprep.subr.bf16.mxu1 %v8203_v33  ;;  %5984 = vst [vmem:[%s10987_s24 + $0x8] sm:$0xff] %v5932_v31  ;;  %v5935_v11 = vmax.f32 %v4960_v43, 0.0  ;;  %v4962_v9 = vadd.f32 %v4961_v59, %v4861_v45  ;;  %v8215_v29 = vld [vmem:[%s11957_s1 + $0x106c] ss:$16 sps:$4 sm:$0xff]   ;;  %v4776_v59 = vadd.f32 %v10745_v47, %v10445_v50  ;;  %v8210_v46 = vld [vmem:[%s11957_s1 + $0xe68] ss:$16 sps:$4 sm:$0xff]  }
 0x214   : > { %v4965_v51 = vpop.f32.mrf.mxu0  ;;  %5570 = vmatmul.mubr.bf16.gmra.mxu0 %v12260_v37  ;;  %v12263_v31 = vld [vmem:[#allocation75_spill] sm:$0xff]  ;;  %v12264_v37 = vld [vmem:[#allocation49_spill] sm:$0xff] }
 0x215   : > { %5671 = vmatmul.mubr.bf16.gmra.mxu1 %v12261_v39  ;;  %v11028_v33 = vpop.f32.mrf.mxu1  ;;  %5987 = vst [vmem:[%s10987_s24 + $0x20] sm:$0xff] %v5935_v11  ;;  %v5936_v20 = vmax.f32 %v4962_v9, 0.0  ;;  %v4966_v49 = vadd.f32 %v4965_v51, %v4865_v22  ;;  %5734 = vmatpush1.bf16.msra.mxu0 %v8198_v6  ;;  %v8213_v57 = vld [vmem:[%s11957_s1 + $0x1068] ss:$16 sps:$4 sm:$0xff]   ;;  %v8218_v47 = vld [vmem:[%s11957_s1 + $0xe4c] ss:$16 sps:$4 sm:$0xff]   ;;  %v4875_v22 = vadd.f32 %v10736_v1, %v4774_v34 }
 0x216   : > { %5835 = vmatpush1.bf16.msra.mxu1 %v8201_v3  ;;  %v4967_v21 = vpop.f32.mrf.mxu0  ;;  %5735 = vmatprep.subr.bf16.mxu0 %v8206_v54  ;;  %v4871_v3 = vadd.f32 %v10725_v53, %v4770_v58  ;;  %v8221_v50 = vld [vmem:[%s11957_s1 + $0x104c] ss:$16 sps:$4 sm:$0xff]   ;;  %v4877_v58 = vadd.f32 %v10747_v55, %v4776_v59  ;;  %v8216_v38 = vld [vmem:[%s11957_s1 + $0xe48] ss:$16 sps:$4 sm:$0xff]  }
 0x217   : > { %5836 = vmatprep.subr.bf16.mxu1 %v8209_v52  ;;  %v11040_v5 = vpop.f32.mrf.mxu1  ;;  %5988 = vst [vmem:[%s10987_s24 + $0x28] sm:$0xff] %v5936_v20  ;;  %v5939_v2 = vmax.f32 %v4966_v49, 0.0  ;;  %v4968_v45 = vadd.f32 %v4967_v21, %v4867_v18  ;;  %5579 = vmatprep.mubr.bf16.mxu0 %v12262_v23  ;;  %v12265_v39 = vld [vmem:[#allocation77_spill] sm:$0xff]  ;;  %v4780_v20 = vadd.f32 %v10764_v16, %v10465_v63  ;;  %v12267_v34 = vld [vmem:[#allocation79_spill] sm:$0xff] }
 0x218   : > { %5680 = vmatprep.mubr.bf16.mxu1 %v12263_v31  ;;  %v4969_v43 = vpop.f32.mrf.mxu0  ;;  %v8219_v49 = vld [vmem:[%s11957_s1 + $0x1048] ss:$16 sps:$4 sm:$0xff]   ;;  %v8224_v63 = vld [vmem:[%s11957_s1 + $0xe2c] ss:$16 sps:$4 sm:$0xff]   ;;  %v4784_v21 = vadd.f32 %v10777_v62, %v10477_v41 }
 0x219   : > { %v11054_v6 = vpop.f32.mrf.mxu1  ;;  %5991 = vst [vmem:[%s10987_s24 + $0x40] sm:$0xff] %v5939_v2  ;;  %v5940_v40 = vmax.f32 %v4968_v45, 0.0  ;;  %v4970_v54 = vadd.f32 %v4969_v43, %v4869_v15  ;;  %5736 = vmatpush1.bf16.msra.mxu0 %v8204_v10  ;;  %v8227_v16 = vld [vmem:[%s11957_s1 + $0x102c] ss:$16 sps:$4 sm:$0xff]   ;;  %v4881_v23 = vadd.f32 %v10766_v13, %v4780_v20  ;;  %v8222_v31 = vld [vmem:[%s11957_s1 + $0xe28] ss:$16 sps:$4 sm:$0xff]   ;;  %v4788_v13 = vadd.f32 %v10801_v30, %v10497_v28 }
 0x21a   : > { %5837 = vmatpush1.bf16.msra.mxu1 %v8207_v42  ;;  %v4971_v52 = vpop.f32.mrf.mxu0  ;;  %5737 = vmatprep.subr.bf16.mxu0 %v8212_v12  ;;  %v4879_v42 = vadd.f32 %v10759_v27, %v4778_v14  ;;  %v12266_v15 = vld [vmem:[#allocation51_spill] sm:$0xff]  ;;  %v4786_v27 = vadd.f32 %v10786_v8, %v10485_v7 }
 0x21b   : > { %5838 = vmatprep.subr.bf16.mxu1 %v8215_v29  ;;  %v11066_v53 = vpop.f32.mrf.mxu1  ;;  %5992 = vst [vmem:[%s10987_s24 + $0x48] sm:$0xff] %v5940_v40  ;;  %v5943_v11 = vmax.f32 %v4970_v54, 0.0  ;;  %v11078_v9 = vadd.f32 %v4971_v52, %v4871_v3  ;;  %v8225_v43 = vld [vmem:[%s11957_s1 + $0x1028] ss:$16 sps:$4 sm:$0xff]   ;;  %v8230_v7 = vld [vmem:[%s11957_s1 + $0xe0c] ss:$16 sps:$4 sm:$0xff]   ;;  %v4885_v40 = vadd.f32 %v10780_v24, %v4784_v21 }
 0x21c   : > { %v4975_v51 = vpop.f32.mrf.mxu0  ;;  %5580 = vmatmul.mubr.bf16.gmra.mxu0 %v12264_v37  ;;  %v8233_v59 = vld [vmem:[%s11957_s1 + $0x100c] ss:$16 sps:$4 sm:$0xff]   ;;  %v8228_v14 = vld [vmem:[%s11957_s1 + $0xe08] ss:$16 sps:$4 sm:$0xff]  }
 0x21d   : > { %5681 = vmatmul.mubr.bf16.gmra.mxu1 %v12265_v39  ;;  %v11082_v18 = vpop.f32.mrf.mxu1  ;;  %5995 = vst [vmem:[%s10987_s24 + $0x60] sm:$0xff] %v5943_v11  ;;  %v5944_v26 = vmax.f32 %v11078_v9, 0.0  ;;  %v4976_v1 = vadd.f32 %v4975_v51, %v4875_v22  ;;  %5738 = vmatpush1.bf16.msra.mxu0 %v8210_v46  ;;  %v12268_v46 = vld [vmem:[#allocation53_spill] sm:$0xff]  ;;  %v4794_v39 = vadd.f32 %v10821_v44, %v10517_v36  ;;  %v12270_v20 = vld [vmem:[#allocation55_spill] sm:$0xff] }
 0x21e   : > { %5839 = vmatpush1.bf16.msra.mxu1 %v8213_v57  ;;  %v4977_v10 = vpop.f32.mrf.mxu0  ;;  %5739 = vmatprep.subr.bf16.mxu0 %v8218_v47  ;;  %v12269_v57 = vld [vmem:[#allocation81_spill] sm:$0xff]  ;;  %v4887_v47 = vadd.f32 %v10788_v4, %v4786_v27  ;;  %v4889_v4 = vadd.f32 %v10803_v61, %v4788_v13 }
 0x21f   : > { %5840 = vmatprep.subr.bf16.mxu1 %v8221_v50  ;;  %v11095_v55 = vpop.f32.mrf.mxu1  ;;  %5996 = vst [vmem:[%s10987_s24 + $0x68] sm:$0xff] %v5944_v26  ;;  %v5947_v12 = vmax.f32 %v4976_v1, 0.0  ;;  %v4978_v29 = vadd.f32 %v4977_v10, %v4877_v58  ;;  %5589 = vmatprep.mubr.bf16.mxu0 %v12266_v15  ;;  %v4790_v50 = vadd.f32 %v10808_v17, %v10505_v19  ;;  %v8231_v11 = vld [vmem:[%s11957_s1 + $0x1008] ss:$16 sps:$4 sm:$0xff]   ;;  %v8236_v17 = vld [vmem:[%s11957_s1 + $0xfec] ss:$16 sps:$4 sm:$0xff]  }
 0x220   : > { %5690 = vmatprep.mubr.bf16.mxu1 %v12267_v34  ;;  %v4979_v2 = vpop.f32.mrf.mxu0  ;;  %v8239_v37 = vld [vmem:[%s11957_s1 + $0x11ec] ss:$16 sps:$4 sm:$0xff]   ;;  %v8234_v21 = vld [vmem:[%s11957_s1 + $0xfe8] ss:$16 sps:$4 sm:$0xff]  }
 0x221   : > { %v11111_v45 = vpop.f32.mrf.mxu1  ;;  %5999 = vst [vmem:[%s10987_s24 + $0x80] sm:$0xff] %v5947_v12  ;;  %v5948_v41 = vmax.f32 %v4978_v29, 0.0  ;;  %v11117_v62 = vadd.f32 %v4979_v2, %v4879_v42  ;;  %5740 = vmatpush1.bf16.msra.mxu0 %v8216_v38  ;;  %v12271_v1 = vld [vmem:[#allocation83_spill] sm:$0xff] }
 0x222   : > { %5841 = vmatpush1.bf16.msra.mxu1 %v8219_v49  ;;  %v4981_v3 = vpop.f32.mrf.mxu0  ;;  %5741 = vmatprep.subr.bf16.mxu0 %v8224_v63  ;;  %v4796_v49 = vadd.f32 %v10830_v35, %v10525_v25  ;;  %v8237_v12 = vld [vmem:[%s11957_s1 + $0x11e8] ss:$16 sps:$4 sm:$0xff]   ;;  %v12273_v25 = vld [vmem:[#allocation2_spill] sm:$0xff]  ;;  %v8242_v34 = vld [vmem:[%s11957_s1 + $0xfcc] ss:$16 sps:$4 sm:$0xff]  }
 0x223   : > { %5842 = vmatprep.subr.bf16.mxu1 %v8227_v16  ;;  %v11127_v8 = vpop.f32.mrf.mxu1  ;;  %6000 = vst [vmem:[%s10987_s24 + $0x88] sm:$0xff] %v5948_v41  ;;  %v5951_v54 = vmax.f32 %v11117_v62, 0.0  ;;  %v4982_v28 = vadd.f32 %v4981_v3, %v4881_v23  ;;  %v12272_v16 = vld [vmem:[#allocation6_spill] sm:$0xff]  ;;  %v4798_v35 = vadd.f32 %v10839_v56, %v12273_v25  ;;  %v8245_v2 = vld [vmem:[%s11957_s1 + $0x11cc] ss:$16 sps:$4 sm:$0xff]   ;;  %v12274_v23 = vld [vmem:[#allocation24_spill] sm:$0xff] }
 0x224   : > { %v4985_v30 = vpop.f32.mrf.mxu0  ;;  %5590 = vmatmul.mubr.bf16.gmra.mxu0 %v12268_v46  ;;  %v4891_v42 = vadd.f32 %v12272_v16, %v4790_v50  ;;  %v4895_v27 = vadd.f32 %v12274_v23, %v4794_v39  ;;  %v12275_v56 = vld [vmem:[#allocation7_spill] sm:$0xff]  ;;  %v12276_v3 = vld [vmem:[#allocation57_spill] sm:$0xff]  ;;  %v12285_v16 = vld [vmem:[#allocation18_spill] sm:$0xff] }
 0x225   : > { %5691 = vmatmul.mubr.bf16.gmra.mxu1 %v12269_v57  ;;  %v11140_v52 = vpop.f32.mrf.mxu1  ;;  %6003 = vst [vmem:[%s10987_s24 + $0xa0] sm:$0xff] %v5951_v54  ;;  %v5952_v24 = vmax.f32 %v4982_v28, 0.0  ;;  %v4986_v22 = vadd.f32 %v4985_v30, %v4885_v40  ;;  %5742 = vmatpush1.bf16.msra.mxu0 %v8222_v31  ;;  %v12278_v40 = vld [vmem:[#allocation16_spill] sm:$0xff]  ;;  %v8243_v50 = vld [vmem:[%s11957_s1 + $0x11c8] ss:$16 sps:$4 sm:$0xff]  }
 0x226   : > { %5843 = vmatpush1.bf16.msra.mxu1 %v8225_v43  ;;  %v4987_v51 = vpop.f32.mrf.mxu0  ;;  %5743 = vmatprep.subr.bf16.mxu0 %v8230_v7  ;;  %v4897_v43 = vadd.f32 %v12275_v56, %v4796_v49  ;;  %v12277_v7 = vld [vmem:[#allocation85_spill] sm:$0xff]  ;;  %v12279_v28 = vld [vmem:[#allocation8_spill] sm:$0xff]  ;;  %v12284_v49 = vld [vmem:[#allocation87_spill] sm:$0xff] }
 0x227   : > { %5844 = vmatprep.subr.bf16.mxu1 %v8233_v59  ;;  %v11155_v19 = vpop.f32.mrf.mxu1  ;;  %6004 = vst [vmem:[%s10987_s24 + $0xa8] sm:$0xff] %v5952_v24  ;;  %v5955_v58 = vmax.f32 %v4986_v22, 0.0  ;;  %v4988_v61 = vadd.f32 %v4987_v51, %v4887_v47  ;;  %5599 = vmatprep.mubr.bf16.mxu0 %v12270_v20  ;;  %v11168_v38 = vpack.c.bf16 %v5952_v24, %v5948_v41  ;;  %v8240_v47 = vld [vmem:[%s11957_s1 + $0xfc8] ss:$16 sps:$4 sm:$0xff]   ;;  %v12280_v22 = vld [vmem:[#allocation26_spill] sm:$0xff]  ;;  %v12287_v25 = vld [vmem:[#allocation28_spill] sm:$0xff] }
 0x228   : > { %5700 = vmatprep.mubr.bf16.mxu1 %v12271_v1  ;;  %v4989_v10 = vpop.f32.mrf.mxu0  ;;  %v4800_v30 = vadd.f32 %v12279_v28, %v12278_v40  ;;  %v8248_v51 = vld [vmem:[%s11957_s1 + $0xfac] ss:$16 sps:$4 sm:$0xff]   ;;  %v12288_v23 = vld [vmem:[#allocation4_spill] sm:$0xff] }
 0x229   : > { %v11172_v63 = vpop.f32.mrf.mxu1  ;;  %6007 = vst [vmem:[%s10987_s24 + $0xc0] sm:$0xff] %v5955_v58  ;;  %v5956_v36 = vmax.f32 %v4988_v61, 0.0  ;;  %v4990_v44 = vadd.f32 %v4989_v10, %v4889_v4  ;;  %5744 = vmatpush1.bf16.msra.mxu0 %v8228_v14  ;;  %v4899_v14 = vadd.f32 %v12280_v22, %v4798_v35  ;;  %v12282_v39 = vld [vmem:[#allocation9_spill] sm:$0xff]  ;;  %v12283_v1 = vld [vmem:[#allocation59_spill] sm:$0xff] }
 0x22a   : > { %5845 = vmatpush1.bf16.msra.mxu1 %v8231_v11  ;;  %v4991_v29 = vpop.f32.mrf.mxu0  ;;  %5745 = vmatprep.subr.bf16.mxu0 %v8236_v17  ;;  %v8251_v17 = vld [vmem:[%s11957_s1 + $0x11ac] ss:$16 sps:$4 sm:$0xff]   ;;  %v4901_v35 = vadd.f32 %v12287_v25, %v4800_v30  ;;  %v12291_v30 = vld [vmem:[#allocation32_spill] sm:$0xff] }
 0x22b   : > { %5846 = vmatprep.subr.bf16.mxu1 %v8239_v37  ;;  %v11184_v15 = vpop.f32.mrf.mxu1  ;;  %6008 = vst [vmem:[%s10987_s24 + $0xc8] sm:$0xff] %v5956_v36  ;;  %v5959_v41 = vmax.f32 %v4990_v44, 0.0  ;;  %v4992_v31 = vadd.f32 %v4991_v29, %v4891_v42  ;;  %v12281_v37 = vld [vmem:[#allocation3_spill] sm:$0xff]  ;;  %v12286_v42 = vld [vmem:[#allocation10_spill] sm:$0xff]  ;;  %v12297_v25 = vld [vmem:[#allocation5_spill] sm:$0xff] }
 0x22c   : > { %v4995_v13 = vpop.f32.mrf.mxu0  ;;  %5600 = vmatmul.mubr.bf16.gmra.mxu0 %v12276_v3  ;;  %v4806_v44 = vadd.f32 %v12286_v42, %v12285_v16  ;;  %v12290_v3 = vld [vmem:[#allocation30_spill] sm:$0xff] }
 0x22d   : > { %5701 = vmatmul.mubr.bf16.gmra.mxu1 %v12277_v7  ;;  %v11197_v59 = vpop.f32.mrf.mxu1  ;;  %6011 = vst [vmem:[%s10987_s24 + $0xe0] sm:$0xff] %v5959_v41  ;;  %v5960_v46 = vmax.f32 %v4992_v31, 0.0  ;;  %v4996_v57 = vadd.f32 %v4995_v13, %v4895_v27  ;;  %5746 = vmatpush2.bf16.msra.mxu0 %v8234_v21  ;;  %v11208_v24 = vpack.c.bf16 %v5959_v41, %v5955_v58  ;;  %v12289_v27 = vld [vmem:[#allocation11_spill] sm:$0xff] }
 0x22e   : > { %5847 = vmatpush2.bf16.msra.mxu1 %v8237_v12  ;;  %v4997_v11 = vpop.f32.mrf.mxu0  ;;  %5747 = vmatprep.subr.bf16.mxu0 %v8242_v34  ;;  %v4804_v58 = vadd.f32 %v12282_v39, %v12281_v37  ;;  %v4808_v41 = vadd.f32 %v12289_v27, %v12288_v23  ;;  %v8257_v13 = vld [vmem:[%s11957_s1 + $0x118c] ss:$16 sps:$4 sm:$0xff]   ;;  %v8252_v39 = vld [vmem:[%s11957_s1 + $0xf88] ss:$16 sps:$4 sm:$0xff]  }
 0x22f   : > { %5848 = vmatprep.subr.bf16.mxu1 %v8245_v2  ;;  %v11211_v4 = vpop.f32.mrf.mxu1  ;;  %6012 = vst [vmem:[%s10987_s24 + $0xe8] sm:$0xff] %v5960_v46  ;;  %v5963_v61 = vmax.f32 %v4996_v57, 0.0  ;;  %v4998_v20 = vadd.f32 %v4997_v11, %v4897_v43  ;;  %5609 = vmatprep.mubr.bf16.mxu0 %v12283_v1  ;;  %v11224_v10 = vpack.c.bf16 %v5960_v46, %v5956_v36  ;;  %v8246_v2 = vld [vmem:[%s11957_s1 + $0xfa8] ss:$16 sps:$4 sm:$0xff]   ;;  %v8254_v43 = vld [vmem:[%s11957_s1 + $0xf8c] ss:$16 sps:$4 sm:$0xff]  }
 0x230   : > { %5710 = vmatprep.mubr.bf16.mxu1 %v12284_v49  ;;  %v4999_v21 = vpop.f32.mrf.mxu0  ;;  %v8249_v36 = vld [vmem:[%s11957_s1 + $0x11a8] ss:$16 sps:$4 sm:$0xff]   ;;  %v4905_v7 = vadd.f32 %v12290_v3, %v4804_v58  ;;  %v4907_v46 = vadd.f32 %v12291_v30, %v4806_v44  ;;  %v12295_v11 = vld [vmem:[#allocation12_spill] sm:$0xff]  ;;  %v12296_v1 = vld [vmem:[#allocation34_spill] sm:$0xff] }
 0x231   : > { %v11228_v12 = vpop.f32.mrf.mxu1  ;;  %6015 = vst [vmem:[%s10987_s24 + $0x100] sm:$0xff] %v5963_v61  ;;  %v5964_v29 = vmax.f32 %v4998_v20, 0.0  ;;  %v5000_v34 = vadd.f32 %v4999_v21, %v4899_v14  ;;  %5748 = vmatpush2.bf16.msra.mxu0 %v8240_v47  ;;  %v12292_v47 = vld [vmem:[#allocation61_spill] sm:$0xff]  ;;  %v12294_v14 = vld [vmem:[#allocation20_spill] sm:$0xff]  ;;  %v4909_v49 = vadd.f32 %v12296_v1, %v4808_v41  ;;  %v12300_v23 = vld [vmem:[#allocation91_spill] sm:$0xff] }
 0x232   : > { %5849 = vmatpush2.bf16.msra.mxu1 %v8243_v50  ;;  %v5001_v31 = vpop.f32.mrf.mxu0  ;;  %5749 = vmatprep.subr.bf16.mxu0 %v8248_v51  ;;  %v12293_v50 = vld [vmem:[#allocation89_spill] sm:$0xff]  ;;  %v4810_v51 = vadd.f32 %v12295_v11, %v12294_v14  ;;  %v12302_v3 = vld [vmem:[#allocation22_spill] sm:$0xff] }
 0x233   : > { %5850 = vmatprep.subr.bf16.mxu1 %v8251_v17  ;;  %v11240_v56 = vpop.f32.mrf.mxu1  ;;  %6016 = vst [vmem:[%s10987_s24 + $0x108] sm:$0xff] %v5964_v29  ;;  %v5967_v40 = vmax.f32 %v5000_v34, 0.0  ;;  %v5002_v28 = vadd.f32 %v5001_v31, %v4901_v35  ;;  %v8255_v58 = vld [vmem:[%s11957_s1 + $0x1188] ss:$16 sps:$4 sm:$0xff]   ;;  %v8260_v44 = vld [vmem:[%s11957_s1 + $0xf6c] ss:$16 sps:$4 sm:$0xff]  }
 0x234   : > { %v5005_v57 = vpop.f32.mrf.mxu0  ;;  %5610 = vmatmul.mubr.bf16.gmra.mxu0 %v12292_v47  ;;  %v8263_v21 = vld [vmem:[%s11957_s1 + $0x116c] ss:$16 sps:$4 sm:$0xff]   ;;  %v12304_v11 = vld [vmem:[#allocation38_spill] sm:$0xff] }
 0x235   : > { %5711 = vmatmul.mubr.bf16.gmra.mxu1 %v12293_v50  ;;  %v11253_v22 = vpop.f32.mrf.mxu1  ;;  %6019 = vst [vmem:[%s10987_s24 + $0x120] sm:$0xff] %v5967_v40  ;;  %v5968_v17 = vmax.f32 %v5002_v28, 0.0  ;;  %v5006_v37 = vadd.f32 %v5005_v57, %v4905_v7  ;;  %5750 = vmatpush2.bf16.msra.mxu0 %v8246_v2  ;;  %v11264_v20 = vpack.c.bf16 %v5967_v40, %v5963_v61  ;;  %v12298_v35 = vld [vmem:[#allocation13_spill] sm:$0xff]  ;;  %v12303_v7 = vld [vmem:[#allocation14_spill] sm:$0xff] }
 0x236   : > { %5851 = vmatpush2.bf16.msra.mxu1 %v8249_v36  ;;  %v5007_v16 = vpop.f32.mrf.mxu0  ;;  %5751 = vmatprep.subr.bf16.mxu0 %v8254_v43  ;;  %v4814_v61 = vadd.f32 %v12298_v35, %v12297_v25  ;;  %v12299_v36 = vld [vmem:[#allocation63_spill] sm:$0xff]  ;;  %v12301_v43 = vld [vmem:[#allocation36_spill] sm:$0xff]  ;;  %v4816_v40 = vadd.f32 %v12303_v7, %v12302_v3  ;;  %v12306_v1 = vld [vmem:[#allocation93_spill] sm:$0xff] }
 0x237   : > { %5852 = vmatprep.subr.bf16.mxu1 %v8257_v13  ;;  %v11267_v42 = vpop.f32.mrf.mxu1  ;;  %6020 = vst [vmem:[%s10987_s24 + $0x128] sm:$0xff] %v5968_v17  ;;  %v5971_v34 = vmax.f32 %v5006_v37, 0.0  ;;  %v5008_v2 = vadd.f32 %v5007_v16, %v4907_v46  ;;  %5619 = vmatprep.mubr.bf16.mxu0 %v12299_v36  ;;  %v11280_v27 = vpack.c.bf16 %v5968_v17, %v5964_v29  ;;  %v8258_v46 = vld [vmem:[%s11957_s1 + $0xf68] ss:$16 sps:$4 sm:$0xff]   ;;  %v8266_v50 = vld [vmem:[%s11957_s1 + $0xf4c] ss:$16 sps:$4 sm:$0xff]  }
 0x238   : > { %5720 = vmatprep.mubr.bf16.mxu1 %v12300_v23  ;;  %v5009_v41 = vpop.f32.mrf.mxu0  ;;  %v4911_v13 = vadd.f32 %v12301_v43, %v4810_v51  ;;  %v8261_v29 = vld [vmem:[%s11957_s1 + $0x1168] ss:$16 sps:$4 sm:$0xff]   ;;  %v8269_v14 = vld [vmem:[%s11957_s1 + $0x114c] ss:$16 sps:$4 sm:$0xff]   ;;  %v4915_v51 = vadd.f32 %v12304_v11, %v4814_v61  ;;  %v12307_v16 = vld [vmem:[#allocation40_spill] sm:$0xff] }
 0x239   : > { %v11282_v31 = vpop.f32.mrf.mxu1  ;;  %6023 = vst [vmem:[%s10987_s24 + $0x140] sm:$0xff] %v5971_v34  ;;  %v5972_v28 = vmax.f32 %v5008_v2, 0.0  ;;  %v5010_v30 = vadd.f32 %v5009_v41, %v4909_v49  ;;  %5752 = vmatpush2.bf16.msra.mxu0 %v8252_v39  ;;  %v8264_v35 = vld [vmem:[%s11957_s1 + $0xf48] ss:$16 sps:$4 sm:$0xff]   ;;  %v8272_v41 = vld [vmem:[%s11957_s1 + $0xf2c] ss:$16 sps:$4 sm:$0xff]  }
 0x23a   : > { %5853 = vmatpush2.bf16.msra.mxu1 %v8255_v58  ;;  %v5011_v57 = vpop.f32.mrf.mxu0  ;;  %5753 = vmatprep.subr.bf16.mxu0 %v8260_v44  ;;  %v12305_v58 = vld [vmem:[#allocation65_spill] sm:$0xff]  ;;  %v4917_v44 = vadd.f32 %v12307_v16, %v4816_v40  ;;  %v12308_v7 = vld [vmem:[#allocation67_spill] sm:$0xff] }
 0x23b   : > { %5854 = vmatprep.subr.bf16.mxu1 %v8263_v21  ;;  %v11294_v47 = vpop.f32.mrf.mxu1  ;;  %6024 = vst [vmem:[%s10987_s24 + $0x148] sm:$0xff] %v5972_v28  ;;  %v5975_v17 = vmax.f32 %v5010_v30, 0.0  ;;  %v5012_v37 = vadd.f32 %v5011_v57, %v4911_v13  ;;  %v8267_v61 = vld [vmem:[%s11957_s1 + $0x1148] ss:$16 sps:$4 sm:$0xff]   ;;  %v8275_v43 = vld [vmem:[%s11957_s1 + $0x112c] ss:$16 sps:$4 sm:$0xff]  }
 0x23c   : > { %v5015_v39 = vpop.f32.mrf.mxu0  ;;  %5620 = vmatmul.mubr.bf16.gmra.mxu0 %v12305_v58  ;;  %v8270_v57 = vld [vmem:[%s11957_s1 + $0xf28] ss:$16 sps:$4 sm:$0xff]   ;;  %v8278_v11 = vld [vmem:[%s11957_s1 + $0xf0c] ss:$16 sps:$4 sm:$0xff]  }
 0x23d   : > { %5721 = vmatmul.mubr.bf16.gmra.mxu1 %v12306_v1  ;;  %v11306_v49 = vpop.f32.mrf.mxu1  ;;  %6027 = vst [vmem:[%s10987_s24 + $0x160] sm:$0xff] %v5975_v17  ;;  %v5976_v21 = vmax.f32 %v5012_v37, 0.0  ;;  %v5016_v25 = vadd.f32 %v5015_v39, %v4915_v51  ;;  %5754 = vmatpush2.bf16.msra.mxu0 %v8258_v46  ;;  %v11316_v2 = vpack.c.bf16 %v5975_v17, %v5971_v34  ;;  %v12309_v34 = vld [vmem:[#allocation95_spill] sm:$0xff]  ;;  %v12310_v17 = vld [vmem:[#allocation68_spill] sm:$0xff]  ;;  %v8282_v16 = vld [vmem:[%s11959_s3 + $0x78] sm:$0xff]  }
 0x23e   : > { %5855 = vmatpush2.bf16.msra.mxu1 %v8261_v29  ;;  %v5017_v36 = vpop.f32.mrf.mxu0  ;;  %5755 = vmatprep.subr.bf16.mxu0 %v8266_v50  ;;  %v8273_v50 = vld [vmem:[%s11957_s1 + $0x1128] ss:$16 sps:$4 sm:$0xff]   ;;  %v8281_v51 = vld [vmem:[%s11957_s1 + $0x110c] ss:$16 sps:$4 sm:$0xff]   ;;  %v1223_v37 = vsub.s32 2, %v12310_v17  ;;  %v1227_v39 = vsub.s32 3, %v12310_v17 }
 0x23f   : > { %5856 = vmatprep.subr.bf16.mxu1 %v8269_v14  ;;  %v11318_v23 = vpop.f32.mrf.mxu1  ;;  %6028 = vst [vmem:[%s10987_s24 + $0x168] sm:$0xff] %v5976_v21  ;;  %v11327_v13 = vmax.f32 %v5016_v25, 0.0  ;;  %v5018_v3 = vadd.f32 %v5017_v36, %v4917_v44  ;;  %5761 = vmatprep.mubr.bf16.mxu0 %v12308_v7  ;;  %v11331_v40 = vpack.c.bf16 %v5976_v21, %v5972_v28  ;;  %v8276_v58 = vld [vmem:[%s11957_s1 + $0xf08] ss:$16 sps:$4 sm:$0xff]   ;;  %v8314_v44 = vld [vmem:[%s11958_s2] sm:$0xf] }
 0x240   : > { %5862 = vmatprep.mubr.bf16.mxu1 %v12309_v34  ;;  %v5019_v30 = vpop.f32.mrf.mxu0  ;;  %v8279_v1 = vld [vmem:[%s11957_s1 + $0x1108] ss:$16 sps:$4 sm:$0xff]   ;;  %v11365_v21 = vrot.slane %v8314_v44, %v1223_v37  ;;  %v11367_v25 = vrot.slane %v8314_v44, %v1227_v39  ;;  %v8284_v36 = vld [vmem:[%s11959_s3 + $0x70] sm:$0xff]  }
 0x241   : > { %v5120_v46 = vpop.f32.mrf.mxu1  ;;  %6031 = vst [vmem:[%s10987_s24 + $0x180] sm:$0xff] %v11327_v13  ;;  %v11335_v29 = vmax.f32 %v5018_v3, 0.0  ;;  %5756 = vmatpush2.bf16.msra.mxu0 %v8264_v35  ;;  %v8283_v35 = vld [vmem:[%s11959_s3 + $0x38] sm:$0xff]   ;;  %v12311_v3 = vld [vmem:[#allocation70_spill] sm:$0xff]  ;;  %v12312_v7 = vld [vmem:[#allocation96_spill] sm:$0xff] }
 0x242   : > { %5857 = vmatpush2.bf16.msra.mxu1 %v8267_v61  ;;  %5757 = vmatprep.subr.bf16.mxu0 %v8272_v41  ;;  %v5020_v28 = vpop.f32.mrf.mxu0  ;;  %v5057_v61 = vadd.f32 %v10971_v32, %v11365_v21  ;;  %v5059_v34 = vadd.f32 %v10989_v60, %v11367_v25  ;;  %v12313_v46 = vld [vmem:[#allocation72_spill] sm:$0xff]  ;;  %v8286_v60 = vld [vmem:[%s11959_s3 + $0x68] sm:$0xff]   ;;  %v5063_v39 = vadd.f32 %v11014_v0, %v11367_v25  ;;  %v8288_v0 = vld [vmem:[%s11959_s3 + $0x60] sm:$0xff]  }
 0x243   : > { %5858 = vmatprep.subr.bf16.mxu1 %v8275_v43  ;;  %v5121_v14 = vpop.f32.mrf.mxu1  ;;  %6032 = vst [vmem:[%s10987_s24 + $0x188] sm:$0xff] %v11335_v29  ;;  %v8285_v28 = vld [vmem:[%s11959_s3 + $0x30] sm:$0xff]  }
 0x244   : > { %v5061_v14 = vadd.f32 %v11002_v48, %v11365_v21  ;;  %v8287_v48 = vld [vmem:[%s11959_s3 + $0x28] sm:$0xff]  }
 0x245   : > { %5758 = vmatpush2.bf16.msra.mxu0 %v8270_v57  ;;  %v12314_v57 = vld [vmem:[#allocation97_spill] sm:$0xff] }
 0x246   : > { %5859 = vmatpush2.bf16.msra.mxu1 %v8273_v50  ;;  %5759 = vmatprep.subr.bf16.mxu0 %v8278_v11 }
 0x247   : > { %5860 = vmatprep.subr.bf16.mxu1 %v8281_v51 }
 0x249   : > { %5760 = vmatpush2.bf16.msra.mxu0 %v8276_v58 }
 0x24a   : > { %5861 = vmatpush2.bf16.msra.mxu1 %v8279_v1  ;;  %7293 = vmatprep.subr.bf16.mxu0 %v8282_v16 }
 0x24c   : > { %v5157_v41 = vpop.f32.mrf.mxu0  ;;  %5762 = vmatmul.mubr.bf16.vlgmr.msra.gmra.mxu0 %v12311_v3  ;;  %v12316_v3 = vld [vmem:[#allocation98_spill] sm:$0xff] }
 0x24d   : > { %v5258_v43 = vpop.f32.mrf.mxu1  ;;  %5863 = vmatmul.mubr.bf16.vlgmr.msra.gmra.mxu1 %v12312_v7  ;;  %v5158_v30 = vadd.f32 %v5157_v41, %v5057_v61  ;;  %5771 = vmatprep.mubr.bf16.mxu0 %v12313_v46  ;;  %v12318_v46 = vld [vmem:[#allocation99_spill] sm:$0xff] }
 0x24e   : > { %5872 = vmatprep.mubr.bf16.mxu1 %v12314_v57  ;;  %v5159_v50 = vpop.f32.mrf.mxu0  ;;  %7294 = vmatpush3.bf16.msra.mxu0 %v8283_v35  ;;  %v5067_v35 = vadd.f32 %v11028_v33, %v11365_v21  ;;  %v12317_v33 = vld [vmem:[#allocation76_spill] sm:$0xff] }
 0x24f   : > { %v5260_v32 = vpop.f32.mrf.mxu1  ;;  %v11388_v11 = vadd.f32 %v5258_v43, %v5158_v30  ;;  %v5160_v51 = vadd.f32 %v5159_v50, %v5059_v34  ;;  %7295 = vmatprep.subr.bf16.mxu0 %v8284_v36  ;;  %v12315_v43 = vld [vmem:[#allocation74_spill] sm:$0xff]  ;;  %v5069_v34 = vadd.f32 %v11040_v5, %v11367_v25  ;;  %v8290_v5 = vld [vmem:[%s11959_s3 + $0x58] sm:$0xff]  }
 0x250   : > { %v5161_v17 = vpop.f32.mrf.mxu0 }
 0x251   : > { %v5262_v37 = vpop.f32.mrf.mxu1  ;;  %v11395_v58 = vadd.f32 %v5260_v32, %v5160_v51  ;;  %v5162_v1 = vadd.f32 %v5161_v17, %v5061_v14  ;;  %v8289_v32 = vld [vmem:[%s11959_s3 + $0x20] sm:$0xff]  }
 0x252   : > { %v5163_v16 = vpop.f32.mrf.mxu0  ;;  %7296 = vmatpush3.bf16.msra.mxu0 %v8285_v28  ;;  %v5071_v28 = vadd.f32 %v11054_v6, %v11365_v21  ;;  %v8291_v6 = vld [vmem:[%s11959_s3 + $0x18] sm:$0xff]  }
 0x253   : > { %v11397_v44 = vpop.f32.mrf.mxu1  ;;  %v11404_v61 = vadd.f32 %v5262_v37, %v5162_v1  ;;  %v11406_v36 = vadd.f32 %v5163_v16, %v5063_v39  ;;  %7297 = vmatprep.subr.bf16.mxu0 %v8286_v60  ;;  %v5073_v37 = vadd.f32 %v11066_v53, %v11367_v25  ;;  %v8292_v53 = vld [vmem:[%s11959_s3 + $0x50] sm:$0xff]  }
 0x254   : > { %v5167_v41 = vpop.f32.mrf.mxu0  ;;  %5772 = vmatmul.mubr.bf16.gmra.mxu0 %v12315_v43 }
 0x255   : > { %5873 = vmatmul.mubr.bf16.gmra.mxu1 %v12316_v3  ;;  %v5268_v7 = vpop.f32.mrf.mxu1  ;;  %v5168_v30 = vadd.f32 %v5167_v41, %v5067_v35  ;;  %5781 = vmatprep.mubr.bf16.mxu0 %v12317_v33  ;;  %v5077_v35 = vadd.f32 %v11082_v18, %v11365_v21  ;;  %v12319_v3 = vld [vmem:[#allocation78_spill] sm:$0xff]  ;;  %v12321_v18 = vld [vmem:[#allocation80_spill] sm:$0xff] }
 0x256   : > { %5882 = vmatprep.mubr.bf16.mxu1 %v12318_v46  ;;  %v5169_v57 = vpop.f32.mrf.mxu0  ;;  %7298 = vmatpush3.bf16.msra.mxu0 %v8287_v48  ;;  %v12322_v46 = vld [vmem:[#allocation101_spill] sm:$0xff] }
 0x257   : > { %v5270_v50 = vpop.f32.mrf.mxu1  ;;  %v5170_v14 = vadd.f32 %v5169_v57, %v5069_v34  ;;  %v11422_v51 = vadd.f32 %v5268_v7, %v5168_v30  ;;  %7299 = vmatprep.subr.bf16.mxu0 %v8288_v0  ;;  %v12320_v7 = vld [vmem:[#allocation100_spill] sm:$0xff]  ;;  %v5079_v30 = vadd.f32 %v11095_v55, %v11367_v25  ;;  %v8294_v55 = vld [vmem:[%s11959_s3 + $0x48] sm:$0xff]  }
 0x258   : > { %v5171_v60 = vpop.f32.mrf.mxu0 }
 0x259   : > { %v5272_v17 = vpop.f32.mrf.mxu1  ;;  %v5172_v39 = vadd.f32 %v5171_v60, %v5071_v28  ;;  %v11429_v1 = vadd.f32 %v5270_v50, %v5170_v14  ;;  %v5081_v28 = vadd.f32 %v11111_v45, %v11365_v21  ;;  %v8295_v45 = vld [vmem:[%s11959_s3 + $0x8] sm:$0xff]  }
 0x25a   : > { %v5173_v16 = vpop.f32.mrf.mxu0  ;;  %7300 = vmatpush3.bf16.msra.mxu0 %v8289_v32  ;;  %v8293_v32 = vld [vmem:[%s11959_s3 + $0x10] sm:$0xff]  }
 0x25b   : > { %v11431_v48 = vpop.f32.mrf.mxu1  ;;  %v11438_v0 = vadd.f32 %v5173_v16, %v5073_v37  ;;  %v11440_v41 = vadd.f32 %v5272_v17, %v5172_v39  ;;  %7301 = vmatprep.subr.bf16.mxu0 %v8290_v5  ;;  %v5083_v37 = vadd.f32 %v11127_v8, %v11367_v25  ;;  %v8296_v8 = vld [vmem:[%s11959_s3 + $0x40] sm:$0xff]  }
 0x25c   : > { %v5177_v43 = vpop.f32.mrf.mxu0  ;;  %5782 = vmatmul.mubr.bf16.gmra.mxu0 %v12319_v3 }
 0x25d   : > { %5883 = vmatmul.mubr.bf16.gmra.mxu1 %v12320_v7  ;;  %v5278_v34 = vpop.f32.mrf.mxu1  ;;  %v5178_v33 = vadd.f32 %v5177_v43, %v5077_v35  ;;  %5791 = vmatprep.mubr.bf16.mxu0 %v12321_v18  ;;  %v5089_v18 = vadd.f32 %v11155_v19, %v11367_v25 }
 0x25e   : > { %5892 = vmatprep.mubr.bf16.mxu1 %v12322_v46  ;;  %v5179_v57 = vpop.f32.mrf.mxu0  ;;  %7302 = vmatpush3.bf16.msra.mxu0 %v8291_v6 }
 0x25f   : > { %v5280_v50 = vpop.f32.mrf.mxu1  ;;  %v5180_v14 = vadd.f32 %v5179_v57, %v5079_v30  ;;  %v11456_v5 = vadd.f32 %v5278_v34, %v5178_v33  ;;  %7303 = vmatprep.subr.bf16.mxu0 %v8292_v53  ;;  %v5087_v53 = vadd.f32 %v11140_v52, %v11365_v21  ;;  %v12323_v34 = vld [vmem:[#allocation82_spill] sm:$0xff]  ;;  %v12325_v52 = vld [vmem:[#allocation84_spill] sm:$0xff]  ;;  %v12326_v57 = vld [vmem:[#allocation103_spill] sm:$0xff] }
 0x260   : > { %v5181_v60 = vpop.f32.mrf.mxu0  ;;  %v12324_v30 = vld [vmem:[#allocation102_spill] sm:$0xff] }
 0x261   : > { %v5282_v17 = vpop.f32.mrf.mxu1  ;;  %v5182_v39 = vadd.f32 %v5181_v60, %v5081_v28  ;;  %v11463_v16 = vadd.f32 %v5280_v50, %v5180_v14  ;;  %v8297_v28 = vld [vmem:[%s11959_s3] sm:$0xff]   ;;  %v5091_v14 = vadd.f32 %v11172_v63, %v11365_v21 }
 0x262   : > { %v5183_v6 = vpop.f32.mrf.mxu0  ;;  %7304 = vmatpush3.bf16.msra.mxu0 %v8293_v32 }
 0x263   : > { %v11465_v35 = vpop.f32.mrf.mxu1  ;;  %v11472_v43 = vadd.f32 %v5183_v6, %v5083_v37  ;;  %v11474_v3 = vadd.f32 %v5282_v17, %v5182_v39  ;;  %7305 = vmatprep.subr.bf16.mxu0 %v8294_v55  ;;  %v5093_v37 = vadd.f32 %v11184_v15, %v11367_v25  ;;  %v12327_v15 = vld [vmem:[#allocation86_spill] sm:$0xff] }
 0x264   : > { %v5187_v7 = vpop.f32.mrf.mxu0  ;;  %5792 = vmatmul.mubr.bf16.gmra.mxu0 %v12323_v34 }
 0x265   : > { %5893 = vmatmul.mubr.bf16.gmra.mxu1 %v12324_v30  ;;  %v5288_v33 = vpop.f32.mrf.mxu1  ;;  %v5188_v46 = vadd.f32 %v5187_v7, %v5087_v53  ;;  %5801 = vmatprep.mubr.bf16.mxu0 %v12325_v52  ;;  %v5097_v7 = vadd.f32 %v11197_v59, %v11365_v21  ;;  %v12330_v59 = vld [vmem:[#allocation105_spill] sm:$0xff] }
 0x266   : > { %5902 = vmatprep.mubr.bf16.mxu1 %v12326_v57  ;;  %v5189_v50 = vpop.f32.mrf.mxu0  ;;  %7306 = vmatpush3.bf16.msra.mxu0 %v8295_v45  ;;  %v12329_v57 = vld [vmem:[#allocation88_spill] sm:$0xff] }
 0x267   : > { %v5290_v32 = vpop.f32.mrf.mxu1  ;;  %v5190_v55 = vadd.f32 %v5189_v50, %v5089_v18  ;;  %v11490_v60 = vadd.f32 %v5288_v33, %v5188_v46  ;;  %7307 = vmatprep.subr.bf16.mxu0 %v8296_v8  ;;  %v8298_v8 = vld [vmem:[%s11959_s3 + $0xf8] sm:$0xff]   ;;  %v12328_v33 = vld [vmem:[#allocation104_spill] sm:$0xff]  ;;  %v5099_v46 = vadd.f32 %v11211_v4, %v11367_v25 }
 0x268   : > { %v5191_v19 = vpop.f32.mrf.mxu0  ;;  %v8299_v50 = vld [vmem:[%s11959_s3 + $0xb8] sm:$0xff]   ;;  %7351 = vmatprep.subr.bf16.mxu1 %v8298_v8  ;;  %v5107_v8 = vadd.f32 %v11253_v22, %v11365_v21  ;;  %v5109_v22 = vadd.f32 %v11267_v42, %v11367_v25  ;;  %v5113_v42 = vadd.f32 %v11294_v47, %v11367_v25 }
 0x269   : > { %v5292_v17 = vpop.f32.mrf.mxu1  ;;  %v5192_v39 = vadd.f32 %v5191_v19, %v5091_v14  ;;  %v11494_v6 = vadd.f32 %v5290_v32, %v5190_v55  ;;  %v5101_v14 = vadd.f32 %v11228_v12, %v11365_v21  ;;  %7352 = vmatpush3.bf16.msra.mxu1 %v8299_v50  ;;  %v12333_v50 = vld [vmem:[#allocation92_spill] sm:$0xff] }
 0x26a   : > { %v5193_v45 = vpop.f32.mrf.mxu0  ;;  %7308 = vmatpush3.bf16.msra.mxu0 %v8297_v28 }
 0x26b   : > { %v11496_v53 = vpop.f32.mrf.mxu1  ;;  %v11500_v63 = vadd.f32 %v5193_v45, %v5093_v37  ;;  %v11502_v34 = vadd.f32 %v5292_v17, %v5192_v39  ;;  %v5103_v37 = vadd.f32 %v11240_v56, %v11367_v25  ;;  %v8301_v56 = vld [vmem:[%s11959_s3 + $0xb0] sm:$0xff]  }
 0x26c   : > { %v5197_v30 = vpop.f32.mrf.mxu0  ;;  %5802 = vmatmul.mubr.bf16.gmra.mxu0 %v12327_v15 }
 0x26d   : > { %5903 = vmatmul.mubr.bf16.gmra.mxu1 %v12328_v33  ;;  %v5298_v18 = vpop.f32.mrf.mxu1  ;;  %v5198_v52 = vadd.f32 %v5197_v30, %v5097_v7  ;;  %5811 = vmatprep.mubr.bf16.mxu0 %v12329_v57  ;;  %v8300_v33 = vld [vmem:[%s11959_s3 + $0xf0] sm:$0xff]  }
 0x26e   : > { %5912 = vmatprep.mubr.bf16.mxu1 %v12330_v59  ;;  %v5199_v32 = vpop.f32.mrf.mxu0  ;;  %7353 = vmatprep.subr.bf16.mxu1 %v8300_v33  ;;  %v8302_v33 = vld [vmem:[%s11959_s3 + $0xe8] sm:$0xff]  }
 0x26f   : > { %v5300_v28 = vpop.f32.mrf.mxu1  ;;  %v5200_v55 = vadd.f32 %v5199_v32, %v5099_v46  ;;  %v11518_v19 = vadd.f32 %v5298_v18, %v5198_v52  ;;  %v12331_v46 = vld [vmem:[#allocation90_spill] sm:$0xff]  ;;  %v12334_v32 = vld [vmem:[#allocation107_spill] sm:$0xff]  ;;  %7354 = vmatpush3.bf16.msra.mxu1 %v8301_v56  ;;  %v5117_v56 = vadd.f32 %v11306_v49, %v11365_v21  ;;  %v5119_v49 = vadd.f32 %v11318_v23, %v11367_v25 }
 0x270   : > { %v5201_v4 = vpop.f32.mrf.mxu0  ;;  %v12332_v52 = vld [vmem:[#allocation106_spill] sm:$0xff]  ;;  %7355 = vmatprep.subr.bf16.mxu1 %v8302_v33  ;;  %v6044_v33 = vld [vmem:[%s10987_s24 + $0x48] sm:$0xff] }
 0x271   : > { %v5302_v17 = vpop.f32.mrf.mxu1  ;;  %v5202_v39 = vadd.f32 %v5201_v4, %v5101_v14  ;;  %v11522_v45 = vadd.f32 %v5300_v28, %v5200_v55  ;;  %v5111_v55 = vadd.f32 %v11282_v31, %v11365_v21  ;;  %v6036_v31 = vld [vmem:[%s10987_s24 + $0x8] sm:$0xff]  ;;  %v8304_v23 = vld [vmem:[%s11959_s3 + $0xe0] sm:$0xff]  }
 0x272   : > { %v5203_v7 = vpop.f32.mrf.mxu0  ;;  %v8305_v25 = vld [vmem:[%s11959_s3 + $0xa0] sm:$0xff]  }
 0x273   : > { %v11524_v30 = vpop.f32.mrf.mxu1  ;;  %v11528_v15 = vadd.f32 %v5203_v7, %v5103_v37  ;;  %v11530_v12 = vadd.f32 %v5302_v17, %v5202_v39  ;;  %v6040_v7 = vld [vmem:[%s10987_s24 + $0x28] sm:$0xff] }
 0x274   : > { %v5207_v18 = vpop.f32.mrf.mxu0  ;;  %5812 = vmatmul.mubr.bf16.gmra.mxu0 %v12331_v46  ;;  %v6088_v47 = vpack.c.bf16 %v6040_v7, %v6036_v31  ;;  %v6039_v7 = vld [vmem:[%s10987_s24 + $0x20] sm:$0xff] }
 0x275   : > { %5913 = vmatmul.mubr.bf16.gmra.mxu1 %v12332_v52  ;;  %v5308_v57 = vpop.f32.mrf.mxu1  ;;  %v5208_v59 = vadd.f32 %v5207_v18, %v5107_v8  ;;  %5821 = vmatprep.mubr.bf16.mxu0 %v12333_v50  ;;  %v6035_v31 = vld [vmem:[%s10987_s24] sm:$0xff] }
 0x276   : > { %5922 = vmatprep.mubr.bf16.mxu1 %v12334_v32  ;;  %v5209_v28 = vpop.f32.mrf.mxu0  ;;  %v12335_v32 = vld [vmem:[#allocation94_spill] sm:$0xff] }
 0x277   : > { %v5310_v14 = vpop.f32.mrf.mxu1  ;;  %v5210_v4 = vadd.f32 %v5209_v28, %v5109_v22  ;;  %v11546_v17 = vadd.f32 %v5308_v57, %v5208_v59  ;;  %v8303_v59 = vld [vmem:[%s11959_s3 + $0xa8] sm:$0xff]   ;;  %v12336_v28 = vld [vmem:[#allocation108_spill] sm:$0xff] }
 0x278   : > { %v5211_v37 = vpop.f32.mrf.mxu0  ;;  %7356 = vmatpush3.bf16.msra.mxu1 %v8303_v59 }
 0x279   : > { %v5312_v39 = vpop.f32.mrf.mxu1  ;;  %v5212_v8 = vadd.f32 %v5211_v37, %v5111_v55  ;;  %v11551_v18 = vadd.f32 %v5310_v14, %v5210_v4  ;;  %7357 = vmatprep.subr.bf16.mxu1 %v8304_v23 }
 0x27a   : > { %v5213_v46 = vpop.f32.mrf.mxu0 }
 0x27b   : > { %v11556_v52 = vpop.f32.mrf.mxu1  ;;  %v11561_v57 = vadd.f32 %v5213_v46, %v5113_v42  ;;  %v11563_v22 = vadd.f32 %v5312_v39, %v5212_v8 }
 0x27c   : > { %v5217_v50 = vpop.f32.mrf.mxu0  ;;  %5822 = vmatmul.mubr.bf16.gmra.mxu0 %v12335_v32  ;;  %v6092_v32 = vpack.c.bf16 %v5944_v26, %v6044_v33  ;;  %7358 = vmatpush3.bf16.msra.mxu1 %v8305_v25  ;;  %v6051_v33 = vld [vmem:[%s10987_s24 + $0x80] sm:$0xff] }
 0x27d   : > { %5923 = vmatmul.mubr.bf16.gmra.mxu1 %v12336_v28  ;;  %v5318_v14 = vpop.f32.mrf.mxu1  ;;  %v5218_v21 = vadd.f32 %v5217_v50, %v5117_v56  ;;  %6410 = vmatprep.mubr.bf16.mxu0 %v6088_v47  ;;  %v6087_v56 = vpack.c.bf16 %v6039_v7, %v6035_v31  ;;  %v8306_v50 = vld [vmem:[%s11959_s3 + $0xd8] sm:$0xff]   ;;  %v8308_v7 = vld [vmem:[%s11959_s3 + $0xd0] sm:$0xff]  }
 0x27e   : > { %v5219_v55 = vpop.f32.mrf.mxu0  ;;  %v8307_v28 = vld [vmem:[%s11959_s3 + $0x98] sm:$0xff]   ;;  %7359 = vmatprep.subr.bf16.mxu1 %v8306_v50  ;;  %v8309_v31 = vld [vmem:[%s11959_s3 + $0x90] sm:$0xff]   ;;  %v8310_v50 = vld [vmem:[%s11959_s3 + $0xc8] sm:$0xff]  }
 0x27f   : > { %v5320_v4 = vpop.f32.mrf.mxu1  ;;  %v5220_v37 = vadd.f32 %v5219_v55, %v5119_v49  ;;  %v11572_v39 = vadd.f32 %v5318_v14, %v5218_v21  ;;  %v6047_v14 = vld [vmem:[%s10987_s24 + $0x60] sm:$0xff] }
 0x280   : > { %v5221_v42 = vpop.f32.mrf.mxu0  ;;  %7360 = vmatpush3.bf16.msra.mxu1 %v8307_v28  ;;  %v6043_v49 = vld [vmem:[%s10987_s24 + $0x40] sm:$0xff] }
 0x281   : > { %v5322_v8 = vpop.f32.mrf.mxu1  ;;  %v11576_v46 = vadd.f32 %v5320_v4, %v5220_v37  ;;  %v6091_v21 = vpack.c.bf16 %v6047_v14, %v6043_v49  ;;  %7361 = vmatprep.subr.bf16.mxu1 %v8308_v7 }
 0x282   : > { %v5222_v47 = vpop.f32.mrf.mxu0 }
 0x283   : > { %v5323_v59 = vpop.f32.mrf.mxu1 }
 0x284   : > { %6411 = vmatmul.mubr.bf16.vlgmr.msra.gmra.mxu0 %v6087_v56  ;;  %7362 = vmatpush3.bf16.msra.mxu1 %v8309_v31 }
 0x285   : > { %6418 = vmatprep.mubr.bf16.mxu0 %v6092_v32  ;;  %7363 = vmatprep.subr.bf16.mxu1 %v8310_v50  ;;  %v5285_v50 = vadd.f32 %v11465_v35, %v11472_v43 }
 0x28c   : > { %v5359_v55 = vpop.f32.mrf.mxu0  ;;  %6419 = vmatmul.mubr.bf16.gmra.mxu0 %v6091_v21  ;;  %v8312_v21 = vld [vmem:[%s11959_s3 + $0xc0] sm:$0xff]  }
 0x28d   : > { %v5460_v4 = vpop.f32.mrf.mxu1  ;;  %v5360_v9 = vadd.f32 %v5359_v55, %v11388_v11  ;;  %6426 = vmatprep.mubr.bf16.mxu0 %v11168_v38  ;;  %v5265_v38 = vadd.f32 %v11397_v44, %v11406_v36  ;;  %v8311_v44 = vld [vmem:[%s11959_s3 + $0x88] sm:$0xff]  }
 0x28e   : > { %v5361_v26 = vpop.f32.mrf.mxu0  ;;  %7364 = vmatpush3.bf16.msra.mxu1 %v8311_v44 }
 0x28f   : > { %v5462_v37 = vpop.f32.mrf.mxu1  ;;  %v11600_v42 = vadd.f32 %v5460_v4, %v5360_v9  ;;  %v5362_v8 = vadd.f32 %v5361_v26, %v11395_v58  ;;  %v6095_v58 = vpack.c.bf16 %v5951_v54, %v6051_v33  ;;  %v8313_v9 = vld [vmem:[%s11959_s3 + $0x80] sm:$0xff]   ;;  %7365 = vmatprep.subr.bf16.mxu1 %v8312_v21 }
 0x290   : > { %v5363_v23 = vpop.f32.mrf.mxu0 }
 0x291   : > { %v5464_v25 = vpop.f32.mrf.mxu1  ;;  %v11609_v11 = vadd.f32 %v5462_v37, %v5362_v8  ;;  %v5364_v56 = vadd.f32 %v5363_v23, %v11404_v61 }
 0x292   : > { %v5365_v47 = vpop.f32.mrf.mxu0  ;;  %7366 = vmatpush3.bf16.msra.mxu1 %v8313_v9  ;;  %v5295_v9 = vadd.f32 %v11496_v53, %v11500_v63 }
 0x293   : > { %v5466_v59 = vpop.f32.mrf.mxu1  ;;  %v11617_v32 = vadd.f32 %v5464_v25, %v5364_v56  ;;  %v5366_v28 = vadd.f32 %v5365_v47, %v5265_v38 }
 0x294   : > { %v5369_v36 = vpop.f32.mrf.mxu0  ;;  %6427 = vmatmul.mubr.bf16.gmra.mxu0 %v6095_v58 }
 0x295   : > { %v5470_v61 = vpop.f32.mrf.mxu1  ;;  %v11622_v14 = vadd.f32 %v5466_v59, %v5366_v28  ;;  %v5370_v62 = vadd.f32 %v5369_v36, %v11422_v51  ;;  %6434 = vmatprep.mubr.bf16.mxu0 %v11224_v10  ;;  %v5275_v10 = vadd.f32 %v11431_v48, %v11438_v0 }
 0x296   : > { %v5371_v54 = vpop.f32.mrf.mxu0 }
 0x297   : > { %v5472_v49 = vpop.f32.mrf.mxu1  ;;  %v5372_v55 = vadd.f32 %v5371_v54, %v11429_v1  ;;  %v11630_v4 = vadd.f32 %v5470_v61, %v5370_v62 }
 0x298   : > { %v5373_v26 = vpop.f32.mrf.mxu0 }
 0x299   : > { %v5474_v37 = vpop.f32.mrf.mxu1  ;;  %v5374_v51 = vadd.f32 %v5373_v26, %v11440_v41  ;;  %v11638_v7 = vadd.f32 %v5472_v49, %v5372_v55 }
 0x29a   : > { %v5375_v8 = vpop.f32.mrf.mxu0 }
 0x29b   : > { %v5476_v33 = vpop.f32.mrf.mxu1  ;;  %v5376_v1 = vadd.f32 %v5375_v8, %v5275_v10  ;;  %v11640_v31 = vadd.f32 %v5474_v37, %v5374_v51 }
 0x29c   : > { %v5379_v23 = vpop.f32.mrf.mxu0  ;;  %6435 = vmatmul.mubr.bf16.gmra.mxu0 %v11208_v24 }
 0x29d   : > { %v5480_v25 = vpop.f32.mrf.mxu1  ;;  %v5380_v38 = vadd.f32 %v5379_v23, %v11456_v5  ;;  %v11644_v56 = vadd.f32 %v5476_v33, %v5376_v1  ;;  %6442 = vmatprep.mubr.bf16.mxu0 %v11280_v27 }
 0x29e   : > { %v5381_v48 = vpop.f32.mrf.mxu0 }
 0x29f   : > { %v5482_v0 = vpop.f32.mrf.mxu1  ;;  %v5382_v41 = vadd.f32 %v5381_v48, %v11463_v16  ;;  %v11648_v47 = vadd.f32 %v5480_v25, %v5380_v38 }
 0x2a0   : > { %v5383_v59 = vpop.f32.mrf.mxu0 }
 0x2a1   : > { %v5484_v58 = vpop.f32.mrf.mxu1  ;;  %v5384_v24 = vadd.f32 %v5383_v59, %v11474_v3  ;;  %v11653_v28 = vadd.f32 %v5482_v0, %v5382_v41  ;;  %v6111_v41 = vpack.c.bf16 %v11327_v13, %v11327_v13  ;;  %v5315_v13 = vadd.f32 %v11556_v52, %v11561_v57 }
 0x2a2   : > { %v5385_v5 = vpop.f32.mrf.mxu0 }
 0x2a3   : > { %v5486_v44 = vpop.f32.mrf.mxu1  ;;  %v5386_v36 = vadd.f32 %v5385_v5, %v5285_v50  ;;  %v11655_v61 = vadd.f32 %v5484_v58, %v5384_v24 }
 0x2a4   : > { %v5389_v27 = vpop.f32.mrf.mxu0  ;;  %6443 = vmatmul.mubr.bf16.gmra.mxu0 %v11264_v20 }
 0x2a5   : > { %v5490_v16 = vpop.f32.mrf.mxu1  ;;  %v5390_v62 = vadd.f32 %v5389_v27, %v11490_v60  ;;  %v11659_v54 = vadd.f32 %v5486_v44, %v5386_v36  ;;  %6450 = vmatprep.mubr.bf16.mxu0 %v11331_v40  ;;  %v6112_v40 = vpack.c.bf16 %v11335_v29, %v11335_v29  ;;  %v5305_v29 = vadd.f32 %v11524_v30, %v11528_v15 }
 0x2a6   : > { %v5391_v35 = vpop.f32.mrf.mxu0 }
 0x2a7   : > { %v5492_v43 = vpop.f32.mrf.mxu1  ;;  %v5392_v3 = vadd.f32 %v5391_v35, %v11494_v6  ;;  %v11663_v49 = vadd.f32 %v5490_v16, %v5390_v62 }
 0x2a8   : > { %v5393_v21 = vpop.f32.mrf.mxu0 }
 0x2a9   : > { %v5494_v55 = vpop.f32.mrf.mxu1  ;;  %v5394_v20 = vadd.f32 %v5393_v21, %v11502_v34  ;;  %v11668_v26 = vadd.f32 %v5492_v43, %v5392_v3 }
 0x2aa   : > { %v5395_v60 = vpop.f32.mrf.mxu0 }
 0x2ab   : > { %v5496_v37 = vpop.f32.mrf.mxu1  ;;  %v5396_v10 = vadd.f32 %v5395_v60, %v5295_v9  ;;  %v11670_v51 = vadd.f32 %v5494_v55, %v5394_v20 }
 0x2ac   : > { %v5399_v6 = vpop.f32.mrf.mxu0  ;;  %6451 = vmatmul.mubr.bf16.gmra.mxu0 %v11316_v2 }
 0x2ad   : > { %v5500_v8 = vpop.f32.mrf.mxu1  ;;  %v5400_v33 = vadd.f32 %v5399_v6, %v11518_v19  ;;  %v11676_v1 = vadd.f32 %v5496_v37, %v5396_v10  ;;  %6458 = vmatprep.mubr.bf16.mxu0 %v6112_v40 }
 0x2ae   : > { %v5401_v53 = vpop.f32.mrf.mxu0 }
 0x2af   : > { %v5502_v63 = vpop.f32.mrf.mxu1  ;;  %v5402_v34 = vadd.f32 %v5401_v53, %v11522_v45  ;;  %v11679_v23 = vadd.f32 %v5500_v8, %v5400_v33 }
 0x2b0   : > { %v5403_v25 = vpop.f32.mrf.mxu0 }
 0x2b1   : > { %v5504_v38 = vpop.f32.mrf.mxu1  ;;  %v5404_v48 = vadd.f32 %v5403_v25, %v11530_v12  ;;  %v11684_v2 = vadd.f32 %v5502_v63, %v5402_v34 }
 0x2b2   : > { %v5405_v0 = vpop.f32.mrf.mxu0 }
 0x2b3   : > { %12337 = vst [vmem:[#allocation15_spill] sm:$0xff] %v11684_v2  ;;  %v5506_v19 = vpop.f32.mrf.mxu1  ;;  %v5406_v59 = vadd.f32 %v5405_v0, %v5305_v29  ;;  %v11688_v58 = vadd.f32 %v5504_v38, %v5404_v48 }
 0x2b4   : > { %v5409_v45 = vpop.f32.mrf.mxu0  ;;  %6459 = vmatmul.mubr.bf16.gmra.mxu0 %v6111_v41 }
 0x2b5   : > { %12338 = vst [vmem:[#allocation42_spill] sm:$0xff] %v11688_v58  ;;  %v5510_v50 = vpop.f32.mrf.mxu1  ;;  %v5410_v24 = vadd.f32 %v5409_v45, %v11546_v17  ;;  %v11691_v5 = vadd.f32 %v5506_v19, %v5406_v59 }
 0x2b6   : > { %v5411_v30 = vpop.f32.mrf.mxu0 }
 0x2b7   : > { %12339 = vst [vmem:[#allocation17_spill] sm:$0xff] %v11691_v5  ;;  %v5512_v15 = vpop.f32.mrf.mxu1  ;;  %v5412_v12 = vadd.f32 %v5411_v30, %v11551_v18  ;;  %v11694_v44 = vadd.f32 %v5510_v50, %v5410_v24 }
 0x2b8   : > { %v5413_v36 = vpop.f32.mrf.mxu0 }
 0x2b9   : > { %12340 = vst [vmem:[#allocation44_spill] sm:$0xff] %v11694_v44  ;;  %v5514_v27 = vpop.f32.mrf.mxu1  ;;  %v5414_v16 = vadd.f32 %v5413_v36, %v11563_v22  ;;  %v11699_v62 = vadd.f32 %v5512_v15, %v5412_v12 }
 0x2ba   : > { %v5415_v35 = vpop.f32.mrf.mxu0 }
 0x2bb   : > { %12341 = vst [vmem:[#allocation19_spill] sm:$0xff] %v11699_v62  ;;  %v5516_v43 = vpop.f32.mrf.mxu1  ;;  %v5416_v17 = vadd.f32 %v5415_v35, %v5315_v13  ;;  %v11701_v3 = vadd.f32 %v5514_v27, %v5414_v16 }
 0x2bc   : > { %v5419_v21 = vpop.f32.mrf.mxu0 }
 0x2bd   : > { %12342 = vst [vmem:[#allocation46_spill] sm:$0xff] %v11701_v3  ;;  %v5520_v55 = vpop.f32.mrf.mxu1  ;;  %v5420_v18 = vadd.f32 %v5419_v21, %v11572_v39  ;;  %v11704_v9 = vadd.f32 %v5516_v43, %v5416_v17 }
 0x2be   : > { %v5421_v20 = vpop.f32.mrf.mxu0 }
 0x2bf   : > { %12343 = vst [vmem:[#allocation21_spill] sm:$0xff] %v11704_v9  ;;  %v5522_v60 = vpop.f32.mrf.mxu1  ;;  %v5422_v37 = vadd.f32 %v5421_v20, %v11576_v46  ;;  %v11707_v52 = vadd.f32 %v5520_v55, %v5420_v18 }
 0x2c0   : > { %v5423_v57 = vpop.f32.mrf.mxu0 }
 0x2c1   : > { %12344 = vst [vmem:[#allocation48_spill] sm:$0xff] %v11707_v52  ;;  %v5524_v22 = vpop.f32.mrf.mxu1  ;;  %v11709_v10 = vadd.f32 %v5522_v60, %v5422_v37 }
 0x2c2   : > { %v5424_v40 = vpop.f32.mrf.mxu0 }
 0x2c3   : > { %12345 = vst [vmem:[#allocation23_spill] sm:$0xff] %v11709_v10  ;;  %v5525_v6 = vpop.f32.mrf.mxu1 }
 0x2cc   : > { %v5561_v8 = vpop.f32.mrf.mxu0 }
 0x2cd   : > { %v5662_v33 = vpop.f32.mrf.mxu1 }
 0x2ce   : > { %v5563_v53 = vpop.f32.mrf.mxu0 }
 0x2cf   : > { %v5664_v63 = vpop.f32.mrf.mxu1 }
 0x2d0   : > { %v5565_v34 = vpop.f32.mrf.mxu0 }
 0x2d1   : > { %v5666_v39 = vpop.f32.mrf.mxu1 }
 0x2d2   : > { %v5567_v25 = vpop.f32.mrf.mxu0 }
 0x2d3   : > { %v11711_v38 = vpop.f32.mrf.mxu1 }
 0x2d4   : > { %v5571_v29 = vpop.f32.mrf.mxu0 }
 0x2d5   : > { %v11713_v48 = vpop.f32.mrf.mxu1 }
 0x2d6   : > { %v11715_v46 = vpop.f32.mrf.mxu0 }
 0x2d7   : > { %v11717_v0 = vpop.f32.mrf.mxu1 }
 0x2d8   : > { %v11719_v19 = vpop.f32.mrf.mxu0 }
 0x2d9   : > { %v11721_v41 = vpop.f32.mrf.mxu1 }
 0x2da   : > { %v11723_v59 = vpop.f32.mrf.mxu0 }
 0x2db   : > { %v11725_v45 = vpop.f32.mrf.mxu1 }
 0x2dc   : > { %v11727_v50 = vpop.f32.mrf.mxu0 }
 0x2dd   : > { %v11729_v24 = vpop.f32.mrf.mxu1 }
 0x2de   : > { %v11731_v30 = vpop.f32.mrf.mxu0 }
 0x2df   : > { %v11733_v15 = vpop.f32.mrf.mxu1 }
 0x2e0   : > { %v11735_v12 = vpop.f32.mrf.mxu0 }
 0x2e1   : > { %v11737_v36 = vpop.f32.mrf.mxu1 }
 0x2e2   : > { %v11739_v27 = vpop.f32.mrf.mxu0 }
 0x2e3   : > { %v11741_v13 = vpop.f32.mrf.mxu1 }
 0x2e4   : > { %v11743_v16 = vpop.f32.mrf.mxu0 }
 0x2e5   : > { %v11745_v35 = vpop.f32.mrf.mxu1 }
 0x2e6   : > { %v11747_v43 = vpop.f32.mrf.mxu0 }
 0x2e7   : > { %v11749_v17 = vpop.f32.mrf.mxu1 }
 0x2e8   : > { %v11751_v21 = vpop.f32.mrf.mxu0 }
 0x2e9   : > { %v11753_v55 = vpop.f32.mrf.mxu1 }
 0x2ea   : > { %v11755_v18 = vpop.f32.mrf.mxu0 }
 0x2eb   : > { %v11757_v20 = vpop.f32.mrf.mxu1 }
 0x2ec   : > { %12346 = vst [vmem:[#allocation50_spill] sm:$0xff] %v11757_v20  ;;  %v11759_v60 = vpop.f32.mrf.mxu0 }
 0x2ed   : > { %12347 = vst [vmem:[#allocation25_spill] sm:$0xff] %v11759_v60  ;;  %v11761_v37 = vpop.f32.mrf.mxu1 }
 0x2ee   : > { %12348 = vst [vmem:[#allocation52_spill] sm:$0xff] %v11761_v37  ;;  %v11763_v57 = vpop.f32.mrf.mxu0 }
 0x2ef   : > { %12349 = vst [vmem:[#allocation27_spill] sm:$0xff] %v11763_v57  ;;  %v11765_v22 = vpop.f32.mrf.mxu1 }
 0x2f0   : > { %12350 = vst [vmem:[#allocation54_spill] sm:$0xff] %v11765_v22  ;;  %v11767_v40 = vpop.f32.mrf.mxu0 }
 0x2f1   : > { %12351 = vst [vmem:[#allocation29_spill] sm:$0xff] %v11767_v40  ;;  %v11769_v6 = vpop.f32.mrf.mxu1 }
 0x2f2   : > { %12352 = vst [vmem:[#allocation56_spill] sm:$0xff] %v11769_v6  ;;  %v11771_v10 = vpop.f32.mrf.mxu0 }
 0x2f3   : > { %12353 = vst [vmem:[#allocation31_spill] sm:$0xff] %v11771_v10  ;;  %v11773_v52 = vpop.f32.mrf.mxu1 }
 0x2f4   : > { %12354 = vst [vmem:[#allocation58_spill] sm:$0xff] %v11773_v52  ;;  %v11775_v9 = vpop.f32.mrf.mxu0 }
 0x2f5   : > { %12355 = vst [vmem:[#allocation33_spill] sm:$0xff] %v11775_v9  ;;  %v11777_v3 = vpop.f32.mrf.mxu1 }
 0x2f6   : > { %12356 = vst [vmem:[#allocation60_spill] sm:$0xff] %v11777_v3  ;;  %v11779_v62 = vpop.f32.mrf.mxu0 }
 0x2f7   : > { %12357 = vst [vmem:[#allocation35_spill] sm:$0xff] %v11779_v62  ;;  %v11781_v44 = vpop.f32.mrf.mxu1 }
 0x2f8   : > { %12358 = vst [vmem:[#allocation62_spill] sm:$0xff] %v11781_v44  ;;  %v11783_v5 = vpop.f32.mrf.mxu0 }
 0x2f9   : > { %12359 = vst [vmem:[#allocation37_spill] sm:$0xff] %v11783_v5  ;;  %v11785_v37 = vpop.f32.mrf.mxu1  ;;  %v5562_v5 = vadd.f32 %v5561_v8, %v11600_v42 }
 0x2fa   : > { %12360 = vst [vmem:[#allocation64_spill] sm:$0xff] %v11785_v37  ;;  %v11787_v22 = vpop.f32.mrf.mxu0  ;;  %v5564_v37 = vadd.f32 %v5563_v53, %v11609_v11  ;;  %v5576_v53 = vadd.f32 %v11719_v19, %v11640_v31 }
 0x2fb   : > { %12361 = vst [vmem:[#allocation39_spill] sm:$0xff] %v11787_v22  ;;  %v11789_v40 = vpop.f32.mrf.mxu1  ;;  %v5663_v57 = vadd.f32 %v5662_v33, %v5562_v5  ;;  %v5566_v22 = vadd.f32 %v5565_v34, %v11617_v32  ;;  %v5574_v32 = vadd.f32 %v11715_v46, %v11638_v7 }
 0x2fc   : > { %12362 = vst [vmem:[#allocation66_spill] sm:$0xff] %v11789_v40  ;;  %v11791_v6 = vpop.f32.mrf.mxu0  ;;  %v5568_v40 = vadd.f32 %v5567_v25, %v11622_v14  ;;  %v5677_v19 = vadd.f32 %v11721_v41, %v5576_v53 }
 0x2fd   : > { %12363 = vst [vmem:[#allocation41_spill] sm:$0xff] %v11791_v6  ;;  %v11793_v10 = vpop.f32.mrf.mxu1 }
 0x2fe   : > { %12364 = vst [vmem:[#allocation69_spill] sm:$0xff] %v11793_v10  ;;  %v11795_v52 = vpop.f32.mrf.mxu0  ;;  %v5665_v10 = vadd.f32 %v5664_v63, %v5564_v37  ;;  %v5669_v42 = vadd.f32 %v11711_v38, %v5568_v40  ;;  %v5675_v38 = vadd.f32 %v11717_v0, %v5574_v32 }
 0x2ff   : > { %12365 = vst [vmem:[#allocation43_spill] sm:$0xff] %v11795_v52  ;;  %v11797_v9 = vpop.f32.mrf.mxu1 }
 0x300   : > { %v5625_v3 = vpop.f32.mrf.mxu0 }
 0x301   : > { %v5726_v62 = vpop.f32.mrf.mxu1  ;;  %v5667_v3 = vadd.f32 %v5666_v39, %v5566_v22  ;;  %v5578_v39 = vadd.f32 %v11723_v59, %v11644_v56  ;;  %v5584_v22 = vadd.f32 %v11731_v30, %v11653_v28  ;;  %v5588_v30 = vadd.f32 %v11739_v27, %v11659_v54 }
 0x302   : > { %v5626_v58 = vpop.f32.mrf.mxu0 }
 0x303   : > { %v5727_v44 = vpop.f32.mrf.mxu1  ;;  %v5572_v58 = vadd.f32 %v5571_v29, %v11630_v4  ;;  %v5679_v0 = vadd.f32 %v11725_v45, %v5578_v39 }
 0x305   : > { %v5673_v4 = vadd.f32 %v11713_v48, %v5572_v58  ;;  %v5582_v48 = vadd.f32 %v11727_v50, %v11648_v47  ;;  %v5586_v50 = vadd.f32 %v11735_v12, %v11655_v61 }
 0x30c   : > { %v5763_v6 = vpop.f32.mrf.mxu0 }
 0x30d   : > { %v5864_v2 = vpop.f32.mrf.mxu1  ;;  %v5764_v20 = vadd.f32 %v5763_v6, %v5663_v57 }
 0x30e   : > { %v5765_v52 = vpop.f32.mrf.mxu0 }
 0x30f   : > { %v5866_v60 = vpop.f32.mrf.mxu1  ;;  %v5865_v44 = vadd.f32 %v5864_v2, %v5764_v20  ;;  %v5766_v62 = vadd.f32 %v5765_v52, %v5665_v10 }
 0x310   : > { %v5767_v11 = vpop.f32.mrf.mxu0 }
 0x311   : > { %v5868_v5 = vpop.f32.mrf.mxu1  ;;  %v5933_v14 = vmax.f32 %v5865_v44, 0.0  ;;  %v5867_v8 = vadd.f32 %v5866_v60, %v5766_v62  ;;  %v5768_v33 = vadd.f32 %v5767_v11, %v5667_v3 }
 0x312   : > { %v5769_v63 = vpop.f32.mrf.mxu0 }
 0x313   : > { %v5870_v34 = vpop.f32.mrf.mxu1  ;;  %5985 = vst [vmem:[%s10987_s24 + $0x10] sm:$0xff] %v5933_v14  ;;  %v5934_v2 = vmax.f32 %v5867_v8, 0.0  ;;  %v5869_v52 = vadd.f32 %v5868_v5, %v5768_v33  ;;  %v5770_v10 = vadd.f32 %v5769_v63, %v5669_v42  ;;  %v5683_v42 = vadd.f32 %v11729_v24, %v5582_v48 }
 0x314   : > { %v5773_v7 = vpop.f32.mrf.mxu0  ;;  %v5687_v24 = vadd.f32 %v11737_v36, %v5586_v50  ;;  %v5592_v33 = vadd.f32 %v11743_v16, %v11663_v49  ;;  %v5596_v16 = vadd.f32 %v11751_v21, %v11670_v51 }
 0x315   : > { %v5874_v25 = vpop.f32.mrf.mxu1  ;;  %5986 = vst [vmem:[%s10987_s24 + $0x18] sm:$0xff] %v5934_v2  ;;  %v5937_v29 = vmax.f32 %v5869_v52, 0.0  ;;  %v5871_v31 = vadd.f32 %v5870_v34, %v5770_v10  ;;  %v5774_v46 = vadd.f32 %v5773_v7, %v5673_v4 }
 0x316   : > { %v5775_v20 = vpop.f32.mrf.mxu0 }
 0x317   : > { %v5876_v60 = vpop.f32.mrf.mxu1  ;;  %5989 = vst [vmem:[%s10987_s24 + $0x30] sm:$0xff] %v5937_v29  ;;  %v5938_v37 = vmax.f32 %v5871_v31, 0.0  ;;  %v5875_v57 = vadd.f32 %v5874_v25, %v5774_v46  ;;  %v5776_v56 = vadd.f32 %v5775_v20, %v5675_v38  ;;  %v6089_v59 = vpack.c.bf16 %v5937_v29, %v5933_v14 }
 0x318   : > { %v5777_v40 = vpop.f32.mrf.mxu0  ;;  %v5685_v14 = vadd.f32 %v11733_v15, %v5584_v22  ;;  %v5689_v15 = vadd.f32 %v11741_v13, %v5588_v30  ;;  %v5693_v29 = vadd.f32 %v11745_v35, %v5592_v33  ;;  %v5697_v35 = vadd.f32 %v11753_v55, %v5596_v16  ;;  %v12367_v22 = vld [vmem:[#allocation50_spill] sm:$0xff] }
 0x319   : > { %v5878_v6 = vpop.f32.mrf.mxu1  ;;  %5990 = vst [vmem:[%s10987_s24 + $0x38] sm:$0xff] %v5938_v37  ;;  %v5941_v41 = vmax.f32 %v5875_v57, 0.0  ;;  %v5877_v3 = vadd.f32 %v5876_v60, %v5776_v56  ;;  %v5778_v58 = vadd.f32 %v5777_v40, %v5677_v19  ;;  %v6090_v47 = vpack.c.bf16 %v5938_v37, %v5934_v2  ;;  %v12366_v60 = vld [vmem:[#allocation25_spill] sm:$0xff]  ;;  %v12368_v40 = vld [vmem:[#allocation15_spill] sm:$0xff] }
 0x31a   : > { %v5779_v44 = vpop.f32.mrf.mxu0  ;;  %v5594_v2 = vadd.f32 %v11747_v43, %v11668_v26  ;;  %v5598_v43 = vadd.f32 %v11755_v18, %v11676_v1  ;;  %v5602_v37 = vadd.f32 %v12366_v60, %v11679_v23 }
 0x31b   : > { %v5880_v62 = vpop.f32.mrf.mxu1  ;;  %5993 = vst [vmem:[%s10987_s24 + $0x50] sm:$0xff] %v5941_v41  ;;  %v5942_v45 = vmax.f32 %v5877_v3, 0.0  ;;  %v5879_v11 = vadd.f32 %v5878_v6, %v5778_v58  ;;  %v5780_v28 = vadd.f32 %v5779_v44, %v5679_v0  ;;  %6498 = vmatprep.mubr.bf16.mxu1 %v6090_v47  ;;  %v12369_v6 = vld [vmem:[#allocation27_spill] sm:$0xff]  ;;  %v12370_v44 = vld [vmem:[#allocation42_spill] sm:$0xff] }
 0x31c   : > { %v5783_v5 = vpop.f32.mrf.mxu0  ;;  %6499 = vmatmul.mubr.bf16.vlgmr.msra.gmra.mxu1 %v6089_v59  ;;  %v5695_v48 = vadd.f32 %v11749_v17, %v5594_v2  ;;  %v5699_v17 = vadd.f32 %v12367_v22, %v5598_v43  ;;  %v12377_v2 = vld [vmem:[#allocation44_spill] sm:$0xff]  ;;  %v12385_v22 = vld [vmem:[#allocation21_spill] sm:$0xff] }
 0x31d   : > { %v5884_v32 = vpop.f32.mrf.mxu1  ;;  %5994 = vst [vmem:[%s10987_s24 + $0x58] sm:$0xff] %v5942_v45  ;;  %v5945_v61 = vmax.f32 %v5879_v11, 0.0  ;;  %v5881_v12 = vadd.f32 %v5880_v62, %v5780_v28  ;;  %v5784_v8 = vadd.f32 %v5783_v5, %v5683_v42  ;;  %v12371_v62 = vld [vmem:[#allocation29_spill] sm:$0xff]  ;;  %v12372_v28 = vld [vmem:[#allocation52_spill] sm:$0xff] }
 0x31e   : > { %v5785_v53 = vpop.f32.mrf.mxu0  ;;  %v5606_v42 = vadd.f32 %v12371_v62, %v12370_v44  ;;  %v5703_v30 = vadd.f32 %v12372_v28, %v5602_v37  ;;  %v12389_v62 = vld [vmem:[#allocation48_spill] sm:$0xff] }
 0x31f   : > { %v5886_v63 = vpop.f32.mrf.mxu1  ;;  %5997 = vst [vmem:[%s10987_s24 + $0x70] sm:$0xff] %v5945_v61  ;;  %v5946_v34 = vmax.f32 %v5881_v12, 0.0  ;;  %v5885_v54 = vadd.f32 %v5884_v32, %v5784_v8  ;;  %v5786_v27 = vadd.f32 %v5785_v53, %v5685_v14  ;;  %v6093_v4 = vpack.c.bf16 %v5945_v61, %v5941_v41  ;;  %v12373_v61 = vld [vmem:[#allocation17_spill] sm:$0xff]  ;;  %v12374_v12 = vld [vmem:[#allocation31_spill] sm:$0xff]  ;;  %v12375_v53 = vld [vmem:[#allocation54_spill] sm:$0xff] }
 0x320   : > { %v5787_v52 = vpop.f32.mrf.mxu0  ;;  %v5604_v41 = vadd.f32 %v12369_v6, %v12368_v40  ;;  %v5608_v8 = vadd.f32 %v12374_v12, %v12373_v61  ;;  %v12391_v61 = vld [vmem:[#allocation66_spill] sm:$0xff] }
 0x321   : > { %v5888_v10 = vpop.f32.mrf.mxu1  ;;  %5998 = vst [vmem:[%s10987_s24 + $0x78] sm:$0xff] %v5946_v34  ;;  %v5949_v36 = vmax.f32 %v5885_v54, 0.0  ;;  %v5887_v39 = vadd.f32 %v5886_v63, %v5786_v27  ;;  %v5788_v7 = vadd.f32 %v5787_v52, %v5687_v24  ;;  %v6094_v49 = vpack.c.bf16 %v5946_v34, %v5942_v45  ;;  %v12378_v52 = vld [vmem:[#allocation33_spill] sm:$0xff] }
 0x322   : > { %v5789_v25 = vpop.f32.mrf.mxu0  ;;  %v5705_v63 = vadd.f32 %v12375_v53, %v5604_v41 }
 0x323   : > { %v5890_v38 = vpop.f32.mrf.mxu1  ;;  %6001 = vst [vmem:[%s10987_s24 + $0x90] sm:$0xff] %v5949_v36  ;;  %v5950_v13 = vmax.f32 %v5887_v39, 0.0  ;;  %v5889_v31 = vadd.f32 %v5888_v10, %v5788_v7  ;;  %v5790_v26 = vadd.f32 %v5789_v25, %v5689_v15  ;;  %6506 = vmatprep.mubr.bf16.mxu1 %v6094_v49  ;;  %v5612_v10 = vadd.f32 %v12378_v52, %v12377_v2  ;;  %v12394_v52 = vld [vmem:[#allocation69_spill] sm:$0xff] }
 0x324   : > { %v5793_v46 = vpop.f32.mrf.mxu0  ;;  %6507 = vmatmul.mubr.bf16.gmra.mxu1 %v6093_v4  ;;  %v12376_v4 = vld [vmem:[#allocation56_spill] sm:$0xff] }
 0x325   : > { %v5894_v19 = vpop.f32.mrf.mxu1  ;;  %6002 = vst [vmem:[%s10987_s24 + $0x98] sm:$0xff] %v5950_v13  ;;  %v5953_v51 = vmax.f32 %v5889_v31, 0.0  ;;  %v5891_v21 = vadd.f32 %v5890_v38, %v5790_v26  ;;  %v5794_v20 = vadd.f32 %v5793_v46, %v5693_v29  ;;  %v5707_v15 = vadd.f32 %v12376_v4, %v5606_v42  ;;  %v12379_v38 = vld [vmem:[#allocation58_spill] sm:$0xff]  ;;  %v12381_v31 = vld [vmem:[#allocation35_spill] sm:$0xff]  ;;  %v12390_v42 = vld [vmem:[#allocation41_spill] sm:$0xff] }
 0x326   : > { %v5795_v57 = vpop.f32.mrf.mxu0  ;;  %v5709_v29 = vadd.f32 %v12379_v38, %v5608_v8  ;;  %v12392_v8 = vld [vmem:[#allocation23_spill] sm:$0xff] }
 0x327   : > { %v5896_v56 = vpop.f32.mrf.mxu1  ;;  %6005 = vst [vmem:[%s10987_s24 + $0xb0] sm:$0xff] %v5953_v51  ;;  %v5954_v59 = vmax.f32 %v5891_v21, 0.0  ;;  %v5895_v1 = vadd.f32 %v5894_v19, %v5794_v20  ;;  %v5796_v18 = vadd.f32 %v5795_v57, %v5695_v48  ;;  %v6097_v0 = vpack.c.bf16 %v5953_v51, %v5949_v36  ;;  %v12382_v20 = vld [vmem:[#allocation46_spill] sm:$0xff] }
 0x328   : > { %v5797_v3 = vpop.f32.mrf.mxu0 }
 0x329   : > { %v5898_v58 = vpop.f32.mrf.mxu1  ;;  %6006 = vst [vmem:[%s10987_s24 + $0xb8] sm:$0xff] %v5954_v59  ;;  %v5957_v55 = vmax.f32 %v5895_v1, 0.0  ;;  %v5897_v47 = vadd.f32 %v5896_v56, %v5796_v18  ;;  %v5798_v50 = vadd.f32 %v5797_v3, %v5697_v35  ;;  %v6098_v23 = vpack.c.bf16 %v5954_v59, %v5950_v13  ;;  %v12380_v13 = vld [vmem:[#allocation19_spill] sm:$0xff]  ;;  %v12383_v35 = vld [vmem:[#allocation37_spill] sm:$0xff]  ;;  %v12384_v56 = vld [vmem:[#allocation60_spill] sm:$0xff] }
 0x32a   : > { %v5799_v45 = vpop.f32.mrf.mxu0  ;;  %v5614_v26 = vadd.f32 %v12381_v31, %v12380_v13  ;;  %v5616_v60 = vadd.f32 %v12383_v35, %v12382_v20  ;;  %v5713_v59 = vadd.f32 %v12384_v56, %v5612_v10  ;;  %v12387_v3 = vld [vmem:[#allocation62_spill] sm:$0xff] }
 0x32b   : > { %v5900_v11 = vpop.f32.mrf.mxu1  ;;  %6009 = vst [vmem:[%s10987_s24 + $0xd0] sm:$0xff] %v5957_v55  ;;  %v5958_v5 = vmax.f32 %v5897_v47, 0.0  ;;  %v5899_v32 = vadd.f32 %v5898_v58, %v5798_v50  ;;  %v5800_v14 = vadd.f32 %v5799_v45, %v5699_v17  ;;  %6514 = vmatprep.mubr.bf16.mxu1 %v6098_v23  ;;  %v12386_v17 = vld [vmem:[#allocation39_spill] sm:$0xff]  ;;  %v12388_v23 = vld [vmem:[#allocation64_spill] sm:$0xff]  ;;  %v5622_v45 = vadd.f32 %v12390_v42, %v12389_v62 }
 0x32c   : > { %v5803_v24 = vpop.f32.mrf.mxu0  ;;  %6515 = vmatmul.mubr.bf16.gmra.mxu1 %v6097_v0  ;;  %v5618_v40 = vadd.f32 %v12386_v17, %v12385_v22  ;;  %v5715_v58 = vadd.f32 %v12387_v3, %v5614_v26  ;;  %v5717_v44 = vadd.f32 %v12388_v23, %v5616_v60 }
 0x32d   : > { %v5904_v33 = vpop.f32.mrf.mxu1  ;;  %6010 = vst [vmem:[%s10987_s24 + $0xd8] sm:$0xff] %v5958_v5  ;;  %v5961_v34 = vmax.f32 %v5899_v32, 0.0  ;;  %v5901_v54 = vadd.f32 %v5900_v11, %v5800_v14  ;;  %v5804_v27 = vadd.f32 %v5803_v24, %v5703_v30  ;;  %v12393_v24 = vld [vmem:[#allocation43_spill] sm:$0xff]  ;;  %v5723_v10 = vadd.f32 %v12394_v52, %v5622_v45 }
 0x32e   : > { %v5805_v36 = vpop.f32.mrf.mxu0  ;;  %v5719_v12 = vadd.f32 %v12391_v61, %v5618_v40 }
 0x32f   : > { %v5906_v39 = vpop.f32.mrf.mxu1  ;;  %6013 = vst [vmem:[%s10987_s24 + $0xf0] sm:$0xff] %v5961_v34  ;;  %v5962_v7 = vmax.f32 %v5901_v54, 0.0  ;;  %v5905_v49 = vadd.f32 %v5904_v33, %v5804_v27  ;;  %v5806_v16 = vadd.f32 %v5805_v36, %v5705_v63  ;;  %v6101_v25 = vpack.c.bf16 %v5961_v34, %v5957_v55 }
 0x330   : > { %v5807_v43 = vpop.f32.mrf.mxu0  ;;  %v5624_v33 = vadd.f32 %v12393_v24, %v12392_v8 }
 0x331   : > { %v5908_v46 = vpop.f32.mrf.mxu1  ;;  %6014 = vst [vmem:[%s10987_s24 + $0xf8] sm:$0xff] %v5962_v7  ;;  %v5965_v19 = vmax.f32 %v5905_v49, 0.0  ;;  %v5907_v48 = vadd.f32 %v5906_v39, %v5806_v16  ;;  %v5808_v51 = vadd.f32 %v5807_v43, %v5707_v15  ;;  %v6102_v21 = vpack.c.bf16 %v5962_v7, %v5958_v5 }
 0x332   : > { %v5809_v37 = vpop.f32.mrf.mxu0 }
 0x333   : > { %v5910_v57 = vpop.f32.mrf.mxu1  ;;  %6017 = vst [vmem:[%s10987_s24 + $0x110] sm:$0xff] %v5965_v19  ;;  %v5966_v1 = vmax.f32 %v5907_v48, 0.0  ;;  %v5909_v18 = vadd.f32 %v5908_v46, %v5808_v51  ;;  %v5810_v0 = vadd.f32 %v5809_v37, %v5709_v29  ;;  %6522 = vmatprep.mubr.bf16.mxu1 %v6102_v21 }
 0x334   : > { %v5813_v6 = vpop.f32.mrf.mxu0  ;;  %6523 = vmatmul.mubr.bf16.gmra.mxu1 %v6101_v25  ;;  %v5725_v25 = vadd.f32 %v11797_v9, %v5624_v33 }
 0x335   : > { %v5914_v41 = vpop.f32.mrf.mxu1  ;;  %6018 = vst [vmem:[%s10987_s24 + $0x118] sm:$0xff] %v5966_v1  ;;  %v5969_v55 = vmax.f32 %v5909_v18, 0.0  ;;  %v5911_v47 = vadd.f32 %v5910_v57, %v5810_v0  ;;  %v5814_v50 = vadd.f32 %v5813_v6, %v5713_v59 }
 0x336   : > { %v5815_v11 = vpop.f32.mrf.mxu0 }
 0x337   : > { %v5916_v28 = vpop.f32.mrf.mxu1  ;;  %6021 = vst [vmem:[%s10987_s24 + $0x130] sm:$0xff] %v5969_v55  ;;  %v5970_v30 = vmax.f32 %v5911_v47, 0.0  ;;  %v5915_v5 = vadd.f32 %v5914_v41, %v5814_v50  ;;  %v5816_v32 = vadd.f32 %v5815_v11, %v5715_v58  ;;  %v6105_v14 = vpack.c.bf16 %v5969_v55, %v5965_v19 }
 0x338   : > { %v5817_v53 = vpop.f32.mrf.mxu0 }
 0x339   : > { %v5918_v63 = vpop.f32.mrf.mxu1  ;;  %6022 = vst [vmem:[%s10987_s24 + $0x138] sm:$0xff] %v5970_v30  ;;  %v5973_v34 = vmax.f32 %v5915_v5, 0.0  ;;  %v5917_v54 = vadd.f32 %v5916_v28, %v5816_v32  ;;  %v5818_v27 = vadd.f32 %v5817_v53, %v5717_v44  ;;  %v6106_v4 = vpack.c.bf16 %v5970_v30, %v5966_v1 }
 0x33a   : > { %v5819_v15 = vpop.f32.mrf.mxu0 }
 0x33b   : > { %v5920_v2 = vpop.f32.mrf.mxu1  ;;  %6025 = vst [vmem:[%s10987_s24 + $0x150] sm:$0xff] %v5973_v34  ;;  %v5974_v36 = vmax.f32 %v5917_v54, 0.0  ;;  %v5919_v39 = vadd.f32 %v5918_v63, %v5818_v27  ;;  %v5820_v7 = vadd.f32 %v5819_v15, %v5719_v12  ;;  %6530 = vmatprep.mubr.bf16.mxu1 %v6106_v4 }
 0x33c   : > { %v5823_v49 = vpop.f32.mrf.mxu0  ;;  %6531 = vmatmul.mubr.bf16.gmra.mxu1 %v6105_v14 }
 0x33d   : > { %v5924_v16 = vpop.f32.mrf.mxu1  ;;  %6026 = vst [vmem:[%s10987_s24 + $0x158] sm:$0xff] %v5974_v36  ;;  %v5977_v38 = vmax.f32 %v5919_v39, 0.0  ;;  %v5921_v29 = vadd.f32 %v5920_v2, %v5820_v7  ;;  %v5824_v13 = vadd.f32 %v5823_v49, %v5723_v10  ;;  %v11912_v7 = vld [vmem:[%s11960_s4] ss:$0 sm:$0xff] }
 0x33e   : > { %v5825_v31 = vpop.f32.mrf.mxu0 }
 0x33f   : > { %v5926_v26 = vpop.f32.mrf.mxu1  ;;  %6029 = vst [vmem:[%s10987_s24 + $0x170] sm:$0xff] %v5977_v38  ;;  %v5978_v43 = vmax.f32 %v5921_v29, 0.0  ;;  %v5925_v46 = vadd.f32 %v5924_v16, %v5824_v13  ;;  %v5826_v19 = vadd.f32 %v5825_v31, %v5725_v25  ;;  %v6109_v48 = vpack.c.bf16 %v5977_v38, %v5973_v34 }
 0x340   : > { %v5827_v51 = vpop.f32.mrf.mxu0 }
 0x341   : > { %v5928_v21 = vpop.f32.mrf.mxu1  ;;  %6030 = vst [vmem:[%s10987_s24 + $0x178] sm:$0xff] %v5978_v43  ;;  %v5981_v20 = vmax.f32 %v5925_v46, 0.0  ;;  %v5927_v35 = vadd.f32 %v5926_v26, %v5826_v19  ;;  %v6110_v60 = vpack.c.bf16 %v5978_v43, %v5974_v36 }
 0x342   : > { %v5828_v9 = vpop.f32.mrf.mxu0 }
 0x343   : > { %v5929_v37 = vpop.f32.mrf.mxu1  ;;  %6033 = vst [vmem:[%s10987_s24 + $0x190] sm:$0xff] %v5981_v20  ;;  %v5982_v57 = vmax.f32 %v5927_v35, 0.0  ;;  %6538 = vmatprep.mubr.bf16.mxu1 %v6110_v60  ;;  %v6113_v17 = vpack.c.bf16 %v5981_v20, %v5981_v20 }
 0x344   : > { %v7309_v56 = vpop.f32.mrf.mxu0  ;;  %6539 = vmatmul.mubr.bf16.gmra.mxu1 %v6109_v48 }
 0x345   : > { %6034 = vst [vmem:[%s10987_s24 + $0x198] sm:$0xff] %v5982_v57  ;;  %v6114_v59 = vpack.c.bf16 %v5982_v57, %v5982_v57 }
 0x346   : > { %v7310_v1 = vpop.f32.mrf.mxu0 }
 0x347   : > { %v7311_v18 = vadd.f32 %v7310_v1, %v7309_v56  ;;  %6546 = vmatprep.mubr.bf16.mxu1 %v6114_v59 }
 0x348   : > { %v7312_v0 = vpop.f32.mrf.mxu0 }
 0x349   : > { %v6413_v25 = vadd.f32 %v7311_v18, %v11912_v7 }
 0x34a   : > { %v7313_v22 = vpop.f32.mrf.mxu0 }
 0x34b   : > { %v7314_v40 = vadd.f32 %v7313_v22, %v7312_v0 }
 0x34c   : > { %v7315_v6 = vpop.f32.mrf.mxu0  ;;  %6547 = vmatmul.mubr.bf16.gmra.mxu1 %v6113_v17 }
 0x34d   : > { %v6416_v26 = vadd.f32 %v7314_v40, %v11912_v7 }
 0x34e   : > { %v7316_v41 = vpop.f32.mrf.mxu0 }
 0x34f   : > { %v7317_v3 = vadd.f32 %v7316_v41, %v7315_v6 }
 0x350   : > { %v7318_v58 = vpop.f32.mrf.mxu0 }
 0x351   : > { %v6421_v21 = vadd.f32 %v7317_v3, %v11912_v7 }
 0x352   : > { %v7319_v55 = vpop.f32.mrf.mxu0 }
 0x353   : > { %v7320_v47 = vadd.f32 %v7319_v55, %v7318_v58 }
 0x354   : > { %v7321_v50 = vpop.f32.mrf.mxu0 }
 0x355   : > { %v6424_v57 = vadd.f32 %v7320_v47, %v11912_v7 }
 0x356   : > { %v7322_v23 = vpop.f32.mrf.mxu0 }
 0x357   : > { %v7323_v44 = vadd.f32 %v7322_v23, %v7321_v50 }
 0x358   : > { %v7324_v62 = vpop.f32.mrf.mxu0 }
 0x359   : > { %v6429_v22 = vadd.f32 %v7323_v44, %v11912_v7 }
 0x35a   : > { %v7325_v42 = vpop.f32.mrf.mxu0 }
 0x35b   : > { %v7326_v45 = vadd.f32 %v7325_v42, %v7324_v62 }
 0x35c   : > { %v7327_v11 = vpop.f32.mrf.mxu0 }
 0x35d   : > { %v6432_v58 = vadd.f32 %v7326_v45, %v11912_v7 }
 0x35e   : > { %v7328_v28 = vpop.f32.mrf.mxu0 }
 0x35f   : > { %v11895_v30 = vadd.f32 %v7328_v28, %v7327_v11 }
 0x360   : > { %v7330_v5 = vpop.f32.mrf.mxu0 }
 0x361   : > { %v6437_v42 = vadd.f32 %v11895_v30, %v11912_v7 }
 0x362   : > { %v7331_v32 = vpop.f32.mrf.mxu0 }
 0x363   : > { %v11897_v14 = vadd.f32 %v7331_v32, %v7330_v5 }
 0x364   : > { %v7333_v61 = vpop.f32.mrf.mxu0 }
 0x365   : > { %v6440_v45 = vadd.f32 %v11897_v14, %v11912_v7 }
 0x366   : > { %v7334_v12 = vpop.f32.mrf.mxu0 }
 0x367   : > { %v11899_v8 = vadd.f32 %v7334_v12, %v7333_v61 }
 0x368   : > { %v7336_v24 = vpop.f32.mrf.mxu0 }
 0x369   : > { %v6445_v30 = vadd.f32 %v11899_v8, %v11912_v7 }
 0x36a   : > { %v7337_v33 = vpop.f32.mrf.mxu0 }
 0x36b   : > { %v11901_v53 = vadd.f32 %v7337_v33, %v7336_v24 }
 0x36c   : > { %v7339_v63 = vpop.f32.mrf.mxu0 }
 0x36d   : > { %v6448_v14 = vadd.f32 %v11901_v53, %v11912_v7 }
 0x36e   : > { %v7340_v34 = vpop.f32.mrf.mxu0 }
 0x36f   : > { %v11903_v54 = vadd.f32 %v7340_v34, %v7339_v63 }
 0x370   : > { %v7342_v27 = vpop.f32.mrf.mxu0 }
 0x371   : > { %v6453_v8 = vadd.f32 %v11903_v54, %v11912_v7 }
 0x372   : > { %v7343_v4 = vpop.f32.mrf.mxu0 }
 0x373   : > { %v11905_v15 = vadd.f32 %v7343_v4, %v7342_v27 }
 0x374   : > { %v7345_v2 = vpop.f32.mrf.mxu0 }
 0x375   : > { %v6456_v53 = vadd.f32 %v11905_v15, %v11912_v7 }
 0x376   : > { %v7346_v52 = vpop.f32.mrf.mxu0 }
 0x377   : > { %v11907_v10 = vadd.f32 %v7346_v52, %v7345_v2 }
 0x378   : > { %v7348_v36 = vpop.f32.mrf.mxu0 }
 0x379   : > { %v6461_v54 = vadd.f32 %v11907_v10, %v11912_v7 }
 0x37a   : > { %v7349_v39 = vpop.f32.mrf.mxu0 }
 0x3dc   : > { %v7367_v49 = vpop.f32.mrf.mxu1 }
 0x3de   : > { %v7368_v16 = vpop.f32.mrf.mxu1 }
 0x3df   : > { %v7369_v38 = vadd.f32 %v7368_v16, %v7367_v49 }
 0x3e0   : > { %v7370_v29 = vpop.f32.mrf.mxu1 }
 0x3e1   : > { %v6501_v13 = vadd.f32 %v7369_v38, %v6413_v25 }
 0x3e2   : > { %v7371_v31 = vpop.f32.mrf.mxu1 }
 0x3e3   : > { %v6554_v43 = vmax.f32 %v6501_v13, 0.0  ;;  %v7372_v46 = vadd.f32 %v7371_v31, %v7370_v29 }
 0x3e4   : > { %v7373_v19 = vpop.f32.mrf.mxu1 }
 0x3e5   : > { %6567 = vst [vmem:[%s11919_s16] sm:$0xff] %v6554_v43  ;;  %v6504_v48 = vadd.f32 %v7372_v46, %v6416_v26 }
 0x3e6   : > { %v7374_v51 = vpop.f32.mrf.mxu1 }
 0x3e7   : > { %v6555_v20 = vmax.f32 %v6504_v48, 0.0  ;;  %v7375_v35 = vadd.f32 %v7374_v51, %v7373_v19 }
 0x3e8   : > { %v7376_v60 = vpop.f32.mrf.mxu1 }
 0x3e9   : > { %6568 = vst [vmem:[%s11919_s16 + $0x8] sm:$0xff] %v6555_v20  ;;  %v6509_v9 = vadd.f32 %v7375_v35, %v6421_v21 }
 0x3ea   : > { %v7377_v37 = vpop.f32.mrf.mxu1 }
 0x3eb   : > { %v6556_v56 = vmax.f32 %v6509_v9, 0.0  ;;  %v7378_v59 = vadd.f32 %v7377_v37, %v7376_v60 }
 0x3ec   : > { %v7379_v1 = vpop.f32.mrf.mxu1 }
 0x3ed   : > { %6569 = vst [vmem:[%s11919_s16 + $0x10] sm:$0xff] %v6556_v56  ;;  %v6512_v18 = vadd.f32 %v7378_v59, %v6424_v57 }
 0x3ee   : > { %v7380_v0 = vpop.f32.mrf.mxu1 }
 0x3ef   : > { %v6557_v17 = vmax.f32 %v6512_v18, 0.0  ;;  %v7381_v40 = vadd.f32 %v7380_v0, %v7379_v1 }
 0x3f0   : > { %v7382_v6 = vpop.f32.mrf.mxu1 }
 0x3f1   : > { %6570 = vst [vmem:[%s11919_s16 + $0x18] sm:$0xff] %v6557_v17  ;;  %v6517_v41 = vadd.f32 %v7381_v40, %v6429_v22 }
 0x3f2   : > { %v7383_v3 = vpop.f32.mrf.mxu1 }
 0x3f3   : > { %v6558_v55 = vmax.f32 %v6517_v41, 0.0  ;;  %v7384_v47 = vadd.f32 %v7383_v3, %v7382_v6 }
 0x3f4   : > { %v7385_v50 = vpop.f32.mrf.mxu1 }
 0x3f5   : > { %6571 = vst [vmem:[%s11919_s16 + $0x20] sm:$0xff] %v6558_v55  ;;  %v6520_v23 = vadd.f32 %v7384_v47, %v6432_v58 }
 0x3f6   : > { %v7386_v62 = vpop.f32.mrf.mxu1 }
 0x3f7   : > { %v6559_v44 = vmax.f32 %v6520_v23, 0.0  ;;  %v7387_v11 = vadd.f32 %v7386_v62, %v7385_v50 }
 0x3f8   : > { %v7388_v28 = vpop.f32.mrf.mxu1 }
 0x3f9   : > { %6572 = vst [vmem:[%s11919_s16 + $0x28] sm:$0xff] %v6559_v44  ;;  %v6525_v5 = vadd.f32 %v7387_v11, %v6437_v42 }
 0x3fa   : > { %v7389_v32 = vpop.f32.mrf.mxu1 }
 0x3fb   : > { %v6560_v61 = vmax.f32 %v6525_v5, 0.0  ;;  %v7390_v12 = vadd.f32 %v7389_v32, %v7388_v28 }
 0x3fc   : > { %v7391_v24 = vpop.f32.mrf.mxu1 }
 0x3fd   : > { %6573 = vst [vmem:[%s11919_s16 + $0x30] sm:$0xff] %v6560_v61  ;;  %v6528_v33 = vadd.f32 %v7390_v12, %v6440_v45 }
 0x3fe   : > { %v7392_v63 = vpop.f32.mrf.mxu1 }
 0x3ff   : > { %v6561_v34 = vmax.f32 %v6528_v33, 0.0  ;;  %v7393_v27 = vadd.f32 %v7392_v63, %v7391_v24 }
 0x400   : > { %v7394_v4 = vpop.f32.mrf.mxu1 }
 0x401   : > { %6574 = vst [vmem:[%s11919_s16 + $0x38] sm:$0xff] %v6561_v34  ;;  %v6533_v2 = vadd.f32 %v7393_v27, %v6445_v30 }
 0x402   : > { %v7395_v52 = vpop.f32.mrf.mxu1 }
 0x403   : > { %v6562_v36 = vmax.f32 %v6533_v2, 0.0  ;;  %v7396_v39 = vadd.f32 %v7395_v52, %v7394_v4 }
 0x404   : > { %v7397_v49 = vpop.f32.mrf.mxu1 }
 0x405   : > { %6575 = vst [vmem:[%s11919_s16 + $0x40] sm:$0xff] %v6562_v36  ;;  %v6536_v16 = vadd.f32 %v7396_v39, %v6448_v14 }
 0x406   : > { %v7398_v25 = vpop.f32.mrf.mxu1 }
 0x407   : > { %v6563_v38 = vmax.f32 %v6536_v16, 0.0  ;;  %v7399_v29 = vadd.f32 %v7398_v25, %v7397_v49 }
 0x408   : > { %v7400_v13 = vpop.f32.mrf.mxu1 }
 0x409   : > { %6576 = vst [vmem:[%s11919_s16 + $0x48] sm:$0xff] %v6563_v38  ;;  %v6541_v31 = vadd.f32 %v7399_v29, %v6453_v8 }
 0x40a   : > { %v7401_v26 = vpop.f32.mrf.mxu1 }
 0x40b   : > { %v6564_v43 = vmax.f32 %v6541_v31, 0.0  ;;  %v7402_v46 = vadd.f32 %v7401_v26, %v7400_v13 }
 0x40c   : > { %v7403_v19 = vpop.f32.mrf.mxu1 }
 0x40d   : > { %6577 = vst [vmem:[%s11919_s16 + $0x50] sm:$0xff] %v6564_v43  ;;  %v6544_v48 = vadd.f32 %v7402_v46, %v6456_v53 }
 0x40e   : > { %v7404_v51 = vpop.f32.mrf.mxu1 }
 0x40f   : > { %v6565_v21 = vmax.f32 %v6544_v48, 0.0  ;;  %v7405_v20 = vadd.f32 %v7404_v51, %v7403_v19 }
 0x410   : > { %v7406_v35 = vpop.f32.mrf.mxu1 }
 0x411   : > { %6578 = vst [vmem:[%s11919_s16 + $0x58] sm:$0xff] %v6565_v21  ;;  %v6549_v60 = vadd.f32 %v7405_v20, %v6461_v54 }
 0x412   : > { %v7407_v9 = vpop.f32.mrf.mxu1 }
 0x413   : > { %v6566_v37 = vmax.f32 %v6549_v60, 0.0 }
 0x415   : > { %6579 = vst [vmem:[%s11919_s16 + $0x60] sm:$0xff] %v6566_v37 }
 0x416 PF: > { %s17_s21 = sadd.s32 1, %s8321_s21  }
 0x417   : > { %p14_p4 = scmp.ge.s32.totalorder %s17_s21, 4  }
 0x419   :  { %16 = sbr.rel (!%p14_p4) target bundleno = 1 (0x1), region = 82 }

// kernel: aux_layers_forward.7
= control target key start
LH: loop header
LB: loop body
LE: loop exit
PB: predicated region body
PF: predicated region fallthrough
CT: control target
= control target key end

     0   :  { %s2901_s1 = inlined_call_operand.vmem [shape: bf16[1152,256], index: 1, kind: input, shape index: {}]   ;;  %s2902_s0 = inlined_call_operand.vmem [shape: f32[56,1152], index: 0, kind: input, shape index: {}]   ;;  %s2903_s3 = inlined_call_operand.vmem [shape: bf16[256,128], index: 3, kind: input, shape index: {}]   ;;  %s2904_s2 = inlined_call_operand.vmem [shape: f32[1,256], index: 2, kind: input, shape index: {}]   ;;  %s2905_s5 = inlined_call_operand.vmem [shape: f32[56,256], index: 5, kind: output, shape index: {0}]   ;;  %s2906_s4 = inlined_call_operand.vmem [shape: f32[1,128], index: 4, kind: input, shape index: {}]   ;;  %s2907_s6 = inlined_call_operand.vmem [shape: f32[56,128], index: 6, kind: output, shape index: {1}]  }
   0x1   :  { %v1826_v0 = vld [vmem:[%s2901_s1 + $0x74] ss:$8 sps:$4 sm:$0xff]   ;;  %v1828_v1 = vld [vmem:[%s2901_s1 + $0x70] ss:$8 sps:$4 sm:$0xff]   ;;  %v1832_v4 = vld [vmem:[%s2901_s1 + $0x64] ss:$8 sps:$4 sm:$0xff]  }
   0x2   :  { %998 = vmatprep.subr.bf16.mxu0 %v1826_v0  ;;  %v1829_v2 = vld [vmem:[%s2901_s1 + $0x174] ss:$8 sps:$4 sm:$0xff]   ;;  %v1831_v3 = vld [vmem:[%s2901_s1 + $0x170] ss:$8 sps:$4 sm:$0xff]   ;;  %v1834_v5 = vld [vmem:[%s2901_s1 + $0x60] ss:$8 sps:$4 sm:$0xff]  }
   0x3   :  { %999 = vmatpush1.bf16.msra.mxu0 %v1828_v1  ;;  %1069 = vmatprep.subr.bf16.mxu1 %v1829_v2  ;;  %v1835_v6 = vld [vmem:[%s2901_s1 + $0x164] ss:$8 sps:$4 sm:$0xff]   ;;  %v1837_v7 = vld [vmem:[%s2901_s1 + $0x160] ss:$8 sps:$4 sm:$0xff]   ;;  %v1838_v8 = vld [vmem:[%s2901_s1 + $0x54] ss:$8 sps:$4 sm:$0xff]  }
   0x4   :  { %1070 = vmatpush1.bf16.msra.mxu1 %v1831_v3  ;;  %1000 = vmatprep.subr.bf16.mxu0 %v1832_v4  ;;  %v1840_v9 = vld [vmem:[%s2901_s1 + $0x50] ss:$8 sps:$4 sm:$0xff]   ;;  %v1841_v10 = vld [vmem:[%s2901_s1 + $0x154] ss:$8 sps:$4 sm:$0xff]   ;;  %v1844_v11 = vld [vmem:[%s2901_s1 + $0x44] ss:$8 sps:$4 sm:$0xff]  }
   0x5   :  { %1071 = vmatprep.subr.bf16.mxu1 %v1835_v6  ;;  %v1843_v12 = vld [vmem:[%s2901_s1 + $0x150] ss:$8 sps:$4 sm:$0xff]   ;;  %v1847_v13 = vld [vmem:[%s2901_s1 + $0x144] ss:$8 sps:$4 sm:$0xff]   ;;  %v1846_v14 = vld [vmem:[%s2901_s1 + $0x40] ss:$8 sps:$4 sm:$0xff]  }
   0x6   :  { %v1850_v15 = vld [vmem:[%s2901_s1 + $0x34] ss:$8 sps:$4 sm:$0xff]   ;;  %v1849_v16 = vld [vmem:[%s2901_s1 + $0x140] ss:$8 sps:$4 sm:$0xff]   ;;  %v1852_v18 = vld [vmem:[%s2901_s1 + $0x30] ss:$8 sps:$4 sm:$0xff]  }
   0x7   :  { %1001 = vmatpush1.bf16.msra.mxu0 %v1834_v5  ;;  %v1853_v17 = vld [vmem:[%s2901_s1 + $0x134] ss:$8 sps:$4 sm:$0xff]   ;;  %v1856_v19 = vld [vmem:[%s2901_s1 + $0x24] ss:$8 sps:$4 sm:$0xff]   ;;  %v1855_v20 = vld [vmem:[%s2901_s1 + $0x130] ss:$8 sps:$4 sm:$0xff]  }
   0x8   :  { %1002 = vmatprep.subr.bf16.mxu0 %v1838_v8  ;;  %1072 = vmatpush1.bf16.msra.mxu1 %v1837_v7  ;;  %v1859_v21 = vld [vmem:[%s2901_s1 + $0x124] ss:$8 sps:$4 sm:$0xff]   ;;  %v1858_v22 = vld [vmem:[%s2901_s1 + $0x20] ss:$8 sps:$4 sm:$0xff]   ;;  %v1862_v23 = vld [vmem:[%s2901_s1 + $0x14] ss:$8 sps:$4 sm:$0xff]  }
   0x9   :  { %1073 = vmatprep.subr.bf16.mxu1 %v1841_v10  ;;  %v1861_v24 = vld [vmem:[%s2901_s1 + $0x120] ss:$8 sps:$4 sm:$0xff]   ;;  %v1865_v25 = vld [vmem:[%s2901_s1 + $0x114] ss:$8 sps:$4 sm:$0xff]   ;;  %v1864_v26 = vld [vmem:[%s2901_s1 + $0x10] ss:$8 sps:$4 sm:$0xff]  }
   0xa   :  { %v1868_v27 = vld [vmem:[%s2901_s1 + $0x4] ss:$8 sps:$4 sm:$0xff]   ;;  %v1867_v28 = vld [vmem:[%s2901_s1 + $0x110] ss:$8 sps:$4 sm:$0xff]   ;;  %v1870_v30 = vld [vmem:[%s2901_s1] ss:$8 sps:$4 sm:$0xff]  }
   0xb   :  { %1003 = vmatpush1.bf16.msra.mxu0 %v1840_v9  ;;  %v1871_v29 = vld [vmem:[%s2901_s1 + $0x104] ss:$8 sps:$4 sm:$0xff]   ;;  %v1874_v31 = vld [vmem:[%s2901_s1 + $0xf4] ss:$8 sps:$4 sm:$0xff]   ;;  %v1873_v32 = vld [vmem:[%s2901_s1 + $0x100] ss:$8 sps:$4 sm:$0xff]  }
   0xc   :  { %1004 = vmatprep.subr.bf16.mxu0 %v1844_v11  ;;  %1074 = vmatpush1.bf16.msra.mxu1 %v1843_v12  ;;  %v1877_v33 = vld [vmem:[%s2901_s1 + $0x1f4] ss:$8 sps:$4 sm:$0xff]   ;;  %v1876_v34 = vld [vmem:[%s2901_s1 + $0xf0] ss:$8 sps:$4 sm:$0xff]   ;;  %v1880_v35 = vld [vmem:[%s2901_s1 + $0xe4] ss:$8 sps:$4 sm:$0xff]  }
   0xd   :  { %1075 = vmatprep.subr.bf16.mxu1 %v1847_v13  ;;  %v1879_v36 = vld [vmem:[%s2901_s1 + $0x1f0] ss:$8 sps:$4 sm:$0xff]   ;;  %v1883_v37 = vld [vmem:[%s2901_s1 + $0x1e4] ss:$8 sps:$4 sm:$0xff]   ;;  %v1882_v38 = vld [vmem:[%s2901_s1 + $0xe0] ss:$8 sps:$4 sm:$0xff]  }
   0xe   :  { %v1886_v39 = vld [vmem:[%s2901_s1 + $0xd4] ss:$8 sps:$4 sm:$0xff]   ;;  %v1885_v40 = vld [vmem:[%s2901_s1 + $0x1e0] ss:$8 sps:$4 sm:$0xff]   ;;  %v1888_v42 = vld [vmem:[%s2901_s1 + $0xd0] ss:$8 sps:$4 sm:$0xff]  }
   0xf   :  { %1005 = vmatpush1.bf16.msra.mxu0 %v1846_v14  ;;  %v1889_v41 = vld [vmem:[%s2901_s1 + $0x1d4] ss:$8 sps:$4 sm:$0xff]   ;;  %v1892_v43 = vld [vmem:[%s2901_s1 + $0xc4] ss:$8 sps:$4 sm:$0xff]   ;;  %v1891_v44 = vld [vmem:[%s2901_s1 + $0x1d0] ss:$8 sps:$4 sm:$0xff]  }
  0x10   :  { %1006 = vmatprep.subr.bf16.mxu0 %v1850_v15  ;;  %1076 = vmatpush1.bf16.msra.mxu1 %v1849_v16  ;;  %v1895_v45 = vld [vmem:[%s2901_s1 + $0x1c4] ss:$8 sps:$4 sm:$0xff]   ;;  %v33_v47 = vld [vmem:[%s2902_s0 + $0x50] sm:$0xff]  ;;  %v1894_v48 = vld [vmem:[%s2901_s1 + $0xc0] ss:$8 sps:$4 sm:$0xff]  }
  0x11   :  { %1077 = vmatprep.subr.bf16.mxu1 %v1853_v17  ;;  %v24_v46 = vld [vmem:[%s2902_s0 + $0x8] sm:$0xff]  ;;  %v1898_v50 = vld [vmem:[%s2901_s1 + $0xb4] ss:$8 sps:$4 sm:$0xff]   ;;  %v35_v53 = vld [vmem:[%s2902_s0 + $0x60] sm:$0xff] }
  0x12   :  { %v87_v49 = vpack.c.bf16 %v33_v47, %v24_v46  ;;  %v1897_v51 = vld [vmem:[%s2901_s1 + $0x1c0] ss:$8 sps:$4 sm:$0xff]   ;;  %v26_v52 = vld [vmem:[%s2902_s0 + $0x18] sm:$0xff]  ;;  %v1904_v57 = vld [vmem:[%s2901_s1 + $0xa4] ss:$8 sps:$4 sm:$0xff]  }
  0x13   :  { %1007 = vmatpush1.bf16.msra.mxu0 %v1852_v18  ;;  %v1901_v54 = vld [vmem:[%s2901_s1 + $0x1b4] ss:$8 sps:$4 sm:$0xff]   ;;  %v89_v55 = vpack.c.bf16 %v35_v53, %v26_v52  ;;  %v1900_v56 = vld [vmem:[%s2901_s1 + $0xb0] ss:$8 sps:$4 sm:$0xff]   ;;  %v1907_v59 = vld [vmem:[%s2901_s1 + $0x1a4] ss:$8 sps:$4 sm:$0xff]  }
  0x14   :  { %1008 = vmatprep.subr.bf16.mxu0 %v1856_v19  ;;  %1078 = vmatpush1.bf16.msra.mxu1 %v1855_v20  ;;  %v1903_v58 = vld [vmem:[%s2901_s1 + $0x1b0] ss:$8 sps:$4 sm:$0xff]   ;;  %v1906_v60 = vld [vmem:[%s2901_s1 + $0xa0] ss:$8 sps:$4 sm:$0xff]   ;;  %v1910_v61 = vld [vmem:[%s2901_s1 + $0x94] ss:$8 sps:$4 sm:$0xff]  }
  0x15   :  { %1079 = vmatprep.subr.bf16.mxu1 %v1859_v21  ;;  %1030 = vmatprep.mubr.bf16.mxu0 %v87_v49  ;;  %v1909_v62 = vld [vmem:[%s2901_s1 + $0x1a0] ss:$8 sps:$4 sm:$0xff]   ;;  %v1913_v63 = vld [vmem:[%s2901_s1 + $0x194] ss:$8 sps:$4 sm:$0xff]   ;;  %v1912_v0 = vld [vmem:[%s2901_s1 + $0x90] ss:$8 sps:$4 sm:$0xff]  }
  0x16   :  { %1101 = vmatprep.mubr.bf16.mxu1 %v89_v55  ;;  %v1915_v1 = vld [vmem:[%s2901_s1 + $0x190] ss:$8 sps:$4 sm:$0xff]   ;;  %v1916_v2 = vld [vmem:[%s2901_s1 + $0x84] ss:$8 sps:$4 sm:$0xff]   ;;  %v1918_v3 = vld [vmem:[%s2901_s1 + $0x80] ss:$8 sps:$4 sm:$0xff]  }
  0x17   :  { %1009 = vmatpush1.bf16.msra.mxu0 %v1858_v22  ;;  %v1919_v4 = vld [vmem:[%s2901_s1 + $0x184] ss:$8 sps:$4 sm:$0xff]   ;;  %v1921_v6 = vld [vmem:[%s2901_s1 + $0x180] ss:$8 sps:$4 sm:$0xff]   ;;  %v1924_v8 = vld [vmem:[%s2901_s1 + $0x274] ss:$8 sps:$4 sm:$0xff]  }
  0x18   :  { %1010 = vmatprep.subr.bf16.mxu0 %v1862_v23  ;;  %1080 = vmatpush1.bf16.msra.mxu1 %v1861_v24  ;;  %v23_v5 = vld [vmem:[%s2902_s0] sm:$0xff]  ;;  %v32_v7 = vld [vmem:[%s2902_s0 + $0x48] sm:$0xff]  ;;  %v25_v9 = vld [vmem:[%s2902_s0 + $0x10] sm:$0xff] }
  0x19   :  { %1081 = vmatprep.subr.bf16.mxu1 %v1865_v25  ;;  %v34_v10 = vld [vmem:[%s2902_s0 + $0x58] sm:$0xff]  ;;  %v86_v11 = vpack.c.bf16 %v32_v7, %v23_v5  ;;  %v1930_v15 = vld [vmem:[%s2901_s1 + $0x264] ss:$8 sps:$4 sm:$0xff]   ;;  %v1928_v17 = vld [vmem:[%s2901_s1 + $0x260] ss:$8 sps:$4 sm:$0xff]  }
  0x1a   :  { %v1927_v12 = vld [vmem:[%s2901_s1 + $0x374] ss:$8 sps:$4 sm:$0xff]   ;;  %v1922_v13 = vld [vmem:[%s2901_s1 + $0x270] ss:$8 sps:$4 sm:$0xff]   ;;  %v88_v14 = vpack.c.bf16 %v34_v10, %v25_v9  ;;  %v1933_v18 = vld [vmem:[%s2901_s1 + $0x364] ss:$8 sps:$4 sm:$0xff]  }
  0x1b   :  { %1011 = vmatpush1.bf16.msra.mxu0 %v1864_v26  ;;  %v1925_v16 = vld [vmem:[%s2901_s1 + $0x370] ss:$8 sps:$4 sm:$0xff]   ;;  %v1931_v19 = vld [vmem:[%s2901_s1 + $0x360] ss:$8 sps:$4 sm:$0xff]   ;;  %v1936_v20 = vld [vmem:[%s2901_s1 + $0x254] ss:$8 sps:$4 sm:$0xff]  }
  0x1c   :  { %1012 = vmatprep.subr.bf16.mxu0 %v1868_v27  ;;  %1082 = vmatpush1.bf16.msra.mxu1 %v1867_v28  ;;  %v42_v21 = vld [vmem:[%s2902_s0 + $0x98] sm:$0xff]  ;;  %v51_v22 = vld [vmem:[%s2902_s0 + $0xe0] sm:$0xff]  ;;  %v41_v26 = vld [vmem:[%s2902_s0 + $0x90] sm:$0xff] }
  0x1d   :  { %1083 = vmatprep.subr.bf16.mxu1 %v1871_v29  ;;  %v1934_v23 = vld [vmem:[%s2901_s1 + $0x250] ss:$8 sps:$4 sm:$0xff]   ;;  %v1939_v24 = vld [vmem:[%s2901_s1 + $0x354] ss:$8 sps:$4 sm:$0xff]   ;;  %v96_v25 = vpack.c.bf16 %v51_v22, %v42_v21  ;;  %v44_v28 = vld [vmem:[%s2902_s0 + $0xa8] sm:$0xff] }
  0x1e   :  { %v50_v27 = vld [vmem:[%s2902_s0 + $0xd8] sm:$0xff]  ;;  %v59_v46 = vld [vmem:[%s2902_s0 + $0x120] sm:$0xff]  ;;  %v68_v47 = vld [vmem:[%s2902_s0 + $0x168] sm:$0xff] }
  0x1f   :  { %1013 = vmatpush1.bf16.msra.mxu0 %v1870_v30  ;;  %v95_v29 = vpack.c.bf16 %v50_v27, %v41_v26  ;;  %v53_v30 = vld [vmem:[%s2902_s0 + $0xf0] sm:$0xff]  ;;  %v104_v49 = vpack.c.bf16 %v68_v47, %v59_v46  ;;  %v1954_v52 = vld [vmem:[%s2901_s1 + $0x224] ss:$8 sps:$4 sm:$0xff]   ;;  %v70_v55 = vld [vmem:[%s2902_s0 + $0x178] sm:$0xff] }
  0x20   :  { %1014 = vmatprep.subr.bf16.mxu0 %v1874_v31  ;;  %1084 = vmatpush1.bf16.msra.mxu1 %v1873_v32  ;;  %v1937_v31 = vld [vmem:[%s2901_s1 + $0x350] ss:$8 sps:$4 sm:$0xff]   ;;  %v1942_v32 = vld [vmem:[%s2901_s1 + $0x244] ss:$8 sps:$4 sm:$0xff]   ;;  %v1964_v9 = vld [vmem:[%s2901_s1 + $0x200] ss:$8 sps:$4 sm:$0xff]  }
  0x21   :  { %1085 = vmatprep.subr.bf16.mxu1 %v1877_v33  ;;  %v98_v33 = vpack.c.bf16 %v53_v30, %v44_v28  ;;  %v1961_v5 = vld [vmem:[%s2901_s1 + $0x310] ss:$8 sps:$4 sm:$0xff]   ;;  %v1969_v7 = vld [vmem:[%s2901_s1 + $0x304] ss:$8 sps:$4 sm:$0xff]   ;;  %v1979_v26 = vld [vmem:[%s2901_s1 + $0x3e0] ss:$8 sps:$4 sm:$0xff]  }
  0x22   :  { %v39_v21 = vld [vmem:[%s2902_s0 + $0x80] sm:$0xff]  ;;  %v1987_v27 = vld [vmem:[%s2901_s1 + $0x3d4] ss:$8 sps:$4 sm:$0xff]   ;;  %v1982_v28 = vld [vmem:[%s2901_s1 + $0x2d0] ss:$8 sps:$4 sm:$0xff]  }
  0x23   :  { %1015 = vmatpush2.bf16.msra.mxu0 %v1876_v34  ;;  %v43_v34 = vld [vmem:[%s2902_s0 + $0xa0] sm:$0xff]  ;;  %v1985_v30 = vld [vmem:[%s2901_s1 + $0x3d0] ss:$8 sps:$4 sm:$0xff]  }
  0x24   :  { %1016 = vmatprep.subr.bf16.mxu0 %v1880_v35  ;;  %1086 = vmatpush2.bf16.msra.mxu1 %v1879_v36  ;;  %v52_v35 = vld [vmem:[%s2902_s0 + $0xe8] sm:$0xff]  ;;  %v2009_v46 = vld [vmem:[%s2901_s1 + $0x390] ss:$8 sps:$4 sm:$0xff]  }
  0x25   :  { %1087 = vmatprep.subr.bf16.mxu1 %v1883_v37  ;;  %v1940_v36 = vld [vmem:[%s2901_s1 + $0x240] ss:$8 sps:$4 sm:$0xff]   ;;  %v1945_v37 = vld [vmem:[%s2901_s1 + $0x344] ss:$8 sps:$4 sm:$0xff]  }
  0x26   :  { %v1981_v22 = vld [vmem:[%s2901_s1 + $0x3e4] ss:$8 sps:$4 sm:$0xff]  }
  0x27   :  { %1017 = vmatpush2.bf16.msra.mxu0 %v1882_v38  ;;  %v97_v38 = vpack.c.bf16 %v52_v35, %v43_v34  ;;  %v1991_v34 = vld [vmem:[%s2901_s1 + $0x3c0] ss:$8 sps:$4 sm:$0xff]   ;;  %v1999_v35 = vld [vmem:[%s2901_s1 + $0x3b4] ss:$8 sps:$4 sm:$0xff]   ;;  %v2017_v47 = vld [vmem:[%s2901_s1 + $0x384] ss:$8 sps:$4 sm:$0xff]  }
  0x28   :  { %1018 = vmatprep.subr.bf16.mxu0 %v1886_v39  ;;  %1088 = vmatpush2.bf16.msra.mxu1 %v1885_v40  ;;  %v1943_v39 = vld [vmem:[%s2901_s1 + $0x340] ss:$8 sps:$4 sm:$0xff]   ;;  %v1948_v40 = vld [vmem:[%s2901_s1 + $0x234] ss:$8 sps:$4 sm:$0xff]  }
  0x29   :  { %1089 = vmatprep.subr.bf16.mxu1 %v1889_v41  ;;  %v60_v41 = vld [vmem:[%s2902_s0 + $0x128] sm:$0xff] }
  0x2b   :  { %1019 = vmatpush2.bf16.msra.mxu0 %v1888_v42  ;;  %v69_v42 = vld [vmem:[%s2902_s0 + $0x170] sm:$0xff] }
  0x2c   :  { %1020 = vmatprep.subr.bf16.mxu0 %v1892_v43  ;;  %1090 = vmatpush2.bf16.msra.mxu1 %v1891_v44  ;;  %v1946_v43 = vld [vmem:[%s2901_s1 + $0x230] ss:$8 sps:$4 sm:$0xff]   ;;  %v1951_v44 = vld [vmem:[%s2901_s1 + $0x334] ss:$8 sps:$4 sm:$0xff]  }
  0x2d   :  { %1091 = vmatprep.subr.bf16.mxu1 %v1895_v45  ;;  %v105_v45 = vpack.c.bf16 %v69_v42, %v60_v41  ;;  %v2008_v41 = vld [vmem:[%s2901_s1 + $0x294] ss:$8 sps:$4 sm:$0xff]   ;;  %v2003_v42 = vld [vmem:[%s2901_s1 + $0x3a0] ss:$8 sps:$4 sm:$0xff]  }
  0x2f   :  { %1021 = vmatpush2.bf16.msra.mxu0 %v1894_v48  ;;  %v62_v48 = vld [vmem:[%s2902_s0 + $0x138] sm:$0xff] }
  0x30   :  { %1022 = vmatprep.subr.bf16.mxu0 %v1898_v50  ;;  %1092 = vmatpush2.bf16.msra.mxu1 %v1897_v51  ;;  %v71_v50 = vld [vmem:[%s2902_s0 + $0x180] sm:$0xff]  ;;  %v1949_v51 = vld [vmem:[%s2901_s1 + $0x330] ss:$8 sps:$4 sm:$0xff]  }
  0x31   :  { %1093 = vmatprep.subr.bf16.mxu1 %v1901_v54  ;;  %v107_v53 = vpack.c.bf16 %v71_v50, %v62_v48  ;;  %v61_v54 = vld [vmem:[%s2902_s0 + $0x130] sm:$0xff]  ;;  %v2012_v48 = vld [vmem:[%s2901_s1 + $0x280] ss:$8 sps:$4 sm:$0xff]  }
  0x32   :  { %v36_v50 = vld [vmem:[%s2902_s0 + $0x68] sm:$0xff] }
  0x33   :  { %1023 = vmatpush2.bf16.msra.mxu0 %v1900_v56  ;;  %v1957_v56 = vld [vmem:[%s2901_s1 + $0x324] ss:$8 sps:$4 sm:$0xff]  }
  0x34   :  { %1024 = vmatprep.subr.bf16.mxu0 %v1904_v57  ;;  %1094 = vmatpush2.bf16.msra.mxu1 %v1903_v58  ;;  %v106_v57 = vpack.c.bf16 %v70_v55, %v61_v54  ;;  %v1952_v58 = vld [vmem:[%s2901_s1 + $0x220] ss:$8 sps:$4 sm:$0xff]   ;;  %v29_v55 = vld [vmem:[%s2902_s0 + $0x30] sm:$0xff] }
  0x35   :  { %1095 = vmatprep.subr.bf16.mxu1 %v1907_v59  ;;  %v1960_v59 = vld [vmem:[%s2901_s1 + $0x214] ss:$8 sps:$4 sm:$0xff]   ;;  %v2015_v54 = vld [vmem:[%s2901_s1 + $0x380] ss:$8 sps:$4 sm:$0xff]  }
  0x37   :  { %1025 = vmatpush2.bf16.msra.mxu0 %v1906_v60  ;;  %v78_v60 = vld [vmem:[%s2902_s0 + $0x1b8] sm:$0xff] }
  0x38   :  { %1026 = vmatprep.subr.bf16.mxu0 %v1910_v61  ;;  %1096 = vmatpush2.bf16.msra.mxu1 %v1909_v62  ;;  %v1955_v61 = vld [vmem:[%s2901_s1 + $0x320] ss:$8 sps:$4 sm:$0xff]   ;;  %v114_v62 = vpack.c.bf16 %v78_v60, %v78_v60  ;;  %v2018_v60 = vld [vmem:[%s2901_s1 + $0x470] ss:$8 sps:$4 sm:$0xff]  }
  0x39   :  { %1097 = vmatprep.subr.bf16.mxu1 %v1913_v63  ;;  %v77_v63 = vld [vmem:[%s2902_s0 + $0x1b0] sm:$0xff] }
  0x3b   :  { %1027 = vmatpush2.bf16.msra.mxu0 %v1912_v0  ;;  %v1963_v0 = vld [vmem:[%s2901_s1 + $0x314] ss:$8 sps:$4 sm:$0xff]  }
  0x3c   :  { %1028 = vmatprep.subr.bf16.mxu0 %v1916_v2  ;;  %1098 = vmatpush2.bf16.msra.mxu1 %v1915_v1  ;;  %v113_v1 = vpack.c.bf16 %v77_v63, %v77_v63  ;;  %v1958_v2 = vld [vmem:[%s2901_s1 + $0x210] ss:$8 sps:$4 sm:$0xff]   ;;  %v2023_v63 = vld [vmem:[%s2901_s1 + $0x464] ss:$8 sps:$4 sm:$0xff]  }
  0x3d   :  { %1099 = vmatprep.subr.bf16.mxu1 %v1919_v4  ;;  %v80_v4 = vld [vmem:[%s2902_s0 + $0x1c8] sm:$0xff] }
  0x3f   :  { %1029 = vmatpush2.bf16.msra.mxu0 %v1918_v3  ;;  %v1966_v3 = vld [vmem:[%s2901_s1 + $0x204] ss:$8 sps:$4 sm:$0xff]  }
  0x40   :  { %1140 = vmatprep.subr.bf16.mxu0 %v1924_v8  ;;  %1100 = vmatpush2.bf16.msra.mxu1 %v1921_v6  ;;  %v116_v6 = vpack.c.bf16 %v80_v4, %v80_v4  ;;  %v79_v8 = vld [vmem:[%s2902_s0 + $0x1c0] sm:$0xff]  ;;  %v2026_v4 = vld [vmem:[%s2901_s1 + $0x454] ss:$8 sps:$4 sm:$0xff]  }
  0x41   :  { %1211 = vmatprep.subr.bf16.mxu1 %v1927_v12  ;;  %v115_v10 = vpack.c.bf16 %v79_v8, %v79_v8  ;;  %v1967_v12 = vld [vmem:[%s2901_s1 + $0x300] ss:$8 sps:$4 sm:$0xff]  }
  0x42   :  { %1031 = vmatmul.mubr.bf16.vlgmr.msra.gmra.mxu0 %v86_v11  ;;  %v1972_v11 = vld [vmem:[%s2901_s1 + $0x2f4] ss:$8 sps:$4 sm:$0xff]   ;;  %v56_v8 = vld [vmem:[%s2902_s0 + $0x108] sm:$0xff] }
  0x43   :  { %1141 = vmatpush1.bf16.msra.mxu0 %v1922_v13  ;;  %1102 = vmatmul.mubr.bf16.vlgmr.msra.gmra.mxu1 %v88_v14  ;;  %v1975_v13 = vld [vmem:[%s2901_s1 + $0x3f4] ss:$8 sps:$4 sm:$0xff]   ;;  %v28_v14 = vld [vmem:[%s2902_s0 + $0x28] sm:$0xff] }
  0x44   :  { %1142 = vmatprep.subr.bf16.mxu0 %v1930_v15  ;;  %1212 = vmatpush1.bf16.msra.mxu1 %v1925_v16  ;;  %v1970_v15 = vld [vmem:[%s2901_s1 + $0x2f0] ss:$8 sps:$4 sm:$0xff]  }
  0x45   :  { %1213 = vmatprep.subr.bf16.mxu1 %v1933_v18  ;;  %1040 = vmatprep.mubr.bf16.mxu0 %v96_v25  ;;  %v37_v16 = vld [vmem:[%s2902_s0 + $0x70] sm:$0xff] }
  0x46   :  { %1111 = vmatprep.mubr.bf16.mxu1 %v98_v33  ;;  %v91_v18 = vpack.c.bf16 %v37_v16, %v28_v14  ;;  %v1984_v25 = vld [vmem:[%s2901_s1 + $0x2d4] ss:$8 sps:$4 sm:$0xff]  }
  0x47   :  { %1143 = vmatpush1.bf16.msra.mxu0 %v1928_v17  ;;  %v1978_v17 = vld [vmem:[%s2901_s1 + $0x2e4] ss:$8 sps:$4 sm:$0xff]   ;;  %v1996_v33 = vld [vmem:[%s2901_s1 + $0x2b4] ss:$8 sps:$4 sm:$0xff]  }
  0x48   :  { %1144 = vmatprep.subr.bf16.mxu0 %v1936_v20  ;;  %1214 = vmatpush1.bf16.msra.mxu1 %v1931_v19  ;;  %v1973_v19 = vld [vmem:[%s2901_s1 + $0x3f0] ss:$8 sps:$4 sm:$0xff]  }
  0x49   :  { %1215 = vmatprep.subr.bf16.mxu1 %v1939_v24  ;;  %v30_v20 = vld [vmem:[%s2902_s0 + $0x38] sm:$0xff]  ;;  %v1976_v24 = vld [vmem:[%s2901_s1 + $0x2e0] ss:$8 sps:$4 sm:$0xff]  }
  0x4a   :  { %1041 = vmatmul.mubr.bf16.gmra.mxu0 %v95_v29  ;;  %v1990_v29 = vld [vmem:[%s2901_s1 + $0x2c4] ss:$8 sps:$4 sm:$0xff]  }
  0x4b   :  { %1145 = vmatpush1.bf16.msra.mxu0 %v1934_v23  ;;  %1112 = vmatmul.mubr.bf16.gmra.mxu1 %v97_v38  ;;  %v93_v23 = vpack.c.bf16 %v39_v21, %v30_v20  ;;  %v1997_v38 = vld [vmem:[%s2901_s1 + $0x3b0] ss:$8 sps:$4 sm:$0xff]   ;;  %v2032_v20 = vld [vmem:[%s2901_s1 + $0x434] ss:$8 sps:$4 sm:$0xff]  }
  0x4c   :  { %1146 = vmatprep.subr.bf16.mxu0 %v1942_v32  ;;  %1216 = vmatpush1.bf16.msra.mxu1 %v1937_v31  ;;  %v1993_v31 = vld [vmem:[%s2901_s1 + $0x3c4] ss:$8 sps:$4 sm:$0xff]   ;;  %v1988_v32 = vld [vmem:[%s2901_s1 + $0x2c0] ss:$8 sps:$4 sm:$0xff]   ;;  %v82_v21 = vld [vmem:[%s2902_s0 + $0x1d8] sm:$0xff] }
  0x4d   :  { %1217 = vmatprep.subr.bf16.mxu1 %v1945_v37  ;;  %1050 = vmatprep.mubr.bf16.mxu0 %v105_v45  ;;  %v2002_v37 = vld [vmem:[%s2901_s1 + $0x2a4] ss:$8 sps:$4 sm:$0xff]  }
  0x4e   :  { %1121 = vmatprep.mubr.bf16.mxu1 %v107_v53  ;;  %v2014_v45 = vld [vmem:[%s2901_s1 + $0x284] ss:$8 sps:$4 sm:$0xff]  }
  0x4f   :  { %1147 = vmatpush1.bf16.msra.mxu0 %v1940_v36  ;;  %v1994_v36 = vld [vmem:[%s2901_s1 + $0x2b0] ss:$8 sps:$4 sm:$0xff]   ;;  %v55_v53 = vld [vmem:[%s2902_s0 + $0x100] sm:$0xff] }
  0x50   :  { %1148 = vmatprep.subr.bf16.mxu0 %v1948_v40  ;;  %1218 = vmatpush1.bf16.msra.mxu1 %v1943_v39  ;;  %v2005_v39 = vld [vmem:[%s2901_s1 + $0x3a4] ss:$8 sps:$4 sm:$0xff]   ;;  %v2000_v40 = vld [vmem:[%s2901_s1 + $0x2a0] ss:$8 sps:$4 sm:$0xff]  }
  0x51   :  { %1219 = vmatprep.subr.bf16.mxu1 %v1951_v44  ;;  %v2006_v44 = vld [vmem:[%s2901_s1 + $0x290] ss:$8 sps:$4 sm:$0xff]  }
  0x52   :  { %1051 = vmatmul.mubr.bf16.gmra.mxu0 %v104_v49  ;;  %v27_v49 = vld [vmem:[%s2902_s0 + $0x20] sm:$0xff] }
  0x53   :  { %1149 = vmatpush1.bf16.msra.mxu0 %v1946_v43  ;;  %1122 = vmatmul.mubr.bf16.gmra.mxu1 %v106_v57  ;;  %v2011_v43 = vld [vmem:[%s2901_s1 + $0x394] ss:$8 sps:$4 sm:$0xff]   ;;  %v90_v57 = vpack.c.bf16 %v36_v50, %v27_v49 }
  0x54   :  { %1150 = vmatprep.subr.bf16.mxu0 %v1954_v52  ;;  %1220 = vmatpush1.bf16.msra.mxu1 %v1949_v51  ;;  %v2020_v51 = vld [vmem:[%s2901_s1 + $0x474] ss:$8 sps:$4 sm:$0xff]  }
  0x55   :  { %1221 = vmatprep.subr.bf16.mxu1 %v1957_v56  ;;  %1060 = vmatprep.mubr.bf16.mxu0 %v114_v62  ;;  %v46_v52 = vld [vmem:[%s2902_s0 + $0xb8] sm:$0xff]  ;;  %v85_v50 = vld [vmem:[%s2902_s0 + $0x1f0] sm:$0xff] }
  0x56   :  { %1131 = vmatprep.mubr.bf16.mxu1 %v116_v6  ;;  %v38_v56 = vld [vmem:[%s2902_s0 + $0x78] sm:$0xff]  ;;  %v73_v6 = vld [vmem:[%s2902_s0 + $0x190] sm:$0xff] }
  0x57   :  { %1151 = vmatpush1.bf16.msra.mxu0 %v1952_v58  ;;  %v48_v58 = vld [vmem:[%s2902_s0 + $0xc8] sm:$0xff]  ;;  %v92_v62 = vpack.c.bf16 %v38_v56, %v29_v55  ;;  %v2045_v55 = vld [vmem:[%s2903_s3 + $0x30] sm:$0xff]  }
  0x58   :  { %1152 = vmatprep.subr.bf16.mxu0 %v1960_v59  ;;  %1222 = vmatpush1.bf16.msra.mxu1 %v1955_v61  ;;  %v57_v59 = vld [vmem:[%s2902_s0 + $0x110] sm:$0xff]  ;;  %v100_v61 = vpack.c.bf16 %v55_v53, %v46_v52  ;;  %v2042_v52 = vld [vmem:[%s2903_s3 + $0x78] sm:$0xff]   ;;  %v2046_v56 = vld [vmem:[%s2903_s3 + $0x68] sm:$0xff]  }
  0x59   :  { %1223 = vmatprep.subr.bf16.mxu1 %v1963_v0  ;;  %v102_v0 = vpack.c.bf16 %v57_v59, %v48_v58  ;;  %v2043_v53 = vld [vmem:[%s2903_s3 + $0x38] sm:$0xff]   ;;  %v2048_v58 = vld [vmem:[%s2903_s3 + $0x60] sm:$0xff]  }
  0x5a   :  { %1061 = vmatmul.mubr.bf16.gmra.mxu0 %v113_v1  ;;  %v2021_v1 = vld [vmem:[%s2901_s1 + $0x460] ss:$8 sps:$4 sm:$0xff]  }
  0x5b   :  { %1153 = vmatpush1.bf16.msra.mxu0 %v1958_v2  ;;  %1132 = vmatmul.mubr.bf16.gmra.mxu1 %v115_v10  ;;  %v45_v2 = vld [vmem:[%s2902_s0 + $0xb0] sm:$0xff]  ;;  %v66_v10 = vld [vmem:[%s2902_s0 + $0x158] sm:$0xff]  ;;  %v2049_v59 = vld [vmem:[%s2903_s3 + $0x20] sm:$0xff]  }
  0x5c   :  { %1154 = vmatprep.subr.bf16.mxu0 %v1966_v3  ;;  %1224 = vmatpush1.bf16.msra.mxu1 %v1961_v5  ;;  %v54_v3 = vld [vmem:[%s2902_s0 + $0xf8] sm:$0xff]  ;;  %v64_v5 = vld [vmem:[%s2902_s0 + $0x148] sm:$0xff] }
  0x5d   :  { %1225 = vmatprep.subr.bf16.mxu1 %v1969_v7  ;;  %1172 = vmatprep.mubr.bf16.mxu0 %v91_v18  ;;  %v47_v7 = vld [vmem:[%s2902_s0 + $0xc0] sm:$0xff] }
  0x5e   :  { %1243 = vmatprep.mubr.bf16.mxu1 %v93_v23  ;;  %v101_v14 = vpack.c.bf16 %v56_v8, %v47_v7  ;;  %v63_v18 = vld [vmem:[%s2902_s0 + $0x140] sm:$0xff]  ;;  %v74_v23 = vld [vmem:[%s2902_s0 + $0x198] sm:$0xff] }
  0x5f   :  { %1155 = vmatpush1.bf16.msra.mxu0 %v1964_v9  ;;  %v99_v9 = vpack.c.bf16 %v54_v3, %v45_v2  ;;  %v2056_v2 = vld [vmem:[%s2903_s3 + $0x40] sm:$0xff]  }
  0x60   :  { %1156 = vmatprep.subr.bf16.mxu0 %v1972_v11  ;;  %1226 = vmatpush1.bf16.msra.mxu1 %v1967_v12  ;;  %v75_v11 = vld [vmem:[%s2902_s0 + $0x1a0] sm:$0xff]  ;;  %v2024_v12 = vld [vmem:[%s2901_s1 + $0x450] ss:$8 sps:$4 sm:$0xff]  }
  0x61   :  { %1227 = vmatprep.subr.bf16.mxu1 %v1975_v13  ;;  %v109_v13 = vpack.c.bf16 %v73_v6, %v64_v5  ;;  %v111_v16 = vpack.c.bf16 %v75_v11, %v66_v10  ;;  %v2057_v3 = vld [vmem:[%s2903_s3] sm:$0xff]  }
  0x62   :  { %v266_v7 = vld [vmem:[%s2904_s2] sm:$0x3] }
  0x63   :  { %1157 = vmatpush2.bf16.msra.mxu0 %v1970_v15  ;;  %v2029_v15 = vld [vmem:[%s2901_s1 + $0x444] ss:$8 sps:$4 sm:$0xff]  }
  0x64   :  { %1158 = vmatprep.subr.bf16.mxu0 %v1978_v17  ;;  %1228 = vmatpush2.bf16.msra.mxu1 %v1973_v19  ;;  %v2027_v17 = vld [vmem:[%s2901_s1 + $0x440] ss:$8 sps:$4 sm:$0xff]  }
  0x65   :  { %1229 = vmatprep.subr.bf16.mxu1 %v1981_v22  ;;  %v72_v19 = vld [vmem:[%s2902_s0 + $0x188] sm:$0xff]  ;;  %v65_v22 = vld [vmem:[%s2902_s0 + $0x150] sm:$0xff] }
  0x67   :  { %1159 = vmatpush2.bf16.msra.mxu0 %v1976_v24  ;;  %v108_v24 = vpack.c.bf16 %v72_v19, %v63_v18 }
  0x68   :  { %1160 = vmatprep.subr.bf16.mxu0 %v1984_v25  ;;  %1230 = vmatpush2.bf16.msra.mxu1 %v1979_v26  ;;  %v84_v25 = vld [vmem:[%s2902_s0 + $0x1e8] sm:$0xff]  ;;  %v2030_v26 = vld [vmem:[%s2901_s1 + $0x430] ss:$8 sps:$4 sm:$0xff]  }
  0x69   :  { %1231 = vmatprep.subr.bf16.mxu1 %v1987_v27  ;;  %v118_v27 = vpack.c.bf16 %v82_v21, %v82_v21 }
  0x6b   :  { %1161 = vmatpush2.bf16.msra.mxu0 %v1982_v28  ;;  %v110_v28 = vpack.c.bf16 %v74_v23, %v65_v22 }
  0x6c   :  { %1162 = vmatprep.subr.bf16.mxu0 %v1990_v29  ;;  %1232 = vmatpush2.bf16.msra.mxu1 %v1985_v30  ;;  %v2035_v29 = vld [vmem:[%s2901_s1 + $0x424] ss:$8 sps:$4 sm:$0xff]   ;;  %v120_v30 = vpack.c.bf16 %v84_v25, %v84_v25 }
  0x6d   :  { %1233 = vmatprep.subr.bf16.mxu1 %v1993_v31  ;;  %v2033_v31 = vld [vmem:[%s2901_s1 + $0x420] ss:$8 sps:$4 sm:$0xff]  }
  0x6f   :  { %1163 = vmatpush2.bf16.msra.mxu0 %v1988_v32  ;;  %v81_v32 = vld [vmem:[%s2902_s0 + $0x1d0] sm:$0xff] }
  0x70   :  { %1164 = vmatprep.subr.bf16.mxu0 %v1996_v33  ;;  %1234 = vmatpush2.bf16.msra.mxu1 %v1991_v34  ;;  %v2038_v33 = vld [vmem:[%s2901_s1 + $0x414] ss:$8 sps:$4 sm:$0xff]   ;;  %v83_v34 = vld [vmem:[%s2902_s0 + $0x1e0] sm:$0xff] }
  0x71   :  { %1235 = vmatprep.subr.bf16.mxu1 %v1999_v35  ;;  %v117_v35 = vpack.c.bf16 %v81_v32, %v81_v32 }
  0x73   :  { %1165 = vmatpush2.bf16.msra.mxu0 %v1994_v36  ;;  %v2036_v36 = vld [vmem:[%s2901_s1 + $0x410] ss:$8 sps:$4 sm:$0xff]  }
  0x74   :  { %1166 = vmatprep.subr.bf16.mxu0 %v2002_v37  ;;  %1236 = vmatpush2.bf16.msra.mxu1 %v1997_v38  ;;  %v119_v37 = vpack.c.bf16 %v83_v34, %v83_v34  ;;  %v2041_v38 = vld [vmem:[%s2901_s1 + $0x404] ss:$8 sps:$4 sm:$0xff]  }
  0x75   :  { %1237 = vmatprep.subr.bf16.mxu1 %v2005_v39  ;;  %v2039_v39 = vld [vmem:[%s2901_s1 + $0x400] ss:$8 sps:$4 sm:$0xff]  }
  0x77   :  { %1167 = vmatpush2.bf16.msra.mxu0 %v2000_v40  ;;  %v2058_v40 = vmov 0  }
  0x78   :  { %1168 = vmatprep.subr.bf16.mxu0 %v2008_v41  ;;  %1238 = vmatpush2.bf16.msra.mxu1 %v2003_v42  ;;  %v31_v41 = vld [vmem:[%s2902_s0 + $0x40] sm:$0xff]  ;;  %v40_v42 = vld [vmem:[%s2902_s0 + $0x88] sm:$0xff] }
  0x79   :  { %1239 = vmatprep.subr.bf16.mxu1 %v2011_v43  ;;  %v94_v43 = vpack.c.bf16 %v40_v42, %v31_v41 }
  0x7b   :  { %1169 = vmatpush2.bf16.msra.mxu0 %v2006_v44  ;;  %v49_v44 = vld [vmem:[%s2902_s0 + $0xd0] sm:$0xff] }
  0x7c   :  { %1170 = vmatprep.subr.bf16.mxu0 %v2014_v45  ;;  %1240 = vmatpush2.bf16.msra.mxu1 %v2009_v46  ;;  %v58_v45 = vld [vmem:[%s2902_s0 + $0x118] sm:$0xff] }
  0x7d   :  { %1241 = vmatprep.subr.bf16.mxu1 %v2017_v47  ;;  %v103_v46 = vpack.c.bf16 %v58_v45, %v49_v44  ;;  %v67_v47 = vld [vmem:[%s2902_s0 + $0x160] sm:$0xff] }
  0x7f   :  { %1171 = vmatpush2.bf16.msra.mxu0 %v2012_v48  ;;  %v76_v48 = vld [vmem:[%s2902_s0 + $0x1a8] sm:$0xff] }
  0x80   :  { %1282 = vmatprep.subr.bf16.mxu0 %v2020_v51  ;;  %1242 = vmatpush2.bf16.msra.mxu1 %v2015_v54  ;;  %v112_v49 = vpack.c.bf16 %v76_v48, %v67_v47  ;;  %v121_v51 = vpack.c.bf16 %v85_v50, %v85_v50  ;;  %v2044_v54 = vld [vmem:[%s2903_s3 + $0x70] sm:$0xff]  }
  0x81   :  { %1785 = vmatprep.subr.bf16.mxu1 %v2042_v52 }
  0x82   :  { %1173 = vmatmul.mubr.bf16.vlgmr.msra.gmra.mxu0 %v90_v57  ;;  %v2047_v57 = vld [vmem:[%s2903_s3 + $0x28] sm:$0xff]  }
  0x83   :  { %1283 = vmatpush1.bf16.msra.mxu0 %v2018_v60  ;;  %1182 = vmatprep.mubr.bf16.mxu0 %v100_v61  ;;  %v2050_v60 = vld [vmem:[%s2903_s3 + $0x58] sm:$0xff]  }
  0x84   :  { %1244 = vmatmul.mubr.bf16.vlgmr.msra.gmra.mxu1 %v92_v62  ;;  %1284 = vmatprep.subr.bf16.mxu0 %v2023_v63  ;;  %v2051_v61 = vld [vmem:[%s2903_s3 + $0x18] sm:$0xff]   ;;  %v2052_v62 = vld [vmem:[%s2903_s3 + $0x50] sm:$0xff]  }
  0x85   :  { %1253 = vmatprep.mubr.bf16.mxu1 %v102_v0  ;;  %1786 = vmatpush3.bf16.msra.mxu1 %v2043_v53  ;;  %v2053_v63 = vld [vmem:[%s2903_s3 + $0x10] sm:$0xff]   ;;  %v2054_v0 = vld [vmem:[%s2903_s3 + $0x48] sm:$0xff]  }
  0x86   :  { %1787 = vmatprep.subr.bf16.mxu1 %v2044_v54 }
  0x87   :  { %1285 = vmatpush1.bf16.msra.mxu0 %v2021_v1  ;;  %v2055_v1 = vld [vmem:[%s2903_s3 + $0x8] sm:$0xff]  }
  0x88   :  { %1286 = vmatprep.subr.bf16.mxu0 %v2026_v4  ;;  %v268_v4 = vlaneseq }
  0x89   :  { %1788 = vmatpush3.bf16.msra.mxu1 %v2045_v55 }
  0x8a   :  { %1183 = vmatmul.mubr.bf16.gmra.mxu0 %v99_v9  ;;  %1789 = vmatprep.subr.bf16.mxu1 %v2046_v56  ;;  %v269_v5 = vshrl.u32 %v268_v4, 7 }
  0x8b   :  { %1287 = vmatpush1.bf16.msra.mxu0 %v2024_v12  ;;  %1192 = vmatprep.mubr.bf16.mxu0 %v109_v13 }
  0x8c   :  { %1254 = vmatmul.mubr.bf16.gmra.mxu1 %v101_v14  ;;  %1288 = vmatprep.subr.bf16.mxu0 %v2029_v15  ;;  %v270_v6 = vsub.s32 0, %v269_v5  ;;  %v274_v8 = vsub.s32 1, %v269_v5 }
  0x8d   :  { %1263 = vmatprep.mubr.bf16.mxu1 %v111_v16  ;;  %1790 = vmatpush3.bf16.msra.mxu1 %v2047_v57 }
  0x8e   :  { %1791 = vmatprep.subr.bf16.mxu1 %v2048_v58  ;;  %v271_v9 = vrot.slane %v266_v7, %v270_v6  ;;  %v275_v10 = vrot.slane %v266_v7, %v274_v8 }
  0x8f   :  { %1289 = vmatpush1.bf16.msra.mxu0 %v2027_v17 }
  0x90   :  { %1290 = vmatprep.subr.bf16.mxu0 %v2032_v20 }
  0x91   :  { %1792 = vmatpush3.bf16.msra.mxu1 %v2049_v59 }
  0x92   :  { %1193 = vmatmul.mubr.bf16.gmra.mxu0 %v108_v24  ;;  %1793 = vmatprep.subr.bf16.mxu1 %v2050_v60 }
  0x93   :  { %1291 = vmatpush1.bf16.msra.mxu0 %v2030_v26  ;;  %1202 = vmatprep.mubr.bf16.mxu0 %v118_v27 }
  0x94   :  { %1264 = vmatmul.mubr.bf16.gmra.mxu1 %v110_v28  ;;  %1292 = vmatprep.subr.bf16.mxu0 %v2035_v29 }
  0x95   :  { %1273 = vmatprep.mubr.bf16.mxu1 %v120_v30  ;;  %1794 = vmatpush3.bf16.msra.mxu1 %v2051_v61 }
  0x96   :  { %1795 = vmatprep.subr.bf16.mxu1 %v2052_v62 }
  0x97   :  { %1293 = vmatpush1.bf16.msra.mxu0 %v2033_v31 }
  0x98   :  { %1294 = vmatprep.subr.bf16.mxu0 %v2038_v33 }
  0x99   :  { %1796 = vmatpush3.bf16.msra.mxu1 %v2053_v63 }
  0x9a   :  { %1203 = vmatmul.mubr.bf16.gmra.mxu0 %v117_v35  ;;  %1797 = vmatprep.subr.bf16.mxu1 %v2054_v0 }
  0x9b   :  { %1295 = vmatpush1.bf16.msra.mxu0 %v2036_v36  ;;  %1314 = vmatprep.mubr.bf16.mxu0 %v2058_v40 }
  0x9c   :  { %1274 = vmatmul.mubr.bf16.gmra.mxu1 %v119_v37  ;;  %1296 = vmatprep.subr.bf16.mxu0 %v2041_v38 }
  0x9d   :  { %1798 = vmatpush3.bf16.msra.mxu1 %v2055_v1 }
  0x9e   :  { %1799 = vmatprep.subr.bf16.mxu1 %v2056_v2 }
  0x9f   :  { %1297 = vmatpush1.bf16.msra.mxu0 %v2039_v39 }
  0xa1   :  { %1800 = vmatpush3.bf16.msra.mxu1 %v2057_v3 }
  0xa2   :  { %1315 = vmatmul.mubr.bf16.vlgmr.msra.gmra.mxu0 %v94_v43 }
  0xa3   :  { %1324 = vmatprep.mubr.bf16.mxu0 %v2058_v40 }
  0xaa   :  { %1325 = vmatmul.mubr.bf16.gmra.mxu0 %v103_v46 }
  0xab   :  { %1334 = vmatprep.mubr.bf16.mxu0 %v2058_v40 }
  0xb2   :  { %1335 = vmatmul.mubr.bf16.gmra.mxu0 %v112_v49 }
  0xb3   :  { %1344 = vmatprep.mubr.bf16.mxu0 %v2058_v40 }
  0xba   :  { %1345 = vmatmul.mubr.bf16.gmra.mxu0 %v121_v51 }
 0x102   :  { %v1032_v11 = vpop.f32.mrf.mxu0 }
 0x103   :  { %v1033_v12 = vadd.f32 %v1032_v11, %v271_v9  ;;  %v1103_v14 = vpop.f32.mrf.mxu1 }
 0x104   :  { %v1034_v13 = vpop.f32.mrf.mxu0 }
 0x105   :  { %v1035_v15 = vadd.f32 %v1034_v13, %v275_v10  ;;  %v2766_v16 = vadd.f32 %v1103_v14, %v1033_v12  ;;  %v1105_v18 = vpop.f32.mrf.mxu1 }
 0x106   :  { %v1036_v17 = vpop.f32.mrf.mxu0 }
 0x107   :  { %v1037_v19 = vadd.f32 %v1036_v17, %v271_v9  ;;  %v2768_v20 = vadd.f32 %v1105_v18, %v1035_v15  ;;  %v1107_v22 = vpop.f32.mrf.mxu1 }
 0x108   :  { %v1038_v21 = vpop.f32.mrf.mxu0 }
 0x109   :  { %v1039_v23 = vadd.f32 %v1038_v21, %v275_v10  ;;  %v2770_v24 = vadd.f32 %v1107_v22, %v1037_v19  ;;  %v1109_v25 = vpop.f32.mrf.mxu1 }
 0x10a   :  { %v1042_v26 = vpop.f32.mrf.mxu0 }
 0x10b   :  { %v2772_v27 = vadd.f32 %v1109_v25, %v1039_v23  ;;  %v1043_v28 = vadd.f32 %v1042_v26, %v271_v9  ;;  %v1113_v30 = vpop.f32.mrf.mxu1 }
 0x10c   :  { %v1044_v29 = vpop.f32.mrf.mxu0 }
 0x10d   :  { %v1045_v31 = vadd.f32 %v1044_v29, %v275_v10  ;;  %v2774_v32 = vadd.f32 %v1113_v30, %v1043_v28  ;;  %v1115_v34 = vpop.f32.mrf.mxu1 }
 0x10e   :  { %v1046_v33 = vpop.f32.mrf.mxu0 }
 0x10f   :  { %v1047_v35 = vadd.f32 %v1046_v33, %v271_v9  ;;  %v2776_v36 = vadd.f32 %v1115_v34, %v1045_v31  ;;  %v1117_v38 = vpop.f32.mrf.mxu1 }
 0x110   :  { %v1048_v37 = vpop.f32.mrf.mxu0 }
 0x111   :  { %v1049_v39 = vadd.f32 %v1048_v37, %v275_v10  ;;  %v2778_v40 = vadd.f32 %v1117_v38, %v1047_v35  ;;  %v1119_v42 = vpop.f32.mrf.mxu1 }
 0x112   :  { %v1052_v41 = vpop.f32.mrf.mxu0 }
 0x113   :  { %v1053_v43 = vadd.f32 %v1052_v41, %v271_v9  ;;  %v2780_v44 = vadd.f32 %v1119_v42, %v1049_v39  ;;  %v1123_v46 = vpop.f32.mrf.mxu1 }
 0x114   :  { %v1054_v45 = vpop.f32.mrf.mxu0 }
 0x115   :  { %v1055_v47 = vadd.f32 %v1054_v45, %v275_v10  ;;  %v2782_v48 = vadd.f32 %v1123_v46, %v1053_v43  ;;  %v1125_v50 = vpop.f32.mrf.mxu1 }
 0x116   :  { %v1056_v49 = vpop.f32.mrf.mxu0 }
 0x117   :  { %v1057_v51 = vadd.f32 %v1056_v49, %v271_v9  ;;  %v2784_v52 = vadd.f32 %v1125_v50, %v1055_v47  ;;  %v1127_v54 = vpop.f32.mrf.mxu1 }
 0x118   :  { %v1058_v53 = vpop.f32.mrf.mxu0 }
 0x119   :  { %v1059_v55 = vadd.f32 %v1058_v53, %v275_v10  ;;  %v2786_v56 = vadd.f32 %v1127_v54, %v1057_v51  ;;  %v1129_v58 = vpop.f32.mrf.mxu1 }
 0x11a   :  { %v1062_v57 = vpop.f32.mrf.mxu0 }
 0x11b   :  { %v1063_v59 = vadd.f32 %v1062_v57, %v271_v9  ;;  %v2788_v60 = vadd.f32 %v1129_v58, %v1059_v55  ;;  %v1133_v0 = vpop.f32.mrf.mxu1 }
 0x11c   :  { %v1064_v61 = vpop.f32.mrf.mxu0 }
 0x11d   :  { %v1065_v62 = vadd.f32 %v1064_v61, %v275_v10  ;;  %v2790_v1 = vadd.f32 %v1133_v0, %v1063_v59  ;;  %v1135_v3 = vpop.f32.mrf.mxu1 }
 0x11e   :  { %v1066_v63 = vpop.f32.mrf.mxu0 }
 0x11f   :  { %v2792_v4 = vadd.f32 %v1135_v3, %v1065_v62  ;;  %v1137_v5 = vpop.f32.mrf.mxu1 }
 0x120   :  { %v1067_v2 = vpop.f32.mrf.mxu0 }
 0x121   :  { %v1138_v6 = vpop.f32.mrf.mxu1 }
 0x142   :  { %v1174_v7 = vpop.f32.mrf.mxu0 }
 0x143   :  { %v1175_v41 = vadd.f32 %v1174_v7, %v2766_v16 }
 0x144   :  { %v1176_v8 = vpop.f32.mrf.mxu0  ;;  %v1245_v11 = vpop.f32.mrf.mxu1 }
 0x145   :  { %v1177_v45 = vadd.f32 %v1176_v8, %v2768_v20  ;;  %v1246_v49 = vadd.f32 %v1245_v11, %v1175_v41 }
 0x146   :  { %v1178_v12 = vpop.f32.mrf.mxu0  ;;  %v1247_v13 = vpop.f32.mrf.mxu1 }
 0x147   :  { %v1179_v50 = vadd.f32 %v1178_v12, %v2770_v24  ;;  %v1248_v54 = vadd.f32 %v1247_v13, %v1177_v45 }
 0x148   :  { %v1180_v9 = vpop.f32.mrf.mxu0  ;;  %v1249_v14 = vpop.f32.mrf.mxu1 }
 0x149   :  { %v1181_v55 = vadd.f32 %v1180_v9, %v2772_v27  ;;  %v1250_v59 = vadd.f32 %v1249_v14, %v1179_v50 }
 0x14a   :  { %v1184_v15 = vpop.f32.mrf.mxu0  ;;  %v1251_v17 = vpop.f32.mrf.mxu1 }
 0x14b   :  { %v1185_v16 = vadd.f32 %v1184_v15, %v2774_v32  ;;  %v1252_v0 = vadd.f32 %v1251_v17, %v1181_v55 }
 0x14c   :  { %v1186_v10 = vpop.f32.mrf.mxu0  ;;  %v1255_v18 = vpop.f32.mrf.mxu1 }
 0x14d   :  { %v1187_v63 = vadd.f32 %v1186_v10, %v2776_v36  ;;  %v1256_v5 = vadd.f32 %v1255_v18, %v1185_v16 }
 0x14e   :  { %v1188_v19 = vpop.f32.mrf.mxu0  ;;  %v1257_v21 = vpop.f32.mrf.mxu1 }
 0x14f   :  { %v1189_v3 = vadd.f32 %v1188_v19, %v2778_v40  ;;  %v1258_v7 = vadd.f32 %v1257_v21, %v1187_v63 }
 0x150   :  { %v1190_v22 = vpop.f32.mrf.mxu0  ;;  %v1259_v23 = vpop.f32.mrf.mxu1 }
 0x151   :  { %v1191_v8 = vadd.f32 %v1190_v22, %v2780_v44  ;;  %v1260_v40 = vadd.f32 %v1259_v23, %v1189_v3 }
 0x152   :  { %v1194_v25 = vpop.f32.mrf.mxu0  ;;  %v1261_v26 = vpop.f32.mrf.mxu1 }
 0x153   :  { %v1195_v14 = vadd.f32 %v1194_v25, %v2782_v48  ;;  %v1262_v19 = vadd.f32 %v1261_v26, %v1191_v8 }
 0x154   :  { %v1196_v28 = vpop.f32.mrf.mxu0  ;;  %v2794_v29 = vpop.f32.mrf.mxu1 }
 0x155   :  { %v1197_v44 = vadd.f32 %v1196_v28, %v2784_v52  ;;  %v1266_v25 = vadd.f32 %v2794_v29, %v1195_v14 }
 0x156   :  { %v1198_v30 = vpop.f32.mrf.mxu0  ;;  %v2796_v31 = vpop.f32.mrf.mxu1 }
 0x157   :  { %v1199_v48 = vadd.f32 %v1198_v30, %v2786_v56  ;;  %v1268_v26 = vadd.f32 %v2796_v31, %v1197_v44 }
 0x158   :  { %v2798_v33 = vpop.f32.mrf.mxu0  ;;  %v2800_v34 = vpop.f32.mrf.mxu1 }
 0x159   :  { %v1270_v29 = vadd.f32 %v2800_v34, %v1199_v48 }
 0x15a   :  { %v2802_v35 = vpop.f32.mrf.mxu0  ;;  %v2804_v37 = vpop.f32.mrf.mxu1 }
 0x15c   :  { %v2806_v38 = vpop.f32.mrf.mxu0  ;;  %v2808_v39 = vpop.f32.mrf.mxu1 }
 0x15e   :  { %v1208_v42 = vpop.f32.mrf.mxu0  ;;  %v2811_v43 = vpop.f32.mrf.mxu1 }
 0x15f   :  { %v1201_v42 = vadd.f32 %v2798_v33, %v2788_v60 }
 0x160   :  { %v1209_v46 = vpop.f32.mrf.mxu0  ;;  %v1279_v47 = vpop.f32.mrf.mxu1 }
 0x161   :  { %v1205_v47 = vadd.f32 %v2802_v35, %v2790_v1  ;;  %v1272_v50 = vadd.f32 %v2804_v37, %v1201_v42 }
 0x162   :  { %v1316_v51 = vpop.f32.mrf.mxu0  ;;  %v1280_v53 = vpop.f32.mrf.mxu1 }
 0x163   :  { %v1317_v57 = vadd.f32 %v1316_v51, %v1246_v49  ;;  %v1207_v51 = vadd.f32 %v2806_v38, %v2792_v4  ;;  %v1276_v35 = vadd.f32 %v2808_v39, %v1205_v47 }
 0x164   :  { %v1318_v58 = vpop.f32.mrf.mxu0 }
 0x165   :  { %v1353_v61 = vmax.f32 %v1317_v57, 0.0  ;;  %v1319_v62 = vadd.f32 %v1318_v58, %v1248_v54  ;;  %v1278_v4 = vadd.f32 %v2811_v43, %v1207_v51 }
 0x166   :  { %v1320_v20 = vpop.f32.mrf.mxu0 }
 0x167   :  { %1367 = vst [vmem:[%s2905_s5] sm:$0xff] %v1353_v61  ;;  %v1354_v24 = vmax.f32 %v1319_v62, 0.0  ;;  %v1321_v2 = vadd.f32 %v1320_v20, %v1250_v59 }
 0x168   :  { %v1322_v27 = vpop.f32.mrf.mxu0 }
 0x169   :  { %1368 = vst [vmem:[%s2905_s5 + $0x8] sm:$0xff] %v1354_v24  ;;  %v1355_v32 = vmax.f32 %v1321_v2, 0.0  ;;  %v1323_v6 = vadd.f32 %v1322_v27, %v1252_v0  ;;  %v1768_v2 = vld [vmem:[%s2906_s4] ss:$0 sm:$0xff] }
 0x16a   :  { %v1326_v36 = vpop.f32.mrf.mxu0 }
 0x16b   :  { %1369 = vst [vmem:[%s2905_s5 + $0x10] sm:$0xff] %v1355_v32  ;;  %v1356_v11 = vmax.f32 %v1323_v6, 0.0  ;;  %v1327_v12 = vadd.f32 %v1326_v36, %v1256_v5  ;;  %v1395_v13 = vpack.c.bf16 %v1355_v32, %v1353_v61 }
 0x16c   :  { %v1328_v9 = vpop.f32.mrf.mxu0 }
 0x16d   :  { %1370 = vst [vmem:[%s2905_s5 + $0x18] sm:$0xff] %v1356_v11  ;;  %v1357_v15 = vmax.f32 %v1327_v12, 0.0  ;;  %v1329_v17 = vadd.f32 %v1328_v9, %v1258_v7  ;;  %v1396_v10 = vpack.c.bf16 %v1356_v11, %v1354_v24 }
 0x16e   :  { %v1330_v18 = vpop.f32.mrf.mxu0 }
 0x16f   :  { %1371 = vst [vmem:[%s2905_s5 + $0x20] sm:$0xff] %v1357_v15  ;;  %v1358_v21 = vmax.f32 %v1329_v17, 0.0  ;;  %v1331_v22 = vadd.f32 %v1330_v18, %v1260_v40  ;;  %1570 = vmatprep.mubr.bf16.mxu1 %v1396_v10 }
 0x170   :  { %v1332_v23 = vpop.f32.mrf.mxu0  ;;  %1571 = vmatmul.mubr.bf16.vlgmr.msra.gmra.mxu1 %v1395_v13 }
 0x171   :  { %1372 = vst [vmem:[%s2905_s5 + $0x28] sm:$0xff] %v1358_v21  ;;  %v1359_v52 = vmax.f32 %v1331_v22, 0.0  ;;  %v1333_v28 = vadd.f32 %v1332_v23, %v1262_v19 }
 0x172   :  { %v1336_v41 = vpop.f32.mrf.mxu0 }
 0x173   :  { %1373 = vst [vmem:[%s2905_s5 + $0x30] sm:$0xff] %v1359_v52  ;;  %v1360_v56 = vmax.f32 %v1333_v28, 0.0  ;;  %v1337_v30 = vadd.f32 %v1336_v41, %v1266_v25  ;;  %v1397_v45 = vpack.c.bf16 %v1359_v52, %v1357_v15 }
 0x174   :  { %v1338_v46 = vpop.f32.mrf.mxu0 }
 0x175   :  { %1374 = vst [vmem:[%s2905_s5 + $0x38] sm:$0xff] %v1360_v56  ;;  %v1361_v31 = vmax.f32 %v1337_v30, 0.0  ;;  %v1339_v49 = vadd.f32 %v1338_v46, %v1268_v26  ;;  %v1398_v60 = vpack.c.bf16 %v1360_v56, %v1358_v21 }
 0x176   :  { %v1340_v33 = vpop.f32.mrf.mxu0 }
 0x177   :  { %1375 = vst [vmem:[%s2905_s5 + $0x40] sm:$0xff] %v1361_v31  ;;  %v1362_v34 = vmax.f32 %v1339_v49, 0.0  ;;  %v1341_v53 = vadd.f32 %v1340_v33, %v1270_v29  ;;  %1578 = vmatprep.mubr.bf16.mxu1 %v1398_v60 }
 0x178   :  { %v1342_v1 = vpop.f32.mrf.mxu0  ;;  %1579 = vmatmul.mubr.bf16.gmra.mxu1 %v1397_v45 }
 0x179   :  { %1376 = vst [vmem:[%s2905_s5 + $0x48] sm:$0xff] %v1362_v34  ;;  %v1363_v54 = vmax.f32 %v1341_v53, 0.0  ;;  %v1343_v37 = vadd.f32 %v1342_v1, %v1272_v50 }
 0x17a   :  { %v1346_v55 = vpop.f32.mrf.mxu0 }
 0x17b   :  { %1377 = vst [vmem:[%s2905_s5 + $0x50] sm:$0xff] %v1363_v54  ;;  %v1364_v38 = vmax.f32 %v1343_v37, 0.0  ;;  %v1347_v57 = vadd.f32 %v1346_v55, %v1276_v35  ;;  %v1399_v58 = vpack.c.bf16 %v1363_v54, %v1361_v31 }
 0x17c   :  { %v1348_v59 = vpop.f32.mrf.mxu0 }
 0x17d   :  { %1378 = vst [vmem:[%s2905_s5 + $0x58] sm:$0xff] %v1364_v38  ;;  %v1365_v39 = vmax.f32 %v1347_v57, 0.0  ;;  %v1349_v16 = vadd.f32 %v1348_v59, %v1278_v4  ;;  %v1400_v61 = vpack.c.bf16 %v1364_v38, %v1362_v34 }
 0x17e   :  { %v1350_v62 = vpop.f32.mrf.mxu0 }
 0x17f   :  { %1379 = vst [vmem:[%s2905_s5 + $0x60] sm:$0xff] %v1365_v39  ;;  %v1366_v43 = vmax.f32 %v1349_v16, 0.0  ;;  %1586 = vmatprep.mubr.bf16.mxu1 %v1400_v61  ;;  %v1401_v0 = vpack.c.bf16 %v1365_v39, %v1365_v39 }
 0x180   :  { %v1351_v63 = vpop.f32.mrf.mxu0  ;;  %1587 = vmatmul.mubr.bf16.gmra.mxu1 %v1399_v58 }
 0x181   :  { %1380 = vst [vmem:[%s2905_s5 + $0x68] sm:$0xff] %v1366_v43  ;;  %v1402_v20 = vpack.c.bf16 %v1366_v43, %v1366_v43 }
 0x183   :  { %1594 = vmatprep.mubr.bf16.mxu1 %v1402_v20 }
 0x188   :  { %1595 = vmatmul.mubr.bf16.gmra.mxu1 %v1401_v0 }
 0x230   :  { %v1801_v24 = vpop.f32.mrf.mxu1 }
 0x232   :  { %v1802_v3 = vpop.f32.mrf.mxu1 }
 0x233   :  { %v1803_v27 = vadd.f32 %v1802_v3, %v1801_v24 }
 0x234   :  { %v1804_v5 = vpop.f32.mrf.mxu1 }
 0x235   :  { %v1573_v32 = vadd.f32 %v1803_v27, %v1768_v2 }
 0x236   :  { %v1805_v6 = vpop.f32.mrf.mxu1 }
 0x237   :  { %v1602_v7 = vmax.f32 %v1573_v32, 0.0  ;;  %v1806_v36 = vadd.f32 %v1805_v6, %v1804_v5 }
 0x238   :  { %v1807_v8 = vpop.f32.mrf.mxu1 }
 0x239   :  { %1609 = vst [vmem:[%s2907_s6] sm:$0xff] %v1602_v7  ;;  %v1576_v11 = vadd.f32 %v1806_v36, %v1768_v2 }
 0x23a   :  { %v1808_v12 = vpop.f32.mrf.mxu1 }
 0x23b   :  { %v1603_v13 = vmax.f32 %v1576_v11, 0.0  ;;  %v1809_v40 = vadd.f32 %v1808_v12, %v1807_v8 }
 0x23c   :  { %v1810_v9 = vpop.f32.mrf.mxu1 }
 0x23d   :  { %1610 = vst [vmem:[%s2907_s6 + $0x8] sm:$0xff] %v1603_v13  ;;  %v1581_v14 = vadd.f32 %v1809_v40, %v1768_v2 }
 0x23e   :  { %v1811_v15 = vpop.f32.mrf.mxu1 }
 0x23f   :  { %v1604_v17 = vmax.f32 %v1581_v14, 0.0  ;;  %v1812_v10 = vadd.f32 %v1811_v15, %v1810_v9 }
 0x240   :  { %v1813_v44 = vpop.f32.mrf.mxu1 }
 0x241   :  { %1611 = vst [vmem:[%s2907_s6 + $0x10] sm:$0xff] %v1604_v17  ;;  %v1584_v18 = vadd.f32 %v1812_v10, %v1768_v2 }
 0x242   :  { %v1814_v19 = vpop.f32.mrf.mxu1 }
 0x243   :  { %v1605_v21 = vmax.f32 %v1584_v18, 0.0  ;;  %v1815_v22 = vadd.f32 %v1814_v19, %v1813_v44 }
 0x244   :  { %v1816_v48 = vpop.f32.mrf.mxu1 }
 0x245   :  { %1612 = vst [vmem:[%s2907_s6 + $0x18] sm:$0xff] %v1605_v21  ;;  %v1589_v23 = vadd.f32 %v1815_v22, %v1768_v2 }
 0x246   :  { %v1817_v25 = vpop.f32.mrf.mxu1 }
 0x247   :  { %v1606_v52 = vmax.f32 %v1589_v23, 0.0  ;;  %v1818_v28 = vadd.f32 %v1817_v25, %v1816_v48 }
 0x248   :  { %v1819_v26 = vpop.f32.mrf.mxu1 }
 0x249   :  { %1613 = vst [vmem:[%s2907_s6 + $0x20] sm:$0xff] %v1606_v52  ;;  %v1592_v41 = vadd.f32 %v1818_v28, %v1768_v2 }
 0x24a   :  { %v1820_v42 = vpop.f32.mrf.mxu1 }
 0x24b   :  { %v1607_v56 = vmax.f32 %v1592_v41, 0.0  ;;  %v1821_v30 = vadd.f32 %v1820_v42, %v1819_v26 }
 0x24c   :  { %v1822_v45 = vpop.f32.mrf.mxu1 }
 0x24d   :  { %1614 = vst [vmem:[%s2907_s6 + $0x28] sm:$0xff] %v1607_v56  ;;  %v1597_v29 = vadd.f32 %v1821_v30, %v1768_v2 }
 0x24e   :  { %v1823_v46 = vpop.f32.mrf.mxu1 }
 0x24f   :  { %v1608_v47 = vmax.f32 %v1597_v29, 0.0 }
 0x251   :  { %1615 = vst [vmem:[%s2907_s6 + $0x30] sm:$0xff] %v1608_v47 }

// kernel: aux_layers_forward.8
= control target key start
LH: loop header
LB: loop body
LE: loop exit
PB: predicated region body
PF: predicated region fallthrough
CT: control target
= control target key end

     0   :  { %s2470_s1 = inlined_call_operand.vmem [shape: bf16[1152,256], index: 1, kind: input, shape index: {}]   ;;  %s2471_s0 = inlined_call_operand.vmem [shape: f32[24,1152], index: 0, kind: input, shape index: {}]   ;;  %s2472_s3 = inlined_call_operand.vmem [shape: bf16[256,128], index: 3, kind: input, shape index: {}]   ;;  %s2473_s2 = inlined_call_operand.vmem [shape: f32[1,256], index: 2, kind: input, shape index: {}]   ;;  %s2474_s5 = inlined_call_operand.vmem [shape: f32[24,256], index: 5, kind: output, shape index: {0}]   ;;  %s2475_s4 = inlined_call_operand.vmem [shape: f32[1,128], index: 4, kind: input, shape index: {}]   ;;  %s2476_s6 = inlined_call_operand.vmem [shape: f32[24,128], index: 6, kind: output, shape index: {1}]  }
   0x1   :  { %v1608_v0 = vld [vmem:[%s2470_s1 + $0x74] ss:$8 sps:$4 sm:$0xff]   ;;  %v1610_v1 = vld [vmem:[%s2470_s1 + $0x70] ss:$8 sps:$4 sm:$0xff]   ;;  %v1614_v4 = vld [vmem:[%s2470_s1 + $0x64] ss:$8 sps:$4 sm:$0xff]  }
   0x2   :  { %944 = vmatprep.subr.bf16.mxu0 %v1608_v0  ;;  %v1611_v2 = vld [vmem:[%s2470_s1 + $0x174] ss:$8 sps:$4 sm:$0xff]   ;;  %v1613_v3 = vld [vmem:[%s2470_s1 + $0x170] ss:$8 sps:$4 sm:$0xff]   ;;  %v1616_v5 = vld [vmem:[%s2470_s1 + $0x60] ss:$8 sps:$4 sm:$0xff]  }
   0x3   :  { %945 = vmatpush1.bf16.msra.mxu0 %v1610_v1  ;;  %995 = vmatprep.subr.bf16.mxu1 %v1611_v2  ;;  %v1617_v6 = vld [vmem:[%s2470_s1 + $0x164] ss:$8 sps:$4 sm:$0xff]   ;;  %v1619_v7 = vld [vmem:[%s2470_s1 + $0x160] ss:$8 sps:$4 sm:$0xff]   ;;  %v1620_v8 = vld [vmem:[%s2470_s1 + $0x54] ss:$8 sps:$4 sm:$0xff]  }
   0x4   :  { %996 = vmatpush1.bf16.msra.mxu1 %v1613_v3  ;;  %946 = vmatprep.subr.bf16.mxu0 %v1614_v4  ;;  %v1622_v9 = vld [vmem:[%s2470_s1 + $0x50] ss:$8 sps:$4 sm:$0xff]   ;;  %v1623_v10 = vld [vmem:[%s2470_s1 + $0x154] ss:$8 sps:$4 sm:$0xff]   ;;  %v1626_v11 = vld [vmem:[%s2470_s1 + $0x44] ss:$8 sps:$4 sm:$0xff]  }
   0x5   :  { %997 = vmatprep.subr.bf16.mxu1 %v1617_v6  ;;  %v1625_v12 = vld [vmem:[%s2470_s1 + $0x150] ss:$8 sps:$4 sm:$0xff]   ;;  %v1629_v13 = vld [vmem:[%s2470_s1 + $0x144] ss:$8 sps:$4 sm:$0xff]   ;;  %v1628_v14 = vld [vmem:[%s2470_s1 + $0x40] ss:$8 sps:$4 sm:$0xff]  }
   0x6   :  { %v1632_v15 = vld [vmem:[%s2470_s1 + $0x34] ss:$8 sps:$4 sm:$0xff]   ;;  %v1631_v16 = vld [vmem:[%s2470_s1 + $0x140] ss:$8 sps:$4 sm:$0xff]   ;;  %v1634_v18 = vld [vmem:[%s2470_s1 + $0x30] ss:$8 sps:$4 sm:$0xff]  }
   0x7   :  { %947 = vmatpush1.bf16.msra.mxu0 %v1616_v5  ;;  %v1635_v17 = vld [vmem:[%s2470_s1 + $0x134] ss:$8 sps:$4 sm:$0xff]   ;;  %v1638_v19 = vld [vmem:[%s2470_s1 + $0x24] ss:$8 sps:$4 sm:$0xff]   ;;  %v1637_v20 = vld [vmem:[%s2470_s1 + $0x130] ss:$8 sps:$4 sm:$0xff]  }
   0x8   :  { %948 = vmatprep.subr.bf16.mxu0 %v1620_v8  ;;  %998 = vmatpush1.bf16.msra.mxu1 %v1619_v7  ;;  %v1641_v21 = vld [vmem:[%s2470_s1 + $0x124] ss:$8 sps:$4 sm:$0xff]   ;;  %v1640_v22 = vld [vmem:[%s2470_s1 + $0x20] ss:$8 sps:$4 sm:$0xff]   ;;  %v1644_v23 = vld [vmem:[%s2470_s1 + $0x14] ss:$8 sps:$4 sm:$0xff]  }
   0x9   :  { %999 = vmatprep.subr.bf16.mxu1 %v1623_v10  ;;  %v1643_v24 = vld [vmem:[%s2470_s1 + $0x120] ss:$8 sps:$4 sm:$0xff]   ;;  %v1647_v25 = vld [vmem:[%s2470_s1 + $0x114] ss:$8 sps:$4 sm:$0xff]   ;;  %v1646_v26 = vld [vmem:[%s2470_s1 + $0x10] ss:$8 sps:$4 sm:$0xff]  }
   0xa   :  { %v1650_v27 = vld [vmem:[%s2470_s1 + $0x4] ss:$8 sps:$4 sm:$0xff]   ;;  %v1649_v28 = vld [vmem:[%s2470_s1 + $0x110] ss:$8 sps:$4 sm:$0xff]   ;;  %v1652_v30 = vld [vmem:[%s2470_s1] ss:$8 sps:$4 sm:$0xff]  }
   0xb   :  { %949 = vmatpush1.bf16.msra.mxu0 %v1622_v9  ;;  %v1653_v29 = vld [vmem:[%s2470_s1 + $0x104] ss:$8 sps:$4 sm:$0xff]   ;;  %v1656_v31 = vld [vmem:[%s2470_s1 + $0xf4] ss:$8 sps:$4 sm:$0xff]   ;;  %v1655_v32 = vld [vmem:[%s2470_s1 + $0x100] ss:$8 sps:$4 sm:$0xff]  }
   0xc   :  { %950 = vmatprep.subr.bf16.mxu0 %v1626_v11  ;;  %1000 = vmatpush1.bf16.msra.mxu1 %v1625_v12  ;;  %v1659_v33 = vld [vmem:[%s2470_s1 + $0x1f4] ss:$8 sps:$4 sm:$0xff]   ;;  %v1658_v34 = vld [vmem:[%s2470_s1 + $0xf0] ss:$8 sps:$4 sm:$0xff]   ;;  %v1662_v35 = vld [vmem:[%s2470_s1 + $0xe4] ss:$8 sps:$4 sm:$0xff]  }
   0xd   :  { %1001 = vmatprep.subr.bf16.mxu1 %v1629_v13  ;;  %v1661_v36 = vld [vmem:[%s2470_s1 + $0x1f0] ss:$8 sps:$4 sm:$0xff]   ;;  %v1665_v37 = vld [vmem:[%s2470_s1 + $0x1e4] ss:$8 sps:$4 sm:$0xff]   ;;  %v1664_v38 = vld [vmem:[%s2470_s1 + $0xe0] ss:$8 sps:$4 sm:$0xff]  }
   0xe   :  { %v1668_v39 = vld [vmem:[%s2470_s1 + $0xd4] ss:$8 sps:$4 sm:$0xff]   ;;  %v1667_v40 = vld [vmem:[%s2470_s1 + $0x1e0] ss:$8 sps:$4 sm:$0xff]   ;;  %v1670_v42 = vld [vmem:[%s2470_s1 + $0xd0] ss:$8 sps:$4 sm:$0xff]  }
   0xf   :  { %951 = vmatpush1.bf16.msra.mxu0 %v1628_v14  ;;  %v1671_v41 = vld [vmem:[%s2470_s1 + $0x1d4] ss:$8 sps:$4 sm:$0xff]   ;;  %v1674_v43 = vld [vmem:[%s2470_s1 + $0xc4] ss:$8 sps:$4 sm:$0xff]   ;;  %v1673_v44 = vld [vmem:[%s2470_s1 + $0x1d0] ss:$8 sps:$4 sm:$0xff]  }
  0x10   :  { %952 = vmatprep.subr.bf16.mxu0 %v1632_v15  ;;  %1002 = vmatpush1.bf16.msra.mxu1 %v1631_v16  ;;  %v1677_v45 = vld [vmem:[%s2470_s1 + $0x1c4] ss:$8 sps:$4 sm:$0xff]   ;;  %v33_v47 = vld [vmem:[%s2471_s0 + $0x50] sm:$0xff]  ;;  %v1676_v48 = vld [vmem:[%s2470_s1 + $0xc0] ss:$8 sps:$4 sm:$0xff]  }
  0x11   :  { %1003 = vmatprep.subr.bf16.mxu1 %v1635_v17  ;;  %v24_v46 = vld [vmem:[%s2471_s0 + $0x8] sm:$0xff]  ;;  %v1680_v50 = vld [vmem:[%s2470_s1 + $0xb4] ss:$8 sps:$4 sm:$0xff]   ;;  %v35_v53 = vld [vmem:[%s2471_s0 + $0x60] sm:$0xff] }
  0x12   :  { %v51_v49 = vpack.c.bf16 %v33_v47, %v24_v46  ;;  %v1679_v51 = vld [vmem:[%s2470_s1 + $0x1c0] ss:$8 sps:$4 sm:$0xff]   ;;  %v26_v52 = vld [vmem:[%s2471_s0 + $0x18] sm:$0xff]  ;;  %v1686_v57 = vld [vmem:[%s2470_s1 + $0xa4] ss:$8 sps:$4 sm:$0xff]  }
  0x13   :  { %953 = vmatpush1.bf16.msra.mxu0 %v1634_v18  ;;  %v1683_v54 = vld [vmem:[%s2470_s1 + $0x1b4] ss:$8 sps:$4 sm:$0xff]   ;;  %v53_v55 = vpack.c.bf16 %v35_v53, %v26_v52  ;;  %v1682_v56 = vld [vmem:[%s2470_s1 + $0xb0] ss:$8 sps:$4 sm:$0xff]   ;;  %v1689_v59 = vld [vmem:[%s2470_s1 + $0x1a4] ss:$8 sps:$4 sm:$0xff]  }
  0x14   :  { %954 = vmatprep.subr.bf16.mxu0 %v1638_v19  ;;  %1004 = vmatpush1.bf16.msra.mxu1 %v1637_v20  ;;  %v1685_v58 = vld [vmem:[%s2470_s1 + $0x1b0] ss:$8 sps:$4 sm:$0xff]   ;;  %v1688_v60 = vld [vmem:[%s2470_s1 + $0xa0] ss:$8 sps:$4 sm:$0xff]   ;;  %v1692_v61 = vld [vmem:[%s2470_s1 + $0x94] ss:$8 sps:$4 sm:$0xff]  }
  0x15   :  { %1005 = vmatprep.subr.bf16.mxu1 %v1641_v21  ;;  %976 = vmatprep.mubr.bf16.mxu0 %v51_v49  ;;  %v1691_v62 = vld [vmem:[%s2470_s1 + $0x1a0] ss:$8 sps:$4 sm:$0xff]   ;;  %v1695_v63 = vld [vmem:[%s2470_s1 + $0x194] ss:$8 sps:$4 sm:$0xff]   ;;  %v1694_v0 = vld [vmem:[%s2470_s1 + $0x90] ss:$8 sps:$4 sm:$0xff]  }
  0x16   :  { %1027 = vmatprep.mubr.bf16.mxu1 %v53_v55  ;;  %v1697_v1 = vld [vmem:[%s2470_s1 + $0x190] ss:$8 sps:$4 sm:$0xff]   ;;  %v1698_v2 = vld [vmem:[%s2470_s1 + $0x84] ss:$8 sps:$4 sm:$0xff]   ;;  %v1700_v3 = vld [vmem:[%s2470_s1 + $0x80] ss:$8 sps:$4 sm:$0xff]  }
  0x17   :  { %955 = vmatpush1.bf16.msra.mxu0 %v1640_v22  ;;  %v1701_v4 = vld [vmem:[%s2470_s1 + $0x184] ss:$8 sps:$4 sm:$0xff]   ;;  %v1703_v6 = vld [vmem:[%s2470_s1 + $0x180] ss:$8 sps:$4 sm:$0xff]   ;;  %v1706_v8 = vld [vmem:[%s2470_s1 + $0x274] ss:$8 sps:$4 sm:$0xff]  }
  0x18   :  { %956 = vmatprep.subr.bf16.mxu0 %v1644_v23  ;;  %1006 = vmatpush1.bf16.msra.mxu1 %v1643_v24  ;;  %v23_v5 = vld [vmem:[%s2471_s0] sm:$0xff]  ;;  %v32_v7 = vld [vmem:[%s2471_s0 + $0x48] sm:$0xff]  ;;  %v25_v9 = vld [vmem:[%s2471_s0 + $0x10] sm:$0xff] }
  0x19   :  { %1007 = vmatprep.subr.bf16.mxu1 %v1647_v25  ;;  %v34_v10 = vld [vmem:[%s2471_s0 + $0x58] sm:$0xff]  ;;  %v50_v11 = vpack.c.bf16 %v32_v7, %v23_v5  ;;  %v1712_v15 = vld [vmem:[%s2470_s1 + $0x264] ss:$8 sps:$4 sm:$0xff]   ;;  %v1710_v18 = vld [vmem:[%s2470_s1 + $0x260] ss:$8 sps:$4 sm:$0xff]  }
  0x1a   :  { %v1709_v12 = vld [vmem:[%s2470_s1 + $0x374] ss:$8 sps:$4 sm:$0xff]   ;;  %v1704_v13 = vld [vmem:[%s2470_s1 + $0x270] ss:$8 sps:$4 sm:$0xff]   ;;  %v52_v14 = vpack.c.bf16 %v34_v10, %v25_v9  ;;  %v1715_v17 = vld [vmem:[%s2470_s1 + $0x364] ss:$8 sps:$4 sm:$0xff]  }
  0x1b   :  { %957 = vmatpush1.bf16.msra.mxu0 %v1646_v26  ;;  %v1707_v16 = vld [vmem:[%s2470_s1 + $0x370] ss:$8 sps:$4 sm:$0xff]   ;;  %v1718_v19 = vld [vmem:[%s2470_s1 + $0x254] ss:$8 sps:$4 sm:$0xff]   ;;  %v1713_v20 = vld [vmem:[%s2470_s1 + $0x360] ss:$8 sps:$4 sm:$0xff]  }
  0x1c   :  { %958 = vmatprep.subr.bf16.mxu0 %v1650_v27  ;;  %1008 = vmatpush1.bf16.msra.mxu1 %v1649_v28  ;;  %v1721_v21 = vld [vmem:[%s2470_s1 + $0x354] ss:$8 sps:$4 sm:$0xff]   ;;  %v1716_v22 = vld [vmem:[%s2470_s1 + $0x250] ss:$8 sps:$4 sm:$0xff]   ;;  %v1724_v23 = vld [vmem:[%s2470_s1 + $0x244] ss:$8 sps:$4 sm:$0xff]  }
  0x1d   :  { %1009 = vmatprep.subr.bf16.mxu1 %v1653_v29  ;;  %v1719_v24 = vld [vmem:[%s2470_s1 + $0x350] ss:$8 sps:$4 sm:$0xff]   ;;  %v1727_v25 = vld [vmem:[%s2470_s1 + $0x344] ss:$8 sps:$4 sm:$0xff]   ;;  %v1722_v26 = vld [vmem:[%s2470_s1 + $0x240] ss:$8 sps:$4 sm:$0xff]  }
  0x1e   :  { %v1730_v27 = vld [vmem:[%s2470_s1 + $0x234] ss:$8 sps:$4 sm:$0xff]   ;;  %v1725_v28 = vld [vmem:[%s2470_s1 + $0x340] ss:$8 sps:$4 sm:$0xff]   ;;  %v1740_v46 = vld [vmem:[%s2470_s1 + $0x210] ss:$8 sps:$4 sm:$0xff]  }
  0x1f   :  { %959 = vmatpush1.bf16.msra.mxu0 %v1652_v30  ;;  %v1733_v29 = vld [vmem:[%s2470_s1 + $0x334] ss:$8 sps:$4 sm:$0xff]   ;;  %v1748_v47 = vld [vmem:[%s2470_s1 + $0x204] ss:$8 sps:$4 sm:$0xff]   ;;  %v1746_v53 = vld [vmem:[%s2470_s1 + $0x200] ss:$8 sps:$4 sm:$0xff]  }
  0x20   :  { %960 = vmatprep.subr.bf16.mxu0 %v1656_v31  ;;  %1010 = vmatpush1.bf16.msra.mxu1 %v1655_v32  ;;  %v42_v30 = vld [vmem:[%s2471_s0 + $0x98] sm:$0xff]  ;;  %v28_v49 = vld [vmem:[%s2471_s0 + $0x28] sm:$0xff] }
  0x21   :  { %1011 = vmatprep.subr.bf16.mxu1 %v1659_v33  ;;  %v1728_v31 = vld [vmem:[%s2470_s1 + $0x230] ss:$8 sps:$4 sm:$0xff]   ;;  %v60_v32 = vpack.c.bf16 %v42_v30, %v42_v30  ;;  %v1736_v33 = vld [vmem:[%s2470_s1 + $0x224] ss:$8 sps:$4 sm:$0xff]   ;;  %v1778_v9 = vld [vmem:[%s2470_s1 + $0x2b4] ss:$8 sps:$4 sm:$0xff]  }
  0x22   :  { %v30_v55 = vld [vmem:[%s2471_s0 + $0x38] sm:$0xff]  ;;  %v1772_v5 = vld [vmem:[%s2470_s1 + $0x2c4] ss:$8 sps:$4 sm:$0xff]   ;;  %v1773_v10 = vld [vmem:[%s2470_s1 + $0x3c0] ss:$8 sps:$4 sm:$0xff]  }
  0x23   :  { %961 = vmatpush2.bf16.msra.mxu0 %v1658_v34  ;;  %v41_v34 = vld [vmem:[%s2471_s0 + $0x90] sm:$0xff]  ;;  %v1775_v7 = vld [vmem:[%s2470_s1 + $0x3c4] ss:$8 sps:$4 sm:$0xff]  }
  0x24   :  { %962 = vmatprep.subr.bf16.mxu0 %v1662_v35  ;;  %1012 = vmatpush2.bf16.msra.mxu1 %v1661_v36  ;;  %v1731_v35 = vld [vmem:[%s2470_s1 + $0x330] ss:$8 sps:$4 sm:$0xff]   ;;  %v59_v36 = vpack.c.bf16 %v41_v34, %v41_v34 }
  0x25   :  { %1013 = vmatprep.subr.bf16.mxu1 %v1665_v37  ;;  %v1739_v37 = vld [vmem:[%s2470_s1 + $0x324] ss:$8 sps:$4 sm:$0xff]   ;;  %v29_v30 = vld [vmem:[%s2471_s0 + $0x30] sm:$0xff] }
  0x26   :  { %v1800_v34 = vld [vmem:[%s2470_s1 + $0x470] ss:$8 sps:$4 sm:$0xff]  }
  0x27   :  { %963 = vmatpush2.bf16.msra.mxu0 %v1664_v38  ;;  %v1734_v38 = vld [vmem:[%s2470_s1 + $0x220] ss:$8 sps:$4 sm:$0xff]  }
  0x28   :  { %964 = vmatprep.subr.bf16.mxu0 %v1668_v39  ;;  %1014 = vmatpush2.bf16.msra.mxu1 %v1667_v40  ;;  %v44_v39 = vld [vmem:[%s2471_s0 + $0xa8] sm:$0xff] }
  0x29   :  { %1015 = vmatprep.subr.bf16.mxu1 %v1671_v41  ;;  %v1737_v40 = vld [vmem:[%s2470_s1 + $0x320] ss:$8 sps:$4 sm:$0xff]   ;;  %v1742_v41 = vld [vmem:[%s2470_s1 + $0x214] ss:$8 sps:$4 sm:$0xff]  }
  0x2b   :  { %965 = vmatpush2.bf16.msra.mxu0 %v1670_v42  ;;  %v62_v42 = vpack.c.bf16 %v44_v39, %v44_v39  ;;  %v1803_v39 = vld [vmem:[%s2470_s1 + $0x460] ss:$8 sps:$4 sm:$0xff]  }
  0x2c   :  { %966 = vmatprep.subr.bf16.mxu0 %v1674_v43  ;;  %1016 = vmatpush2.bf16.msra.mxu1 %v1673_v44  ;;  %v43_v43 = vld [vmem:[%s2471_s0 + $0xa0] sm:$0xff]  ;;  %v1745_v44 = vld [vmem:[%s2470_s1 + $0x314] ss:$8 sps:$4 sm:$0xff]  }
  0x2d   :  { %1017 = vmatprep.subr.bf16.mxu1 %v1677_v45  ;;  %v61_v45 = vpack.c.bf16 %v43_v43, %v43_v43 }
  0x2f   :  { %967 = vmatpush2.bf16.msra.mxu0 %v1676_v48  ;;  %v1743_v48 = vld [vmem:[%s2470_s1 + $0x310] ss:$8 sps:$4 sm:$0xff]  }
  0x30   :  { %968 = vmatprep.subr.bf16.mxu0 %v1680_v50  ;;  %1018 = vmatpush2.bf16.msra.mxu1 %v1679_v51  ;;  %v37_v50 = vld [vmem:[%s2471_s0 + $0x70] sm:$0xff]  ;;  %v1751_v51 = vld [vmem:[%s2470_s1 + $0x304] ss:$8 sps:$4 sm:$0xff]  }
  0x31   :  { %1019 = vmatprep.subr.bf16.mxu1 %v1683_v54  ;;  %v55_v52 = vpack.c.bf16 %v37_v50, %v28_v49  ;;  %v1754_v54 = vld [vmem:[%s2470_s1 + $0x2f4] ss:$8 sps:$4 sm:$0xff]   ;;  %v1812_v50 = vld [vmem:[%s2470_s1 + $0x430] ss:$8 sps:$4 sm:$0xff]  }
  0x32   :  { %v1814_v49 = vld [vmem:[%s2470_s1 + $0x434] ss:$8 sps:$4 sm:$0xff]  }
  0x33   :  { %969 = vmatpush2.bf16.msra.mxu0 %v1682_v56  ;;  %v39_v56 = vld [vmem:[%s2471_s0 + $0x80] sm:$0xff] }
  0x34   :  { %970 = vmatprep.subr.bf16.mxu0 %v1686_v57  ;;  %1020 = vmatpush2.bf16.msra.mxu1 %v1685_v58  ;;  %v1749_v57 = vld [vmem:[%s2470_s1 + $0x300] ss:$8 sps:$4 sm:$0xff]   ;;  %v57_v58 = vpack.c.bf16 %v39_v56, %v30_v55  ;;  %v1823_v55 = vld [vmem:[%s2470_s1 + $0x404] ss:$8 sps:$4 sm:$0xff]  }
  0x35   :  { %1021 = vmatprep.subr.bf16.mxu1 %v1689_v59  ;;  %v1757_v59 = vld [vmem:[%s2470_s1 + $0x3f4] ss:$8 sps:$4 sm:$0xff]   ;;  %v1821_v56 = vld [vmem:[%s2470_s1 + $0x400] ss:$8 sps:$4 sm:$0xff]  }
  0x37   :  { %971 = vmatpush2.bf16.msra.mxu0 %v1688_v60  ;;  %v1752_v60 = vld [vmem:[%s2470_s1 + $0x2f0] ss:$8 sps:$4 sm:$0xff]  }
  0x38   :  { %972 = vmatprep.subr.bf16.mxu0 %v1692_v61  ;;  %1022 = vmatpush2.bf16.msra.mxu1 %v1691_v62  ;;  %v1760_v61 = vld [vmem:[%s2470_s1 + $0x2e4] ss:$8 sps:$4 sm:$0xff]   ;;  %v1755_v62 = vld [vmem:[%s2470_s1 + $0x3f0] ss:$8 sps:$4 sm:$0xff]  }
  0x39   :  { %1023 = vmatprep.subr.bf16.mxu1 %v1695_v63  ;;  %v1763_v63 = vld [vmem:[%s2470_s1 + $0x3e4] ss:$8 sps:$4 sm:$0xff]  }
  0x3b   :  { %973 = vmatpush2.bf16.msra.mxu0 %v1694_v0  ;;  %v1758_v0 = vld [vmem:[%s2470_s1 + $0x2e0] ss:$8 sps:$4 sm:$0xff]  }
  0x3c   :  { %974 = vmatprep.subr.bf16.mxu0 %v1698_v2  ;;  %1024 = vmatpush2.bf16.msra.mxu1 %v1697_v1  ;;  %v1766_v1 = vld [vmem:[%s2470_s1 + $0x2d4] ss:$8 sps:$4 sm:$0xff]   ;;  %v1761_v2 = vld [vmem:[%s2470_s1 + $0x3e0] ss:$8 sps:$4 sm:$0xff]  }
  0x3d   :  { %1025 = vmatprep.subr.bf16.mxu1 %v1701_v4  ;;  %v1764_v4 = vld [vmem:[%s2470_s1 + $0x2d0] ss:$8 sps:$4 sm:$0xff]  }
  0x3f   :  { %975 = vmatpush2.bf16.msra.mxu0 %v1700_v3  ;;  %v1769_v3 = vld [vmem:[%s2470_s1 + $0x3d4] ss:$8 sps:$4 sm:$0xff]  }
  0x40   :  { %1046 = vmatprep.subr.bf16.mxu0 %v1706_v8  ;;  %1026 = vmatpush2.bf16.msra.mxu1 %v1703_v6  ;;  %v1767_v6 = vld [vmem:[%s2470_s1 + $0x3d0] ss:$8 sps:$4 sm:$0xff]   ;;  %v1770_v8 = vld [vmem:[%s2470_s1 + $0x2c0] ss:$8 sps:$4 sm:$0xff]  }
  0x41   :  { %1097 = vmatprep.subr.bf16.mxu1 %v1709_v12  ;;  %v1776_v12 = vld [vmem:[%s2470_s1 + $0x2b0] ss:$8 sps:$4 sm:$0xff]  }
  0x42   :  { %977 = vmatmul.mubr.bf16.vlgmr.msra.gmra.mxu0 %v50_v11  ;;  %v1781_v11 = vld [vmem:[%s2470_s1 + $0x3b4] ss:$8 sps:$4 sm:$0xff]  }
  0x43   :  { %1047 = vmatpush1.bf16.msra.mxu0 %v1704_v13  ;;  %1028 = vmatmul.mubr.bf16.vlgmr.msra.gmra.mxu1 %v52_v14  ;;  %v1784_v13 = vld [vmem:[%s2470_s1 + $0x2a4] ss:$8 sps:$4 sm:$0xff]   ;;  %v1779_v14 = vld [vmem:[%s2470_s1 + $0x3b0] ss:$8 sps:$4 sm:$0xff]  }
  0x44   :  { %1048 = vmatprep.subr.bf16.mxu0 %v1712_v15  ;;  %1098 = vmatpush1.bf16.msra.mxu1 %v1707_v16  ;;  %v1787_v15 = vld [vmem:[%s2470_s1 + $0x3a4] ss:$8 sps:$4 sm:$0xff]   ;;  %v1782_v16 = vld [vmem:[%s2470_s1 + $0x2a0] ss:$8 sps:$4 sm:$0xff]  }
  0x45   :  { %1099 = vmatprep.subr.bf16.mxu1 %v1715_v17  ;;  %986 = vmatprep.mubr.bf16.mxu0 %v60_v32  ;;  %v1790_v17 = vld [vmem:[%s2470_s1 + $0x294] ss:$8 sps:$4 sm:$0xff]  }
  0x46   :  { %1037 = vmatprep.mubr.bf16.mxu1 %v62_v42  ;;  %v47_v42 = vld [vmem:[%s2471_s0 + $0xc0] sm:$0xff] }
  0x47   :  { %1049 = vmatpush1.bf16.msra.mxu0 %v1710_v18  ;;  %v1785_v18 = vld [vmem:[%s2470_s1 + $0x3a0] ss:$8 sps:$4 sm:$0xff]  }
  0x48   :  { %1050 = vmatprep.subr.bf16.mxu0 %v1718_v19  ;;  %1100 = vmatpush1.bf16.msra.mxu1 %v1713_v20  ;;  %v1793_v19 = vld [vmem:[%s2470_s1 + $0x394] ss:$8 sps:$4 sm:$0xff]   ;;  %v1788_v20 = vld [vmem:[%s2470_s1 + $0x290] ss:$8 sps:$4 sm:$0xff]  }
  0x49   :  { %1101 = vmatprep.subr.bf16.mxu1 %v1721_v21  ;;  %v1796_v21 = vld [vmem:[%s2470_s1 + $0x284] ss:$8 sps:$4 sm:$0xff]  }
  0x4a   :  { %987 = vmatmul.mubr.bf16.gmra.mxu0 %v59_v36 }
  0x4b   :  { %1051 = vmatpush1.bf16.msra.mxu0 %v1716_v22  ;;  %1038 = vmatmul.mubr.bf16.gmra.mxu1 %v61_v45  ;;  %v1791_v22 = vld [vmem:[%s2470_s1 + $0x390] ss:$8 sps:$4 sm:$0xff]   ;;  %v65_v45 = vpack.c.bf16 %v47_v42, %v47_v42 }
  0x4c   :  { %1052 = vmatprep.subr.bf16.mxu0 %v1724_v23  ;;  %1102 = vmatpush1.bf16.msra.mxu1 %v1719_v24  ;;  %v1799_v23 = vld [vmem:[%s2470_s1 + $0x384] ss:$8 sps:$4 sm:$0xff]   ;;  %v1794_v24 = vld [vmem:[%s2470_s1 + $0x280] ss:$8 sps:$4 sm:$0xff]  }
  0x4d   :  { %1103 = vmatprep.subr.bf16.mxu1 %v1727_v25  ;;  %1078 = vmatprep.mubr.bf16.mxu0 %v55_v52  ;;  %v27_v25 = vld [vmem:[%s2471_s0 + $0x20] sm:$0xff] }
  0x4e   :  { %1129 = vmatprep.mubr.bf16.mxu1 %v57_v58  ;;  %v1815_v52 = vld [vmem:[%s2470_s1 + $0x420] ss:$8 sps:$4 sm:$0xff]  }
  0x4f   :  { %1053 = vmatpush1.bf16.msra.mxu0 %v1722_v26  ;;  %v36_v26 = vld [vmem:[%s2471_s0 + $0x68] sm:$0xff] }
  0x50   :  { %1054 = vmatprep.subr.bf16.mxu0 %v1730_v27  ;;  %1104 = vmatpush1.bf16.msra.mxu1 %v1725_v28  ;;  %v1802_v27 = vld [vmem:[%s2470_s1 + $0x474] ss:$8 sps:$4 sm:$0xff]   ;;  %v54_v32 = vpack.c.bf16 %v36_v26, %v27_v25  ;;  %v40_v58 = vld [vmem:[%s2471_s0 + $0x88] sm:$0xff] }
  0x51   :  { %1105 = vmatprep.subr.bf16.mxu1 %v1733_v29  ;;  %v46_v28 = vld [vmem:[%s2471_s0 + $0xb8] sm:$0xff]  ;;  %v1797_v29 = vld [vmem:[%s2470_s1 + $0x380] ss:$8 sps:$4 sm:$0xff]  }
  0x53   :  { %1055 = vmatpush1.bf16.msra.mxu0 %v1728_v31  ;;  %v38_v31 = vld [vmem:[%s2471_s0 + $0x78] sm:$0xff] }
  0x54   :  { %1056 = vmatprep.subr.bf16.mxu0 %v1736_v33  ;;  %1106 = vmatpush1.bf16.msra.mxu1 %v1731_v35  ;;  %v48_v33 = vld [vmem:[%s2471_s0 + $0xc8] sm:$0xff]  ;;  %v64_v35 = vpack.c.bf16 %v46_v28, %v46_v28  ;;  %v56_v36 = vpack.c.bf16 %v38_v31, %v29_v30 }
  0x55   :  { %1107 = vmatprep.subr.bf16.mxu1 %v1739_v37  ;;  %v1805_v37 = vld [vmem:[%s2470_s1 + $0x464] ss:$8 sps:$4 sm:$0xff]  }
  0x57   :  { %1057 = vmatpush1.bf16.msra.mxu0 %v1734_v38  ;;  %v66_v38 = vpack.c.bf16 %v48_v33, %v48_v33 }
  0x58   :  { %1058 = vmatprep.subr.bf16.mxu0 %v1742_v41  ;;  %1108 = vmatpush1.bf16.msra.mxu1 %v1737_v40  ;;  %v45_v40 = vld [vmem:[%s2471_s0 + $0xb0] sm:$0xff] }
  0x59   :  { %1109 = vmatprep.subr.bf16.mxu1 %v1745_v44  ;;  %v1808_v41 = vld [vmem:[%s2470_s1 + $0x454] ss:$8 sps:$4 sm:$0xff]   ;;  %v63_v43 = vpack.c.bf16 %v45_v40, %v45_v40  ;;  %v1806_v44 = vld [vmem:[%s2470_s1 + $0x450] ss:$8 sps:$4 sm:$0xff]  }
  0x5b   :  { %1059 = vmatpush1.bf16.msra.mxu0 %v1740_v46  ;;  %v1811_v46 = vld [vmem:[%s2470_s1 + $0x444] ss:$8 sps:$4 sm:$0xff]  }
  0x5c   :  { %1060 = vmatprep.subr.bf16.mxu0 %v1748_v47  ;;  %1110 = vmatpush1.bf16.msra.mxu1 %v1743_v48  ;;  %v1809_v47 = vld [vmem:[%s2470_s1 + $0x440] ss:$8 sps:$4 sm:$0xff]   ;;  %v1840_v48 = vmov 0  }
  0x5d   :  { %1111 = vmatprep.subr.bf16.mxu1 %v1751_v51  ;;  %v1817_v51 = vld [vmem:[%s2470_s1 + $0x424] ss:$8 sps:$4 sm:$0xff]  }
  0x5f   :  { %1061 = vmatpush1.bf16.msra.mxu0 %v1746_v53  ;;  %v1820_v53 = vld [vmem:[%s2470_s1 + $0x414] ss:$8 sps:$4 sm:$0xff]  }
  0x60   :  { %1062 = vmatprep.subr.bf16.mxu0 %v1754_v54  ;;  %1112 = vmatpush1.bf16.msra.mxu1 %v1749_v57  ;;  %v1818_v54 = vld [vmem:[%s2470_s1 + $0x410] ss:$8 sps:$4 sm:$0xff]   ;;  %v31_v57 = vld [vmem:[%s2471_s0 + $0x40] sm:$0xff] }
  0x61   :  { %1113 = vmatprep.subr.bf16.mxu1 %v1757_v59  ;;  %v58_v59 = vpack.c.bf16 %v40_v58, %v31_v57 }
  0x63   :  { %1063 = vmatpush2.bf16.msra.mxu0 %v1752_v60  ;;  %v49_v60 = vld [vmem:[%s2471_s0 + $0xd0] sm:$0xff] }
  0x64   :  { %1064 = vmatprep.subr.bf16.mxu0 %v1760_v61  ;;  %1114 = vmatpush2.bf16.msra.mxu1 %v1755_v62  ;;  %v67_v61 = vpack.c.bf16 %v49_v60, %v49_v60  ;;  %v1824_v62 = vld [vmem:[%s2472_s3 + $0x78] sm:$0xff]  }
  0x65   :  { %1115 = vmatprep.subr.bf16.mxu1 %v1763_v63  ;;  %v1825_v63 = vld [vmem:[%s2472_s3 + $0x38] sm:$0xff]  }
  0x67   :  { %1065 = vmatpush2.bf16.msra.mxu0 %v1758_v0  ;;  %v1826_v0 = vld [vmem:[%s2472_s3 + $0x70] sm:$0xff]  }
  0x68   :  { %1066 = vmatprep.subr.bf16.mxu0 %v1766_v1  ;;  %1116 = vmatpush2.bf16.msra.mxu1 %v1761_v2  ;;  %v1827_v1 = vld [vmem:[%s2472_s3 + $0x30] sm:$0xff]   ;;  %v1828_v2 = vld [vmem:[%s2472_s3 + $0x68] sm:$0xff]  }
  0x69   :  { %1117 = vmatprep.subr.bf16.mxu1 %v1769_v3  ;;  %v1829_v3 = vld [vmem:[%s2472_s3 + $0x28] sm:$0xff]  }
  0x6b   :  { %1067 = vmatpush2.bf16.msra.mxu0 %v1764_v4  ;;  %v1830_v4 = vld [vmem:[%s2472_s3 + $0x60] sm:$0xff]  }
  0x6c   :  { %1068 = vmatprep.subr.bf16.mxu0 %v1772_v5  ;;  %1118 = vmatpush2.bf16.msra.mxu1 %v1767_v6  ;;  %v1831_v5 = vld [vmem:[%s2472_s3 + $0x20] sm:$0xff]   ;;  %v1832_v6 = vld [vmem:[%s2472_s3 + $0x58] sm:$0xff]  }
  0x6d   :  { %1119 = vmatprep.subr.bf16.mxu1 %v1775_v7  ;;  %v1833_v7 = vld [vmem:[%s2472_s3 + $0x18] sm:$0xff]  }
  0x6f   :  { %1069 = vmatpush2.bf16.msra.mxu0 %v1770_v8  ;;  %v1834_v8 = vld [vmem:[%s2472_s3 + $0x50] sm:$0xff]  }
  0x70   :  { %1070 = vmatprep.subr.bf16.mxu0 %v1778_v9  ;;  %1120 = vmatpush2.bf16.msra.mxu1 %v1773_v10  ;;  %v1835_v9 = vld [vmem:[%s2472_s3 + $0x10] sm:$0xff]   ;;  %v1836_v10 = vld [vmem:[%s2472_s3 + $0x48] sm:$0xff]  }
  0x71   :  { %1121 = vmatprep.subr.bf16.mxu1 %v1781_v11  ;;  %v1837_v11 = vld [vmem:[%s2472_s3 + $0x8] sm:$0xff]  }
  0x73   :  { %1071 = vmatpush2.bf16.msra.mxu0 %v1776_v12  ;;  %v1838_v12 = vld [vmem:[%s2472_s3 + $0x40] sm:$0xff]  }
  0x74   :  { %1072 = vmatprep.subr.bf16.mxu0 %v1784_v13  ;;  %1122 = vmatpush2.bf16.msra.mxu1 %v1779_v14  ;;  %v1839_v13 = vld [vmem:[%s2472_s3] sm:$0xff]   ;;  %v214_v14 = vlaneseq }
  0x75   :  { %1123 = vmatprep.subr.bf16.mxu1 %v1787_v15 }
  0x76   :  { %v215_v15 = vshrl.u32 %v214_v14, 7 }
  0x77   :  { %1073 = vmatpush2.bf16.msra.mxu0 %v1782_v16 }
  0x78   :  { %1074 = vmatprep.subr.bf16.mxu0 %v1790_v17  ;;  %1124 = vmatpush2.bf16.msra.mxu1 %v1785_v18  ;;  %v216_v16 = vsub.s32 0, %v215_v15  ;;  %v212_v17 = vld [vmem:[%s2473_s2] sm:$0x3]  ;;  %v220_v18 = vsub.s32 1, %v215_v15 }
  0x79   :  { %1125 = vmatprep.subr.bf16.mxu1 %v1793_v19 }
  0x7a   :  { %v217_v19 = vrot.slane %v212_v17, %v216_v16 }
  0x7b   :  { %1075 = vmatpush2.bf16.msra.mxu0 %v1788_v20  ;;  %v221_v20 = vrot.slane %v212_v17, %v220_v18 }
  0x7c   :  { %1076 = vmatprep.subr.bf16.mxu0 %v1796_v21  ;;  %1126 = vmatpush2.bf16.msra.mxu1 %v1791_v22 }
  0x7d   :  { %1127 = vmatprep.subr.bf16.mxu1 %v1799_v23 }
  0x7f   :  { %1077 = vmatpush2.bf16.msra.mxu0 %v1794_v24 }
  0x80   :  { %1148 = vmatprep.subr.bf16.mxu0 %v1802_v27  ;;  %1128 = vmatpush2.bf16.msra.mxu1 %v1797_v29 }
  0x81   :  { %1579 = vmatprep.subr.bf16.mxu1 %v1824_v62 }
  0x82   :  { %1079 = vmatmul.mubr.bf16.vlgmr.msra.gmra.mxu0 %v54_v32 }
  0x83   :  { %1149 = vmatpush1.bf16.msra.mxu0 %v1800_v34  ;;  %1088 = vmatprep.mubr.bf16.mxu0 %v64_v35 }
  0x84   :  { %1130 = vmatmul.mubr.bf16.vlgmr.msra.gmra.mxu1 %v56_v36  ;;  %1150 = vmatprep.subr.bf16.mxu0 %v1805_v37 }
  0x85   :  { %1139 = vmatprep.mubr.bf16.mxu1 %v66_v38  ;;  %1580 = vmatpush3.bf16.msra.mxu1 %v1825_v63 }
  0x86   :  { %1581 = vmatprep.subr.bf16.mxu1 %v1826_v0 }
  0x87   :  { %1151 = vmatpush1.bf16.msra.mxu0 %v1803_v39 }
  0x88   :  { %1152 = vmatprep.subr.bf16.mxu0 %v1808_v41 }
  0x89   :  { %1582 = vmatpush3.bf16.msra.mxu1 %v1827_v1 }
  0x8a   :  { %1089 = vmatmul.mubr.bf16.gmra.mxu0 %v63_v43  ;;  %1583 = vmatprep.subr.bf16.mxu1 %v1828_v2 }
  0x8b   :  { %1153 = vmatpush1.bf16.msra.mxu0 %v1806_v44  ;;  %1180 = vmatprep.mubr.bf16.mxu0 %v1840_v48 }
  0x8c   :  { %1140 = vmatmul.mubr.bf16.gmra.mxu1 %v65_v45  ;;  %1154 = vmatprep.subr.bf16.mxu0 %v1811_v46 }
  0x8d   :  { %1584 = vmatpush3.bf16.msra.mxu1 %v1829_v3 }
  0x8e   :  { %1585 = vmatprep.subr.bf16.mxu1 %v1830_v4 }
  0x8f   :  { %1155 = vmatpush1.bf16.msra.mxu0 %v1809_v47 }
  0x90   :  { %1156 = vmatprep.subr.bf16.mxu0 %v1814_v49 }
  0x91   :  { %1586 = vmatpush3.bf16.msra.mxu1 %v1831_v5 }
  0x92   :  { %1587 = vmatprep.subr.bf16.mxu1 %v1832_v6 }
  0x93   :  { %1157 = vmatpush1.bf16.msra.mxu0 %v1812_v50 }
  0x94   :  { %1158 = vmatprep.subr.bf16.mxu0 %v1817_v51 }
  0x95   :  { %1588 = vmatpush3.bf16.msra.mxu1 %v1833_v7 }
  0x96   :  { %1589 = vmatprep.subr.bf16.mxu1 %v1834_v8 }
  0x97   :  { %1159 = vmatpush1.bf16.msra.mxu0 %v1815_v52 }
  0x98   :  { %1160 = vmatprep.subr.bf16.mxu0 %v1820_v53 }
  0x99   :  { %1590 = vmatpush3.bf16.msra.mxu1 %v1835_v9 }
  0x9a   :  { %1591 = vmatprep.subr.bf16.mxu1 %v1836_v10 }
  0x9b   :  { %1161 = vmatpush1.bf16.msra.mxu0 %v1818_v54 }
  0x9c   :  { %1162 = vmatprep.subr.bf16.mxu0 %v1823_v55 }
  0x9d   :  { %1592 = vmatpush3.bf16.msra.mxu1 %v1837_v11 }
  0x9e   :  { %1593 = vmatprep.subr.bf16.mxu1 %v1838_v12 }
  0x9f   :  { %1163 = vmatpush1.bf16.msra.mxu0 %v1821_v56 }
  0xa1   :  { %1594 = vmatpush3.bf16.msra.mxu1 %v1839_v13 }
  0xa2   :  { %1181 = vmatmul.mubr.bf16.vlgmr.msra.gmra.mxu0 %v58_v59 }
  0xa3   :  { %1190 = vmatprep.mubr.bf16.mxu0 %v1840_v48 }
  0xaa   :  { %1191 = vmatmul.mubr.bf16.gmra.mxu0 %v67_v61 }
 0x102   :  { %v978_v21 = vpop.f32.mrf.mxu0 }
 0x103   :  { %v979_v22 = vadd.f32 %v978_v21, %v217_v19  ;;  %v1029_v24 = vpop.f32.mrf.mxu1 }
 0x104   :  { %v980_v23 = vpop.f32.mrf.mxu0 }
 0x105   :  { %v981_v25 = vadd.f32 %v980_v23, %v221_v20  ;;  %v1030_v26 = vadd.f32 %v1029_v24, %v979_v22  ;;  %v1031_v28 = vpop.f32.mrf.mxu1 }
 0x106   :  { %v982_v27 = vpop.f32.mrf.mxu0 }
 0x107   :  { %v983_v29 = vadd.f32 %v982_v27, %v217_v19  ;;  %v1032_v30 = vadd.f32 %v1031_v28, %v981_v25  ;;  %v1033_v32 = vpop.f32.mrf.mxu1 }
 0x108   :  { %v984_v31 = vpop.f32.mrf.mxu0 }
 0x109   :  { %v985_v33 = vadd.f32 %v984_v31, %v221_v20  ;;  %v1034_v34 = vadd.f32 %v1033_v32, %v983_v29  ;;  %v1035_v35 = vpop.f32.mrf.mxu1 }
 0x10a   :  { %v988_v37 = vpop.f32.mrf.mxu0 }
 0x10b   :  { %v1036_v36 = vadd.f32 %v1035_v35, %v985_v33  ;;  %v989_v38 = vadd.f32 %v988_v37, %v217_v19  ;;  %v1039_v42 = vpop.f32.mrf.mxu1 }
 0x10c   :  { %v990_v39 = vpop.f32.mrf.mxu0 }
 0x10d   :  { %v991_v40 = vadd.f32 %v990_v39, %v221_v20  ;;  %v1040_v43 = vadd.f32 %v1039_v42, %v989_v38  ;;  %v1041_v45 = vpop.f32.mrf.mxu1  ;;  %v1562_v38 = vld [vmem:[%s2475_s4] ss:$0 sm:$0xff] }
 0x10e   :  { %v992_v41 = vpop.f32.mrf.mxu0 }
 0x10f   :  { %v1042_v46 = vadd.f32 %v1041_v45, %v991_v40  ;;  %v1043_v47 = vpop.f32.mrf.mxu1 }
 0x110   :  { %v993_v44 = vpop.f32.mrf.mxu0 }
 0x111   :  { %v1044_v48 = vpop.f32.mrf.mxu1 }
 0x142   :  { %v1080_v49 = vpop.f32.mrf.mxu0 }
 0x143   :  { %v1081_v1 = vadd.f32 %v1080_v49, %v1030_v26 }
 0x144   :  { %v1082_v50 = vpop.f32.mrf.mxu0  ;;  %v1131_v51 = vpop.f32.mrf.mxu1 }
 0x145   :  { %v1083_v2 = vadd.f32 %v1082_v50, %v1032_v30  ;;  %v1132_v3 = vadd.f32 %v1131_v51, %v1081_v1 }
 0x146   :  { %v1084_v52 = vpop.f32.mrf.mxu0  ;;  %v1133_v53 = vpop.f32.mrf.mxu1 }
 0x147   :  { %v1085_v4 = vadd.f32 %v1084_v52, %v1034_v34  ;;  %v1134_v6 = vadd.f32 %v1133_v53, %v1083_v2 }
 0x148   :  { %v1086_v54 = vpop.f32.mrf.mxu0  ;;  %v1135_v55 = vpop.f32.mrf.mxu1 }
 0x149   :  { %v1087_v7 = vadd.f32 %v1086_v54, %v1036_v36  ;;  %v1136_v10 = vadd.f32 %v1135_v55, %v1085_v4 }
 0x14a   :  { %v1090_v56 = vpop.f32.mrf.mxu0  ;;  %v1137_v57 = vpop.f32.mrf.mxu1 }
 0x14b   :  { %v1091_v11 = vadd.f32 %v1090_v56, %v1040_v43  ;;  %v1138_v15 = vadd.f32 %v1137_v57, %v1087_v7 }
 0x14c   :  { %v1092_v58 = vpop.f32.mrf.mxu0  ;;  %v1141_v59 = vpop.f32.mrf.mxu1 }
 0x14d   :  { %v1093_v16 = vadd.f32 %v1092_v58, %v1042_v46  ;;  %v1142_v20 = vadd.f32 %v1141_v59, %v1091_v11 }
 0x14e   :  { %v1143_v60 = vpop.f32.mrf.mxu1  ;;  %v1094_v61 = vpop.f32.mrf.mxu0 }
 0x14f   :  { %v1144_v24 = vadd.f32 %v1143_v60, %v1093_v16 }
 0x150   :  { %v1095_v62 = vpop.f32.mrf.mxu0  ;;  %v1145_v63 = vpop.f32.mrf.mxu1 }
 0x152   :  { %v1146_v0 = vpop.f32.mrf.mxu1 }
 0x162   :  { %v1182_v5 = vpop.f32.mrf.mxu0 }
 0x163   :  { %v1183_v8 = vadd.f32 %v1182_v5, %v1132_v3 }
 0x164   :  { %v1184_v9 = vpop.f32.mrf.mxu0 }
 0x165   :  { %v1199_v12 = vmax.f32 %v1183_v8, 0.0  ;;  %v1185_v13 = vadd.f32 %v1184_v9, %v1134_v6 }
 0x166   :  { %v1186_v14 = vpop.f32.mrf.mxu0 }
 0x167   :  { %1205 = vst [vmem:[%s2474_s5] sm:$0xff] %v1199_v12  ;;  %v1200_v17 = vmax.f32 %v1185_v13, 0.0  ;;  %v1187_v18 = vadd.f32 %v1186_v14, %v1136_v10 }
 0x168   :  { %v1188_v19 = vpop.f32.mrf.mxu0 }
 0x169   :  { %1206 = vst [vmem:[%s2474_s5 + $0x8] sm:$0xff] %v1200_v17  ;;  %v1201_v21 = vmax.f32 %v1187_v18, 0.0  ;;  %v1189_v22 = vadd.f32 %v1188_v19, %v1138_v15 }
 0x16a   :  { %v1192_v23 = vpop.f32.mrf.mxu0 }
 0x16b   :  { %1207 = vst [vmem:[%s2474_s5 + $0x10] sm:$0xff] %v1201_v21  ;;  %v1202_v25 = vmax.f32 %v1189_v22, 0.0  ;;  %v1193_v26 = vadd.f32 %v1192_v23, %v1142_v20  ;;  %v1217_v27 = vpack.c.bf16 %v1201_v21, %v1199_v12 }
 0x16c   :  { %v1194_v28 = vpop.f32.mrf.mxu0 }
 0x16d   :  { %1208 = vst [vmem:[%s2474_s5 + $0x18] sm:$0xff] %v1202_v25  ;;  %v1203_v29 = vmax.f32 %v1193_v26, 0.0  ;;  %v1195_v30 = vadd.f32 %v1194_v28, %v1144_v24  ;;  %v1218_v31 = vpack.c.bf16 %v1202_v25, %v1200_v17 }
 0x16e   :  { %v1196_v32 = vpop.f32.mrf.mxu0 }
 0x16f   :  { %1209 = vst [vmem:[%s2474_s5 + $0x20] sm:$0xff] %v1203_v29  ;;  %v1204_v33 = vmax.f32 %v1195_v30, 0.0  ;;  %1388 = vmatprep.mubr.bf16.mxu1 %v1218_v31  ;;  %v1219_v36 = vpack.c.bf16 %v1203_v29, %v1203_v29 }
 0x170   :  { %v1197_v34 = vpop.f32.mrf.mxu0  ;;  %1389 = vmatmul.mubr.bf16.vlgmr.msra.gmra.mxu1 %v1217_v27 }
 0x171   :  { %1210 = vst [vmem:[%s2474_s5 + $0x28] sm:$0xff] %v1204_v33  ;;  %v1220_v35 = vpack.c.bf16 %v1204_v33, %v1204_v33 }
 0x173   :  { %1396 = vmatprep.mubr.bf16.mxu1 %v1220_v35 }
 0x178   :  { %1397 = vmatmul.mubr.bf16.gmra.mxu1 %v1219_v36 }
 0x230   :  { %v1595_v37 = vpop.f32.mrf.mxu1 }
 0x232   :  { %v1596_v39 = vpop.f32.mrf.mxu1 }
 0x233   :  { %v1597_v40 = vadd.f32 %v1596_v39, %v1595_v37 }
 0x234   :  { %v1598_v41 = vpop.f32.mrf.mxu1 }
 0x235   :  { %v1391_v42 = vadd.f32 %v1597_v40, %v1562_v38 }
 0x236   :  { %v1599_v43 = vpop.f32.mrf.mxu1 }
 0x237   :  { %v1404_v44 = vmax.f32 %v1391_v42, 0.0  ;;  %v1600_v45 = vadd.f32 %v1599_v43, %v1598_v41 }
 0x238   :  { %v1601_v46 = vpop.f32.mrf.mxu1 }
 0x239   :  { %1407 = vst [vmem:[%s2476_s6] sm:$0xff] %v1404_v44  ;;  %v1394_v47 = vadd.f32 %v1600_v45, %v1562_v38 }
 0x23a   :  { %v1602_v48 = vpop.f32.mrf.mxu1 }
 0x23b   :  { %v1405_v49 = vmax.f32 %v1394_v47, 0.0  ;;  %v1603_v50 = vadd.f32 %v1602_v48, %v1601_v46 }
 0x23c   :  { %v1604_v51 = vpop.f32.mrf.mxu1 }
 0x23d   :  { %1408 = vst [vmem:[%s2476_s6 + $0x8] sm:$0xff] %v1405_v49  ;;  %v1399_v52 = vadd.f32 %v1603_v50, %v1562_v38 }
 0x23e   :  { %v1605_v53 = vpop.f32.mrf.mxu1 }
 0x23f   :  { %v1406_v54 = vmax.f32 %v1399_v52, 0.0 }
 0x241   :  { %1409 = vst [vmem:[%s2476_s6 + $0x10] sm:$0xff] %v1406_v54 }

// kernel: aux_layers_forward.9
= control target key start
LH: loop header
LB: loop body
LE: loop exit
PB: predicated region body
PF: predicated region fallthrough
CT: control target
= control target key end

     0   :  { %s1972_s1 = inlined_call_operand.vmem [shape: bf16[1152,256], index: 1, kind: input, shape index: {}]   ;;  %s1973_s0 = inlined_call_operand.vmem [shape: f32[8,1152], index: 0, kind: input, shape index: {}]   ;;  %s1974_s2 = inlined_call_operand.vmem [shape: f32[1,256], index: 2, kind: input, shape index: {}]   ;;  %s1975_s3 = inlined_call_operand.vmem [shape: f32[8,256], index: 3, kind: output, shape index: {}]  }
   0x1   :  { %v1267_v0 = vld [vmem:[%s1972_s1 + $0x74] ss:$8 sps:$4 sm:$0xff]   ;;  %v1269_v1 = vld [vmem:[%s1972_s1 + $0x70] ss:$8 sps:$4 sm:$0xff]   ;;  %v1273_v4 = vld [vmem:[%s1972_s1 + $0x64] ss:$8 sps:$4 sm:$0xff]  }
   0x2   :  { %909 = vmatprep.subr.bf16.mxu0 %v1267_v0  ;;  %v1270_v2 = vld [vmem:[%s1972_s1 + $0x174] ss:$8 sps:$4 sm:$0xff]   ;;  %v1272_v3 = vld [vmem:[%s1972_s1 + $0x170] ss:$8 sps:$4 sm:$0xff]   ;;  %v1275_v5 = vld [vmem:[%s1972_s1 + $0x60] ss:$8 sps:$4 sm:$0xff]  }
   0x3   :  { %910 = vmatpush1.bf16.msra.mxu0 %v1269_v1  ;;  %950 = vmatprep.subr.bf16.mxu1 %v1270_v2  ;;  %v1276_v6 = vld [vmem:[%s1972_s1 + $0x164] ss:$8 sps:$4 sm:$0xff]   ;;  %v1278_v7 = vld [vmem:[%s1972_s1 + $0x160] ss:$8 sps:$4 sm:$0xff]   ;;  %v1279_v8 = vld [vmem:[%s1972_s1 + $0x54] ss:$8 sps:$4 sm:$0xff]  }
   0x4   :  { %951 = vmatpush1.bf16.msra.mxu1 %v1272_v3  ;;  %911 = vmatprep.subr.bf16.mxu0 %v1273_v4  ;;  %v1281_v9 = vld [vmem:[%s1972_s1 + $0x50] ss:$8 sps:$4 sm:$0xff]   ;;  %v1282_v10 = vld [vmem:[%s1972_s1 + $0x154] ss:$8 sps:$4 sm:$0xff]   ;;  %v1285_v11 = vld [vmem:[%s1972_s1 + $0x44] ss:$8 sps:$4 sm:$0xff]  }
   0x5   :  { %952 = vmatprep.subr.bf16.mxu1 %v1276_v6  ;;  %v1284_v12 = vld [vmem:[%s1972_s1 + $0x150] ss:$8 sps:$4 sm:$0xff]   ;;  %v1288_v13 = vld [vmem:[%s1972_s1 + $0x144] ss:$8 sps:$4 sm:$0xff]   ;;  %v1287_v14 = vld [vmem:[%s1972_s1 + $0x40] ss:$8 sps:$4 sm:$0xff]  }
   0x6   :  { %v1291_v15 = vld [vmem:[%s1972_s1 + $0x34] ss:$8 sps:$4 sm:$0xff]   ;;  %v1290_v16 = vld [vmem:[%s1972_s1 + $0x140] ss:$8 sps:$4 sm:$0xff]   ;;  %v1293_v18 = vld [vmem:[%s1972_s1 + $0x30] ss:$8 sps:$4 sm:$0xff]  }
   0x7   :  { %912 = vmatpush1.bf16.msra.mxu0 %v1275_v5  ;;  %v1294_v17 = vld [vmem:[%s1972_s1 + $0x134] ss:$8 sps:$4 sm:$0xff]   ;;  %v1297_v19 = vld [vmem:[%s1972_s1 + $0x24] ss:$8 sps:$4 sm:$0xff]   ;;  %v1296_v20 = vld [vmem:[%s1972_s1 + $0x130] ss:$8 sps:$4 sm:$0xff]  }
   0x8   :  { %913 = vmatprep.subr.bf16.mxu0 %v1279_v8  ;;  %953 = vmatpush1.bf16.msra.mxu1 %v1278_v7  ;;  %v1300_v21 = vld [vmem:[%s1972_s1 + $0x124] ss:$8 sps:$4 sm:$0xff]   ;;  %v1299_v22 = vld [vmem:[%s1972_s1 + $0x20] ss:$8 sps:$4 sm:$0xff]   ;;  %v1303_v23 = vld [vmem:[%s1972_s1 + $0x14] ss:$8 sps:$4 sm:$0xff]  }
   0x9   :  { %954 = vmatprep.subr.bf16.mxu1 %v1282_v10  ;;  %v1302_v24 = vld [vmem:[%s1972_s1 + $0x120] ss:$8 sps:$4 sm:$0xff]   ;;  %v1306_v25 = vld [vmem:[%s1972_s1 + $0x114] ss:$8 sps:$4 sm:$0xff]   ;;  %v1305_v26 = vld [vmem:[%s1972_s1 + $0x10] ss:$8 sps:$4 sm:$0xff]  }
   0xa   :  { %v1309_v27 = vld [vmem:[%s1972_s1 + $0x4] ss:$8 sps:$4 sm:$0xff]   ;;  %v1308_v28 = vld [vmem:[%s1972_s1 + $0x110] ss:$8 sps:$4 sm:$0xff]   ;;  %v1311_v30 = vld [vmem:[%s1972_s1] ss:$8 sps:$4 sm:$0xff]  }
   0xb   :  { %914 = vmatpush1.bf16.msra.mxu0 %v1281_v9  ;;  %v1312_v29 = vld [vmem:[%s1972_s1 + $0x104] ss:$8 sps:$4 sm:$0xff]   ;;  %v1315_v31 = vld [vmem:[%s1972_s1 + $0xf4] ss:$8 sps:$4 sm:$0xff]   ;;  %v1314_v32 = vld [vmem:[%s1972_s1 + $0x100] ss:$8 sps:$4 sm:$0xff]  }
   0xc   :  { %915 = vmatprep.subr.bf16.mxu0 %v1285_v11  ;;  %955 = vmatpush1.bf16.msra.mxu1 %v1284_v12  ;;  %v1318_v33 = vld [vmem:[%s1972_s1 + $0x1f4] ss:$8 sps:$4 sm:$0xff]   ;;  %v1317_v34 = vld [vmem:[%s1972_s1 + $0xf0] ss:$8 sps:$4 sm:$0xff]   ;;  %v1321_v35 = vld [vmem:[%s1972_s1 + $0xe4] ss:$8 sps:$4 sm:$0xff]  }
   0xd   :  { %956 = vmatprep.subr.bf16.mxu1 %v1288_v13  ;;  %v1320_v36 = vld [vmem:[%s1972_s1 + $0x1f0] ss:$8 sps:$4 sm:$0xff]   ;;  %v1324_v37 = vld [vmem:[%s1972_s1 + $0x1e4] ss:$8 sps:$4 sm:$0xff]   ;;  %v1323_v38 = vld [vmem:[%s1972_s1 + $0xe0] ss:$8 sps:$4 sm:$0xff]  }
   0xe   :  { %v1327_v39 = vld [vmem:[%s1972_s1 + $0xd4] ss:$8 sps:$4 sm:$0xff]   ;;  %v1326_v40 = vld [vmem:[%s1972_s1 + $0x1e0] ss:$8 sps:$4 sm:$0xff]   ;;  %v1329_v42 = vld [vmem:[%s1972_s1 + $0xd0] ss:$8 sps:$4 sm:$0xff]  }
   0xf   :  { %916 = vmatpush1.bf16.msra.mxu0 %v1287_v14  ;;  %v1330_v41 = vld [vmem:[%s1972_s1 + $0x1d4] ss:$8 sps:$4 sm:$0xff]   ;;  %v1333_v43 = vld [vmem:[%s1972_s1 + $0xc4] ss:$8 sps:$4 sm:$0xff]   ;;  %v1332_v44 = vld [vmem:[%s1972_s1 + $0x1d0] ss:$8 sps:$4 sm:$0xff]  }
  0x10   :  { %917 = vmatprep.subr.bf16.mxu0 %v1291_v15  ;;  %957 = vmatpush1.bf16.msra.mxu1 %v1290_v16  ;;  %v1336_v45 = vld [vmem:[%s1972_s1 + $0x1c4] ss:$8 sps:$4 sm:$0xff]   ;;  %v1335_v47 = vld [vmem:[%s1972_s1 + $0xc0] ss:$8 sps:$4 sm:$0xff]   ;;  %v1339_v49 = vld [vmem:[%s1972_s1 + $0xb4] ss:$8 sps:$4 sm:$0xff]  }
  0x11   :  { %958 = vmatprep.subr.bf16.mxu1 %v1294_v17  ;;  %v16_v46 = vld [vmem:[%s1973_s0 + $0x8] sm:$0xff]  ;;  %v18_v50 = vld [vmem:[%s1973_s0 + $0x18] sm:$0xff]  ;;  %v15_v4 = vld [vmem:[%s1973_s0] sm:$0xff] }
  0x12   :  { %v25_v48 = vpack.c.bf16 %v16_v46, %v16_v46  ;;  %v1338_v51 = vld [vmem:[%s1972_s1 + $0x1c0] ss:$8 sps:$4 sm:$0xff]   ;;  %v27_v52 = vpack.c.bf16 %v18_v50, %v18_v50  ;;  %v1342_v53 = vld [vmem:[%s1972_s1 + $0x1b4] ss:$8 sps:$4 sm:$0xff]   ;;  %v1341_v54 = vld [vmem:[%s1972_s1 + $0xb0] ss:$8 sps:$4 sm:$0xff]   ;;  %v24_v7 = vpack.c.bf16 %v15_v4, %v15_v4 }
  0x13   :  { %918 = vmatpush1.bf16.msra.mxu0 %v1293_v18  ;;  %v1345_v55 = vld [vmem:[%s1972_s1 + $0xa4] ss:$8 sps:$4 sm:$0xff]   ;;  %v1344_v56 = vld [vmem:[%s1972_s1 + $0x1b0] ss:$8 sps:$4 sm:$0xff]   ;;  %v1347_v58 = vld [vmem:[%s1972_s1 + $0xa0] ss:$8 sps:$4 sm:$0xff]  }
  0x14   :  { %919 = vmatprep.subr.bf16.mxu0 %v1297_v19  ;;  %959 = vmatpush1.bf16.msra.mxu1 %v1296_v20  ;;  %v1348_v57 = vld [vmem:[%s1972_s1 + $0x1a4] ss:$8 sps:$4 sm:$0xff]   ;;  %v1351_v59 = vld [vmem:[%s1972_s1 + $0x94] ss:$8 sps:$4 sm:$0xff]   ;;  %v1350_v60 = vld [vmem:[%s1972_s1 + $0x1a0] ss:$8 sps:$4 sm:$0xff]  }
  0x15   :  { %960 = vmatprep.subr.bf16.mxu1 %v1300_v21  ;;  %941 = vmatprep.mubr.bf16.mxu0 %v25_v48  ;;  %v1354_v61 = vld [vmem:[%s1972_s1 + $0x194] ss:$8 sps:$4 sm:$0xff]   ;;  %v1353_v62 = vld [vmem:[%s1972_s1 + $0x90] ss:$8 sps:$4 sm:$0xff]   ;;  %v1357_v63 = vld [vmem:[%s1972_s1 + $0x84] ss:$8 sps:$4 sm:$0xff]  }
  0x16   :  { %982 = vmatprep.mubr.bf16.mxu1 %v27_v52  ;;  %v1356_v0 = vld [vmem:[%s1972_s1 + $0x190] ss:$8 sps:$4 sm:$0xff]   ;;  %v1359_v1 = vld [vmem:[%s1972_s1 + $0x80] ss:$8 sps:$4 sm:$0xff]   ;;  %v1360_v2 = vld [vmem:[%s1972_s1 + $0x184] ss:$8 sps:$4 sm:$0xff]  }
  0x17   :  { %920 = vmatpush1.bf16.msra.mxu0 %v1299_v22  ;;  %v1362_v3 = vld [vmem:[%s1972_s1 + $0x180] ss:$8 sps:$4 sm:$0xff]   ;;  %v1365_v5 = vld [vmem:[%s1972_s1 + $0x274] ss:$8 sps:$4 sm:$0xff]   ;;  %v1363_v9 = vld [vmem:[%s1972_s1 + $0x270] ss:$8 sps:$4 sm:$0xff]  }
  0x18   :  { %921 = vmatprep.subr.bf16.mxu0 %v1303_v23  ;;  %961 = vmatpush1.bf16.msra.mxu1 %v1302_v24  ;;  %v17_v6 = vld [vmem:[%s1973_s0 + $0x10] sm:$0xff]  ;;  %v1371_v11 = vld [vmem:[%s1972_s1 + $0x264] ss:$8 sps:$4 sm:$0xff]   ;;  %v1369_v14 = vld [vmem:[%s1972_s1 + $0x260] ss:$8 sps:$4 sm:$0xff]  }
  0x19   :  { %962 = vmatprep.subr.bf16.mxu1 %v1306_v25  ;;  %v1368_v8 = vld [vmem:[%s1972_s1 + $0x374] ss:$8 sps:$4 sm:$0xff]   ;;  %v26_v10 = vpack.c.bf16 %v17_v6, %v17_v6  ;;  %v1366_v12 = vld [vmem:[%s1972_s1 + $0x370] ss:$8 sps:$4 sm:$0xff]   ;;  %v1374_v13 = vld [vmem:[%s1972_s1 + $0x364] ss:$8 sps:$4 sm:$0xff]  }
  0x1a   :  { %v1377_v15 = vld [vmem:[%s1972_s1 + $0x254] ss:$8 sps:$4 sm:$0xff]   ;;  %v1372_v16 = vld [vmem:[%s1972_s1 + $0x360] ss:$8 sps:$4 sm:$0xff]   ;;  %v1375_v18 = vld [vmem:[%s1972_s1 + $0x250] ss:$8 sps:$4 sm:$0xff]  }
  0x1b   :  { %922 = vmatpush1.bf16.msra.mxu0 %v1305_v26  ;;  %v1380_v17 = vld [vmem:[%s1972_s1 + $0x354] ss:$8 sps:$4 sm:$0xff]   ;;  %v1383_v19 = vld [vmem:[%s1972_s1 + $0x244] ss:$8 sps:$4 sm:$0xff]   ;;  %v1378_v20 = vld [vmem:[%s1972_s1 + $0x350] ss:$8 sps:$4 sm:$0xff]  }
  0x1c   :  { %923 = vmatprep.subr.bf16.mxu0 %v1309_v27  ;;  %963 = vmatpush1.bf16.msra.mxu1 %v1308_v28  ;;  %v1386_v21 = vld [vmem:[%s1972_s1 + $0x344] ss:$8 sps:$4 sm:$0xff]   ;;  %v1381_v22 = vld [vmem:[%s1972_s1 + $0x240] ss:$8 sps:$4 sm:$0xff]   ;;  %v1389_v23 = vld [vmem:[%s1972_s1 + $0x234] ss:$8 sps:$4 sm:$0xff]  }
  0x1d   :  { %964 = vmatprep.subr.bf16.mxu1 %v1312_v29  ;;  %v1384_v24 = vld [vmem:[%s1972_s1 + $0x340] ss:$8 sps:$4 sm:$0xff]   ;;  %v1392_v25 = vld [vmem:[%s1972_s1 + $0x334] ss:$8 sps:$4 sm:$0xff]   ;;  %v1387_v26 = vld [vmem:[%s1972_s1 + $0x230] ss:$8 sps:$4 sm:$0xff]  }
  0x1e   :  { %v1395_v27 = vld [vmem:[%s1972_s1 + $0x224] ss:$8 sps:$4 sm:$0xff]   ;;  %v1390_v28 = vld [vmem:[%s1972_s1 + $0x330] ss:$8 sps:$4 sm:$0xff]   ;;  %v1417_v50 = vld [vmem:[%s1972_s1 + $0x2e0] ss:$8 sps:$4 sm:$0xff]  }
  0x1f   :  { %924 = vmatpush1.bf16.msra.mxu0 %v1311_v30  ;;  %v1398_v29 = vld [vmem:[%s1972_s1 + $0x324] ss:$8 sps:$4 sm:$0xff]   ;;  %v1393_v30 = vld [vmem:[%s1972_s1 + $0x220] ss:$8 sps:$4 sm:$0xff]   ;;  %v1411_v46 = vld [vmem:[%s1972_s1 + $0x2f0] ss:$8 sps:$4 sm:$0xff]  }
  0x20   :  { %925 = vmatprep.subr.bf16.mxu0 %v1315_v31  ;;  %965 = vmatpush1.bf16.msra.mxu1 %v1314_v32  ;;  %v1401_v31 = vld [vmem:[%s1972_s1 + $0x214] ss:$8 sps:$4 sm:$0xff]   ;;  %v1396_v32 = vld [vmem:[%s1972_s1 + $0x320] ss:$8 sps:$4 sm:$0xff]   ;;  %v1414_v48 = vld [vmem:[%s1972_s1 + $0x3f0] ss:$8 sps:$4 sm:$0xff]  }
  0x21   :  { %966 = vmatprep.subr.bf16.mxu1 %v1318_v33  ;;  %v1404_v33 = vld [vmem:[%s1972_s1 + $0x314] ss:$8 sps:$4 sm:$0xff]   ;;  %v1420_v52 = vld [vmem:[%s1972_s1 + $0x3e0] ss:$8 sps:$4 sm:$0xff]   ;;  %v1447_v6 = vld [vmem:[%s1972_s1 + $0x290] ss:$8 sps:$4 sm:$0xff]  }
  0x22   :  { %v1444_v4 = vld [vmem:[%s1972_s1 + $0x3a0] ss:$8 sps:$4 sm:$0xff]  }
  0x23   :  { %926 = vmatpush2.bf16.msra.mxu0 %v1317_v34  ;;  %v20_v34 = vld [vmem:[%s1973_s0 + $0x28] sm:$0xff] }
  0x24   :  { %927 = vmatprep.subr.bf16.mxu0 %v1321_v35  ;;  %967 = vmatpush2.bf16.msra.mxu1 %v1320_v36  ;;  %v1399_v35 = vld [vmem:[%s1972_s1 + $0x210] ss:$8 sps:$4 sm:$0xff]   ;;  %v29_v36 = vpack.c.bf16 %v20_v34, %v20_v34 }
  0x25   :  { %968 = vmatprep.subr.bf16.mxu1 %v1324_v37  ;;  %v1407_v37 = vld [vmem:[%s1972_s1 + $0x204] ss:$8 sps:$4 sm:$0xff]  }
  0x27   :  { %928 = vmatpush2.bf16.msra.mxu0 %v1323_v38  ;;  %v22_v38 = vld [vmem:[%s1973_s0 + $0x38] sm:$0xff] }
  0x28   :  { %929 = vmatprep.subr.bf16.mxu0 %v1327_v39  ;;  %969 = vmatpush2.bf16.msra.mxu1 %v1326_v40  ;;  %v1402_v39 = vld [vmem:[%s1972_s1 + $0x310] ss:$8 sps:$4 sm:$0xff]   ;;  %v31_v40 = vpack.c.bf16 %v22_v38, %v22_v38  ;;  %v177_v38 = vld [vmem:[%s1974_s2] sm:$0x3] }
  0x29   :  { %970 = vmatprep.subr.bf16.mxu1 %v1330_v41  ;;  %v1410_v41 = vld [vmem:[%s1972_s1 + $0x304] ss:$8 sps:$4 sm:$0xff]  }
  0x2b   :  { %930 = vmatpush2.bf16.msra.mxu0 %v1329_v42  ;;  %v1405_v42 = vld [vmem:[%s1972_s1 + $0x200] ss:$8 sps:$4 sm:$0xff]  }
  0x2c   :  { %931 = vmatprep.subr.bf16.mxu0 %v1333_v43  ;;  %971 = vmatpush2.bf16.msra.mxu1 %v1332_v44  ;;  %v1413_v43 = vld [vmem:[%s1972_s1 + $0x2f4] ss:$8 sps:$4 sm:$0xff]   ;;  %v1408_v44 = vld [vmem:[%s1972_s1 + $0x300] ss:$8 sps:$4 sm:$0xff]  }
  0x2d   :  { %972 = vmatprep.subr.bf16.mxu1 %v1336_v45  ;;  %v1416_v45 = vld [vmem:[%s1972_s1 + $0x3f4] ss:$8 sps:$4 sm:$0xff]  }
  0x2f   :  { %932 = vmatpush2.bf16.msra.mxu0 %v1335_v47  ;;  %v1419_v47 = vld [vmem:[%s1972_s1 + $0x2e4] ss:$8 sps:$4 sm:$0xff]  }
  0x30   :  { %933 = vmatprep.subr.bf16.mxu0 %v1339_v49  ;;  %973 = vmatpush2.bf16.msra.mxu1 %v1338_v51  ;;  %v1422_v49 = vld [vmem:[%s1972_s1 + $0x3e4] ss:$8 sps:$4 sm:$0xff]   ;;  %v1425_v51 = vld [vmem:[%s1972_s1 + $0x2d4] ss:$8 sps:$4 sm:$0xff]  }
  0x31   :  { %974 = vmatprep.subr.bf16.mxu1 %v1342_v53  ;;  %v1428_v53 = vld [vmem:[%s1972_s1 + $0x3d4] ss:$8 sps:$4 sm:$0xff]  }
  0x33   :  { %934 = vmatpush2.bf16.msra.mxu0 %v1341_v54  ;;  %v1423_v54 = vld [vmem:[%s1972_s1 + $0x2d0] ss:$8 sps:$4 sm:$0xff]  }
  0x34   :  { %935 = vmatprep.subr.bf16.mxu0 %v1345_v55  ;;  %975 = vmatpush2.bf16.msra.mxu1 %v1344_v56  ;;  %v1431_v55 = vld [vmem:[%s1972_s1 + $0x2c4] ss:$8 sps:$4 sm:$0xff]   ;;  %v1426_v56 = vld [vmem:[%s1972_s1 + $0x3d0] ss:$8 sps:$4 sm:$0xff]  }
  0x35   :  { %976 = vmatprep.subr.bf16.mxu1 %v1348_v57  ;;  %v1434_v57 = vld [vmem:[%s1972_s1 + $0x3c4] ss:$8 sps:$4 sm:$0xff]  }
  0x37   :  { %936 = vmatpush2.bf16.msra.mxu0 %v1347_v58  ;;  %v1429_v58 = vld [vmem:[%s1972_s1 + $0x2c0] ss:$8 sps:$4 sm:$0xff]  }
  0x38   :  { %937 = vmatprep.subr.bf16.mxu0 %v1351_v59  ;;  %977 = vmatpush2.bf16.msra.mxu1 %v1350_v60  ;;  %v1437_v59 = vld [vmem:[%s1972_s1 + $0x2b4] ss:$8 sps:$4 sm:$0xff]   ;;  %v1432_v60 = vld [vmem:[%s1972_s1 + $0x3c0] ss:$8 sps:$4 sm:$0xff]  }
  0x39   :  { %978 = vmatprep.subr.bf16.mxu1 %v1354_v61  ;;  %v1440_v61 = vld [vmem:[%s1972_s1 + $0x3b4] ss:$8 sps:$4 sm:$0xff]  }
  0x3b   :  { %938 = vmatpush2.bf16.msra.mxu0 %v1353_v62  ;;  %v1435_v62 = vld [vmem:[%s1972_s1 + $0x2b0] ss:$8 sps:$4 sm:$0xff]  }
  0x3c   :  { %939 = vmatprep.subr.bf16.mxu0 %v1357_v63  ;;  %979 = vmatpush2.bf16.msra.mxu1 %v1356_v0  ;;  %v1443_v63 = vld [vmem:[%s1972_s1 + $0x2a4] ss:$8 sps:$4 sm:$0xff]   ;;  %v1438_v0 = vld [vmem:[%s1972_s1 + $0x3b0] ss:$8 sps:$4 sm:$0xff]  }
  0x3d   :  { %980 = vmatprep.subr.bf16.mxu1 %v1360_v2  ;;  %v1441_v2 = vld [vmem:[%s1972_s1 + $0x2a0] ss:$8 sps:$4 sm:$0xff]  }
  0x3f   :  { %940 = vmatpush2.bf16.msra.mxu0 %v1359_v1  ;;  %v1446_v1 = vld [vmem:[%s1972_s1 + $0x3a4] ss:$8 sps:$4 sm:$0xff]  }
  0x40   :  { %991 = vmatprep.subr.bf16.mxu0 %v1365_v5  ;;  %981 = vmatpush2.bf16.msra.mxu1 %v1362_v3  ;;  %v1449_v3 = vld [vmem:[%s1972_s1 + $0x294] ss:$8 sps:$4 sm:$0xff]  }
  0x41   :  { %1032 = vmatprep.subr.bf16.mxu1 %v1368_v8  ;;  %v1452_v5 = vld [vmem:[%s1972_s1 + $0x394] ss:$8 sps:$4 sm:$0xff]   ;;  %v1450_v8 = vld [vmem:[%s1972_s1 + $0x390] ss:$8 sps:$4 sm:$0xff]  }
  0x42   :  { %942 = vmatmul.mubr.bf16.vlgmr.msra.gmra.mxu0 %v24_v7  ;;  %v1455_v7 = vld [vmem:[%s1972_s1 + $0x284] ss:$8 sps:$4 sm:$0xff]  }
  0x43   :  { %992 = vmatpush1.bf16.msra.mxu0 %v1363_v9  ;;  %983 = vmatmul.mubr.bf16.vlgmr.msra.gmra.mxu1 %v26_v10  ;;  %v1458_v9 = vld [vmem:[%s1972_s1 + $0x384] ss:$8 sps:$4 sm:$0xff]   ;;  %v1453_v10 = vld [vmem:[%s1972_s1 + $0x280] ss:$8 sps:$4 sm:$0xff]  }
  0x44   :  { %993 = vmatprep.subr.bf16.mxu0 %v1371_v11  ;;  %1033 = vmatpush1.bf16.msra.mxu1 %v1366_v12  ;;  %v19_v11 = vld [vmem:[%s1973_s0 + $0x20] sm:$0xff]  ;;  %v1461_v12 = vld [vmem:[%s1972_s1 + $0x474] ss:$8 sps:$4 sm:$0xff]  }
  0x45   :  { %1034 = vmatprep.subr.bf16.mxu1 %v1374_v13  ;;  %1023 = vmatprep.mubr.bf16.mxu0 %v29_v36  ;;  %v1456_v13 = vld [vmem:[%s1972_s1 + $0x380] ss:$8 sps:$4 sm:$0xff]  }
  0x46   :  { %1064 = vmatprep.mubr.bf16.mxu1 %v31_v40 }
  0x47   :  { %994 = vmatpush1.bf16.msra.mxu0 %v1369_v14  ;;  %v21_v14 = vld [vmem:[%s1973_s0 + $0x30] sm:$0xff] }
  0x48   :  { %995 = vmatprep.subr.bf16.mxu0 %v1377_v15  ;;  %1035 = vmatpush1.bf16.msra.mxu1 %v1372_v16  ;;  %v28_v15 = vpack.c.bf16 %v19_v11, %v19_v11  ;;  %v1459_v16 = vld [vmem:[%s1972_s1 + $0x470] ss:$8 sps:$4 sm:$0xff]  }
  0x49   :  { %1036 = vmatprep.subr.bf16.mxu1 %v1380_v17  ;;  %v30_v17 = vpack.c.bf16 %v21_v14, %v21_v14 }
  0x4b   :  { %996 = vmatpush1.bf16.msra.mxu0 %v1375_v18  ;;  %v1464_v18 = vld [vmem:[%s1972_s1 + $0x464] ss:$8 sps:$4 sm:$0xff]  }
  0x4c   :  { %997 = vmatprep.subr.bf16.mxu0 %v1383_v19  ;;  %1037 = vmatpush1.bf16.msra.mxu1 %v1378_v20  ;;  %v1462_v19 = vld [vmem:[%s1972_s1 + $0x460] ss:$8 sps:$4 sm:$0xff]   ;;  %v1483_v20 = vmov 0  }
  0x4d   :  { %1038 = vmatprep.subr.bf16.mxu1 %v1386_v21  ;;  %v1467_v21 = vld [vmem:[%s1972_s1 + $0x454] ss:$8 sps:$4 sm:$0xff]  }
  0x4f   :  { %998 = vmatpush1.bf16.msra.mxu0 %v1381_v22  ;;  %v1465_v22 = vld [vmem:[%s1972_s1 + $0x450] ss:$8 sps:$4 sm:$0xff]  }
  0x50   :  { %999 = vmatprep.subr.bf16.mxu0 %v1389_v23  ;;  %1039 = vmatpush1.bf16.msra.mxu1 %v1384_v24  ;;  %v1470_v23 = vld [vmem:[%s1972_s1 + $0x444] ss:$8 sps:$4 sm:$0xff]   ;;  %v1468_v24 = vld [vmem:[%s1972_s1 + $0x440] ss:$8 sps:$4 sm:$0xff]  }
  0x51   :  { %1040 = vmatprep.subr.bf16.mxu1 %v1392_v25  ;;  %v1473_v25 = vld [vmem:[%s1972_s1 + $0x434] ss:$8 sps:$4 sm:$0xff]  }
  0x53   :  { %1000 = vmatpush1.bf16.msra.mxu0 %v1387_v26  ;;  %v1471_v26 = vld [vmem:[%s1972_s1 + $0x430] ss:$8 sps:$4 sm:$0xff]  }
  0x54   :  { %1001 = vmatprep.subr.bf16.mxu0 %v1395_v27  ;;  %1041 = vmatpush1.bf16.msra.mxu1 %v1390_v28  ;;  %v1476_v27 = vld [vmem:[%s1972_s1 + $0x424] ss:$8 sps:$4 sm:$0xff]   ;;  %v1474_v28 = vld [vmem:[%s1972_s1 + $0x420] ss:$8 sps:$4 sm:$0xff]  }
  0x55   :  { %1042 = vmatprep.subr.bf16.mxu1 %v1398_v29  ;;  %v1479_v29 = vld [vmem:[%s1972_s1 + $0x414] ss:$8 sps:$4 sm:$0xff]  }
  0x57   :  { %1002 = vmatpush1.bf16.msra.mxu0 %v1393_v30  ;;  %v1477_v30 = vld [vmem:[%s1972_s1 + $0x410] ss:$8 sps:$4 sm:$0xff]  }
  0x58   :  { %1003 = vmatprep.subr.bf16.mxu0 %v1401_v31  ;;  %1043 = vmatpush1.bf16.msra.mxu1 %v1396_v32  ;;  %v1482_v31 = vld [vmem:[%s1972_s1 + $0x404] ss:$8 sps:$4 sm:$0xff]   ;;  %v1480_v32 = vld [vmem:[%s1972_s1 + $0x400] ss:$8 sps:$4 sm:$0xff]  }
  0x59   :  { %1044 = vmatprep.subr.bf16.mxu1 %v1404_v33  ;;  %v23_v33 = vld [vmem:[%s1973_s0 + $0x40] sm:$0xff] }
  0x5a   :  { %v32_v34 = vpack.c.bf16 %v23_v33, %v23_v33 }
  0x5b   :  { %1004 = vmatpush1.bf16.msra.mxu0 %v1399_v35  ;;  %v179_v35 = vlaneseq }
  0x5c   :  { %1005 = vmatprep.subr.bf16.mxu0 %v1407_v37  ;;  %1045 = vmatpush1.bf16.msra.mxu1 %v1402_v39 }
  0x5d   :  { %1046 = vmatprep.subr.bf16.mxu1 %v1410_v41  ;;  %v180_v36 = vshrl.u32 %v179_v35, 7 }
  0x5f   :  { %1006 = vmatpush1.bf16.msra.mxu0 %v1405_v42  ;;  %v181_v37 = vsub.s32 0, %v180_v36  ;;  %v185_v39 = vsub.s32 1, %v180_v36 }
  0x60   :  { %1007 = vmatprep.subr.bf16.mxu0 %v1413_v43  ;;  %1047 = vmatpush1.bf16.msra.mxu1 %v1408_v44 }
  0x61   :  { %1048 = vmatprep.subr.bf16.mxu1 %v1416_v45  ;;  %v182_v40 = vrot.slane %v177_v38, %v181_v37  ;;  %v186_v41 = vrot.slane %v177_v38, %v185_v39 }
  0x63   :  { %1008 = vmatpush2.bf16.msra.mxu0 %v1411_v46 }
  0x64   :  { %1009 = vmatprep.subr.bf16.mxu0 %v1419_v47  ;;  %1049 = vmatpush2.bf16.msra.mxu1 %v1414_v48 }
  0x65   :  { %1050 = vmatprep.subr.bf16.mxu1 %v1422_v49 }
  0x67   :  { %1010 = vmatpush2.bf16.msra.mxu0 %v1417_v50 }
  0x68   :  { %1011 = vmatprep.subr.bf16.mxu0 %v1425_v51  ;;  %1051 = vmatpush2.bf16.msra.mxu1 %v1420_v52 }
  0x69   :  { %1052 = vmatprep.subr.bf16.mxu1 %v1428_v53 }
  0x6b   :  { %1012 = vmatpush2.bf16.msra.mxu0 %v1423_v54 }
  0x6c   :  { %1013 = vmatprep.subr.bf16.mxu0 %v1431_v55  ;;  %1053 = vmatpush2.bf16.msra.mxu1 %v1426_v56 }
  0x6d   :  { %1054 = vmatprep.subr.bf16.mxu1 %v1434_v57 }
  0x6f   :  { %1014 = vmatpush2.bf16.msra.mxu0 %v1429_v58 }
  0x70   :  { %1015 = vmatprep.subr.bf16.mxu0 %v1437_v59  ;;  %1055 = vmatpush2.bf16.msra.mxu1 %v1432_v60 }
  0x71   :  { %1056 = vmatprep.subr.bf16.mxu1 %v1440_v61 }
  0x73   :  { %1016 = vmatpush2.bf16.msra.mxu0 %v1435_v62 }
  0x74   :  { %1017 = vmatprep.subr.bf16.mxu0 %v1443_v63  ;;  %1057 = vmatpush2.bf16.msra.mxu1 %v1438_v0 }
  0x75   :  { %1058 = vmatprep.subr.bf16.mxu1 %v1446_v1 }
  0x77   :  { %1018 = vmatpush2.bf16.msra.mxu0 %v1441_v2 }
  0x78   :  { %1019 = vmatprep.subr.bf16.mxu0 %v1449_v3  ;;  %1059 = vmatpush2.bf16.msra.mxu1 %v1444_v4 }
  0x79   :  { %1060 = vmatprep.subr.bf16.mxu1 %v1452_v5 }
  0x7b   :  { %1020 = vmatpush2.bf16.msra.mxu0 %v1447_v6 }
  0x7c   :  { %1021 = vmatprep.subr.bf16.mxu0 %v1455_v7  ;;  %1061 = vmatpush2.bf16.msra.mxu1 %v1450_v8 }
  0x7d   :  { %1062 = vmatprep.subr.bf16.mxu1 %v1458_v9 }
  0x7f   :  { %1022 = vmatpush2.bf16.msra.mxu0 %v1453_v10 }
  0x80   :  { %1073 = vmatprep.subr.bf16.mxu0 %v1461_v12  ;;  %1063 = vmatpush2.bf16.msra.mxu1 %v1456_v13 }
  0x82   :  { %1024 = vmatmul.mubr.bf16.vlgmr.msra.gmra.mxu0 %v28_v15 }
  0x83   :  { %1074 = vmatpush1.bf16.msra.mxu0 %v1459_v16  ;;  %1105 = vmatprep.mubr.bf16.mxu0 %v1483_v20 }
  0x84   :  { %1065 = vmatmul.mubr.bf16.vlgmr.msra.gmra.mxu1 %v30_v17  ;;  %1075 = vmatprep.subr.bf16.mxu0 %v1464_v18 }
  0x87   :  { %1076 = vmatpush1.bf16.msra.mxu0 %v1462_v19 }
  0x88   :  { %1077 = vmatprep.subr.bf16.mxu0 %v1467_v21 }
  0x8b   :  { %1078 = vmatpush1.bf16.msra.mxu0 %v1465_v22 }
  0x8c   :  { %1079 = vmatprep.subr.bf16.mxu0 %v1470_v23 }
  0x8f   :  { %1080 = vmatpush1.bf16.msra.mxu0 %v1468_v24 }
  0x90   :  { %1081 = vmatprep.subr.bf16.mxu0 %v1473_v25 }
  0x93   :  { %1082 = vmatpush1.bf16.msra.mxu0 %v1471_v26 }
  0x94   :  { %1083 = vmatprep.subr.bf16.mxu0 %v1476_v27 }
  0x97   :  { %1084 = vmatpush1.bf16.msra.mxu0 %v1474_v28 }
  0x98   :  { %1085 = vmatprep.subr.bf16.mxu0 %v1479_v29 }
  0x9b   :  { %1086 = vmatpush1.bf16.msra.mxu0 %v1477_v30 }
  0x9c   :  { %1087 = vmatprep.subr.bf16.mxu0 %v1482_v31 }
  0x9f   :  { %1088 = vmatpush1.bf16.msra.mxu0 %v1480_v32 }
  0xa2   :  { %1106 = vmatmul.mubr.bf16.vlgmr.msra.gmra.mxu0 %v32_v34 }
 0x102   :  { %v943_v42 = vpop.f32.mrf.mxu0 }
 0x103   :  { %v944_v43 = vadd.f32 %v943_v42, %v182_v40  ;;  %v984_v45 = vpop.f32.mrf.mxu1 }
 0x104   :  { %v945_v44 = vpop.f32.mrf.mxu0 }
 0x105   :  { %v946_v46 = vadd.f32 %v945_v44, %v186_v41  ;;  %v985_v47 = vadd.f32 %v984_v45, %v944_v43  ;;  %v986_v49 = vpop.f32.mrf.mxu1 }
 0x106   :  { %v947_v48 = vpop.f32.mrf.mxu0 }
 0x107   :  { %v987_v50 = vadd.f32 %v986_v49, %v946_v46  ;;  %v988_v52 = vpop.f32.mrf.mxu1 }
 0x108   :  { %v948_v51 = vpop.f32.mrf.mxu0 }
 0x109   :  { %v989_v53 = vpop.f32.mrf.mxu1 }
 0x142   :  { %v1025_v54 = vpop.f32.mrf.mxu0 }
 0x143   :  { %v1026_v62 = vadd.f32 %v1025_v54, %v985_v47 }
 0x144   :  { %v1027_v55 = vpop.f32.mrf.mxu0  ;;  %v1066_v56 = vpop.f32.mrf.mxu1 }
 0x145   :  { %v1028_v63 = vadd.f32 %v1027_v55, %v987_v50  ;;  %v1067_v0 = vadd.f32 %v1066_v56, %v1026_v62 }
 0x146   :  { %v1029_v57 = vpop.f32.mrf.mxu0  ;;  %v1068_v58 = vpop.f32.mrf.mxu1 }
 0x147   :  { %v1069_v2 = vadd.f32 %v1068_v58, %v1028_v63 }
 0x148   :  { %v1030_v59 = vpop.f32.mrf.mxu0  ;;  %v1070_v60 = vpop.f32.mrf.mxu1 }
 0x14a   :  { %v1071_v61 = vpop.f32.mrf.mxu1 }
 0x162   :  { %v1107_v1 = vpop.f32.mrf.mxu0 }
 0x163   :  { %v1108_v3 = vadd.f32 %v1107_v1, %v1067_v0 }
 0x164   :  { %v1109_v4 = vpop.f32.mrf.mxu0 }
 0x165   :  { %v1114_v5 = vmax.f32 %v1108_v3, 0.0  ;;  %v1110_v6 = vadd.f32 %v1109_v4, %v1069_v2 }
 0x166   :  { %v1111_v7 = vpop.f32.mrf.mxu0 }
 0x167   :  { %1116 = vst [vmem:[%s1975_s3] sm:$0xff] %v1114_v5  ;;  %v1115_v8 = vmax.f32 %v1110_v6, 0.0 }
 0x168   :  { %v1112_v9 = vpop.f32.mrf.mxu0 }
 0x169   :  { %1117 = vst [vmem:[%s1975_s3 + $0x8] sm:$0xff] %v1115_v8 }

</bundles_post_ra>
